<compile_context>
chip_gen: v7x
topology: tpu7x:2x2x1
jax: 0.10.0
libtpu: 0.0.40
codegen_flags: <defaults>
</compile_context>

<pallas_src>
import functools
import math

import jax
import jax.numpy as jnp
from jax import lax
from jax.experimental import pallas as pl
from jax.experimental.pallas import tpu as pltpu

_LN_EPS = 1e-5
_SQRT_2_OVER_PI = math.sqrt(2.0 / math.pi)

# Tile preferences (v6e/v7x friendly; on v5e 128-wide tiles would also do).
_ATTN_TQ = 256
_ATTN_TK = 512
_MLP_TR = 256
_LN_TR = 512
_LIN_TM = 512


# ----------------------------------------------------------------------------
# Generic helpers
# ----------------------------------------------------------------------------

_VMEM_LIMIT_CACHE = None


def _vmem_limit():
    """Generation-aware VMEM budget: ~80% of physical VMEM per TensorCore."""
    global _VMEM_LIMIT_CACHE
    if _VMEM_LIMIT_CACHE is None:
        try:
            cap = pltpu.get_tpu_info().vmem_capacity_bytes
        except Exception:  # pragma: no cover - conservative fallback
            cap = 128 * 1024 * 1024
        _VMEM_LIMIT_CACHE = max(32 * 1024 * 1024, int(cap * 0.8))
    return _VMEM_LIMIT_CACHE


def _round_up(n, m):
    return ((n + m - 1) // m) * m


def _row_tile(n, pref):
    """Row-tile size: `pref`, capped at n rounded up to a sublane multiple."""
    return min(pref, _round_up(max(n, 1), 8))


def _tile_or_full(n, pref):
    """Feature-dim tile: `pref` if it divides n, else the full dimension."""
    return pref if (n >= pref and n % pref == 0) else n


def _pad_rows_2d(x2, tile):
    r = x2.shape[0]
    rp = _round_up(r, tile)
    if rp != r:
        x2 = jnp.pad(x2, ((0, rp - r), (0, 0)))
    return x2, r


def _pad_axis(x, axis, mult):
    n = x.shape[axis]
    np_ = _round_up(n, mult)
    if np_ != n:
        pads = [(0, 0)] * x.ndim
        pads[axis] = (0, np_ - n)
        x = jnp.pad(x, pads)
    return x


def _ln_f32(x, g, b, eps):
    mean = jnp.mean(x, axis=-1, keepdims=True)
    xc = x - mean
    var = jnp.mean(xc * xc, axis=-1, keepdims=True)
    return xc * lax.rsqrt(var + eps) * g + b


def _gelu_tanh(x):
    # tanh-approx GELU; tanh lowers to the EUP slot (frees the VALU slot).
    return 0.5 * x * (1.0 + jnp.tanh(_SQRT_2_OVER_PI *
                                     (x + 0.044715 * x * x * x)))


# ----------------------------------------------------------------------------
# Tiled linear (matmul + bias) — input_proj / query_proj
# ----------------------------------------------------------------------------

def _linear_kernel(x_ref, w_ref, b_ref, o_ref, acc_ref):
    @pl.when(pl.program_id(2) == 0)
    def _():
        acc_ref[...] = jnp.zeros_like(acc_ref)

    acc_ref[...] += jnp.dot(x_ref[...].astype(jnp.bfloat16),
                            w_ref[...].astype(jnp.bfloat16),
                            preferred_element_type=jnp.float32)

    @pl.when(pl.program_id(2) == pl.num_programs(2) - 1)
    def _():
        o_ref[...] = (acc_ref[...] + b_ref[...]).astype(o_ref.dtype)


def linear(x, w, b, *, tm=_LIN_TM, tn=256, tk=None):
    """y = x @ w + b; rows padded to the tile multiple (never full-axis blocks).

    For the input/query projections the contraction is tiny, so `tk=None`
    keeps the whole K resident and the kernel is pure HBM streaming over rows.
    """
    orig = x.shape
    K = orig[-1]
    N = w.shape[1]
    x2 = x.reshape(-1, K)
    R = x2.shape[0]
    tm = _row_tile(R, tm)
    x2, r_valid = _pad_rows_2d(x2, tm)
    Rp = x2.shape[0]
    tn = _tile_or_full(N, tn)
    tk = K if tk is None else _tile_or_full(K, tk)
    out = pl.pallas_call(
        _linear_kernel,
        out_shape=jax.ShapeDtypeStruct((Rp, N), x.dtype),
        grid=(Rp // tm, N // tn, K // tk),
        in_specs=[
            pl.BlockSpec((tm, tk), lambda i, j, k: (i, k)),
            pl.BlockSpec((tk, tn), lambda i, j, k: (k, j)),
            pl.BlockSpec((1, tn), lambda i, j, k: (0, j)),
        ],
        out_specs=pl.BlockSpec((tm, tn), lambda i, j, k: (i, j)),
        scratch_shapes=[pltpu.VMEM((tm, tn), jnp.float32)],
        compiler_params=pltpu.CompilerParams(
            dimension_semantics=("parallel", "parallel", "arbitrary"),
            vmem_limit_bytes=_vmem_limit()),
    )(x2, w, b.reshape(1, N))
    if Rp != r_valid:
        out = out[:r_valid]
    return out.reshape(orig[:-1] + (N,))


# ----------------------------------------------------------------------------
# Fused LayerNorm + matmul (hoisted K/V projection), row-tiled
# ----------------------------------------------------------------------------

def _ln_linear_kernel(x_ref, g_ref, b_ref, w_ref, bias_ref, o_ref, *, eps):
    x = x_ref[...].astype(jnp.float32)
    xn = _ln_f32(x, g_ref[...], b_ref[...], eps)
    y = (jnp.dot(xn.astype(jnp.bfloat16), w_ref[...].astype(jnp.bfloat16),
                 preferred_element_type=jnp.float32) + bias_ref[...])
    o_ref[...] = y.astype(o_ref.dtype)


def ln_linear(x2, gamma, beta, w, bias, *, out_dtype, row_tile):
    R, K = x2.shape
    N = w.shape[1]
    assert R % row_tile == 0
    return pl.pallas_call(
        functools.partial(_ln_linear_kernel, eps=_LN_EPS),
        out_shape=jax.ShapeDtypeStruct((R, N), out_dtype),
        grid=(R // row_tile,),
        in_specs=[
            pl.BlockSpec((row_tile, K), lambda i: (i, 0)),
            pl.BlockSpec((1, K), lambda i: (0, 0)),
            pl.BlockSpec((1, K), lambda i: (0, 0)),
            pl.BlockSpec((K, N), lambda i: (0, 0)),
            pl.BlockSpec((1, N), lambda i: (0, 0)),
        ],
        out_specs=pl.BlockSpec((row_tile, N), lambda i: (i, 0)),
        compiler_params=pltpu.CompilerParams(
            dimension_semantics=("parallel",),
            vmem_limit_bytes=_vmem_limit()),
    )(x2, gamma.reshape(1, K), beta.reshape(1, K), w, bias.reshape(1, N))


# ----------------------------------------------------------------------------
# Row-tiled LayerNorm (standalone: ln_post)
# ----------------------------------------------------------------------------

def _layernorm_kernel(x_ref, g_ref, b_ref, o_ref, *, eps):
    x = x_ref[...].astype(jnp.float32)
    o_ref[...] = _ln_f32(x, g_ref[...], b_ref[...], eps).astype(o_ref.dtype)


def layer_norm(x, gamma, beta, eps=_LN_EPS):
    orig = x.shape
    W = orig[-1]
    x2 = x.reshape(-1, W)
    R = x2.shape[0]
    tr = _row_tile(R, _LN_TR)
    x2, r_valid = _pad_rows_2d(x2, tr)
    Rp = x2.shape[0]
    out = pl.pallas_call(
        functools.partial(_layernorm_kernel, eps=eps),
        out_shape=jax.ShapeDtypeStruct((Rp, W), x.dtype),
        grid=(Rp // tr,),
        in_specs=[
            pl.BlockSpec((tr, W), lambda i: (i, 0)),
            pl.BlockSpec((1, W), lambda i: (0, 0)),
            pl.BlockSpec((1, W), lambda i: (0, 0)),
        ],
        out_specs=pl.BlockSpec((tr, W), lambda i: (i, 0)),
        compiler_params=pltpu.CompilerParams(
            dimension_semantics=("parallel",),
            vmem_limit_bytes=_vmem_limit()),
    )(x2, gamma.reshape(1, W), beta.reshape(1, W))
    if Rp != r_valid:
        out = out[:r_valid]
    return out.reshape(orig)


# ----------------------------------------------------------------------------
# Flash attention over precomputed (hoisted) K/V:
#   out = x + Wo @ MHA( LN_q(x) Wq , K , V ) + bo
# ----------------------------------------------------------------------------

def _flash_attn_kernel(x_ref, kv_ref,
                       lnq_g_ref, lnq_b_ref,
                       wq_ref, bq_ref, wo_ref, bo_ref,
                       o_ref,
                       q_scr, m_scr, l_scr, acc_scr,
                       *, heads, kv_valid, kv_total):
    ik = pl.program_id(2)
    tq = x_ref.shape[1]
    w = x_ref.shape[2]
    tk = kv_ref.shape[1]
    dh = w // heads
    scale = 1.0 / math.sqrt(dh)

    @pl.when(ik == 0)
    def _init():
        x = x_ref[0].astype(jnp.float32)
        xn = _ln_f32(x, lnq_g_ref[...], lnq_b_ref[...], _LN_EPS)
        q = (jnp.dot(xn.astype(jnp.bfloat16), wq_ref[...].astype(jnp.bfloat16),
                     preferred_element_type=jnp.float32) + bq_ref[...])
        q_scr[...] = q.astype(jnp.bfloat16)
        m_scr[...] = jnp.full(m_scr.shape, -jnp.inf, dtype=m_scr.dtype)
        l_scr[...] = jnp.zeros_like(l_scr)
        acc_scr[...] = jnp.zeros_like(acc_scr)

    kv = kv_ref[0]            # (tk, 2W) bf16, precomputed once per token
    q = q_scr[...]            # (tq, W)  bf16

    if kv_total != kv_valid:  # static: only traced when KV padding exists
        col = lax.broadcasted_iota(jnp.int32, (tq, tk), 1)
        valid = (ik * tk + col) < kv_valid
    else:
        valid = None

    # Heads split in-kernel (static unroll); per-head softmax stats are kept
    # replicated across that head's dh lanes so every scratch read/write below
    # is a dense (tq, dh) slice — no concatenates, no narrow column stores.
    for h in range(heads):
        c0, c1 = h * dh, (h + 1) * dh
        s = lax.dot_general(q[:, c0:c1], kv[:, c0:c1],
                            (((1,), (1,)), ((), ())),
                            preferred_element_type=jnp.float32) * scale
        if valid is not None:
            s = jnp.where(valid, s, -jnp.inf)
        m_prev = m_scr[:, c0:c1]
        m_new = jnp.maximum(m_prev, jnp.max(s, axis=-1, keepdims=True))
        alpha = jnp.exp(m_prev - m_new)
        p = jnp.exp(s - m_new[:, :1])                     # (tq, tk) f32
        m_scr[:, c0:c1] = m_new
        l_scr[:, c0:c1] = (alpha * l_scr[:, c0:c1]
                           + jnp.sum(p, axis=-1, keepdims=True))
        acc_scr[:, c0:c1] = (alpha * acc_scr[:, c0:c1]
                             + jnp.dot(p.astype(jnp.bfloat16),
                                       kv[:, w + c0:w + c1],
                                       preferred_element_type=jnp.float32))

    @pl.when(ik == pl.num_programs(2) - 1)
    def _finish():
        inv = pl.reciprocal(l_scr[...], approx=True)      # EUP slot
        merged = (acc_scr[...] * inv).astype(jnp.bfloat16)
        out = (jnp.dot(merged, wo_ref[...].astype(jnp.bfloat16),
                       preferred_element_type=jnp.float32) + bo_ref[...])
        o_ref[0] = (x_ref[0].astype(jnp.float32) + out).astype(o_ref.dtype)


def cross_attention(x, data, ln_q, ln_kv, attn, heads, *,
                    tq_pref=_ATTN_TQ, tk_pref=_ATTN_TK):
    """Residual multi-head cross-attention (self-attention when data is x)."""
    B, Tq, W = x.shape
    Tk = data.shape[1]
    tq = _row_tile(Tq, tq_pref)
    tk = _row_tile(Tk, tk_pref)
    x_p = _pad_axis(x, 1, tq)
    data_p = _pad_axis(data, 1, tk)
    Tq_p, Tk_p = x_p.shape[1], data_p.shape[1]

    # Hoisted K/V projection: LN_kv(data) @ Wkv + bkv computed once per token
    # (bf16 output halves HBM traffic); padded rows are masked in the scores.
    kv = ln_linear(data_p.reshape(B * Tk_p, W), ln_kv[0], ln_kv[1],
                   attn["wkv"], attn["bkv"], out_dtype=jnp.bfloat16,
                   row_tile=tk)
    kv = kv.reshape(B, Tk_p, 2 * W)

    kern = functools.partial(_flash_attn_kernel, heads=heads,
                             kv_valid=Tk, kv_total=Tk_p)
    out = pl.pallas_call(
        kern,
        out_shape=jax.ShapeDtypeStruct((B, Tq_p, W), x.dtype),
        grid=(B, Tq_p // tq, Tk_p // tk),
        in_specs=[
            pl.BlockSpec((1, tq, W), lambda b, iq, ik: (b, iq, 0)),      # x
            pl.BlockSpec((1, tk, 2 * W), lambda b, iq, ik: (b, ik, 0)),  # kv
            pl.BlockSpec((1, W), lambda b, iq, ik: (0, 0)),              # lnq g
            pl.BlockSpec((1, W), lambda b, iq, ik: (0, 0)),              # lnq b
            pl.BlockSpec((W, W), lambda b, iq, ik: (0, 0)),              # wq
            pl.BlockSpec((1, W), lambda b, iq, ik: (0, 0)),              # bq
            pl.BlockSpec((W, W), lambda b, iq, ik: (0, 0)),              # wo
            pl.BlockSpec((1, W), lambda b, iq, ik: (0, 0)),              # bo
        ],
        out_specs=pl.BlockSpec((1, tq, W), lambda b, iq, ik: (b, iq, 0)),
        scratch_shapes=[
            pltpu.VMEM((tq, W), jnp.bfloat16),   # cached Q (bf16 MXU feed)
            pltpu.VMEM((tq, W), jnp.float32),    # running max (replicated/head)
            pltpu.VMEM((tq, W), jnp.float32),    # running sum (replicated/head)
            pltpu.VMEM((tq, W), jnp.float32),    # output accumulator
        ],
        compiler_params=pltpu.CompilerParams(
            dimension_semantics=("parallel", "parallel", "arbitrary"),
            vmem_limit_bytes=_vmem_limit()),
    )(x_p, kv,
      ln_q[0].reshape(1, W), ln_q[1].reshape(1, W),
      attn["wq"], attn["bq"].reshape(1, W),
      attn["wo"], attn["bo"].reshape(1, W))
    return out[:, :Tq] if Tq_p != Tq else out


# ----------------------------------------------------------------------------
# Fused residual MLP block:  out = x + W2 @ GELU( LN(x) W1 + b1 ) + b2
# ----------------------------------------------------------------------------

def _mlp_block_kernel(x_ref, g_ref, b_ref, w1_ref, b1_ref, w2_ref, b2_ref,
                      o_ref, *, eps):
    x = x_ref[...].astype(jnp.float32)
    xn = _ln_f32(x, g_ref[...], b_ref[...], eps)
    h = (jnp.dot(xn.astype(jnp.bfloat16), w1_ref[...].astype(jnp.bfloat16),
                 preferred_element_type=jnp.float32) + b1_ref[...])
    h = _gelu_tanh(h)   # fused epilogue; (tr, 4W) never round-trips HBM
    y = (jnp.dot(h.astype(jnp.bfloat16), w2_ref[...].astype(jnp.bfloat16),
                 preferred_element_type=jnp.float32) + b2_ref[...])
    o_ref[...] = (x + y).astype(o_ref.dtype)


def mlp_block(x, ln, p, *, tr_pref=_MLP_TR):
    B, T, W = x.shape
    x2 = x.reshape(B * T, W)
    tr = _row_tile(B * T, tr_pref)
    x2, r_valid = _pad_rows_2d(x2, tr)
    Rp = x2.shape[0]
    out = pl.pallas_call(
        functools.partial(_mlp_block_kernel, eps=_LN_EPS),
        out_shape=jax.ShapeDtypeStruct((Rp, W), x.dtype),
        grid=(Rp // tr,),
        in_specs=[
            pl.BlockSpec((tr, W), lambda i: (i, 0)),
            pl.BlockSpec((1, W), lambda i: (0, 0)),
            pl.BlockSpec((1, W), lambda i: (0, 0)),
            pl.BlockSpec((W, 4 * W), lambda i: (0, 0)),
            pl.BlockSpec((1, 4 * W), lambda i: (0, 0)),
            pl.BlockSpec((4 * W, W), lambda i: (0, 0)),
            pl.BlockSpec((1, W), lambda i: (0, 0)),
        ],
        out_specs=pl.BlockSpec((tr, W), lambda i: (i, 0)),
        compiler_params=pltpu.CompilerParams(
            dimension_semantics=("parallel",),
            vmem_limit_bytes=_vmem_limit()),
    )(x2, ln[0].reshape(1, W), ln[1].reshape(1, W),
      p["w1"], p["b1"].reshape(1, 4 * W), p["w2"], p["b2"].reshape(1, W))
    if Rp != r_valid:
        out = out[:r_valid]
    return out.reshape(B, T, W)


# ----------------------------------------------------------------------------
# Model pieces built from the fused kernels
# ----------------------------------------------------------------------------

def residual_cross_attention_block(x, data, p, heads):
    x = cross_attention(x, data, p["ln1"], p["ln2"], p["attn"], heads)
    x = mlp_block(x, p["ln3"], p["mlp"])
    return x


def residual_self_attention_block(x, p, heads):
    # Shared LayerNorm (ln1) for Q and K/V, as in the reference block.
    x = cross_attention(x, x, p["ln1"], p["ln1"], p["attn"], heads)
    x = mlp_block(x, p["ln2"], p["mlp"])
    return x


def transformer(x, blocks, heads):
    for p in blocks:
        x = residual_self_attention_block(x, p, heads)
    return x


def fourier_embed(x, num_freqs=8, include_pi=True):
    # FourierEmbedder(num_freqs, logspace=True, include_input=True)
    freqs = 2.0 ** jnp.arange(num_freqs, dtype=jnp.float32)
    if include_pi:
        freqs = freqs * jnp.pi
    emb = (x[..., None] * freqs).reshape(x.shape[:-1] + (-1,))
    return jnp.concatenate([x, jnp.sin(emb), jnp.cos(emb)], axis=-1)


# ----------------------------------------------------------------------------
# Deterministic synthetic parameter init (matmul weights stored in bf16)
# ----------------------------------------------------------------------------

def init_linear(key, fan_in, fan_out, *, mxu_dtype=jnp.bfloat16):
    kw, kb = jax.random.split(key)
    s = 1.0 / math.sqrt(fan_in)
    w = jax.random.uniform(kw, (fan_in, fan_out), jnp.float32, -s, s)
    b = jax.random.uniform(kb, (fan_out,), jnp.float32, -s, s)
    return w.astype(mxu_dtype), b


def init_ln(width):
    return (jnp.ones((width,), jnp.float32), jnp.zeros((width,), jnp.float32))


def init_attn(key, width):
    k1, k2, k3, k4 = jax.random.split(key, 4)
    wq, bq = init_linear(k1, width, width)
    wk, bk = init_linear(k2, width, width)
    wv, bv = init_linear(k3, width, width)
    wo, bo = init_linear(k4, width, width)
    return dict(wq=wq, bq=bq,
                wkv=jnp.concatenate([wk, wv], axis=1),
                bkv=jnp.concatenate([bk, bv], axis=0),
                wo=wo, bo=bo)


def init_mlp(key, width):
    k1, k2 = jax.random.split(key)
    w1, b1 = init_linear(k1, width, width * 4)
    w2, b2 = init_linear(k2, width * 4, width)
    return dict(w1=w1, b1=b1, w2=w2, b2=b2)


def init_res_cross_block(key, width):
    k1, k2 = jax.random.split(key)
    return dict(ln1=init_ln(width), ln2=init_ln(width), ln3=init_ln(width),
                attn=init_attn(k1, width), mlp=init_mlp(k2, width))


def init_res_self_block(key, width):
    k1, k2 = jax.random.split(key)
    return dict(ln1=init_ln(width), ln2=init_ln(width),
                attn=init_attn(k1, width), mlp=init_mlp(k2, width))


def init_model(key, *, num_latents, feature_dim, embed_dim, width,
               num_encoder_layers, num_decoder_layers, num_freqs=8):
    fourier_dim = 3 * (2 * num_freqs + 1)
    keys = jax.random.split(key, 10)
    params = {}
    params["query"] = 0.02 * jax.random.normal(keys[0], (num_latents, width),
                                               jnp.float32)
    params["input_proj"] = init_linear(keys[1], fourier_dim + feature_dim, width)
    params["enc_cross"] = init_res_cross_block(keys[2], width)
    params["enc_self"] = [init_res_self_block(k, width)
                          for k in jax.random.split(keys[3], num_encoder_layers)]
    # Tiny projections run in plain JAX -> keep f32.
    params["pre_kl"] = init_linear(keys[4], width, 2 * embed_dim,
                                   mxu_dtype=jnp.float32)
    params["post_kl"] = init_linear(keys[5], embed_dim, width,
                                    mxu_dtype=jnp.float32)
    params["dec_self"] = [init_res_self_block(k, width)
                          for k in jax.random.split(keys[6], num_decoder_layers)]
    params["query_proj"] = init_linear(keys[7], fourier_dim, width)
    params["geo_cross"] = init_res_cross_block(keys[8], width)
    params["ln_post"] = init_ln(width)
    params["output_proj"] = init_linear(keys[9], width, 1,
                                        mxu_dtype=jnp.float32)
    return params


# ----------------------------------------------------------------------------
# Full forward pass (SurfaceFieldAutoEncoder.forward)
# ----------------------------------------------------------------------------

def surface_field_autoencoder_forward(params, coords, feats, queries, noise, *,
                                      heads, num_freqs=8,
                                      sample_posterior=True):
    B = coords.shape[0]

    # ---- CrossAttentionEncoder ----
    data = fourier_embed(coords, num_freqs)
    if feats is not None:
        data = jnp.concatenate([data, feats], axis=-1)
    data = linear(data, *params["input_proj"])          # tiny K: no K tiling
    query = jnp.broadcast_to(params["query"][None], (B,) + params["query"].shape)
    latents = residual_cross_attention_block(query, data,
                                             params["enc_cross"], heads)
    latents = transformer(latents, params["enc_self"], heads)

    # ---- pre_kl + DiagonalGaussianDistribution (tiny: plain JAX, XLA fuses) --
    moments = latents @ params["pre_kl"][0] + params["pre_kl"][1]
    E = moments.shape[-1] // 2
    mean, logvar = moments[..., :E], moments[..., E:]
    logvar = jnp.clip(logvar, -30.0, 20.0)
    std = jnp.exp(0.5 * logvar)
    var = jnp.exp(logvar)
    z = mean + std * noise                              # posterior.sample()

    # ---- decode: post_kl + decoder Transformer ----
    x = z @ params["post_kl"][0] + params["post_kl"][1]
    x = transformer(x, params["dec_self"], heads)

    # ---- query_geometry: CrossAttentionDecoder ----
    q = linear(fourier_embed(queries, num_freqs), *params["query_proj"])
    q = residual_cross_attention_block(q, x, params["geo_cross"], heads)
    q = layer_norm(q, *params["ln_post"])
    # width -> 1 projection kept in plain JAX (lane-1 Pallas output would be
    # pure masked-store overhead).
    recon_feats = (q @ params["output_proj"][0] + params["output_proj"][1])[..., 0]

    # ---- KL loss ----
    if sample_posterior:
        kl = 0.5 * jnp.sum(mean ** 2 + var - 1.0 - logvar, axis=(1, 2))
        kl_loss = jnp.mean(kl)
    else:
        kl_loss = jnp.asarray(0.0, dtype=recon_feats.dtype)

    return recon_feats, coords, kl_loss


# ----------------------------------------------------------------------------
# Demo
# ----------------------------------------------------------------------------

if __name__ == "__main__":
    key = jax.random.PRNGKey(0)

    # Small shapes consistent with the module; N and Q deliberately not
    # multiples of 8 so the pad+mask / crop paths are exercised.
    B, N, Q = 2, 20, 18
    num_latents, feature_dim, embed_dim = 8, 4, 8
    width, heads = 32, 4
    num_encoder_layers, num_decoder_layers = 2, 2
    num_freqs = 8

    kp, kc, kf, kq, kn = jax.random.split(key, 5)
    params = init_model(kp, num_latents=num_latents, feature_dim=feature_dim,
                        embed_dim=embed_dim, width=width,
                        num_encoder_layers=num_encoder_layers,
                        num_decoder_layers=num_decoder_layers,
                        num_freqs=num_freqs)

    coords = jax.random.uniform(kc, (B, N, 3), jnp.float32, -1.0, 1.0)
    feats = jax.random.normal(kf, (B, N, feature_dim), jnp.float32)
    queries = jax.random.uniform(kq, (B, Q, 3), jnp.float32, -1.0, 1.0)
    # deterministic stand-in for torch.randn in posterior.sample()
    noise = jax.random.normal(kn, (B, num_latents, embed_dim), jnp.float32)

    fwd = jax.jit(functools.partial(surface_field_autoencoder_forward,
                                    heads=heads, num_freqs=num_freqs,
                                    sample_posterior=True))
    recon_feats, center_pos, kl_loss = fwd(params, coords, feats, queries, noise)
    jax.block_until_ready((recon_feats, center_pos, kl_loss))

    assert recon_feats.shape == (B, Q)
    assert center_pos.shape == (B, N, 3)
    assert kl_loss.shape == ()
    assert bool(jnp.isfinite(kl_loss)) and bool(jnp.all(jnp.isfinite(recon_feats)))
    print("KERNEL_OK")
</pallas_src>

<mosaic_0001>
module attributes {stable_mosaic.version = 11 : i64} {
  func.func @_linear_kernel(%arg0: i32, %arg1: i32, %arg2: i32, %arg3: memref<40x55xf32, #tpu.memory_space<vmem>>, %arg4: memref<55x32xbf16, #tpu.memory_space<vmem>>, %arg5: memref<1x32xf32, #tpu.memory_space<vmem>>, %arg6: memref<40x32xf32, #tpu.memory_space<vmem>>, %arg7: memref<40x32xf32, #tpu.memory_space<vmem>>) attributes {dimension_semantics = [#tpu.dimension_semantics<parallel>, #tpu.dimension_semantics<parallel>, #tpu.dimension_semantics<arbitrary>], iteration_bounds = array<i64: 1, 1, 1>, scalar_prefetch = 0 : i64, scratch_operands = 1 : i64, tpu.core_type = #tpu.core_type<tc>, window_params = [{transform_indices = @transform_0, window_bounds = array<i64: 40, 55>}, {transform_indices = @transform_1, window_bounds = array<i64: 55, 32>}, {transform_indices = @transform_2, window_bounds = array<i64: 1, 32>}, {transform_indices = @transform_3, window_bounds = array<i64: 40, 32>}]} {
    %c0_i32 = arith.constant 0 : i32
    %0 = arith.cmpi eq, %arg2, %c0_i32 : i32
    %1 = arith.extui %0 : i1 to i32
    %c0_i32_0 = arith.constant 0 : i32
    %2 = arith.cmpi ne, %1, %c0_i32_0 : i32
    scf.if %2 {
      %cst_10 = arith.constant 0.000000e+00 : f32
      %13 = vector.broadcast %cst_10 : f32 to vector<40x32xf32>
      %c0_11 = arith.constant 0 : index
      %c0_12 = arith.constant 0 : index
      %14 = vector.load %arg7[%c0_11, %c0_12] : memref<40x32xf32, #tpu.memory_space<vmem>>, vector<40x32xf32>
      tpu.vector_store %arg7[%c0_11, %c0_12], %13 {strides = array<i32>} : memref<40x32xf32, #tpu.memory_space<vmem>>, vector<40x32xf32>,
    } else {
    }
    %c0 = arith.constant 0 : index
    %c0_1 = arith.constant 0 : index
    %3 = vector.load %arg7[%c0, %c0_1] : memref<40x32xf32, #tpu.memory_space<vmem>>, vector<40x32xf32>
    %c0_2 = arith.constant 0 : index
    %c0_3 = arith.constant 0 : index
    %4 = vector.load %arg3[%c0_2, %c0_3] : memref<40x55xf32, #tpu.memory_space<vmem>>, vector<40x55xf32>
    %5 = arith.truncf %4 : vector<40x55xf32> to vector<40x55xbf16>
    %c0_4 = arith.constant 0 : index
    %c0_5 = arith.constant 0 : index
    %6 = vector.load %arg4[%c0_4, %c0_5] : memref<55x32xbf16, #tpu.memory_space<vmem>>, vector<55x32xbf16>
    %cst = arith.constant dense<0.000000e+00> : vector<40x32xf32>
    %7 = tpu.matmul %5, %6, %cst {dimension_numbers = #tpu.dot_dimension_numbers<[1], [0], [0], [1], [0, 0, 1, 1], [], []>} : vector<40x55xbf16>, vector<55x32xbf16>, vector<40x32xf32> -> vector<40x32xf32>
    %8 = arith.addf %3, %7 : vector<40x32xf32>
    %c0_6 = arith.constant 0 : index
    %c0_7 = arith.constant 0 : index
    %9 = vector.load %arg7[%c0_6, %c0_7] : memref<40x32xf32, #tpu.memory_space<vmem>>, vector<40x32xf32>
    tpu.vector_store %arg7[%c0_6, %c0_7], %8 {strides = array<i32>} : memref<40x32xf32, #tpu.memory_space<vmem>>, vector<40x32xf32>,
    %c0_i32_8 = arith.constant 0 : i32
    %10 = arith.cmpi eq, %arg2, %c0_i32_8 : i32
    %11 = arith.extui %10 : i1 to i32
    %c0_i32_9 = arith.constant 0 : i32
    %12 = arith.cmpi ne, %11, %c0_i32_9 : i32
    scf.if %12 {
      %c0_10 = arith.constant 0 : index
      %c0_11 = arith.constant 0 : index
      %13 = vector.load %arg7[%c0_10, %c0_11] : memref<40x32xf32, #tpu.memory_space<vmem>>, vector<40x32xf32>
      %c0_12 = arith.constant 0 : index
      %c0_13 = arith.constant 0 : index
      %14 = vector.load %arg5[%c0_12, %c0_13] : memref<1x32xf32, #tpu.memory_space<vmem>>, vector<1x32xf32>
      %15 = vector.broadcast %14 : vector<1x32xf32> to vector<40x32xf32>
      %16 = arith.addf %13, %15 : vector<40x32xf32>
      %c0_14 = arith.constant 0 : index
      %c0_15 = arith.constant 0 : index
      %17 = vector.load %arg6[%c0_14, %c0_15] : memref<40x32xf32, #tpu.memory_space<vmem>>, vector<40x32xf32>
      tpu.vector_store %arg6[%c0_14, %c0_15], %16 {strides = array<i32>} : memref<40x32xf32, #tpu.memory_space<vmem>>, vector<40x32xf32>,
    } else {
    }
    return
  }
  func.func @transform_0(%arg0: i32, %arg1: i32, %arg2: i32) -> (i32, i32) {
    %c0_i32 = arith.constant 0 : i32
    return %arg0, %arg2 : i32, i32
  }
  func.func @transform_1(%arg0: i32, %arg1: i32, %arg2: i32) -> (i32, i32) {
    %c0_i32 = arith.constant 0 : i32
    return %arg2, %arg1 : i32, i32
  }
  func.func @transform_2(%arg0: i32, %arg1: i32, %arg2: i32) -> (i32, i32) {
    %c0_i32 = arith.constant 0 : i32
    %c0_i32_0 = arith.constant 0 : i32
    return %c0_i32, %arg1 : i32, i32
  }
  func.func @transform_3(%arg0: i32, %arg1: i32, %arg2: i32) -> (i32, i32) {
    %c0_i32 = arith.constant 0 : i32
    return %arg0, %arg1 : i32, i32
  }
}

module attributes {stable_mosaic.version = 11 : i64} {
  func.func @_ln_linear_kernel(%arg0: i32, %arg1: memref<24x32xf32, #tpu.memory_space<vmem>>, %arg2: memref<1x32xf32, #tpu.memory_space<vmem>>, %arg3: memref<1x32xf32, #tpu.memory_space<vmem>>, %arg4: memref<32x64xbf16, #tpu.memory_space<vmem>>, %arg5: memref<1x64xf32, #tpu.memory_space<vmem>>, %arg6: memref<24x64xbf16, #tpu.memory_space<vmem>>) attributes {dimension_semantics = [#tpu.dimension_semantics<parallel>], iteration_bounds = array<i64: 2>, scalar_prefetch = 0 : i64, scratch_operands = 0 : i64, tpu.core_type = #tpu.core_type<tc>, window_params = [{transform_indices = @transform_0, window_bounds = array<i64: 24, 32>}, {pipeline_mode = #tpu.pipeline_mode<synchronous>, transform_indices = @transform_1, window_bounds = array<i64: 1, 32>}, {pipeline_mode = #tpu.pipeline_mode<synchronous>, transform_indices = @transform_2, window_bounds = array<i64: 1, 32>}, {pipeline_mode = #tpu.pipeline_mode<synchronous>, transform_indices = @transform_3, window_bounds = array<i64: 32, 64>}, {pipeline_mode = #tpu.pipeline_mode<synchronous>, transform_indices = @transform_4, window_bounds = array<i64: 1, 64>}, {transform_indices = @transform_5, window_bounds = array<i64: 24, 64>}]} {
    %c0 = arith.constant 0 : index
    %c0_0 = arith.constant 0 : index
    %0 = vector.load %arg1[%c0, %c0_0] : memref<24x32xf32, #tpu.memory_space<vmem>>, vector<24x32xf32>
    %c0_1 = arith.constant 0 : index
    %c0_2 = arith.constant 0 : index
    %1 = vector.load %arg2[%c0_1, %c0_2] : memref<1x32xf32, #tpu.memory_space<vmem>>, vector<1x32xf32>
    %c0_3 = arith.constant 0 : index
    %c0_4 = arith.constant 0 : index
    %2 = vector.load %arg3[%c0_3, %c0_4] : memref<1x32xf32, #tpu.memory_space<vmem>>, vector<1x32xf32>
    %cst = arith.constant dense<0.000000e+00> : vector<24xf32>
    %3 = vector.multi_reduction <add>, %0, %cst [1] : vector<24x32xf32> to vector<24xf32>
    %4 = vector.shape_cast %3 : vector<24xf32> to vector<24x1xf32>
    %cst_5 = arith.constant 3.200000e+01 : f32
    %5 = vector.broadcast %cst_5 : f32 to vector<24x1xf32>
    %6 = arith.divf %4, %5 : vector<24x1xf32>
    %7 = vector.broadcast %6 : vector<24x1xf32> to vector<24x32xf32>
    %8 = arith.subf %0, %7 : vector<24x32xf32>
    %9 = arith.mulf %8, %8 : vector<24x32xf32>
    %cst_6 = arith.constant dense<0.000000e+00> : vector<24xf32>
    %10 = vector.multi_reduction <add>, %9, %cst_6 [1] : vector<24x32xf32> to vector<24xf32>
    %11 = vector.shape_cast %10 : vector<24xf32> to vector<24x1xf32>
    %cst_7 = arith.constant 3.200000e+01 : f32
    %12 = vector.broadcast %cst_7 : f32 to vector<24x1xf32>
    %13 = arith.divf %11, %12 : vector<24x1xf32>
    %cst_8 = arith.constant 9.99999974E-6 : f32
    %14 = vector.broadcast %cst_8 : f32 to vector<24x1xf32>
    %15 = arith.addf %13, %14 : vector<24x1xf32>
    %16 = math.rsqrt %15 : vector<24x1xf32>
    %17 = vector.broadcast %16 : vector<24x1xf32> to vector<24x32xf32>
    %18 = arith.mulf %8, %17 : vector<24x32xf32>
    %19 = vector.broadcast %1 : vector<1x32xf32> to vector<24x32xf32>
    %20 = arith.mulf %18, %19 : vector<24x32xf32>
    %21 = vector.broadcast %2 : vector<1x32xf32> to vector<24x32xf32>
    %22 = arith.addf %20, %21 : vector<24x32xf32>
    %23 = arith.truncf %22 : vector<24x32xf32> to vector<24x32xbf16>
    %c0_9 = arith.constant 0 : index
    %c0_10 = arith.constant 0 : index
    %24 = vector.load %arg4[%c0_9, %c0_10] : memref<32x64xbf16, #tpu.memory_space<vmem>>, vector<32x64xbf16>
    %cst_11 = arith.constant dense<0.000000e+00> : vector<24x64xf32>
    %25 = tpu.matmul %23, %24, %cst_11 {dimension_numbers = #tpu.dot_dimension_numbers<[1], [0], [0], [1], [0, 0, 1, 1], [], []>} : vector<24x32xbf16>, vector<32x64xbf16>, vector<24x64xf32> -> vector<24x64xf32>
    %c0_12 = arith.constant 0 : index
    %c0_13 = arith.constant 0 : index
    %26 = vector.load %arg5[%c0_12, %c0_13] : memref<1x64xf32, #tpu.memory_space<vmem>>, vector<1x64xf32>
    %27 = vector.broadcast %26 : vector<1x64xf32> to vector<24x64xf32>
    %28 = arith.addf %25, %27 : vector<24x64xf32>
    %29 = arith.truncf %28 : vector<24x64xf32> to vector<24x64xbf16>
    %c0_14 = arith.constant 0 : index
    %c0_15 = arith.constant 0 : index
    %30 = vector.load %arg6[%c0_14, %c0_15] : memref<24x64xbf16, #tpu.memory_space<vmem>>, vector<24x64xbf16>
    tpu.vector_store %arg6[%c0_14, %c0_15], %29 {strides = array<i32>} : memref<24x64xbf16, #tpu.memory_space<vmem>>, vector<24x64xbf16>,
    return
  }
  func.func @transform_0(%arg0: i32) -> (i32, i32) {
    %c0_i32 = arith.constant 0 : i32
    %c0_i32_0 = arith.constant 0 : i32
    return %arg0, %c0_i32 : i32, i32
  }
  func.func @transform_1(%arg0: i32) -> (i32, i32) {
    %c0_i32 = arith.constant 0 : i32
    %c0_i32_0 = arith.constant 0 : i32
    %c0_i32_1 = arith.constant 0 : i32
    return %c0_i32, %c0_i32_0 : i32, i32
  }
  func.func @transform_2(%arg0: i32) -> (i32, i32) {
    %c0_i32 = arith.constant 0 : i32
    %c0_i32_0 = arith.constant 0 : i32
    %c0_i32_1 = arith.constant 0 : i32
    return %c0_i32, %c0_i32_0 : i32, i32
  }
  func.func @transform_3(%arg0: i32) -> (i32, i32) {
    %c0_i32 = arith.constant 0 : i32
    %c0_i32_0 = arith.constant 0 : i32
    %c0_i32_1 = arith.constant 0 : i32
    return %c0_i32, %c0_i32_0 : i32, i32
  }
  func.func @transform_4(%arg0: i32) -> (i32, i32) {
    %c0_i32 = arith.constant 0 : i32
    %c0_i32_0 = arith.constant 0 : i32
    %c0_i32_1 = arith.constant 0 : i32
    return %c0_i32, %c0_i32_0 : i32, i32
  }
  func.func @transform_5(%arg0: i32) -> (i32, i32) {
    %c0_i32 = arith.constant 0 : i32
    %c0_i32_0 = arith.constant 0 : i32
    return %arg0, %c0_i32 : i32, i32
  }
}

module attributes {stable_mosaic.version = 11 : i64} {
  func.func @_flash_attn_kernel(%arg0: i32, %arg1: i32, %arg2: i32, %arg3: memref<1x8x32xf32, #tpu.memory_space<vmem>>, %arg4: memref<1x24x64xbf16, #tpu.memory_space<vmem>>, %arg5: memref<1x32xf32, #tpu.memory_space<vmem>>, %arg6: memref<1x32xf32, #tpu.memory_space<vmem>>, %arg7: memref<32x32xbf16, #tpu.memory_space<vmem>>, %arg8: memref<1x32xf32, #tpu.memory_space<vmem>>, %arg9: memref<32x32xbf16, #tpu.memory_space<vmem>>, %arg10: memref<1x32xf32, #tpu.memory_space<vmem>>, %arg11: memref<1x8x32xf32, #tpu.memory_space<vmem>>, %arg12: memref<8x32xbf16, #tpu.memory_space<vmem>>, %arg13: memref<8x32xf32, #tpu.memory_space<vmem>>, %arg14: memref<8x32xf32, #tpu.memory_space<vmem>>, %arg15: memref<8x32xf32, #tpu.memory_space<vmem>>) attributes {dimension_semantics = [#tpu.dimension_semantics<parallel>, #tpu.dimension_semantics<parallel>, #tpu.dimension_semantics<arbitrary>], iteration_bounds = array<i64: 2, 1, 1>, scalar_prefetch = 0 : i64, scratch_operands = 4 : i64, tpu.core_type = #tpu.core_type<tc>, window_params = [{transform_indices = @transform_0, window_bounds = array<i64: 1, 8, 32>}, {transform_indices = @transform_1, window_bounds = array<i64: 1, 24, 64>}, {pipeline_mode = #tpu.pipeline_mode<synchronous>, transform_indices = @transform_2, window_bounds = array<i64: 1, 32>}, {pipeline_mode = #tpu.pipeline_mode<synchronous>, transform_indices = @transform_3, window_bounds = array<i64: 1, 32>}, {pipeline_mode = #tpu.pipeline_mode<synchronous>, transform_indices = @transform_4, window_bounds = array<i64: 32, 32>}, {pipeline_mode = #tpu.pipeline_mode<synchronous>, transform_indices = @transform_5, window_bounds = array<i64: 1, 32>}, {pipeline_mode = #tpu.pipeline_mode<synchronous>, transform_indices = @transform_6, window_bounds = array<i64: 32, 32>}, {pipeline_mode = #tpu.pipeline_mode<synchronous>, transform_indices = @transform_7, window_bounds = array<i64: 1, 32>}, {transform_indices = @transform_8, window_bounds = array<i64: 1, 8, 32>}]} {
    %c0_i32 = arith.constant 0 : i32
    %0 = arith.cmpi eq, %arg2, %c0_i32 : i32
    %1 = arith.extui %0 : i1 to i32
    %c0_i32_0 = arith.constant 0 : i32
    %2 = arith.cmpi ne, %1, %c0_i32_0 : i32
    scf.if %2 {
      %c0_75 = arith.constant 0 : index
      %c0_76 = arith.constant 0 : index
      %c0_77 = arith.constant 0 : index
      %147 = vector.load %arg3[%c0_75, %c0_76, %c0_77] : memref<1x8x32xf32, #tpu.memory_space<vmem>>, vector<1x8x32xf32>
      %148 = vector.shape_cast %147 : vector<1x8x32xf32> to vector<8x32xf32>
      %c0_78 = arith.constant 0 : index
      %c0_79 = arith.constant 0 : index
      %149 = vector.load %arg5[%c0_78, %c0_79] : memref<1x32xf32, #tpu.memory_space<vmem>>, vector<1x32xf32>
      %c0_80 = arith.constant 0 : index
      %c0_81 = arith.constant 0 : index
      %150 = vector.load %arg6[%c0_80, %c0_81] : memref<1x32xf32, #tpu.memory_space<vmem>>, vector<1x32xf32>
      %cst_82 = arith.constant dense<0.000000e+00> : vector<8xf32>
      %151 = vector.multi_reduction <add>, %148, %cst_82 [1] : vector<8x32xf32> to vector<8xf32>
      %152 = vector.shape_cast %151 : vector<8xf32> to vector<8x1xf32>
      %cst_83 = arith.constant 3.200000e+01 : f32
      %153 = vector.broadcast %cst_83 : f32 to vector<8x1xf32>
      %154 = arith.divf %152, %153 : vector<8x1xf32>
      %155 = vector.broadcast %154 : vector<8x1xf32> to vector<8x32xf32>
      %156 = arith.subf %148, %155 : vector<8x32xf32>
      %157 = arith.mulf %156, %156 : vector<8x32xf32>
      %cst_84 = arith.constant dense<0.000000e+00> : vector<8xf32>
      %158 = vector.multi_reduction <add>, %157, %cst_84 [1] : vector<8x32xf32> to vector<8xf32>
      %159 = vector.shape_cast %158 : vector<8xf32> to vector<8x1xf32>
      %cst_85 = arith.constant 3.200000e+01 : f32
      %160 = vector.broadcast %cst_85 : f32 to vector<8x1xf32>
      %161 = arith.divf %159, %160 : vector<8x1xf32>
      %cst_86 = arith.constant 9.99999974E-6 : f32
      %162 = vector.broadcast %cst_86 : f32 to vector<8x1xf32>
      %163 = arith.addf %161, %162 : vector<8x1xf32>
      %164 = math.rsqrt %163 : vector<8x1xf32>
      %165 = vector.broadcast %164 : vector<8x1xf32> to vector<8x32xf32>
      %166 = arith.mulf %156, %165 : vector<8x32xf32>
      %167 = vector.broadcast %149 : vector<1x32xf32> to vector<8x32xf32>
      %168 = arith.mulf %166, %167 : vector<8x32xf32>
      %169 = vector.broadcast %150 : vector<1x32xf32> to vector<8x32xf32>
      %170 = arith.addf %168, %169 : vector<8x32xf32>
      %171 = arith.truncf %170 : vector<8x32xf32> to vector<8x32xbf16>
      %c0_87 = arith.constant 0 : index
      %c0_88 = arith.constant 0 : index
      %172 = vector.load %arg7[%c0_87, %c0_88] : memref<32x32xbf16, #tpu.memory_space<vmem>>, vector<32x32xbf16>
      %cst_89 = arith.constant dense<0.000000e+00> : vector<8x32xf32>
      %173 = tpu.matmul %171, %172, %cst_89 {dimension_numbers = #tpu.dot_dimension_numbers<[1], [0], [0], [1], [0, 0, 1, 1], [], []>} : vector<8x32xbf16>, vector<32x32xbf16>, vector<8x32xf32> -> vector<8x32xf32>
      %c0_90 = arith.constant 0 : index
      %c0_91 = arith.constant 0 : index
      %174 = vector.load %arg8[%c0_90, %c0_91] : memref<1x32xf32, #tpu.memory_space<vmem>>, vector<1x32xf32>
      %175 = vector.broadcast %174 : vector<1x32xf32> to vector<8x32xf32>
      %176 = arith.addf %173, %175 : vector<8x32xf32>
      %177 = arith.truncf %176 : vector<8x32xf32> to vector<8x32xbf16>
      %c0_92 = arith.constant 0 : index
      %c0_93 = arith.constant 0 : index
      %178 = vector.load %arg12[%c0_92, %c0_93] : memref<8x32xbf16, #tpu.memory_space<vmem>>, vector<8x32xbf16>
      tpu.vector_store %arg12[%c0_92, %c0_93], %177 {strides = array<i32>} : memref<8x32xbf16, #tpu.memory_space<vmem>>, vector<8x32xbf16>,
      %cst_94 = arith.constant 0xFF800000 : f32
      %179 = vector.broadcast %cst_94 : f32 to vector<8x32xf32>
      %c0_95 = arith.constant 0 : index
      %c0_96 = arith.constant 0 : index
      %180 = vector.load %arg13[%c0_95, %c0_96] : memref<8x32xf32, #tpu.memory_space<vmem>>, vector<8x32xf32>
      tpu.vector_store %arg13[%c0_95, %c0_96], %179 {strides = array<i32>} : memref<8x32xf32, #tpu.memory_space<vmem>>, vector<8x32xf32>,
      %cst_97 = arith.constant 0.000000e+00 : f32
      %181 = vector.broadcast %cst_97 : f32 to vector<8x32xf32>
      %c0_98 = arith.constant 0 : index
      %c0_99 = arith.constant 0 : index
      %182 = vector.load %arg14[%c0_98, %c0_99] : memref<8x32xf32, #tpu.memory_space<vmem>>, vector<8x32xf32>
      tpu.vector_store %arg14[%c0_98, %c0_99], %181 {strides = array<i32>} : memref<8x32xf32, #tpu.memory_space<vmem>>, vector<8x32xf32>,
      %cst_100 = arith.constant 0.000000e+00 : f32
      %183 = vector.broadcast %cst_100 : f32 to vector<8x32xf32>
      %c0_101 = arith.constant 0 : index
      %c0_102 = arith.constant 0 : index
      %184 = vector.load %arg15[%c0_101, %c0_102] : memref<8x32xf32, #tpu.memory_space<vmem>>, vector<8x32xf32>
      tpu.vector_store %arg15[%c0_101, %c0_102], %183 {strides = array<i32>} : memref<8x32xf32, #tpu.memory_space<vmem>>, vector<8x32xf32>,
    } else {
    }
    %c0 = arith.constant 0 : index
    %c0_1 = arith.constant 0 : index
    %c0_2 = arith.constant 0 : index
    %3 = vector.load %arg4[%c0, %c0_1, %c0_2] : memref<1x24x64xbf16, #tpu.memory_space<vmem>>, vector<1x24x64xbf16>
    %4 = vector.shape_cast %3 : vector<1x24x64xbf16> to vector<24x64xbf16>
    %c0_3 = arith.constant 0 : index
    %c0_4 = arith.constant 0 : index
    %5 = vector.load %arg12[%c0_3, %c0_4] : memref<8x32xbf16, #tpu.memory_space<vmem>>, vector<8x32xbf16>
    %6 = tpu.iota {dimensions = array<i32: 1>} : vector<8x24xi32>
    %c24_i32 = arith.constant 24 : i32
    %7 = arith.muli %arg2, %c24_i32 : i32
    %8 = vector.broadcast %7 : i32 to vector<8x24xi32>
    %9 = arith.addi %8, %6 : vector<8x24xi32>
    %c20_i32 = arith.constant 20 : i32
    %10 = vector.broadcast %c20_i32 : i32 to vector<8x24xi32>
    %11 = arith.cmpi slt, %9, %10 : vector<8x24xi32>
    %12 = vector.extract_strided_slice %5 {offsets = [0, 0], sizes = [8, 8], strides = [1, 1]} : vector<8x32xbf16> to vector<8x8xbf16>
    %13 = vector.extract_strided_slice %4 {offsets = [0, 0], sizes = [24, 8], strides = [1, 1]} : vector<24x64xbf16> to vector<24x8xbf16>
    %cst = arith.constant dense<0.000000e+00> : vector<8x24xf32>
    %14 = tpu.matmul %12, %13, %cst {dimension_numbers = #tpu.dot_dimension_numbers<[1], [1], [0], [0], [0, 0, 1, 0], [], []>} : vector<8x8xbf16>, vector<24x8xbf16>, vector<8x24xf32> -> vector<8x24xf32>
    %cst_5 = arith.constant 0.353553385 : f32
    %15 = vector.broadcast %cst_5 : f32 to vector<8x24xf32>
    %16 = arith.mulf %14, %15 : vector<8x24xf32>
    %cst_6 = arith.constant 0xFF800000 : f32
    %17 = vector.broadcast %cst_6 : f32 to vector<8x24xf32>
    %18 = arith.select %11, %16, %17 : vector<8x24xi1>, vector<8x24xf32>
    %c0_7 = arith.constant 0 : index
    %c0_8 = arith.constant 0 : index
    %19 = vector.load %arg13[%c0_7, %c0_8] : memref<8x32xf32, #tpu.memory_space<vmem>>, vector<8x8xf32>
    %cst_9 = arith.constant dense<0xFF800000> : vector<8xf32>
    %20 = vector.multi_reduction <maximumf>, %18, %cst_9 [1] : vector<8x24xf32> to vector<8xf32>
    %21 = vector.shape_cast %20 : vector<8xf32> to vector<8x1xf32>
    %22 = vector.broadcast %21 : vector<8x1xf32> to vector<8x8xf32>
    %23 = arith.maximumf %19, %22 : vector<8x8xf32>
    %24 = arith.subf %19, %23 : vector<8x8xf32>
    %25 = math.exp %24 : vector<8x8xf32>
    %26 = vector.extract_strided_slice %23 {offsets = [0, 0], sizes = [8, 1], strides = [1, 1]} : vector<8x8xf32> to vector<8x1xf32>
    %27 = vector.broadcast %26 : vector<8x1xf32> to vector<8x24xf32>
    %28 = arith.subf %18, %27 : vector<8x24xf32>
    %29 = math.exp %28 : vector<8x24xf32>
    %c0_10 = arith.constant 0 : index
    %c0_11 = arith.constant 0 : index
    %30 = vector.load %arg13[%c0_10, %c0_11] : memref<8x32xf32, #tpu.memory_space<vmem>>, vector<8x8xf32>
    tpu.vector_store %arg13[%c0_10, %c0_11], %23 {strides = array<i32>} : memref<8x32xf32, #tpu.memory_space<vmem>>, vector<8x8xf32>,
    %c0_12 = arith.constant 0 : index
    %c0_13 = arith.constant 0 : index
    %31 = vector.load %arg14[%c0_12, %c0_13] : memref<8x32xf32, #tpu.memory_space<vmem>>, vector<8x8xf32>
    %32 = arith.mulf %25, %31 : vector<8x8xf32>
    %cst_14 = arith.constant dense<0.000000e+00> : vector<8xf32>
    %33 = vector.multi_reduction <add>, %29, %cst_14 [1] : vector<8x24xf32> to vector<8xf32>
    %34 = vector.shape_cast %33 : vector<8xf32> to vector<8x1xf32>
    %35 = vector.broadcast %34 : vector<8x1xf32> to vector<8x8xf32>
    %36 = arith.addf %32, %35 : vector<8x8xf32>
    %c0_15 = arith.constant 0 : index
    %c0_16 = arith.constant 0 : index
    %37 = vector.load %arg14[%c0_15, %c0_16] : memref<8x32xf32, #tpu.memory_space<vmem>>, vector<8x8xf32>
    tpu.vector_store %arg14[%c0_15, %c0_16], %36 {strides = array<i32>} : memref<8x32xf32, #tpu.memory_space<vmem>>, vector<8x8xf32>,
    %c0_17 = arith.constant 0 : index
    %c0_18 = arith.constant 0 : index
    %38 = vector.load %arg15[%c0_17, %c0_18] : memref<8x32xf32, #tpu.memory_space<vmem>>, vector<8x8xf32>
    %39 = arith.mulf %25, %38 : vector<8x8xf32>
    %40 = arith.truncf %29 : vector<8x24xf32> to vector<8x24xbf16>
    %41 = vector.extract_strided_slice %4 {offsets = [0, 32], sizes = [24, 8], strides = [1, 1]} : vector<24x64xbf16> to vector<24x8xbf16>
    %cst_19 = arith.constant dense<0.000000e+00> : vector<8x8xf32>
    %42 = tpu.matmul %40, %41, %cst_19 {dimension_numbers = #tpu.dot_dimension_numbers<[1], [0], [0], [1], [0, 0, 1, 1], [], []>} : vector<8x24xbf16>, vector<24x8xbf16>, vector<8x8xf32> -> vector<8x8xf32>
    %43 = arith.addf %39, %42 : vector<8x8xf32>
    %c0_20 = arith.constant 0 : index
    %c0_21 = arith.constant 0 : index
    %44 = vector.load %arg15[%c0_20, %c0_21] : memref<8x32xf32, #tpu.memory_space<vmem>>, vector<8x8xf32>
    tpu.vector_store %arg15[%c0_20, %c0_21], %43 {strides = array<i32>} : memref<8x32xf32, #tpu.memory_space<vmem>>, vector<8x8xf32>,
    %45 = vector.extract_strided_slice %5 {offsets = [0, 8], sizes = [8, 8], strides = [1, 1]} : vector<8x32xbf16> to vector<8x8xbf16>
    %46 = vector.extract_strided_slice %4 {offsets = [0, 8], sizes = [24, 8], strides = [1, 1]} : vector<24x64xbf16> to vector<24x8xbf16>
    %cst_22 = arith.constant dense<0.000000e+00> : vector<8x24xf32>
    %47 = tpu.matmul %45, %46, %cst_22 {dimension_numbers = #tpu.dot_dimension_numbers<[1], [1], [0], [0], [0, 0, 1, 0], [], []>} : vector<8x8xbf16>, vector<24x8xbf16>, vector<8x24xf32> -> vector<8x24xf32>
    %cst_23 = arith.constant 0.353553385 : f32
    %48 = vector.broadcast %cst_23 : f32 to vector<8x24xf32>
    %49 = arith.mulf %47, %48 : vector<8x24xf32>
    %cst_24 = arith.constant 0xFF800000 : f32
    %50 = vector.broadcast %cst_24 : f32 to vector<8x24xf32>
    %51 = arith.select %11, %49, %50 : vector<8x24xi1>, vector<8x24xf32>
    %c0_25 = arith.constant 0 : index
    %c8 = arith.constant 8 : index
    %52 = vector.load %arg13[%c0_25, %c8] : memref<8x32xf32, #tpu.memory_space<vmem>>, vector<8x8xf32>
    %cst_26 = arith.constant dense<0xFF800000> : vector<8xf32>
    %53 = vector.multi_reduction <maximumf>, %51, %cst_26 [1] : vector<8x24xf32> to vector<8xf32>
    %54 = vector.shape_cast %53 : vector<8xf32> to vector<8x1xf32>
    %55 = vector.broadcast %54 : vector<8x1xf32> to vector<8x8xf32>
    %56 = arith.maximumf %52, %55 : vector<8x8xf32>
    %57 = arith.subf %52, %56 : vector<8x8xf32>
    %58 = math.exp %57 : vector<8x8xf32>
    %59 = vector.extract_strided_slice %56 {offsets = [0, 0], sizes = [8, 1], strides = [1, 1]} : vector<8x8xf32> to vector<8x1xf32>
    %60 = vector.broadcast %59 : vector<8x1xf32> to vector<8x24xf32>
    %61 = arith.subf %51, %60 : vector<8x24xf32>
    %62 = math.exp %61 : vector<8x24xf32>
    %c0_27 = arith.constant 0 : index
    %c8_28 = arith.constant 8 : index
    %63 = vector.load %arg13[%c0_27, %c8_28] : memref<8x32xf32, #tpu.memory_space<vmem>>, vector<8x8xf32>
    tpu.vector_store %arg13[%c0_27, %c8_28], %56 {strides = array<i32>} : memref<8x32xf32, #tpu.memory_space<vmem>>, vector<8x8xf32>,
    %c0_29 = arith.constant 0 : index
    %c8_30 = arith.constant 8 : index
    %64 = vector.load %arg14[%c0_29, %c8_30] : memref<8x32xf32, #tpu.memory_space<vmem>>, vector<8x8xf32>
    %65 = arith.mulf %58, %64 : vector<8x8xf32>
    %cst_31 = arith.constant dense<0.000000e+00> : vector<8xf32>
    %66 = vector.multi_reduction <add>, %62, %cst_31 [1] : vector<8x24xf32> to vector<8xf32>
    %67 = vector.shape_cast %66 : vector<8xf32> to vector<8x1xf32>
    %68 = vector.broadcast %67 : vector<8x1xf32> to vector<8x8xf32>
    %69 = arith.addf %65, %68 : vector<8x8xf32>
    %c0_32 = arith.constant 0 : index
    %c8_33 = arith.constant 8 : index
    %70 = vector.load %arg14[%c0_32, %c8_33] : memref<8x32xf32, #tpu.memory_space<vmem>>, vector<8x8xf32>
    tpu.vector_store %arg14[%c0_32, %c8_33], %69 {strides = array<i32>} : memref<8x32xf32, #tpu.memory_space<vmem>>, vector<8x8xf32>,
    %c0_34 = arith.constant 0 : index
    %c8_35 = arith.constant 8 : index
    %71 = vector.load %arg15[%c0_34, %c8_35] : memref<8x32xf32, #tpu.memory_space<vmem>>, vector<8x8xf32>
    %72 = arith.mulf %58, %71 : vector<8x8xf32>
    %73 = arith.truncf %62 : vector<8x24xf32> to vector<8x24xbf16>
    %74 = vector.extract_strided_slice %4 {offsets = [0, 40], sizes = [24, 8], strides = [1, 1]} : vector<24x64xbf16> to vector<24x8xbf16>
    %cst_36 = arith.constant dense<0.000000e+00> : vector<8x8xf32>
    %75 = tpu.matmul %73, %74, %cst_36 {dimension_numbers = #tpu.dot_dimension_numbers<[1], [0], [0], [1], [0, 0, 1, 1], [], []>} : vector<8x24xbf16>, vector<24x8xbf16>, vector<8x8xf32> -> vector<8x8xf32>
    %76 = arith.addf %72, %75 : vector<8x8xf32>
    %c0_37 = arith.constant 0 : index
    %c8_38 = arith.constant 8 : index
    %77 = vector.load %arg15[%c0_37, %c8_38] : memref<8x32xf32, #tpu.memory_space<vmem>>, vector<8x8xf32>
    tpu.vector_store %arg15[%c0_37, %c8_38], %76 {strides = array<i32>} : memref<8x32xf32, #tpu.memory_space<vmem>>, vector<8x8xf32>,
    %78 = vector.extract_strided_slice %5 {offsets = [0, 16], sizes = [8, 8], strides = [1, 1]} : vector<8x32xbf16> to vector<8x8xbf16>
    %79 = vector.extract_strided_slice %4 {offsets = [0, 16], sizes = [24, 8], strides = [1, 1]} : vector<24x64xbf16> to vector<24x8xbf16>
    %cst_39 = arith.constant dense<0.000000e+00> : vector<8x24xf32>
    %80 = tpu.matmul %78, %79, %cst_39 {dimension_numbers = #tpu.dot_dimension_numbers<[1], [1], [0], [0], [0, 0, 1, 0], [], []>} : vector<8x8xbf16>, vector<24x8xbf16>, vector<8x24xf32> -> vector<8x24xf32>
    %cst_40 = arith.constant 0.353553385 : f32
    %81 = vector.broadcast %cst_40 : f32 to vector<8x24xf32>
    %82 = arith.mulf %80, %81 : vector<8x24xf32>
    %cst_41 = arith.constant 0xFF800000 : f32
    %83 = vector.broadcast %cst_41 : f32 to vector<8x24xf32>
    %84 = arith.select %11, %82, %83 : vector<8x24xi1>, vector<8x24xf32>
    %c0_42 = arith.constant 0 : index
    %c16 = arith.constant 16 : index
    %85 = vector.load %arg13[%c0_42, %c16] : memref<8x32xf32, #tpu.memory_space<vmem>>, vector<8x8xf32>
    %cst_43 = arith.constant dense<0xFF800000> : vector<8xf32>
    %86 = vector.multi_reduction <maximumf>, %84, %cst_43 [1] : vector<8x24xf32> to vector<8xf32>
    %87 = vector.shape_cast %86 : vector<8xf32> to vector<8x1xf32>
    %88 = vector.broadcast %87 : vector<8x1xf32> to vector<8x8xf32>
    %89 = arith.maximumf %85, %88 : vector<8x8xf32>
    %90 = arith.subf %85, %89 : vector<8x8xf32>
    %91 = math.exp %90 : vector<8x8xf32>
    %92 = vector.extract_strided_slice %89 {offsets = [0, 0], sizes = [8, 1], strides = [1, 1]} : vector<8x8xf32> to vector<8x1xf32>
    %93 = vector.broadcast %92 : vector<8x1xf32> to vector<8x24xf32>
    %94 = arith.subf %84, %93 : vector<8x24xf32>
    %95 = math.exp %94 : vector<8x24xf32>
    %c0_44 = arith.constant 0 : index
    %c16_45 = arith.constant 16 : index
    %96 = vector.load %arg13[%c0_44, %c16_45] : memref<8x32xf32, #tpu.memory_space<vmem>>, vector<8x8xf32>
    tpu.vector_store %arg13[%c0_44, %c16_45], %89 {strides = array<i32>} : memref<8x32xf32, #tpu.memory_space<vmem>>, vector<8x8xf32>,
    %c0_46 = arith.constant 0 : index
    %c16_47 = arith.constant 16 : index
    %97 = vector.load %arg14[%c0_46, %c16_47] : memref<8x32xf32, #tpu.memory_space<vmem>>, vector<8x8xf32>
    %98 = arith.mulf %91, %97 : vector<8x8xf32>
    %cst_48 = arith.constant dense<0.000000e+00> : vector<8xf32>
    %99 = vector.multi_reduction <add>, %95, %cst_48 [1] : vector<8x24xf32> to vector<8xf32>
    %100 = vector.shape_cast %99 : vector<8xf32> to vector<8x1xf32>
    %101 = vector.broadcast %100 : vector<8x1xf32> to vector<8x8xf32>
    %102 = arith.addf %98, %101 : vector<8x8xf32>
    %c0_49 = arith.constant 0 : index
    %c16_50 = arith.constant 16 : index
    %103 = vector.load %arg14[%c0_49, %c16_50] : memref<8x32xf32, #tpu.memory_space<vmem>>, vector<8x8xf32>
    tpu.vector_store %arg14[%c0_49, %c16_50], %102 {strides = array<i32>} : memref<8x32xf32, #tpu.memory_space<vmem>>, vector<8x8xf32>,
    %c0_51 = arith.constant 0 : index
    %c16_52 = arith.constant 16 : index
    %104 = vector.load %arg15[%c0_51, %c16_52] : memref<8x32xf32, #tpu.memory_space<vmem>>, vector<8x8xf32>
    %105 = arith.mulf %91, %104 : vector<8x8xf32>
    %106 = arith.truncf %95 : vector<8x24xf32> to vector<8x24xbf16>
    %107 = vector.extract_strided_slice %4 {offsets = [0, 48], sizes = [24, 8], strides = [1, 1]} : vector<24x64xbf16> to vector<24x8xbf16>
    %cst_53 = arith.constant dense<0.000000e+00> : vector<8x8xf32>
    %108 = tpu.matmul %106, %107, %cst_53 {dimension_numbers = #tpu.dot_dimension_numbers<[1], [0], [0], [1], [0, 0, 1, 1], [], []>} : vector<8x24xbf16>, vector<24x8xbf16>, vector<8x8xf32> -> vector<8x8xf32>
    %109 = arith.addf %105, %108 : vector<8x8xf32>
    %c0_54 = arith.constant 0 : index
    %c16_55 = arith.constant 16 : index
    %110 = vector.load %arg15[%c0_54, %c16_55] : memref<8x32xf32, #tpu.memory_space<vmem>>, vector<8x8xf32>
    tpu.vector_store %arg15[%c0_54, %c16_55], %109 {strides = array<i32>} : memref<8x32xf32, #tpu.memory_space<vmem>>, vector<8x8xf32>,
    %111 = vector.extract_strided_slice %5 {offsets = [0, 24], sizes = [8, 8], strides = [1, 1]} : vector<8x32xbf16> to vector<8x8xbf16>
    %112 = vector.extract_strided_slice %4 {offsets = [0, 24], sizes = [24, 8], strides = [1, 1]} : vector<24x64xbf16> to vector<24x8xbf16>
    %cst_56 = arith.constant dense<0.000000e+00> : vector<8x24xf32>
    %113 = tpu.matmul %111, %112, %cst_56 {dimension_numbers = #tpu.dot_dimension_numbers<[1], [1], [0], [0], [0, 0, 1, 0], [], []>} : vector<8x8xbf16>, vector<24x8xbf16>, vector<8x24xf32> -> vector<8x24xf32>
    %cst_57 = arith.constant 0.353553385 : f32
    %114 = vector.broadcast %cst_57 : f32 to vector<8x24xf32>
    %115 = arith.mulf %113, %114 : vector<8x24xf32>
    %cst_58 = arith.constant 0xFF800000 : f32
    %116 = vector.broadcast %cst_58 : f32 to vector<8x24xf32>
    %117 = arith.select %11, %115, %116 : vector<8x24xi1>, vector<8x24xf32>
    %c0_59 = arith.constant 0 : index
    %c24 = arith.constant 24 : index
    %118 = vector.load %arg13[%c0_59, %c24] : memref<8x32xf32, #tpu.memory_space<vmem>>, vector<8x8xf32>
    %cst_60 = arith.constant dense<0xFF800000> : vector<8xf32>
    %119 = vector.multi_reduction <maximumf>, %117, %cst_60 [1] : vector<8x24xf32> to vector<8xf32>
    %120 = vector.shape_cast %119 : vector<8xf32> to vector<8x1xf32>
    %121 = vector.broadcast %120 : vector<8x1xf32> to vector<8x8xf32>
    %122 = arith.maximumf %118, %121 : vector<8x8xf32>
    %123 = arith.subf %118, %122 : vector<8x8xf32>
    %124 = math.exp %123 : vector<8x8xf32>
    %125 = vector.extract_strided_slice %122 {offsets = [0, 0], sizes = [8, 1], strides = [1, 1]} : vector<8x8xf32> to vector<8x1xf32>
    %126 = vector.broadcast %125 : vector<8x1xf32> to vector<8x24xf32>
    %127 = arith.subf %117, %126 : vector<8x24xf32>
    %128 = math.exp %127 : vector<8x24xf32>
    %c0_61 = arith.constant 0 : index
    %c24_62 = arith.constant 24 : index
    %129 = vector.load %arg13[%c0_61, %c24_62] : memref<8x32xf32, #tpu.memory_space<vmem>>, vector<8x8xf32>
    tpu.vector_store %arg13[%c0_61, %c24_62], %122 {strides = array<i32>} : memref<8x32xf32, #tpu.memory_space<vmem>>, vector<8x8xf32>,
    %c0_63 = arith.constant 0 : index
    %c24_64 = arith.constant 24 : index
    %130 = vector.load %arg14[%c0_63, %c24_64] : memref<8x32xf32, #tpu.memory_space<vmem>>, vector<8x8xf32>
    %131 = arith.mulf %124, %130 : vector<8x8xf32>
    %cst_65 = arith.constant dense<0.000000e+00> : vector<8xf32>
    %132 = vector.multi_reduction <add>, %128, %cst_65 [1] : vector<8x24xf32> to vector<8xf32>
    %133 = vector.shape_cast %132 : vector<8xf32> to vector<8x1xf32>
    %134 = vector.broadcast %133 : vector<8x1xf32> to vector<8x8xf32>
    %135 = arith.addf %131, %134 : vector<8x8xf32>
    %c0_66 = arith.constant 0 : index
    %c24_67 = arith.constant 24 : index
    %136 = vector.load %arg14[%c0_66, %c24_67] : memref<8x32xf32, #tpu.memory_space<vmem>>, vector<8x8xf32>
    tpu.vector_store %arg14[%c0_66, %c24_67], %135 {strides = array<i32>} : memref<8x32xf32, #tpu.memory_space<vmem>>, vector<8x8xf32>,
    %c0_68 = arith.constant 0 : index
    %c24_69 = arith.constant 24 : index
    %137 = vector.load %arg15[%c0_68, %c24_69] : memref<8x32xf32, #tpu.memory_space<vmem>>, vector<8x8xf32>
    %138 = arith.mulf %124, %137 : vector<8x8xf32>
    %139 = arith.truncf %128 : vector<8x24xf32> to vector<8x24xbf16>
    %140 = vector.extract_strided_slice %4 {offsets = [0, 56], sizes = [24, 8], strides = [1, 1]} : vector<24x64xbf16> to vector<24x8xbf16>
    %cst_70 = arith.constant dense<0.000000e+00> : vector<8x8xf32>
    %141 = tpu.matmul %139, %140, %cst_70 {dimension_numbers = #tpu.dot_dimension_numbers<[1], [0], [0], [1], [0, 0, 1, 1], [], []>} : vector<8x24xbf16>, vector<24x8xbf16>, vector<8x8xf32> -> vector<8x8xf32>
    %142 = arith.addf %138, %141 : vector<8x8xf32>
    %c0_71 = arith.constant 0 : index
    %c24_72 = arith.constant 24 : index
    %143 = vector.load %arg15[%c0_71, %c24_72] : memref<8x32xf32, #tpu.memory_space<vmem>>, vector<8x8xf32>
    tpu.vector_store %arg15[%c0_71, %c24_72], %142 {strides = array<i32>} : memref<8x32xf32, #tpu.memory_space<vmem>>, vector<8x8xf32>,
    %c0_i32_73 = arith.constant 0 : i32
    %144 = arith.cmpi eq, %arg2, %c0_i32_73 : i32
    %145 = arith.extui %144 : i1 to i32
    %c0_i32_74 = arith.constant 0 : i32
    %146 = arith.cmpi ne, %145, %c0_i32_74 : i32
    scf.if %146 {
      %c0_75 = arith.constant 0 : index
      %c0_76 = arith.constant 0 : index
      %147 = vector.load %arg14[%c0_75, %c0_76] : memref<8x32xf32, #tpu.memory_space<vmem>>, vector<8x32xf32>
      %148 = tpu.reciprocal %147 {approx = true} : vector<8x32xf32> -> vector<8x32xf32>
      %c0_77 = arith.constant 0 : index
      %c0_78 = arith.constant 0 : index
      %149 = vector.load %arg15[%c0_77, %c0_78] : memref<8x32xf32, #tpu.memory_space<vmem>>, vector<8x32xf32>
      %150 = arith.mulf %149, %148 : vector<8x32xf32>
      %151 = arith.truncf %150 : vector<8x32xf32> to vector<8x32xbf16>
      %c0_79 = arith.constant 0 : index
      %c0_80 = arith.constant 0 : index
      %152 = vector.load %arg9[%c0_79, %c0_80] : memref<32x32xbf16, #tpu.memory_space<vmem>>, vector<32x32xbf16>
      %cst_81 = arith.constant dense<0.000000e+00> : vector<8x32xf32>
      %153 = tpu.matmul %151, %152, %cst_81 {dimension_numbers = #tpu.dot_dimension_numbers<[1], [0], [0], [1], [0, 0, 1, 1], [], []>} : vector<8x32xbf16>, vector<32x32xbf16>, vector<8x32xf32> -> vector<8x32xf32>
      %c0_82 = arith.constant 0 : index
      %c0_83 = arith.constant 0 : index
      %154 = vector.load %arg10[%c0_82, %c0_83] : memref<1x32xf32, #tpu.memory_space<vmem>>, vector<1x32xf32>
      %155 = vector.broadcast %154 : vector<1x32xf32> to vector<8x32xf32>
      %156 = arith.addf %153, %155 : vector<8x32xf32>
      %c0_84 = arith.constant 0 : index
      %c0_85 = arith.constant 0 : index
      %c0_86 = arith.constant 0 : index
      %157 = vector.load %arg3[%c0_84, %c0_85, %c0_86] : memref<1x8x32xf32, #tpu.memory_space<vmem>>, vector<1x8x32xf32>
      %158 = vector.shape_cast %157 : vector<1x8x32xf32> to vector<8x32xf32>
      %159 = arith.addf %158, %156 : vector<8x32xf32>
      %c0_87 = arith.constant 0 : index
      %c0_88 = arith.constant 0 : index
      %c0_89 = arith.constant 0 : index
      %160 = vector.load %arg11[%c0_87, %c0_88, %c0_89] : memref<1x8x32xf32, #tpu.memory_space<vmem>>, vector<1x8x32xf32>
      %161 = vector.shape_cast %160 : vector<1x8x32xf32> to vector<8x32xf32>
      %162 = vector.shape_cast %159 : vector<8x32xf32> to vector<1x8x32xf32>
      tpu.vector_store %arg11[%c0_87, %c0_88, %c0_89], %162 {strides = array<i32>} : memref<1x8x32xf32, #tpu.memory_space<vmem>>, vector<1x8x32xf32>,
    } else {
    }
    return
  }
  func.func @transform_0(%arg0: i32, %arg1: i32, %arg2: i32) -> (i32, i32, i32) {
    %c0_i32 = arith.constant 0 : i32
    %c0_i32_0 = arith.constant 0 : i32
    return %arg0, %arg1, %c0_i32 : i32, i32, i32
  }
  func.func @transform_1(%arg0: i32, %arg1: i32, %arg2: i32) -> (i32, i32, i32) {
    %c0_i32 = arith.constant 0 : i32
    %c0_i32_0 = arith.constant 0 : i32
    return %arg0, %arg2, %c0_i32 : i32, i32, i32
  }
  func.func @transform_2(%arg0: i32, %arg1: i32, %arg2: i32) -> (i32, i32) {
    %c0_i32 = arith.constant 0 : i32
    %c0_i32_0 = arith.constant 0 : i32
    %c0_i32_1 = arith.constant 0 : i32
    return %c0_i32, %c0_i32_0 : i32, i32
  }
  func.func @transform_3(%arg0: i32, %arg1: i32, %arg2: i32) -> (i32, i32) {
    %c0_i32 = arith.constant 0 : i32
    %c0_i32_0 = arith.constant 0 : i32
    %c0_i32_1 = arith.constant 0 : i32
    return %c0_i32, %c0_i32_0 : i32, i32
  }
  func.func @transform_4(%arg0: i32, %arg1: i32, %arg2: i32) -> (i32, i32) {
    %c0_i32 = arith.constant 0 : i32
    %c0_i32_0 = arith.constant 0 : i32
    %c0_i32_1 = arith.constant 0 : i32
    return %c0_i32, %c0_i32_0 : i32, i32
  }
  func.func @transform_5(%arg0: i32, %arg1: i32, %arg2: i32) -> (i32, i32) {
    %c0_i32 = arith.constant 0 : i32
    %c0_i32_0 = arith.constant 0 : i32
    %c0_i32_1 = arith.constant 0 : i32
    return %c0_i32, %c0_i32_0 : i32, i32
  }
  func.func @transform_6(%arg0: i32, %arg1: i32, %arg2: i32) -> (i32, i32) {
    %c0_i32 = arith.constant 0 : i32
    %c0_i32_0 = arith.constant 0 : i32
    %c0_i32_1 = arith.constant 0 : i32
    return %c0_i32, %c0_i32_0 : i32, i32
  }
  func.func @transform_7(%arg0: i32, %arg1: i32, %arg2: i32) -> (i32, i32) {
    %c0_i32 = arith.constant 0 : i32
    %c0_i32_0 = arith.constant 0 : i32
    %c0_i32_1 = arith.constant 0 : i32
    return %c0_i32, %c0_i32_0 : i32, i32
  }
  func.func @transform_8(%arg0: i32, %arg1: i32, %arg2: i32) -> (i32, i32, i32) {
    %c0_i32 = arith.constant 0 : i32
    %c0_i32_0 = arith.constant 0 : i32
    return %arg0, %arg1, %c0_i32 : i32, i32, i32
  }
}

module attributes {stable_mosaic.version = 11 : i64} {
  func.func @_mlp_block_kernel(%arg0: i32, %arg1: memref<16x32xf32, #tpu.memory_space<vmem>>, %arg2: memref<1x32xf32, #tpu.memory_space<vmem>>, %arg3: memref<1x32xf32, #tpu.memory_space<vmem>>, %arg4: memref<32x128xbf16, #tpu.memory_space<vmem>>, %arg5: memref<1x128xf32, #tpu.memory_space<vmem>>, %arg6: memref<128x32xbf16, #tpu.memory_space<vmem>>, %arg7: memref<1x32xf32, #tpu.memory_space<vmem>>, %arg8: memref<16x32xf32, #tpu.memory_space<vmem>>) attributes {dimension_semantics = [#tpu.dimension_semantics<parallel>], iteration_bounds = array<i64: 1>, scalar_prefetch = 0 : i64, scratch_operands = 0 : i64, tpu.core_type = #tpu.core_type<tc>, window_params = [{transform_indices = @transform_0, window_bounds = array<i64: 16, 32>}, {pipeline_mode = #tpu.pipeline_mode<synchronous>, transform_indices = @transform_1, window_bounds = array<i64: 1, 32>}, {pipeline_mode = #tpu.pipeline_mode<synchronous>, transform_indices = @transform_2, window_bounds = array<i64: 1, 32>}, {pipeline_mode = #tpu.pipeline_mode<synchronous>, transform_indices = @transform_3, window_bounds = array<i64: 32, 128>}, {pipeline_mode = #tpu.pipeline_mode<synchronous>, transform_indices = @transform_4, window_bounds = array<i64: 1, 128>}, {pipeline_mode = #tpu.pipeline_mode<synchronous>, transform_indices = @transform_5, window_bounds = array<i64: 128, 32>}, {pipeline_mode = #tpu.pipeline_mode<synchronous>, transform_indices = @transform_6, window_bounds = array<i64: 1, 32>}, {transform_indices = @transform_7, window_bounds = array<i64: 16, 32>}]} {
    %c0 = arith.constant 0 : index
    %c0_0 = arith.constant 0 : index
    %0 = vector.load %arg1[%c0, %c0_0] : memref<16x32xf32, #tpu.memory_space<vmem>>, vector<16x32xf32>
    %c0_1 = arith.constant 0 : index
    %c0_2 = arith.constant 0 : index
    %1 = vector.load %arg2[%c0_1, %c0_2] : memref<1x32xf32, #tpu.memory_space<vmem>>, vector<1x32xf32>
    %c0_3 = arith.constant 0 : index
    %c0_4 = arith.constant 0 : index
    %2 = vector.load %arg3[%c0_3, %c0_4] : memref<1x32xf32, #tpu.memory_space<vmem>>, vector<1x32xf32>
    %cst = arith.constant dense<0.000000e+00> : vector<16xf32>
    %3 = vector.multi_reduction <add>, %0, %cst [1] : vector<16x32xf32> to vector<16xf32>
    %4 = vector.shape_cast %3 : vector<16xf32> to vector<16x1xf32>
    %cst_5 = arith.constant 3.200000e+01 : f32
    %5 = vector.broadcast %cst_5 : f32 to vector<16x1xf32>
    %6 = arith.divf %4, %5 : vector<16x1xf32>
    %7 = vector.broadcast %6 : vector<16x1xf32> to vector<16x32xf32>
    %8 = arith.subf %0, %7 : vector<16x32xf32>
    %9 = arith.mulf %8, %8 : vector<16x32xf32>
    %cst_6 = arith.constant dense<0.000000e+00> : vector<16xf32>
    %10 = vector.multi_reduction <add>, %9, %cst_6 [1] : vector<16x32xf32> to vector<16xf32>
    %11 = vector.shape_cast %10 : vector<16xf32> to vector<16x1xf32>
    %cst_7 = arith.constant 3.200000e+01 : f32
    %12 = vector.broadcast %cst_7 : f32 to vector<16x1xf32>
    %13 = arith.divf %11, %12 : vector<16x1xf32>
    %cst_8 = arith.constant 9.99999974E-6 : f32
    %14 = vector.broadcast %cst_8 : f32 to vector<16x1xf32>
    %15 = arith.addf %13, %14 : vector<16x1xf32>
    %16 = math.rsqrt %15 : vector<16x1xf32>
    %17 = vector.broadcast %16 : vector<16x1xf32> to vector<16x32xf32>
    %18 = arith.mulf %8, %17 : vector<16x32xf32>
    %19 = vector.broadcast %1 : vector<1x32xf32> to vector<16x32xf32>
    %20 = arith.mulf %18, %19 : vector<16x32xf32>
    %21 = vector.broadcast %2 : vector<1x32xf32> to vector<16x32xf32>
    %22 = arith.addf %20, %21 : vector<16x32xf32>
    %23 = arith.truncf %22 : vector<16x32xf32> to vector<16x32xbf16>
    %c0_9 = arith.constant 0 : index
    %c0_10 = arith.constant 0 : index
    %24 = vector.load %arg4[%c0_9, %c0_10] : memref<32x128xbf16, #tpu.memory_space<vmem>>, vector<32x128xbf16>
    %cst_11 = arith.constant dense<0.000000e+00> : vector<16x128xf32>
    %25 = tpu.matmul %23, %24, %cst_11 {dimension_numbers = #tpu.dot_dimension_numbers<[1], [0], [0], [1], [0, 0, 1, 1], [], []>} : vector<16x32xbf16>, vector<32x128xbf16>, vector<16x128xf32> -> vector<16x128xf32>
    %c0_12 = arith.constant 0 : index
    %c0_13 = arith.constant 0 : index
    %26 = vector.load %arg5[%c0_12, %c0_13] : memref<1x128xf32, #tpu.memory_space<vmem>>, vector<1x128xf32>
    %27 = vector.broadcast %26 : vector<1x128xf32> to vector<16x128xf32>
    %28 = arith.addf %25, %27 : vector<16x128xf32>
    %cst_14 = arith.constant 5.000000e-01 : f32
    %29 = vector.broadcast %cst_14 : f32 to vector<16x128xf32>
    %30 = arith.mulf %29, %28 : vector<16x128xf32>
    %cst_15 = arith.constant 4.471500e-02 : f32
    %31 = vector.broadcast %cst_15 : f32 to vector<16x128xf32>
    %32 = arith.mulf %31, %28 : vector<16x128xf32>
    %33 = arith.mulf %32, %28 : vector<16x128xf32>
    %34 = arith.mulf %33, %28 : vector<16x128xf32>
    %35 = arith.addf %28, %34 : vector<16x128xf32>
    %cst_16 = arith.constant 0.797884583 : f32
    %36 = vector.broadcast %cst_16 : f32 to vector<16x128xf32>
    %37 = arith.mulf %36, %35 : vector<16x128xf32>
    %38 = math.tanh %37 : vector<16x128xf32>
    %cst_17 = arith.constant 1.000000e+00 : f32
    %39 = vector.broadcast %cst_17 : f32 to vector<16x128xf32>
    %40 = arith.addf %39, %38 : vector<16x128xf32>
    %41 = arith.mulf %30, %40 : vector<16x128xf32>
    %42 = arith.truncf %41 : vector<16x128xf32> to vector<16x128xbf16>
    %c0_18 = arith.constant 0 : index
    %c0_19 = arith.constant 0 : index
    %43 = vector.load %arg6[%c0_18, %c0_19] : memref<128x32xbf16, #tpu.memory_space<vmem>>, vector<128x32xbf16>
    %cst_20 = arith.constant dense<0.000000e+00> : vector<16x32xf32>
    %44 = tpu.matmul %42, %43, %cst_20 {dimension_numbers = #tpu.dot_dimension_numbers<[1], [0], [0], [1], [0, 0, 1, 1], [], []>} : vector<16x128xbf16>, vector<128x32xbf16>, vector<16x32xf32> -> vector<16x32xf32>
    %c0_21 = arith.constant 0 : index
    %c0_22 = arith.constant 0 : index
    %45 = vector.load %arg7[%c0_21, %c0_22] : memref<1x32xf32, #tpu.memory_space<vmem>>, vector<1x32xf32>
    %46 = vector.broadcast %45 : vector<1x32xf32> to vector<16x32xf32>
    %47 = arith.addf %44, %46 : vector<16x32xf32>
    %48 = arith.addf %0, %47 : vector<16x32xf32>
    %c0_23 = arith.constant 0 : index
    %c0_24 = arith.constant 0 : index
    %49 = vector.load %arg8[%c0_23, %c0_24] : memref<16x32xf32, #tpu.memory_space<vmem>>, vector<16x32xf32>
    tpu.vector_store %arg8[%c0_23, %c0_24], %48 {strides = array<i32>} : memref<16x32xf32, #tpu.memory_space<vmem>>, vector<16x32xf32>,
    return
  }
  func.func @transform_0(%arg0: i32) -> (i32, i32) {
    %c0_i32 = arith.constant 0 : i32
    %c0_i32_0 = arith.constant 0 : i32
    return %arg0, %c0_i32 : i32, i32
  }
  func.func @transform_1(%arg0: i32) -> (i32, i32) {
    %c0_i32 = arith.constant 0 : i32
    %c0_i32_0 = arith.constant 0 : i32
    %c0_i32_1 = arith.constant 0 : i32
    return %c0_i32, %c0_i32_0 : i32, i32
  }
  func.func @transform_2(%arg0: i32) -> (i32, i32) {
    %c0_i32 = arith.constant 0 : i32
    %c0_i32_0 = arith.constant 0 : i32
    %c0_i32_1 = arith.constant 0 : i32
    return %c0_i32, %c0_i32_0 : i32, i32
  }
  func.func @transform_3(%arg0: i32) -> (i32, i32) {
    %c0_i32 = arith.constant 0 : i32
    %c0_i32_0 = arith.constant 0 : i32
    %c0_i32_1 = arith.constant 0 : i32
    return %c0_i32, %c0_i32_0 : i32, i32
  }
  func.func @transform_4(%arg0: i32) -> (i32, i32) {
    %c0_i32 = arith.constant 0 : i32
    %c0_i32_0 = arith.constant 0 : i32
    %c0_i32_1 = arith.constant 0 : i32
    return %c0_i32, %c0_i32_0 : i32, i32
  }
  func.func @transform_5(%arg0: i32) -> (i32, i32) {
    %c0_i32 = arith.constant 0 : i32
    %c0_i32_0 = arith.constant 0 : i32
    %c0_i32_1 = arith.constant 0 : i32
    return %c0_i32, %c0_i32_0 : i32, i32
  }
  func.func @transform_6(%arg0: i32) -> (i32, i32) {
    %c0_i32 = arith.constant 0 : i32
    %c0_i32_0 = arith.constant 0 : i32
    %c0_i32_1 = arith.constant 0 : i32
    return %c0_i32, %c0_i32_0 : i32, i32
  }
  func.func @transform_7(%arg0: i32) -> (i32, i32) {
    %c0_i32 = arith.constant 0 : i32
    %c0_i32_0 = arith.constant 0 : i32
    return %arg0, %c0_i32 : i32, i32
  }
}

module attributes {stable_mosaic.version = 11 : i64} {
  func.func @_ln_linear_kernel(%arg0: i32, %arg1: memref<8x32xf32, #tpu.memory_space<vmem>>, %arg2: memref<1x32xf32, #tpu.memory_space<vmem>>, %arg3: memref<1x32xf32, #tpu.memory_space<vmem>>, %arg4: memref<32x64xbf16, #tpu.memory_space<vmem>>, %arg5: memref<1x64xf32, #tpu.memory_space<vmem>>, %arg6: memref<8x64xbf16, #tpu.memory_space<vmem>>) attributes {dimension_semantics = [#tpu.dimension_semantics<parallel>], iteration_bounds = array<i64: 2>, scalar_prefetch = 0 : i64, scratch_operands = 0 : i64, tpu.core_type = #tpu.core_type<tc>, window_params = [{transform_indices = @transform_0, window_bounds = array<i64: 8, 32>}, {pipeline_mode = #tpu.pipeline_mode<synchronous>, transform_indices = @transform_1, window_bounds = array<i64: 1, 32>}, {pipeline_mode = #tpu.pipeline_mode<synchronous>, transform_indices = @transform_2, window_bounds = array<i64: 1, 32>}, {pipeline_mode = #tpu.pipeline_mode<synchronous>, transform_indices = @transform_3, window_bounds = array<i64: 32, 64>}, {pipeline_mode = #tpu.pipeline_mode<synchronous>, transform_indices = @transform_4, window_bounds = array<i64: 1, 64>}, {transform_indices = @transform_5, window_bounds = array<i64: 8, 64>}]} {
    %c0 = arith.constant 0 : index
    %c0_0 = arith.constant 0 : index
    %0 = vector.load %arg1[%c0, %c0_0] : memref<8x32xf32, #tpu.memory_space<vmem>>, vector<8x32xf32>
    %c0_1 = arith.constant 0 : index
    %c0_2 = arith.constant 0 : index
    %1 = vector.load %arg2[%c0_1, %c0_2] : memref<1x32xf32, #tpu.memory_space<vmem>>, vector<1x32xf32>
    %c0_3 = arith.constant 0 : index
    %c0_4 = arith.constant 0 : index
    %2 = vector.load %arg3[%c0_3, %c0_4] : memref<1x32xf32, #tpu.memory_space<vmem>>, vector<1x32xf32>
    %cst = arith.constant dense<0.000000e+00> : vector<8xf32>
    %3 = vector.multi_reduction <add>, %0, %cst [1] : vector<8x32xf32> to vector<8xf32>
    %4 = vector.shape_cast %3 : vector<8xf32> to vector<8x1xf32>
    %cst_5 = arith.constant 3.200000e+01 : f32
    %5 = vector.broadcast %cst_5 : f32 to vector<8x1xf32>
    %6 = arith.divf %4, %5 : vector<8x1xf32>
    %7 = vector.broadcast %6 : vector<8x1xf32> to vector<8x32xf32>
    %8 = arith.subf %0, %7 : vector<8x32xf32>
    %9 = arith.mulf %8, %8 : vector<8x32xf32>
    %cst_6 = arith.constant dense<0.000000e+00> : vector<8xf32>
    %10 = vector.multi_reduction <add>, %9, %cst_6 [1] : vector<8x32xf32> to vector<8xf32>
    %11 = vector.shape_cast %10 : vector<8xf32> to vector<8x1xf32>
    %cst_7 = arith.constant 3.200000e+01 : f32
    %12 = vector.broadcast %cst_7 : f32 to vector<8x1xf32>
    %13 = arith.divf %11, %12 : vector<8x1xf32>
    %cst_8 = arith.constant 9.99999974E-6 : f32
    %14 = vector.broadcast %cst_8 : f32 to vector<8x1xf32>
    %15 = arith.addf %13, %14 : vector<8x1xf32>
    %16 = math.rsqrt %15 : vector<8x1xf32>
    %17 = vector.broadcast %16 : vector<8x1xf32> to vector<8x32xf32>
    %18 = arith.mulf %8, %17 : vector<8x32xf32>
    %19 = vector.broadcast %1 : vector<1x32xf32> to vector<8x32xf32>
    %20 = arith.mulf %18, %19 : vector<8x32xf32>
    %21 = vector.broadcast %2 : vector<1x32xf32> to vector<8x32xf32>
    %22 = arith.addf %20, %21 : vector<8x32xf32>
    %23 = arith.truncf %22 : vector<8x32xf32> to vector<8x32xbf16>
    %c0_9 = arith.constant 0 : index
    %c0_10 = arith.constant 0 : index
    %24 = vector.load %arg4[%c0_9, %c0_10] : memref<32x64xbf16, #tpu.memory_space<vmem>>, vector<32x64xbf16>
    %cst_11 = arith.constant dense<0.000000e+00> : vector<8x64xf32>
    %25 = tpu.matmul %23, %24, %cst_11 {dimension_numbers = #tpu.dot_dimension_numbers<[1], [0], [0], [1], [0, 0, 1, 1], [], []>} : vector<8x32xbf16>, vector<32x64xbf16>, vector<8x64xf32> -> vector<8x64xf32>
    %c0_12 = arith.constant 0 : index
    %c0_13 = arith.constant 0 : index
    %26 = vector.load %arg5[%c0_12, %c0_13] : memref<1x64xf32, #tpu.memory_space<vmem>>, vector<1x64xf32>
    %27 = vector.broadcast %26 : vector<1x64xf32> to vector<8x64xf32>
    %28 = arith.addf %25, %27 : vector<8x64xf32>
    %29 = arith.truncf %28 : vector<8x64xf32> to vector<8x64xbf16>
    %c0_14 = arith.constant 0 : index
    %c0_15 = arith.constant 0 : index
    %30 = vector.load %arg6[%c0_14, %c0_15] : memref<8x64xbf16, #tpu.memory_space<vmem>>, vector<8x64xbf16>
    tpu.vector_store %arg6[%c0_14, %c0_15], %29 {strides = array<i32>} : memref<8x64xbf16, #tpu.memory_space<vmem>>, vector<8x64xbf16>,
    return
  }
  func.func @transform_0(%arg0: i32) -> (i32, i32) {
    %c0_i32 = arith.constant 0 : i32
    %c0_i32_0 = arith.constant 0 : i32
    return %arg0, %c0_i32 : i32, i32
  }
  func.func @transform_1(%arg0: i32) -> (i32, i32) {
    %c0_i32 = arith.constant 0 : i32
    %c0_i32_0 = arith.constant 0 : i32
    %c0_i32_1 = arith.constant 0 : i32
    return %c0_i32, %c0_i32_0 : i32, i32
  }
  func.func @transform_2(%arg0: i32) -> (i32, i32) {
    %c0_i32 = arith.constant 0 : i32
    %c0_i32_0 = arith.constant 0 : i32
    %c0_i32_1 = arith.constant 0 : i32
    return %c0_i32, %c0_i32_0 : i32, i32
  }
  func.func @transform_3(%arg0: i32) -> (i32, i32) {
    %c0_i32 = arith.constant 0 : i32
    %c0_i32_0 = arith.constant 0 : i32
    %c0_i32_1 = arith.constant 0 : i32
    return %c0_i32, %c0_i32_0 : i32, i32
  }
  func.func @transform_4(%arg0: i32) -> (i32, i32) {
    %c0_i32 = arith.constant 0 : i32
    %c0_i32_0 = arith.constant 0 : i32
    %c0_i32_1 = arith.constant 0 : i32
    return %c0_i32, %c0_i32_0 : i32, i32
  }
  func.func @transform_5(%arg0: i32) -> (i32, i32) {
    %c0_i32 = arith.constant 0 : i32
    %c0_i32_0 = arith.constant 0 : i32
    return %arg0, %c0_i32 : i32, i32
  }
}

module attributes {stable_mosaic.version = 11 : i64} {
  func.func @_flash_attn_kernel(%arg0: i32, %arg1: i32, %arg2: i32, %arg3: memref<1x8x32xf32, #tpu.memory_space<vmem>>, %arg4: memref<1x8x64xbf16, #tpu.memory_space<vmem>>, %arg5: memref<1x32xf32, #tpu.memory_space<vmem>>, %arg6: memref<1x32xf32, #tpu.memory_space<vmem>>, %arg7: memref<32x32xbf16, #tpu.memory_space<vmem>>, %arg8: memref<1x32xf32, #tpu.memory_space<vmem>>, %arg9: memref<32x32xbf16, #tpu.memory_space<vmem>>, %arg10: memref<1x32xf32, #tpu.memory_space<vmem>>, %arg11: memref<1x8x32xf32, #tpu.memory_space<vmem>>, %arg12: memref<8x32xbf16, #tpu.memory_space<vmem>>, %arg13: memref<8x32xf32, #tpu.memory_space<vmem>>, %arg14: memref<8x32xf32, #tpu.memory_space<vmem>>, %arg15: memref<8x32xf32, #tpu.memory_space<vmem>>) attributes {dimension_semantics = [#tpu.dimension_semantics<parallel>, #tpu.dimension_semantics<parallel>, #tpu.dimension_semantics<arbitrary>], iteration_bounds = array<i64: 2, 1, 1>, scalar_prefetch = 0 : i64, scratch_operands = 4 : i64, tpu.core_type = #tpu.core_type<tc>, window_params = [{transform_indices = @transform_0, window_bounds = array<i64: 1, 8, 32>}, {transform_indices = @transform_1, window_bounds = array<i64: 1, 8, 64>}, {pipeline_mode = #tpu.pipeline_mode<synchronous>, transform_indices = @transform_2, window_bounds = array<i64: 1, 32>}, {pipeline_mode = #tpu.pipeline_mode<synchronous>, transform_indices = @transform_3, window_bounds = array<i64: 1, 32>}, {pipeline_mode = #tpu.pipeline_mode<synchronous>, transform_indices = @transform_4, window_bounds = array<i64: 32, 32>}, {pipeline_mode = #tpu.pipeline_mode<synchronous>, transform_indices = @transform_5, window_bounds = array<i64: 1, 32>}, {pipeline_mode = #tpu.pipeline_mode<synchronous>, transform_indices = @transform_6, window_bounds = array<i64: 32, 32>}, {pipeline_mode = #tpu.pipeline_mode<synchronous>, transform_indices = @transform_7, window_bounds = array<i64: 1, 32>}, {transform_indices = @transform_8, window_bounds = array<i64: 1, 8, 32>}]} {
    %c0_i32 = arith.constant 0 : i32
    %0 = arith.cmpi eq, %arg2, %c0_i32 : i32
    %1 = arith.extui %0 : i1 to i32
    %c0_i32_0 = arith.constant 0 : i32
    %2 = arith.cmpi ne, %1, %c0_i32_0 : i32
    scf.if %2 {
      %c0_71 = arith.constant 0 : index
      %c0_72 = arith.constant 0 : index
      %c0_73 = arith.constant 0 : index
      %133 = vector.load %arg3[%c0_71, %c0_72, %c0_73] : memref<1x8x32xf32, #tpu.memory_space<vmem>>, vector<1x8x32xf32>
      %134 = vector.shape_cast %133 : vector<1x8x32xf32> to vector<8x32xf32>
      %c0_74 = arith.constant 0 : index
      %c0_75 = arith.constant 0 : index
      %135 = vector.load %arg5[%c0_74, %c0_75] : memref<1x32xf32, #tpu.memory_space<vmem>>, vector<1x32xf32>
      %c0_76 = arith.constant 0 : index
      %c0_77 = arith.constant 0 : index
      %136 = vector.load %arg6[%c0_76, %c0_77] : memref<1x32xf32, #tpu.memory_space<vmem>>, vector<1x32xf32>
      %cst_78 = arith.constant dense<0.000000e+00> : vector<8xf32>
      %137 = vector.multi_reduction <add>, %134, %cst_78 [1] : vector<8x32xf32> to vector<8xf32>
      %138 = vector.shape_cast %137 : vector<8xf32> to vector<8x1xf32>
      %cst_79 = arith.constant 3.200000e+01 : f32
      %139 = vector.broadcast %cst_79 : f32 to vector<8x1xf32>
      %140 = arith.divf %138, %139 : vector<8x1xf32>
      %141 = vector.broadcast %140 : vector<8x1xf32> to vector<8x32xf32>
      %142 = arith.subf %134, %141 : vector<8x32xf32>
      %143 = arith.mulf %142, %142 : vector<8x32xf32>
      %cst_80 = arith.constant dense<0.000000e+00> : vector<8xf32>
      %144 = vector.multi_reduction <add>, %143, %cst_80 [1] : vector<8x32xf32> to vector<8xf32>
      %145 = vector.shape_cast %144 : vector<8xf32> to vector<8x1xf32>
      %cst_81 = arith.constant 3.200000e+01 : f32
      %146 = vector.broadcast %cst_81 : f32 to vector<8x1xf32>
      %147 = arith.divf %145, %146 : vector<8x1xf32>
      %cst_82 = arith.constant 9.99999974E-6 : f32
      %148 = vector.broadcast %cst_82 : f32 to vector<8x1xf32>
      %149 = arith.addf %147, %148 : vector<8x1xf32>
      %150 = math.rsqrt %149 : vector<8x1xf32>
      %151 = vector.broadcast %150 : vector<8x1xf32> to vector<8x32xf32>
      %152 = arith.mulf %142, %151 : vector<8x32xf32>
      %153 = vector.broadcast %135 : vector<1x32xf32> to vector<8x32xf32>
      %154 = arith.mulf %152, %153 : vector<8x32xf32>
      %155 = vector.broadcast %136 : vector<1x32xf32> to vector<8x32xf32>
      %156 = arith.addf %154, %155 : vector<8x32xf32>
      %157 = arith.truncf %156 : vector<8x32xf32> to vector<8x32xbf16>
      %c0_83 = arith.constant 0 : index
      %c0_84 = arith.constant 0 : index
      %158 = vector.load %arg7[%c0_83, %c0_84] : memref<32x32xbf16, #tpu.memory_space<vmem>>, vector<32x32xbf16>
      %cst_85 = arith.constant dense<0.000000e+00> : vector<8x32xf32>
      %159 = tpu.matmul %157, %158, %cst_85 {dimension_numbers = #tpu.dot_dimension_numbers<[1], [0], [0], [1], [0, 0, 1, 1], [], []>} : vector<8x32xbf16>, vector<32x32xbf16>, vector<8x32xf32> -> vector<8x32xf32>
      %c0_86 = arith.constant 0 : index
      %c0_87 = arith.constant 0 : index
      %160 = vector.load %arg8[%c0_86, %c0_87] : memref<1x32xf32, #tpu.memory_space<vmem>>, vector<1x32xf32>
      %161 = vector.broadcast %160 : vector<1x32xf32> to vector<8x32xf32>
      %162 = arith.addf %159, %161 : vector<8x32xf32>
      %163 = arith.truncf %162 : vector<8x32xf32> to vector<8x32xbf16>
      %c0_88 = arith.constant 0 : index
      %c0_89 = arith.constant 0 : index
      %164 = vector.load %arg12[%c0_88, %c0_89] : memref<8x32xbf16, #tpu.memory_space<vmem>>, vector<8x32xbf16>
      tpu.vector_store %arg12[%c0_88, %c0_89], %163 {strides = array<i32>} : memref<8x32xbf16, #tpu.memory_space<vmem>>, vector<8x32xbf16>,
      %cst_90 = arith.constant 0xFF800000 : f32
      %165 = vector.broadcast %cst_90 : f32 to vector<8x32xf32>
      %c0_91 = arith.constant 0 : index
      %c0_92 = arith.constant 0 : index
      %166 = vector.load %arg13[%c0_91, %c0_92] : memref<8x32xf32, #tpu.memory_space<vmem>>, vector<8x32xf32>
      tpu.vector_store %arg13[%c0_91, %c0_92], %165 {strides = array<i32>} : memref<8x32xf32, #tpu.memory_space<vmem>>, vector<8x32xf32>,
      %cst_93 = arith.constant 0.000000e+00 : f32
      %167 = vector.broadcast %cst_93 : f32 to vector<8x32xf32>
      %c0_94 = arith.constant 0 : index
      %c0_95 = arith.constant 0 : index
      %168 = vector.load %arg14[%c0_94, %c0_95] : memref<8x32xf32, #tpu.memory_space<vmem>>, vector<8x32xf32>
      tpu.vector_store %arg14[%c0_94, %c0_95], %167 {strides = array<i32>} : memref<8x32xf32, #tpu.memory_space<vmem>>, vector<8x32xf32>,
      %cst_96 = arith.constant 0.000000e+00 : f32
      %169 = vector.broadcast %cst_96 : f32 to vector<8x32xf32>
      %c0_97 = arith.constant 0 : index
      %c0_98 = arith.constant 0 : index
      %170 = vector.load %arg15[%c0_97, %c0_98] : memref<8x32xf32, #tpu.memory_space<vmem>>, vector<8x32xf32>
      tpu.vector_store %arg15[%c0_97, %c0_98], %169 {strides = array<i32>} : memref<8x32xf32, #tpu.memory_space<vmem>>, vector<8x32xf32>,
    } else {
    }
    %c0 = arith.constant 0 : index
    %c0_1 = arith.constant 0 : index
    %c0_2 = arith.constant 0 : index
    %3 = vector.load %arg4[%c0, %c0_1, %c0_2] : memref<1x8x64xbf16, #tpu.memory_space<vmem>>, vector<1x8x64xbf16>
    %4 = vector.shape_cast %3 : vector<1x8x64xbf16> to vector<8x64xbf16>
    %c0_3 = arith.constant 0 : index
    %c0_4 = arith.constant 0 : index
    %5 = vector.load %arg12[%c0_3, %c0_4] : memref<8x32xbf16, #tpu.memory_space<vmem>>, vector<8x32xbf16>
    %6 = vector.extract_strided_slice %5 {offsets = [0, 0], sizes = [8, 8], strides = [1, 1]} : vector<8x32xbf16> to vector<8x8xbf16>
    %7 = vector.extract_strided_slice %4 {offsets = [0, 0], sizes = [8, 8], strides = [1, 1]} : vector<8x64xbf16> to vector<8x8xbf16>
    %cst = arith.constant dense<0.000000e+00> : vector<8x8xf32>
    %8 = tpu.matmul %6, %7, %cst {dimension_numbers = #tpu.dot_dimension_numbers<[1], [1], [0], [0], [0, 0, 1, 0], [], []>} : vector<8x8xbf16>, vector<8x8xbf16>, vector<8x8xf32> -> vector<8x8xf32>
    %cst_5 = arith.constant 0.353553385 : f32
    %9 = vector.broadcast %cst_5 : f32 to vector<8x8xf32>
    %10 = arith.mulf %8, %9 : vector<8x8xf32>
    %c0_6 = arith.constant 0 : index
    %c0_7 = arith.constant 0 : index
    %11 = vector.load %arg13[%c0_6, %c0_7] : memref<8x32xf32, #tpu.memory_space<vmem>>, vector<8x8xf32>
    %cst_8 = arith.constant dense<0xFF800000> : vector<8xf32>
    %12 = vector.multi_reduction <maximumf>, %10, %cst_8 [1] : vector<8x8xf32> to vector<8xf32>
    %13 = vector.shape_cast %12 : vector<8xf32> to vector<8x1xf32>
    %14 = vector.broadcast %13 : vector<8x1xf32> to vector<8x8xf32>
    %15 = arith.maximumf %11, %14 : vector<8x8xf32>
    %16 = arith.subf %11, %15 : vector<8x8xf32>
    %17 = math.exp %16 : vector<8x8xf32>
    %18 = vector.extract_strided_slice %15 {offsets = [0, 0], sizes = [8, 1], strides = [1, 1]} : vector<8x8xf32> to vector<8x1xf32>
    %19 = vector.broadcast %18 : vector<8x1xf32> to vector<8x8xf32>
    %20 = arith.subf %10, %19 : vector<8x8xf32>
    %21 = math.exp %20 : vector<8x8xf32>
    %c0_9 = arith.constant 0 : index
    %c0_10 = arith.constant 0 : index
    %22 = vector.load %arg13[%c0_9, %c0_10] : memref<8x32xf32, #tpu.memory_space<vmem>>, vector<8x8xf32>
    tpu.vector_store %arg13[%c0_9, %c0_10], %15 {strides = array<i32>} : memref<8x32xf32, #tpu.memory_space<vmem>>, vector<8x8xf32>,
    %c0_11 = arith.constant 0 : index
    %c0_12 = arith.constant 0 : index
    %23 = vector.load %arg14[%c0_11, %c0_12] : memref<8x32xf32, #tpu.memory_space<vmem>>, vector<8x8xf32>
    %24 = arith.mulf %17, %23 : vector<8x8xf32>
    %cst_13 = arith.constant dense<0.000000e+00> : vector<8xf32>
    %25 = vector.multi_reduction <add>, %21, %cst_13 [1] : vector<8x8xf32> to vector<8xf32>
    %26 = vector.shape_cast %25 : vector<8xf32> to vector<8x1xf32>
    %27 = vector.broadcast %26 : vector<8x1xf32> to vector<8x8xf32>
    %28 = arith.addf %24, %27 : vector<8x8xf32>
    %c0_14 = arith.constant 0 : index
    %c0_15 = arith.constant 0 : index
    %29 = vector.load %arg14[%c0_14, %c0_15] : memref<8x32xf32, #tpu.memory_space<vmem>>, vector<8x8xf32>
    tpu.vector_store %arg14[%c0_14, %c0_15], %28 {strides = array<i32>} : memref<8x32xf32, #tpu.memory_space<vmem>>, vector<8x8xf32>,
    %c0_16 = arith.constant 0 : index
    %c0_17 = arith.constant 0 : index
    %30 = vector.load %arg15[%c0_16, %c0_17] : memref<8x32xf32, #tpu.memory_space<vmem>>, vector<8x8xf32>
    %31 = arith.mulf %17, %30 : vector<8x8xf32>
    %32 = arith.truncf %21 : vector<8x8xf32> to vector<8x8xbf16>
    %33 = vector.extract_strided_slice %4 {offsets = [0, 32], sizes = [8, 8], strides = [1, 1]} : vector<8x64xbf16> to vector<8x8xbf16>
    %cst_18 = arith.constant dense<0.000000e+00> : vector<8x8xf32>
    %34 = tpu.matmul %32, %33, %cst_18 {dimension_numbers = #tpu.dot_dimension_numbers<[1], [0], [0], [1], [0, 0, 1, 1], [], []>} : vector<8x8xbf16>, vector<8x8xbf16>, vector<8x8xf32> -> vector<8x8xf32>
    %35 = arith.addf %31, %34 : vector<8x8xf32>
    %c0_19 = arith.constant 0 : index
    %c0_20 = arith.constant 0 : index
    %36 = vector.load %arg15[%c0_19, %c0_20] : memref<8x32xf32, #tpu.memory_space<vmem>>, vector<8x8xf32>
    tpu.vector_store %arg15[%c0_19, %c0_20], %35 {strides = array<i32>} : memref<8x32xf32, #tpu.memory_space<vmem>>, vector<8x8xf32>,
    %37 = vector.extract_strided_slice %5 {offsets = [0, 8], sizes = [8, 8], strides = [1, 1]} : vector<8x32xbf16> to vector<8x8xbf16>
    %38 = vector.extract_strided_slice %4 {offsets = [0, 8], sizes = [8, 8], strides = [1, 1]} : vector<8x64xbf16> to vector<8x8xbf16>
    %cst_21 = arith.constant dense<0.000000e+00> : vector<8x8xf32>
    %39 = tpu.matmul %37, %38, %cst_21 {dimension_numbers = #tpu.dot_dimension_numbers<[1], [1], [0], [0], [0, 0, 1, 0], [], []>} : vector<8x8xbf16>, vector<8x8xbf16>, vector<8x8xf32> -> vector<8x8xf32>
    %cst_22 = arith.constant 0.353553385 : f32
    %40 = vector.broadcast %cst_22 : f32 to vector<8x8xf32>
    %41 = arith.mulf %39, %40 : vector<8x8xf32>
    %c0_23 = arith.constant 0 : index
    %c8 = arith.constant 8 : index
    %42 = vector.load %arg13[%c0_23, %c8] : memref<8x32xf32, #tpu.memory_space<vmem>>, vector<8x8xf32>
    %cst_24 = arith.constant dense<0xFF800000> : vector<8xf32>
    %43 = vector.multi_reduction <maximumf>, %41, %cst_24 [1] : vector<8x8xf32> to vector<8xf32>
    %44 = vector.shape_cast %43 : vector<8xf32> to vector<8x1xf32>
    %45 = vector.broadcast %44 : vector<8x1xf32> to vector<8x8xf32>
    %46 = arith.maximumf %42, %45 : vector<8x8xf32>
    %47 = arith.subf %42, %46 : vector<8x8xf32>
    %48 = math.exp %47 : vector<8x8xf32>
    %49 = vector.extract_strided_slice %46 {offsets = [0, 0], sizes = [8, 1], strides = [1, 1]} : vector<8x8xf32> to vector<8x1xf32>
    %50 = vector.broadcast %49 : vector<8x1xf32> to vector<8x8xf32>
    %51 = arith.subf %41, %50 : vector<8x8xf32>
    %52 = math.exp %51 : vector<8x8xf32>
    %c0_25 = arith.constant 0 : index
    %c8_26 = arith.constant 8 : index
    %53 = vector.load %arg13[%c0_25, %c8_26] : memref<8x32xf32, #tpu.memory_space<vmem>>, vector<8x8xf32>
    tpu.vector_store %arg13[%c0_25, %c8_26], %46 {strides = array<i32>} : memref<8x32xf32, #tpu.memory_space<vmem>>, vector<8x8xf32>,
    %c0_27 = arith.constant 0 : index
    %c8_28 = arith.constant 8 : index
    %54 = vector.load %arg14[%c0_27, %c8_28] : memref<8x32xf32, #tpu.memory_space<vmem>>, vector<8x8xf32>
    %55 = arith.mulf %48, %54 : vector<8x8xf32>
    %cst_29 = arith.constant dense<0.000000e+00> : vector<8xf32>
    %56 = vector.multi_reduction <add>, %52, %cst_29 [1] : vector<8x8xf32> to vector<8xf32>
    %57 = vector.shape_cast %56 : vector<8xf32> to vector<8x1xf32>
    %58 = vector.broadcast %57 : vector<8x1xf32> to vector<8x8xf32>
    %59 = arith.addf %55, %58 : vector<8x8xf32>
    %c0_30 = arith.constant 0 : index
    %c8_31 = arith.constant 8 : index
    %60 = vector.load %arg14[%c0_30, %c8_31] : memref<8x32xf32, #tpu.memory_space<vmem>>, vector<8x8xf32>
    tpu.vector_store %arg14[%c0_30, %c8_31], %59 {strides = array<i32>} : memref<8x32xf32, #tpu.memory_space<vmem>>, vector<8x8xf32>,
    %c0_32 = arith.constant 0 : index
    %c8_33 = arith.constant 8 : index
    %61 = vector.load %arg15[%c0_32, %c8_33] : memref<8x32xf32, #tpu.memory_space<vmem>>, vector<8x8xf32>
    %62 = arith.mulf %48, %61 : vector<8x8xf32>
    %63 = arith.truncf %52 : vector<8x8xf32> to vector<8x8xbf16>
    %64 = vector.extract_strided_slice %4 {offsets = [0, 40], sizes = [8, 8], strides = [1, 1]} : vector<8x64xbf16> to vector<8x8xbf16>
    %cst_34 = arith.constant dense<0.000000e+00> : vector<8x8xf32>
    %65 = tpu.matmul %63, %64, %cst_34 {dimension_numbers = #tpu.dot_dimension_numbers<[1], [0], [0], [1], [0, 0, 1, 1], [], []>} : vector<8x8xbf16>, vector<8x8xbf16>, vector<8x8xf32> -> vector<8x8xf32>
    %66 = arith.addf %62, %65 : vector<8x8xf32>
    %c0_35 = arith.constant 0 : index
    %c8_36 = arith.constant 8 : index
    %67 = vector.load %arg15[%c0_35, %c8_36] : memref<8x32xf32, #tpu.memory_space<vmem>>, vector<8x8xf32>
    tpu.vector_store %arg15[%c0_35, %c8_36], %66 {strides = array<i32>} : memref<8x32xf32, #tpu.memory_space<vmem>>, vector<8x8xf32>,
    %68 = vector.extract_strided_slice %5 {offsets = [0, 16], sizes = [8, 8], strides = [1, 1]} : vector<8x32xbf16> to vector<8x8xbf16>
    %69 = vector.extract_strided_slice %4 {offsets = [0, 16], sizes = [8, 8], strides = [1, 1]} : vector<8x64xbf16> to vector<8x8xbf16>
    %cst_37 = arith.constant dense<0.000000e+00> : vector<8x8xf32>
    %70 = tpu.matmul %68, %69, %cst_37 {dimension_numbers = #tpu.dot_dimension_numbers<[1], [1], [0], [0], [0, 0, 1, 0], [], []>} : vector<8x8xbf16>, vector<8x8xbf16>, vector<8x8xf32> -> vector<8x8xf32>
    %cst_38 = arith.constant 0.353553385 : f32
    %71 = vector.broadcast %cst_38 : f32 to vector<8x8xf32>
    %72 = arith.mulf %70, %71 : vector<8x8xf32>
    %c0_39 = arith.constant 0 : index
    %c16 = arith.constant 16 : index
    %73 = vector.load %arg13[%c0_39, %c16] : memref<8x32xf32, #tpu.memory_space<vmem>>, vector<8x8xf32>
    %cst_40 = arith.constant dense<0xFF800000> : vector<8xf32>
    %74 = vector.multi_reduction <maximumf>, %72, %cst_40 [1] : vector<8x8xf32> to vector<8xf32>
    %75 = vector.shape_cast %74 : vector<8xf32> to vector<8x1xf32>
    %76 = vector.broadcast %75 : vector<8x1xf32> to vector<8x8xf32>
    %77 = arith.maximumf %73, %76 : vector<8x8xf32>
    %78 = arith.subf %73, %77 : vector<8x8xf32>
    %79 = math.exp %78 : vector<8x8xf32>
    %80 = vector.extract_strided_slice %77 {offsets = [0, 0], sizes = [8, 1], strides = [1, 1]} : vector<8x8xf32> to vector<8x1xf32>
    %81 = vector.broadcast %80 : vector<8x1xf32> to vector<8x8xf32>
    %82 = arith.subf %72, %81 : vector<8x8xf32>
    %83 = math.exp %82 : vector<8x8xf32>
    %c0_41 = arith.constant 0 : index
    %c16_42 = arith.constant 16 : index
    %84 = vector.load %arg13[%c0_41, %c16_42] : memref<8x32xf32, #tpu.memory_space<vmem>>, vector<8x8xf32>
    tpu.vector_store %arg13[%c0_41, %c16_42], %77 {strides = array<i32>} : memref<8x32xf32, #tpu.memory_space<vmem>>, vector<8x8xf32>,
    %c0_43 = arith.constant 0 : index
    %c16_44 = arith.constant 16 : index
    %85 = vector.load %arg14[%c0_43, %c16_44] : memref<8x32xf32, #tpu.memory_space<vmem>>, vector<8x8xf32>
    %86 = arith.mulf %79, %85 : vector<8x8xf32>
    %cst_45 = arith.constant dense<0.000000e+00> : vector<8xf32>
    %87 = vector.multi_reduction <add>, %83, %cst_45 [1] : vector<8x8xf32> to vector<8xf32>
    %88 = vector.shape_cast %87 : vector<8xf32> to vector<8x1xf32>
    %89 = vector.broadcast %88 : vector<8x1xf32> to vector<8x8xf32>
    %90 = arith.addf %86, %89 : vector<8x8xf32>
    %c0_46 = arith.constant 0 : index
    %c16_47 = arith.constant 16 : index
    %91 = vector.load %arg14[%c0_46, %c16_47] : memref<8x32xf32, #tpu.memory_space<vmem>>, vector<8x8xf32>
    tpu.vector_store %arg14[%c0_46, %c16_47], %90 {strides = array<i32>} : memref<8x32xf32, #tpu.memory_space<vmem>>, vector<8x8xf32>,
    %c0_48 = arith.constant 0 : index
    %c16_49 = arith.constant 16 : index
    %92 = vector.load %arg15[%c0_48, %c16_49] : memref<8x32xf32, #tpu.memory_space<vmem>>, vector<8x8xf32>
    %93 = arith.mulf %79, %92 : vector<8x8xf32>
    %94 = arith.truncf %83 : vector<8x8xf32> to vector<8x8xbf16>
    %95 = vector.extract_strided_slice %4 {offsets = [0, 48], sizes = [8, 8], strides = [1, 1]} : vector<8x64xbf16> to vector<8x8xbf16>
    %cst_50 = arith.constant dense<0.000000e+00> : vector<8x8xf32>
    %96 = tpu.matmul %94, %95, %cst_50 {dimension_numbers = #tpu.dot_dimension_numbers<[1], [0], [0], [1], [0, 0, 1, 1], [], []>} : vector<8x8xbf16>, vector<8x8xbf16>, vector<8x8xf32> -> vector<8x8xf32>
    %97 = arith.addf %93, %96 : vector<8x8xf32>
    %c0_51 = arith.constant 0 : index
    %c16_52 = arith.constant 16 : index
    %98 = vector.load %arg15[%c0_51, %c16_52] : memref<8x32xf32, #tpu.memory_space<vmem>>, vector<8x8xf32>
    tpu.vector_store %arg15[%c0_51, %c16_52], %97 {strides = array<i32>} : memref<8x32xf32, #tpu.memory_space<vmem>>, vector<8x8xf32>,
    %99 = vector.extract_strided_slice %5 {offsets = [0, 24], sizes = [8, 8], strides = [1, 1]} : vector<8x32xbf16> to vector<8x8xbf16>
    %100 = vector.extract_strided_slice %4 {offsets = [0, 24], sizes = [8, 8], strides = [1, 1]} : vector<8x64xbf16> to vector<8x8xbf16>
    %cst_53 = arith.constant dense<0.000000e+00> : vector<8x8xf32>
    %101 = tpu.matmul %99, %100, %cst_53 {dimension_numbers = #tpu.dot_dimension_numbers<[1], [1], [0], [0], [0, 0, 1, 0], [], []>} : vector<8x8xbf16>, vector<8x8xbf16>, vector<8x8xf32> -> vector<8x8xf32>
    %cst_54 = arith.constant 0.353553385 : f32
    %102 = vector.broadcast %cst_54 : f32 to vector<8x8xf32>
    %103 = arith.mulf %101, %102 : vector<8x8xf32>
    %c0_55 = arith.constant 0 : index
    %c24 = arith.constant 24 : index
    %104 = vector.load %arg13[%c0_55, %c24] : memref<8x32xf32, #tpu.memory_space<vmem>>, vector<8x8xf32>
    %cst_56 = arith.constant dense<0xFF800000> : vector<8xf32>
    %105 = vector.multi_reduction <maximumf>, %103, %cst_56 [1] : vector<8x8xf32> to vector<8xf32>
    %106 = vector.shape_cast %105 : vector<8xf32> to vector<8x1xf32>
    %107 = vector.broadcast %106 : vector<8x1xf32> to vector<8x8xf32>
    %108 = arith.maximumf %104, %107 : vector<8x8xf32>
    %109 = arith.subf %104, %108 : vector<8x8xf32>
    %110 = math.exp %109 : vector<8x8xf32>
    %111 = vector.extract_strided_slice %108 {offsets = [0, 0], sizes = [8, 1], strides = [1, 1]} : vector<8x8xf32> to vector<8x1xf32>
    %112 = vector.broadcast %111 : vector<8x1xf32> to vector<8x8xf32>
    %113 = arith.subf %103, %112 : vector<8x8xf32>
    %114 = math.exp %113 : vector<8x8xf32>
    %c0_57 = arith.constant 0 : index
    %c24_58 = arith.constant 24 : index
    %115 = vector.load %arg13[%c0_57, %c24_58] : memref<8x32xf32, #tpu.memory_space<vmem>>, vector<8x8xf32>
    tpu.vector_store %arg13[%c0_57, %c24_58], %108 {strides = array<i32>} : memref<8x32xf32, #tpu.memory_space<vmem>>, vector<8x8xf32>,
    %c0_59 = arith.constant 0 : index
    %c24_60 = arith.constant 24 : index
    %116 = vector.load %arg14[%c0_59, %c24_60] : memref<8x32xf32, #tpu.memory_space<vmem>>, vector<8x8xf32>
    %117 = arith.mulf %110, %116 : vector<8x8xf32>
    %cst_61 = arith.constant dense<0.000000e+00> : vector<8xf32>
    %118 = vector.multi_reduction <add>, %114, %cst_61 [1] : vector<8x8xf32> to vector<8xf32>
    %119 = vector.shape_cast %118 : vector<8xf32> to vector<8x1xf32>
    %120 = vector.broadcast %119 : vector<8x1xf32> to vector<8x8xf32>
    %121 = arith.addf %117, %120 : vector<8x8xf32>
    %c0_62 = arith.constant 0 : index
    %c24_63 = arith.constant 24 : index
    %122 = vector.load %arg14[%c0_62, %c24_63] : memref<8x32xf32, #tpu.memory_space<vmem>>, vector<8x8xf32>
    tpu.vector_store %arg14[%c0_62, %c24_63], %121 {strides = array<i32>} : memref<8x32xf32, #tpu.memory_space<vmem>>, vector<8x8xf32>,
    %c0_64 = arith.constant 0 : index
    %c24_65 = arith.constant 24 : index
    %123 = vector.load %arg15[%c0_64, %c24_65] : memref<8x32xf32, #tpu.memory_space<vmem>>, vector<8x8xf32>
    %124 = arith.mulf %110, %123 : vector<8x8xf32>
    %125 = arith.truncf %114 : vector<8x8xf32> to vector<8x8xbf16>
    %126 = vector.extract_strided_slice %4 {offsets = [0, 56], sizes = [8, 8], strides = [1, 1]} : vector<8x64xbf16> to vector<8x8xbf16>
    %cst_66 = arith.constant dense<0.000000e+00> : vector<8x8xf32>
    %127 = tpu.matmul %125, %126, %cst_66 {dimension_numbers = #tpu.dot_dimension_numbers<[1], [0], [0], [1], [0, 0, 1, 1], [], []>} : vector<8x8xbf16>, vector<8x8xbf16>, vector<8x8xf32> -> vector<8x8xf32>
    %128 = arith.addf %124, %127 : vector<8x8xf32>
    %c0_67 = arith.constant 0 : index
    %c24_68 = arith.constant 24 : index
    %129 = vector.load %arg15[%c0_67, %c24_68] : memref<8x32xf32, #tpu.memory_space<vmem>>, vector<8x8xf32>
    tpu.vector_store %arg15[%c0_67, %c24_68], %128 {strides = array<i32>} : memref<8x32xf32, #tpu.memory_space<vmem>>, vector<8x8xf32>,
    %c0_i32_69 = arith.constant 0 : i32
    %130 = arith.cmpi eq, %arg2, %c0_i32_69 : i32
    %131 = arith.extui %130 : i1 to i32
    %c0_i32_70 = arith.constant 0 : i32
    %132 = arith.cmpi ne, %131, %c0_i32_70 : i32
    scf.if %132 {
      %c0_71 = arith.constant 0 : index
      %c0_72 = arith.constant 0 : index
      %133 = vector.load %arg14[%c0_71, %c0_72] : memref<8x32xf32, #tpu.memory_space<vmem>>, vector<8x32xf32>
      %134 = tpu.reciprocal %133 {approx = true} : vector<8x32xf32> -> vector<8x32xf32>
      %c0_73 = arith.constant 0 : index
      %c0_74 = arith.constant 0 : index
      %135 = vector.load %arg15[%c0_73, %c0_74] : memref<8x32xf32, #tpu.memory_space<vmem>>, vector<8x32xf32>
      %136 = arith.mulf %135, %134 : vector<8x32xf32>
      %137 = arith.truncf %136 : vector<8x32xf32> to vector<8x32xbf16>
      %c0_75 = arith.constant 0 : index
      %c0_76 = arith.constant 0 : index
      %138 = vector.load %arg9[%c0_75, %c0_76] : memref<32x32xbf16, #tpu.memory_space<vmem>>, vector<32x32xbf16>
      %cst_77 = arith.constant dense<0.000000e+00> : vector<8x32xf32>
      %139 = tpu.matmul %137, %138, %cst_77 {dimension_numbers = #tpu.dot_dimension_numbers<[1], [0], [0], [1], [0, 0, 1, 1], [], []>} : vector<8x32xbf16>, vector<32x32xbf16>, vector<8x32xf32> -> vector<8x32xf32>
      %c0_78 = arith.constant 0 : index
      %c0_79 = arith.constant 0 : index
      %140 = vector.load %arg10[%c0_78, %c0_79] : memref<1x32xf32, #tpu.memory_space<vmem>>, vector<1x32xf32>
      %141 = vector.broadcast %140 : vector<1x32xf32> to vector<8x32xf32>
      %142 = arith.addf %139, %141 : vector<8x32xf32>
      %c0_80 = arith.constant 0 : index
      %c0_81 = arith.constant 0 : index
      %c0_82 = arith.constant 0 : index
      %143 = vector.load %arg3[%c0_80, %c0_81, %c0_82] : memref<1x8x32xf32, #tpu.memory_space<vmem>>, vector<1x8x32xf32>
      %144 = vector.shape_cast %143 : vector<1x8x32xf32> to vector<8x32xf32>
      %145 = arith.addf %144, %142 : vector<8x32xf32>
      %c0_83 = arith.constant 0 : index
      %c0_84 = arith.constant 0 : index
      %c0_85 = arith.constant 0 : index
      %146 = vector.load %arg11[%c0_83, %c0_84, %c0_85] : memref<1x8x32xf32, #tpu.memory_space<vmem>>, vector<1x8x32xf32>
      %147 = vector.shape_cast %146 : vector<1x8x32xf32> to vector<8x32xf32>
      %148 = vector.shape_cast %145 : vector<8x32xf32> to vector<1x8x32xf32>
      tpu.vector_store %arg11[%c0_83, %c0_84, %c0_85], %148 {strides = array<i32>} : memref<1x8x32xf32, #tpu.memory_space<vmem>>, vector<1x8x32xf32>,
    } else {
    }
    return
  }
  func.func @transform_0(%arg0: i32, %arg1: i32, %arg2: i32) -> (i32, i32, i32) {
    %c0_i32 = arith.constant 0 : i32
    %c0_i32_0 = arith.constant 0 : i32
    return %arg0, %arg1, %c0_i32 : i32, i32, i32
  }
  func.func @transform_1(%arg0: i32, %arg1: i32, %arg2: i32) -> (i32, i32, i32) {
    %c0_i32 = arith.constant 0 : i32
    %c0_i32_0 = arith.constant 0 : i32
    return %arg0, %arg2, %c0_i32 : i32, i32, i32
  }
  func.func @transform_2(%arg0: i32, %arg1: i32, %arg2: i32) -> (i32, i32) {
    %c0_i32 = arith.constant 0 : i32
    %c0_i32_0 = arith.constant 0 : i32
    %c0_i32_1 = arith.constant 0 : i32
    return %c0_i32, %c0_i32_0 : i32, i32
  }
  func.func @transform_3(%arg0: i32, %arg1: i32, %arg2: i32) -> (i32, i32) {
    %c0_i32 = arith.constant 0 : i32
    %c0_i32_0 = arith.constant 0 : i32
    %c0_i32_1 = arith.constant 0 : i32
    return %c0_i32, %c0_i32_0 : i32, i32
  }
  func.func @transform_4(%arg0: i32, %arg1: i32, %arg2: i32) -> (i32, i32) {
    %c0_i32 = arith.constant 0 : i32
    %c0_i32_0 = arith.constant 0 : i32
    %c0_i32_1 = arith.constant 0 : i32
    return %c0_i32, %c0_i32_0 : i32, i32
  }
  func.func @transform_5(%arg0: i32, %arg1: i32, %arg2: i32) -> (i32, i32) {
    %c0_i32 = arith.constant 0 : i32
    %c0_i32_0 = arith.constant 0 : i32
    %c0_i32_1 = arith.constant 0 : i32
    return %c0_i32, %c0_i32_0 : i32, i32
  }
  func.func @transform_6(%arg0: i32, %arg1: i32, %arg2: i32) -> (i32, i32) {
    %c0_i32 = arith.constant 0 : i32
    %c0_i32_0 = arith.constant 0 : i32
    %c0_i32_1 = arith.constant 0 : i32
    return %c0_i32, %c0_i32_0 : i32, i32
  }
  func.func @transform_7(%arg0: i32, %arg1: i32, %arg2: i32) -> (i32, i32) {
    %c0_i32 = arith.constant 0 : i32
    %c0_i32_0 = arith.constant 0 : i32
    %c0_i32_1 = arith.constant 0 : i32
    return %c0_i32, %c0_i32_0 : i32, i32
  }
  func.func @transform_8(%arg0: i32, %arg1: i32, %arg2: i32) -> (i32, i32, i32) {
    %c0_i32 = arith.constant 0 : i32
    %c0_i32_0 = arith.constant 0 : i32
    return %arg0, %arg1, %c0_i32 : i32, i32, i32
  }
}

module attributes {stable_mosaic.version = 11 : i64} {
  func.func @_linear_kernel(%arg0: i32, %arg1: i32, %arg2: i32, %arg3: memref<40x51xf32, #tpu.memory_space<vmem>>, %arg4: memref<51x32xbf16, #tpu.memory_space<vmem>>, %arg5: memref<1x32xf32, #tpu.memory_space<vmem>>, %arg6: memref<40x32xf32, #tpu.memory_space<vmem>>, %arg7: memref<40x32xf32, #tpu.memory_space<vmem>>) attributes {dimension_semantics = [#tpu.dimension_semantics<parallel>, #tpu.dimension_semantics<parallel>, #tpu.dimension_semantics<arbitrary>], iteration_bounds = array<i64: 1, 1, 1>, scalar_prefetch = 0 : i64, scratch_operands = 1 : i64, tpu.core_type = #tpu.core_type<tc>, window_params = [{transform_indices = @transform_0, window_bounds = array<i64: 40, 51>}, {transform_indices = @transform_1, window_bounds = array<i64: 51, 32>}, {transform_indices = @transform_2, window_bounds = array<i64: 1, 32>}, {transform_indices = @transform_3, window_bounds = array<i64: 40, 32>}]} {
    %c0_i32 = arith.constant 0 : i32
    %0 = arith.cmpi eq, %arg2, %c0_i32 : i32
    %1 = arith.extui %0 : i1 to i32
    %c0_i32_0 = arith.constant 0 : i32
    %2 = arith.cmpi ne, %1, %c0_i32_0 : i32
    scf.if %2 {
      %cst_10 = arith.constant 0.000000e+00 : f32
      %13 = vector.broadcast %cst_10 : f32 to vector<40x32xf32>
      %c0_11 = arith.constant 0 : index
      %c0_12 = arith.constant 0 : index
      %14 = vector.load %arg7[%c0_11, %c0_12] : memref<40x32xf32, #tpu.memory_space<vmem>>, vector<40x32xf32>
      tpu.vector_store %arg7[%c0_11, %c0_12], %13 {strides = array<i32>} : memref<40x32xf32, #tpu.memory_space<vmem>>, vector<40x32xf32>,
    } else {
    }
    %c0 = arith.constant 0 : index
    %c0_1 = arith.constant 0 : index
    %3 = vector.load %arg7[%c0, %c0_1] : memref<40x32xf32, #tpu.memory_space<vmem>>, vector<40x32xf32>
    %c0_2 = arith.constant 0 : index
    %c0_3 = arith.constant 0 : index
    %4 = vector.load %arg3[%c0_2, %c0_3] : memref<40x51xf32, #tpu.memory_space<vmem>>, vector<40x51xf32>
    %5 = arith.truncf %4 : vector<40x51xf32> to vector<40x51xbf16>
    %c0_4 = arith.constant 0 : index
    %c0_5 = arith.constant 0 : index
    %6 = vector.load %arg4[%c0_4, %c0_5] : memref<51x32xbf16, #tpu.memory_space<vmem>>, vector<51x32xbf16>
    %cst = arith.constant dense<0.000000e+00> : vector<40x32xf32>
    %7 = tpu.matmul %5, %6, %cst {dimension_numbers = #tpu.dot_dimension_numbers<[1], [0], [0], [1], [0, 0, 1, 1], [], []>} : vector<40x51xbf16>, vector<51x32xbf16>, vector<40x32xf32> -> vector<40x32xf32>
    %8 = arith.addf %3, %7 : vector<40x32xf32>
    %c0_6 = arith.constant 0 : index
    %c0_7 = arith.constant 0 : index
    %9 = vector.load %arg7[%c0_6, %c0_7] : memref<40x32xf32, #tpu.memory_space<vmem>>, vector<40x32xf32>
    tpu.vector_store %arg7[%c0_6, %c0_7], %8 {strides = array<i32>} : memref<40x32xf32, #tpu.memory_space<vmem>>, vector<40x32xf32>,
    %c0_i32_8 = arith.constant 0 : i32
    %10 = arith.cmpi eq, %arg2, %c0_i32_8 : i32
    %11 = arith.extui %10 : i1 to i32
    %c0_i32_9 = arith.constant 0 : i32
    %12 = arith.cmpi ne, %11, %c0_i32_9 : i32
    scf.if %12 {
      %c0_10 = arith.constant 0 : index
      %c0_11 = arith.constant 0 : index
      %13 = vector.load %arg7[%c0_10, %c0_11] : memref<40x32xf32, #tpu.memory_space<vmem>>, vector<40x32xf32>
      %c0_12 = arith.constant 0 : index
      %c0_13 = arith.constant 0 : index
      %14 = vector.load %arg5[%c0_12, %c0_13] : memref<1x32xf32, #tpu.memory_space<vmem>>, vector<1x32xf32>
      %15 = vector.broadcast %14 : vector<1x32xf32> to vector<40x32xf32>
      %16 = arith.addf %13, %15 : vector<40x32xf32>
      %c0_14 = arith.constant 0 : index
      %c0_15 = arith.constant 0 : index
      %17 = vector.load %arg6[%c0_14, %c0_15] : memref<40x32xf32, #tpu.memory_space<vmem>>, vector<40x32xf32>
      tpu.vector_store %arg6[%c0_14, %c0_15], %16 {strides = array<i32>} : memref<40x32xf32, #tpu.memory_space<vmem>>, vector<40x32xf32>,
    } else {
    }
    return
  }
  func.func @transform_0(%arg0: i32, %arg1: i32, %arg2: i32) -> (i32, i32) {
    %c0_i32 = arith.constant 0 : i32
    return %arg0, %arg2 : i32, i32
  }
  func.func @transform_1(%arg0: i32, %arg1: i32, %arg2: i32) -> (i32, i32) {
    %c0_i32 = arith.constant 0 : i32
    return %arg2, %arg1 : i32, i32
  }
  func.func @transform_2(%arg0: i32, %arg1: i32, %arg2: i32) -> (i32, i32) {
    %c0_i32 = arith.constant 0 : i32
    %c0_i32_0 = arith.constant 0 : i32
    return %c0_i32, %arg1 : i32, i32
  }
  func.func @transform_3(%arg0: i32, %arg1: i32, %arg2: i32) -> (i32, i32) {
    %c0_i32 = arith.constant 0 : i32
    return %arg0, %arg1 : i32, i32
  }
}

module attributes {stable_mosaic.version = 11 : i64} {
  func.func @_mlp_block_kernel(%arg0: i32, %arg1: memref<40x32xf32, #tpu.memory_space<vmem>>, %arg2: memref<1x32xf32, #tpu.memory_space<vmem>>, %arg3: memref<1x32xf32, #tpu.memory_space<vmem>>, %arg4: memref<32x128xbf16, #tpu.memory_space<vmem>>, %arg5: memref<1x128xf32, #tpu.memory_space<vmem>>, %arg6: memref<128x32xbf16, #tpu.memory_space<vmem>>, %arg7: memref<1x32xf32, #tpu.memory_space<vmem>>, %arg8: memref<40x32xf32, #tpu.memory_space<vmem>>) attributes {dimension_semantics = [#tpu.dimension_semantics<parallel>], iteration_bounds = array<i64: 1>, scalar_prefetch = 0 : i64, scratch_operands = 0 : i64, tpu.core_type = #tpu.core_type<tc>, window_params = [{transform_indices = @transform_0, window_bounds = array<i64: 40, 32>}, {pipeline_mode = #tpu.pipeline_mode<synchronous>, transform_indices = @transform_1, window_bounds = array<i64: 1, 32>}, {pipeline_mode = #tpu.pipeline_mode<synchronous>, transform_indices = @transform_2, window_bounds = array<i64: 1, 32>}, {pipeline_mode = #tpu.pipeline_mode<synchronous>, transform_indices = @transform_3, window_bounds = array<i64: 32, 128>}, {pipeline_mode = #tpu.pipeline_mode<synchronous>, transform_indices = @transform_4, window_bounds = array<i64: 1, 128>}, {pipeline_mode = #tpu.pipeline_mode<synchronous>, transform_indices = @transform_5, window_bounds = array<i64: 128, 32>}, {pipeline_mode = #tpu.pipeline_mode<synchronous>, transform_indices = @transform_6, window_bounds = array<i64: 1, 32>}, {transform_indices = @transform_7, window_bounds = array<i64: 40, 32>}]} {
    %c0 = arith.constant 0 : index
    %c0_0 = arith.constant 0 : index
    %0 = vector.load %arg1[%c0, %c0_0] : memref<40x32xf32, #tpu.memory_space<vmem>>, vector<40x32xf32>
    %c0_1 = arith.constant 0 : index
    %c0_2 = arith.constant 0 : index
    %1 = vector.load %arg2[%c0_1, %c0_2] : memref<1x32xf32, #tpu.memory_space<vmem>>, vector<1x32xf32>
    %c0_3 = arith.constant 0 : index
    %c0_4 = arith.constant 0 : index
    %2 = vector.load %arg3[%c0_3, %c0_4] : memref<1x32xf32, #tpu.memory_space<vmem>>, vector<1x32xf32>
    %cst = arith.constant dense<0.000000e+00> : vector<40xf32>
    %3 = vector.multi_reduction <add>, %0, %cst [1] : vector<40x32xf32> to vector<40xf32>
    %4 = vector.shape_cast %3 : vector<40xf32> to vector<40x1xf32>
    %cst_5 = arith.constant 3.200000e+01 : f32
    %5 = vector.broadcast %cst_5 : f32 to vector<40x1xf32>
    %6 = arith.divf %4, %5 : vector<40x1xf32>
    %7 = vector.broadcast %6 : vector<40x1xf32> to vector<40x32xf32>
    %8 = arith.subf %0, %7 : vector<40x32xf32>
    %9 = arith.mulf %8, %8 : vector<40x32xf32>
    %cst_6 = arith.constant dense<0.000000e+00> : vector<40xf32>
    %10 = vector.multi_reduction <add>, %9, %cst_6 [1] : vector<40x32xf32> to vector<40xf32>
    %11 = vector.shape_cast %10 : vector<40xf32> to vector<40x1xf32>
    %cst_7 = arith.constant 3.200000e+01 : f32
    %12 = vector.broadcast %cst_7 : f32 to vector<40x1xf32>
    %13 = arith.divf %11, %12 : vector<40x1xf32>
    %cst_8 = arith.constant 9.99999974E-6 : f32
    %14 = vector.broadcast %cst_8 : f32 to vector<40x1xf32>
    %15 = arith.addf %13, %14 : vector<40x1xf32>
    %16 = math.rsqrt %15 : vector<40x1xf32>
    %17 = vector.broadcast %16 : vector<40x1xf32> to vector<40x32xf32>
    %18 = arith.mulf %8, %17 : vector<40x32xf32>
    %19 = vector.broadcast %1 : vector<1x32xf32> to vector<40x32xf32>
    %20 = arith.mulf %18, %19 : vector<40x32xf32>
    %21 = vector.broadcast %2 : vector<1x32xf32> to vector<40x32xf32>
    %22 = arith.addf %20, %21 : vector<40x32xf32>
    %23 = arith.truncf %22 : vector<40x32xf32> to vector<40x32xbf16>
    %c0_9 = arith.constant 0 : index
    %c0_10 = arith.constant 0 : index
    %24 = vector.load %arg4[%c0_9, %c0_10] : memref<32x128xbf16, #tpu.memory_space<vmem>>, vector<32x128xbf16>
    %cst_11 = arith.constant dense<0.000000e+00> : vector<40x128xf32>
    %25 = tpu.matmul %23, %24, %cst_11 {dimension_numbers = #tpu.dot_dimension_numbers<[1], [0], [0], [1], [0, 0, 1, 1], [], []>} : vector<40x32xbf16>, vector<32x128xbf16>, vector<40x128xf32> -> vector<40x128xf32>
    %c0_12 = arith.constant 0 : index
    %c0_13 = arith.constant 0 : index
    %26 = vector.load %arg5[%c0_12, %c0_13] : memref<1x128xf32, #tpu.memory_space<vmem>>, vector<1x128xf32>
    %27 = vector.broadcast %26 : vector<1x128xf32> to vector<40x128xf32>
    %28 = arith.addf %25, %27 : vector<40x128xf32>
    %cst_14 = arith.constant 5.000000e-01 : f32
    %29 = vector.broadcast %cst_14 : f32 to vector<40x128xf32>
    %30 = arith.mulf %29, %28 : vector<40x128xf32>
    %cst_15 = arith.constant 4.471500e-02 : f32
    %31 = vector.broadcast %cst_15 : f32 to vector<40x128xf32>
    %32 = arith.mulf %31, %28 : vector<40x128xf32>
    %33 = arith.mulf %32, %28 : vector<40x128xf32>
    %34 = arith.mulf %33, %28 : vector<40x128xf32>
    %35 = arith.addf %28, %34 : vector<40x128xf32>
    %cst_16 = arith.constant 0.797884583 : f32
    %36 = vector.broadcast %cst_16 : f32 to vector<40x128xf32>
    %37 = arith.mulf %36, %35 : vector<40x128xf32>
    %38 = math.tanh %37 : vector<40x128xf32>
    %cst_17 = arith.constant 1.000000e+00 : f32
    %39 = vector.broadcast %cst_17 : f32 to vector<40x128xf32>
    %40 = arith.addf %39, %38 : vector<40x128xf32>
    %41 = arith.mulf %30, %40 : vector<40x128xf32>
    %42 = arith.truncf %41 : vector<40x128xf32> to vector<40x128xbf16>
    %c0_18 = arith.constant 0 : index
    %c0_19 = arith.constant 0 : index
    %43 = vector.load %arg6[%c0_18, %c0_19] : memref<128x32xbf16, #tpu.memory_space<vmem>>, vector<128x32xbf16>
    %cst_20 = arith.constant dense<0.000000e+00> : vector<40x32xf32>
    %44 = tpu.matmul %42, %43, %cst_20 {dimension_numbers = #tpu.dot_dimension_numbers<[1], [0], [0], [1], [0, 0, 1, 1], [], []>} : vector<40x128xbf16>, vector<128x32xbf16>, vector<40x32xf32> -> vector<40x32xf32>
    %c0_21 = arith.constant 0 : index
    %c0_22 = arith.constant 0 : index
    %45 = vector.load %arg7[%c0_21, %c0_22] : memref<1x32xf32, #tpu.memory_space<vmem>>, vector<1x32xf32>
    %46 = vector.broadcast %45 : vector<1x32xf32> to vector<40x32xf32>
    %47 = arith.addf %44, %46 : vector<40x32xf32>
    %48 = arith.addf %0, %47 : vector<40x32xf32>
    %c0_23 = arith.constant 0 : index
    %c0_24 = arith.constant 0 : index
    %49 = vector.load %arg8[%c0_23, %c0_24] : memref<40x32xf32, #tpu.memory_space<vmem>>, vector<40x32xf32>
    tpu.vector_store %arg8[%c0_23, %c0_24], %48 {strides = array<i32>} : memref<40x32xf32, #tpu.memory_space<vmem>>, vector<40x32xf32>,
    return
  }
  func.func @transform_0(%arg0: i32) -> (i32, i32) {
    %c0_i32 = arith.constant 0 : i32
    %c0_i32_0 = arith.constant 0 : i32
    return %arg0, %c0_i32 : i32, i32
  }
  func.func @transform_1(%arg0: i32) -> (i32, i32) {
    %c0_i32 = arith.constant 0 : i32
    %c0_i32_0 = arith.constant 0 : i32
    %c0_i32_1 = arith.constant 0 : i32
    return %c0_i32, %c0_i32_0 : i32, i32
  }
  func.func @transform_2(%arg0: i32) -> (i32, i32) {
    %c0_i32 = arith.constant 0 : i32
    %c0_i32_0 = arith.constant 0 : i32
    %c0_i32_1 = arith.constant 0 : i32
    return %c0_i32, %c0_i32_0 : i32, i32
  }
  func.func @transform_3(%arg0: i32) -> (i32, i32) {
    %c0_i32 = arith.constant 0 : i32
    %c0_i32_0 = arith.constant 0 : i32
    %c0_i32_1 = arith.constant 0 : i32
    return %c0_i32, %c0_i32_0 : i32, i32
  }
  func.func @transform_4(%arg0: i32) -> (i32, i32) {
    %c0_i32 = arith.constant 0 : i32
    %c0_i32_0 = arith.constant 0 : i32
    %c0_i32_1 = arith.constant 0 : i32
    return %c0_i32, %c0_i32_0 : i32, i32
  }
  func.func @transform_5(%arg0: i32) -> (i32, i32) {
    %c0_i32 = arith.constant 0 : i32
    %c0_i32_0 = arith.constant 0 : i32
    %c0_i32_1 = arith.constant 0 : i32
    return %c0_i32, %c0_i32_0 : i32, i32
  }
  func.func @transform_6(%arg0: i32) -> (i32, i32) {
    %c0_i32 = arith.constant 0 : i32
    %c0_i32_0 = arith.constant 0 : i32
    %c0_i32_1 = arith.constant 0 : i32
    return %c0_i32, %c0_i32_0 : i32, i32
  }
  func.func @transform_7(%arg0: i32) -> (i32, i32) {
    %c0_i32 = arith.constant 0 : i32
    %c0_i32_0 = arith.constant 0 : i32
    return %arg0, %c0_i32 : i32, i32
  }
}

module attributes {stable_mosaic.version = 11 : i64} {
  func.func @_flash_attn_kernel(%arg0: i32, %arg1: i32, %arg2: i32, %arg3: memref<1x24x32xf32, #tpu.memory_space<vmem>>, %arg4: memref<1x8x64xbf16, #tpu.memory_space<vmem>>, %arg5: memref<1x32xf32, #tpu.memory_space<vmem>>, %arg6: memref<1x32xf32, #tpu.memory_space<vmem>>, %arg7: memref<32x32xbf16, #tpu.memory_space<vmem>>, %arg8: memref<1x32xf32, #tpu.memory_space<vmem>>, %arg9: memref<32x32xbf16, #tpu.memory_space<vmem>>, %arg10: memref<1x32xf32, #tpu.memory_space<vmem>>, %arg11: memref<1x24x32xf32, #tpu.memory_space<vmem>>, %arg12: memref<24x32xbf16, #tpu.memory_space<vmem>>, %arg13: memref<24x32xf32, #tpu.memory_space<vmem>>, %arg14: memref<24x32xf32, #tpu.memory_space<vmem>>, %arg15: memref<24x32xf32, #tpu.memory_space<vmem>>) attributes {dimension_semantics = [#tpu.dimension_semantics<parallel>, #tpu.dimension_semantics<parallel>, #tpu.dimension_semantics<arbitrary>], iteration_bounds = array<i64: 2, 1, 1>, scalar_prefetch = 0 : i64, scratch_operands = 4 : i64, tpu.core_type = #tpu.core_type<tc>, window_params = [{transform_indices = @transform_0, window_bounds = array<i64: 1, 24, 32>}, {transform_indices = @transform_1, window_bounds = array<i64: 1, 8, 64>}, {pipeline_mode = #tpu.pipeline_mode<synchronous>, transform_indices = @transform_2, window_bounds = array<i64: 1, 32>}, {pipeline_mode = #tpu.pipeline_mode<synchronous>, transform_indices = @transform_3, window_bounds = array<i64: 1, 32>}, {pipeline_mode = #tpu.pipeline_mode<synchronous>, transform_indices = @transform_4, window_bounds = array<i64: 32, 32>}, {pipeline_mode = #tpu.pipeline_mode<synchronous>, transform_indices = @transform_5, window_bounds = array<i64: 1, 32>}, {pipeline_mode = #tpu.pipeline_mode<synchronous>, transform_indices = @transform_6, window_bounds = array<i64: 32, 32>}, {pipeline_mode = #tpu.pipeline_mode<synchronous>, transform_indices = @transform_7, window_bounds = array<i64: 1, 32>}, {transform_indices = @transform_8, window_bounds = array<i64: 1, 24, 32>}]} {
    %c0_i32 = arith.constant 0 : i32
    %0 = arith.cmpi eq, %arg2, %c0_i32 : i32
    %1 = arith.extui %0 : i1 to i32
    %c0_i32_0 = arith.constant 0 : i32
    %2 = arith.cmpi ne, %1, %c0_i32_0 : i32
    scf.if %2 {
      %c0_71 = arith.constant 0 : index
      %c0_72 = arith.constant 0 : index
      %c0_73 = arith.constant 0 : index
      %133 = vector.load %arg3[%c0_71, %c0_72, %c0_73] : memref<1x24x32xf32, #tpu.memory_space<vmem>>, vector<1x24x32xf32>
      %134 = vector.shape_cast %133 : vector<1x24x32xf32> to vector<24x32xf32>
      %c0_74 = arith.constant 0 : index
      %c0_75 = arith.constant 0 : index
      %135 = vector.load %arg5[%c0_74, %c0_75] : memref<1x32xf32, #tpu.memory_space<vmem>>, vector<1x32xf32>
      %c0_76 = arith.constant 0 : index
      %c0_77 = arith.constant 0 : index
      %136 = vector.load %arg6[%c0_76, %c0_77] : memref<1x32xf32, #tpu.memory_space<vmem>>, vector<1x32xf32>
      %cst_78 = arith.constant dense<0.000000e+00> : vector<24xf32>
      %137 = vector.multi_reduction <add>, %134, %cst_78 [1] : vector<24x32xf32> to vector<24xf32>
      %138 = vector.shape_cast %137 : vector<24xf32> to vector<24x1xf32>
      %cst_79 = arith.constant 3.200000e+01 : f32
      %139 = vector.broadcast %cst_79 : f32 to vector<24x1xf32>
      %140 = arith.divf %138, %139 : vector<24x1xf32>
      %141 = vector.broadcast %140 : vector<24x1xf32> to vector<24x32xf32>
      %142 = arith.subf %134, %141 : vector<24x32xf32>
      %143 = arith.mulf %142, %142 : vector<24x32xf32>
      %cst_80 = arith.constant dense<0.000000e+00> : vector<24xf32>
      %144 = vector.multi_reduction <add>, %143, %cst_80 [1] : vector<24x32xf32> to vector<24xf32>
      %145 = vector.shape_cast %144 : vector<24xf32> to vector<24x1xf32>
      %cst_81 = arith.constant 3.200000e+01 : f32
      %146 = vector.broadcast %cst_81 : f32 to vector<24x1xf32>
      %147 = arith.divf %145, %146 : vector<24x1xf32>
      %cst_82 = arith.constant 9.99999974E-6 : f32
      %148 = vector.broadcast %cst_82 : f32 to vector<24x1xf32>
      %149 = arith.addf %147, %148 : vector<24x1xf32>
      %150 = math.rsqrt %149 : vector<24x1xf32>
      %151 = vector.broadcast %150 : vector<24x1xf32> to vector<24x32xf32>
      %152 = arith.mulf %142, %151 : vector<24x32xf32>
      %153 = vector.broadcast %135 : vector<1x32xf32> to vector<24x32xf32>
      %154 = arith.mulf %152, %153 : vector<24x32xf32>
      %155 = vector.broadcast %136 : vector<1x32xf32> to vector<24x32xf32>
      %156 = arith.addf %154, %155 : vector<24x32xf32>
      %157 = arith.truncf %156 : vector<24x32xf32> to vector<24x32xbf16>
      %c0_83 = arith.constant 0 : index
      %c0_84 = arith.constant 0 : index
      %158 = vector.load %arg7[%c0_83, %c0_84] : memref<32x32xbf16, #tpu.memory_space<vmem>>, vector<32x32xbf16>
      %cst_85 = arith.constant dense<0.000000e+00> : vector<24x32xf32>
      %159 = tpu.matmul %157, %158, %cst_85 {dimension_numbers = #tpu.dot_dimension_numbers<[1], [0], [0], [1], [0, 0, 1, 1], [], []>} : vector<24x32xbf16>, vector<32x32xbf16>, vector<24x32xf32> -> vector<24x32xf32>
      %c0_86 = arith.constant 0 : index
      %c0_87 = arith.constant 0 : index
      %160 = vector.load %arg8[%c0_86, %c0_87] : memref<1x32xf32, #tpu.memory_space<vmem>>, vector<1x32xf32>
      %161 = vector.broadcast %160 : vector<1x32xf32> to vector<24x32xf32>
      %162 = arith.addf %159, %161 : vector<24x32xf32>
      %163 = arith.truncf %162 : vector<24x32xf32> to vector<24x32xbf16>
      %c0_88 = arith.constant 0 : index
      %c0_89 = arith.constant 0 : index
      %164 = vector.load %arg12[%c0_88, %c0_89] : memref<24x32xbf16, #tpu.memory_space<vmem>>, vector<24x32xbf16>
      tpu.vector_store %arg12[%c0_88, %c0_89], %163 {strides = array<i32>} : memref<24x32xbf16, #tpu.memory_space<vmem>>, vector<24x32xbf16>,
      %cst_90 = arith.constant 0xFF800000 : f32
      %165 = vector.broadcast %cst_90 : f32 to vector<24x32xf32>
      %c0_91 = arith.constant 0 : index
      %c0_92 = arith.constant 0 : index
      %166 = vector.load %arg13[%c0_91, %c0_92] : memref<24x32xf32, #tpu.memory_space<vmem>>, vector<24x32xf32>
      tpu.vector_store %arg13[%c0_91, %c0_92], %165 {strides = array<i32>} : memref<24x32xf32, #tpu.memory_space<vmem>>, vector<24x32xf32>,
      %cst_93 = arith.constant 0.000000e+00 : f32
      %167 = vector.broadcast %cst_93 : f32 to vector<24x32xf32>
      %c0_94 = arith.constant 0 : index
      %c0_95 = arith.constant 0 : index
      %168 = vector.load %arg14[%c0_94, %c0_95] : memref<24x32xf32, #tpu.memory_space<vmem>>, vector<24x32xf32>
      tpu.vector_store %arg14[%c0_94, %c0_95], %167 {strides = array<i32>} : memref<24x32xf32, #tpu.memory_space<vmem>>, vector<24x32xf32>,
      %cst_96 = arith.constant 0.000000e+00 : f32
      %169 = vector.broadcast %cst_96 : f32 to vector<24x32xf32>
      %c0_97 = arith.constant 0 : index
      %c0_98 = arith.constant 0 : index
      %170 = vector.load %arg15[%c0_97, %c0_98] : memref<24x32xf32, #tpu.memory_space<vmem>>, vector<24x32xf32>
      tpu.vector_store %arg15[%c0_97, %c0_98], %169 {strides = array<i32>} : memref<24x32xf32, #tpu.memory_space<vmem>>, vector<24x32xf32>,
    } else {
    }
    %c0 = arith.constant 0 : index
    %c0_1 = arith.constant 0 : index
    %c0_2 = arith.constant 0 : index
    %3 = vector.load %arg4[%c0, %c0_1, %c0_2] : memref<1x8x64xbf16, #tpu.memory_space<vmem>>, vector<1x8x64xbf16>
    %4 = vector.shape_cast %3 : vector<1x8x64xbf16> to vector<8x64xbf16>
    %c0_3 = arith.constant 0 : index
    %c0_4 = arith.constant 0 : index
    %5 = vector.load %arg12[%c0_3, %c0_4] : memref<24x32xbf16, #tpu.memory_space<vmem>>, vector<24x32xbf16>
    %6 = vector.extract_strided_slice %5 {offsets = [0, 0], sizes = [24, 8], strides = [1, 1]} : vector<24x32xbf16> to vector<24x8xbf16>
    %7 = vector.extract_strided_slice %4 {offsets = [0, 0], sizes = [8, 8], strides = [1, 1]} : vector<8x64xbf16> to vector<8x8xbf16>
    %cst = arith.constant dense<0.000000e+00> : vector<24x8xf32>
    %8 = tpu.matmul %6, %7, %cst {dimension_numbers = #tpu.dot_dimension_numbers<[1], [1], [0], [0], [0, 0, 1, 0], [], []>} : vector<24x8xbf16>, vector<8x8xbf16>, vector<24x8xf32> -> vector<24x8xf32>
    %cst_5 = arith.constant 0.353553385 : f32
    %9 = vector.broadcast %cst_5 : f32 to vector<24x8xf32>
    %10 = arith.mulf %8, %9 : vector<24x8xf32>
    %c0_6 = arith.constant 0 : index
    %c0_7 = arith.constant 0 : index
    %11 = vector.load %arg13[%c0_6, %c0_7] : memref<24x32xf32, #tpu.memory_space<vmem>>, vector<24x8xf32>
    %cst_8 = arith.constant dense<0xFF800000> : vector<24xf32>
    %12 = vector.multi_reduction <maximumf>, %10, %cst_8 [1] : vector<24x8xf32> to vector<24xf32>
    %13 = vector.shape_cast %12 : vector<24xf32> to vector<24x1xf32>
    %14 = vector.broadcast %13 : vector<24x1xf32> to vector<24x8xf32>
    %15 = arith.maximumf %11, %14 : vector<24x8xf32>
    %16 = arith.subf %11, %15 : vector<24x8xf32>
    %17 = math.exp %16 : vector<24x8xf32>
    %18 = vector.extract_strided_slice %15 {offsets = [0, 0], sizes = [24, 1], strides = [1, 1]} : vector<24x8xf32> to vector<24x1xf32>
    %19 = vector.broadcast %18 : vector<24x1xf32> to vector<24x8xf32>
    %20 = arith.subf %10, %19 : vector<24x8xf32>
    %21 = math.exp %20 : vector<24x8xf32>
    %c0_9 = arith.constant 0 : index
    %c0_10 = arith.constant 0 : index
    %22 = vector.load %arg13[%c0_9, %c0_10] : memref<24x32xf32, #tpu.memory_space<vmem>>, vector<24x8xf32>
    tpu.vector_store %arg13[%c0_9, %c0_10], %15 {strides = array<i32>} : memref<24x32xf32, #tpu.memory_space<vmem>>, vector<24x8xf32>,
    %c0_11 = arith.constant 0 : index
    %c0_12 = arith.constant 0 : index
    %23 = vector.load %arg14[%c0_11, %c0_12] : memref<24x32xf32, #tpu.memory_space<vmem>>, vector<24x8xf32>
    %24 = arith.mulf %17, %23 : vector<24x8xf32>
    %cst_13 = arith.constant dense<0.000000e+00> : vector<24xf32>
    %25 = vector.multi_reduction <add>, %21, %cst_13 [1] : vector<24x8xf32> to vector<24xf32>
    %26 = vector.shape_cast %25 : vector<24xf32> to vector<24x1xf32>
    %27 = vector.broadcast %26 : vector<24x1xf32> to vector<24x8xf32>
    %28 = arith.addf %24, %27 : vector<24x8xf32>
    %c0_14 = arith.constant 0 : index
    %c0_15 = arith.constant 0 : index
    %29 = vector.load %arg14[%c0_14, %c0_15] : memref<24x32xf32, #tpu.memory_space<vmem>>, vector<24x8xf32>
    tpu.vector_store %arg14[%c0_14, %c0_15], %28 {strides = array<i32>} : memref<24x32xf32, #tpu.memory_space<vmem>>, vector<24x8xf32>,
    %c0_16 = arith.constant 0 : index
    %c0_17 = arith.constant 0 : index
    %30 = vector.load %arg15[%c0_16, %c0_17] : memref<24x32xf32, #tpu.memory_space<vmem>>, vector<24x8xf32>
    %31 = arith.mulf %17, %30 : vector<24x8xf32>
    %32 = arith.truncf %21 : vector<24x8xf32> to vector<24x8xbf16>
    %33 = vector.extract_strided_slice %4 {offsets = [0, 32], sizes = [8, 8], strides = [1, 1]} : vector<8x64xbf16> to vector<8x8xbf16>
    %cst_18 = arith.constant dense<0.000000e+00> : vector<24x8xf32>
    %34 = tpu.matmul %32, %33, %cst_18 {dimension_numbers = #tpu.dot_dimension_numbers<[1], [0], [0], [1], [0, 0, 1, 1], [], []>} : vector<24x8xbf16>, vector<8x8xbf16>, vector<24x8xf32> -> vector<24x8xf32>
    %35 = arith.addf %31, %34 : vector<24x8xf32>
    %c0_19 = arith.constant 0 : index
    %c0_20 = arith.constant 0 : index
    %36 = vector.load %arg15[%c0_19, %c0_20] : memref<24x32xf32, #tpu.memory_space<vmem>>, vector<24x8xf32>
    tpu.vector_store %arg15[%c0_19, %c0_20], %35 {strides = array<i32>} : memref<24x32xf32, #tpu.memory_space<vmem>>, vector<24x8xf32>,
    %37 = vector.extract_strided_slice %5 {offsets = [0, 8], sizes = [24, 8], strides = [1, 1]} : vector<24x32xbf16> to vector<24x8xbf16>
    %38 = vector.extract_strided_slice %4 {offsets = [0, 8], sizes = [8, 8], strides = [1, 1]} : vector<8x64xbf16> to vector<8x8xbf16>
    %cst_21 = arith.constant dense<0.000000e+00> : vector<24x8xf32>
    %39 = tpu.matmul %37, %38, %cst_21 {dimension_numbers = #tpu.dot_dimension_numbers<[1], [1], [0], [0], [0, 0, 1, 0], [], []>} : vector<24x8xbf16>, vector<8x8xbf16>, vector<24x8xf32> -> vector<24x8xf32>
    %cst_22 = arith.constant 0.353553385 : f32
    %40 = vector.broadcast %cst_22 : f32 to vector<24x8xf32>
    %41 = arith.mulf %39, %40 : vector<24x8xf32>
    %c0_23 = arith.constant 0 : index
    %c8 = arith.constant 8 : index
    %42 = vector.load %arg13[%c0_23, %c8] : memref<24x32xf32, #tpu.memory_space<vmem>>, vector<24x8xf32>
    %cst_24 = arith.constant dense<0xFF800000> : vector<24xf32>
    %43 = vector.multi_reduction <maximumf>, %41, %cst_24 [1] : vector<24x8xf32> to vector<24xf32>
    %44 = vector.shape_cast %43 : vector<24xf32> to vector<24x1xf32>
    %45 = vector.broadcast %44 : vector<24x1xf32> to vector<24x8xf32>
    %46 = arith.maximumf %42, %45 : vector<24x8xf32>
    %47 = arith.subf %42, %46 : vector<24x8xf32>
    %48 = math.exp %47 : vector<24x8xf32>
    %49 = vector.extract_strided_slice %46 {offsets = [0, 0], sizes = [24, 1], strides = [1, 1]} : vector<24x8xf32> to vector<24x1xf32>
    %50 = vector.broadcast %49 : vector<24x1xf32> to vector<24x8xf32>
    %51 = arith.subf %41, %50 : vector<24x8xf32>
    %52 = math.exp %51 : vector<24x8xf32>
    %c0_25 = arith.constant 0 : index
    %c8_26 = arith.constant 8 : index
    %53 = vector.load %arg13[%c0_25, %c8_26] : memref<24x32xf32, #tpu.memory_space<vmem>>, vector<24x8xf32>
    tpu.vector_store %arg13[%c0_25, %c8_26], %46 {strides = array<i32>} : memref<24x32xf32, #tpu.memory_space<vmem>>, vector<24x8xf32>,
    %c0_27 = arith.constant 0 : index
    %c8_28 = arith.constant 8 : index
    %54 = vector.load %arg14[%c0_27, %c8_28] : memref<24x32xf32, #tpu.memory_space<vmem>>, vector<24x8xf32>
    %55 = arith.mulf %48, %54 : vector<24x8xf32>
    %cst_29 = arith.constant dense<0.000000e+00> : vector<24xf32>
    %56 = vector.multi_reduction <add>, %52, %cst_29 [1] : vector<24x8xf32> to vector<24xf32>
    %57 = vector.shape_cast %56 : vector<24xf32> to vector<24x1xf32>
    %58 = vector.broadcast %57 : vector<24x1xf32> to vector<24x8xf32>
    %59 = arith.addf %55, %58 : vector<24x8xf32>
    %c0_30 = arith.constant 0 : index
    %c8_31 = arith.constant 8 : index
    %60 = vector.load %arg14[%c0_30, %c8_31] : memref<24x32xf32, #tpu.memory_space<vmem>>, vector<24x8xf32>
    tpu.vector_store %arg14[%c0_30, %c8_31], %59 {strides = array<i32>} : memref<24x32xf32, #tpu.memory_space<vmem>>, vector<24x8xf32>,
    %c0_32 = arith.constant 0 : index
    %c8_33 = arith.constant 8 : index
    %61 = vector.load %arg15[%c0_32, %c8_33] : memref<24x32xf32, #tpu.memory_space<vmem>>, vector<24x8xf32>
    %62 = arith.mulf %48, %61 : vector<24x8xf32>
    %63 = arith.truncf %52 : vector<24x8xf32> to vector<24x8xbf16>
    %64 = vector.extract_strided_slice %4 {offsets = [0, 40], sizes = [8, 8], strides = [1, 1]} : vector<8x64xbf16> to vector<8x8xbf16>
    %cst_34 = arith.constant dense<0.000000e+00> : vector<24x8xf32>
    %65 = tpu.matmul %63, %64, %cst_34 {dimension_numbers = #tpu.dot_dimension_numbers<[1], [0], [0], [1], [0, 0, 1, 1], [], []>} : vector<24x8xbf16>, vector<8x8xbf16>, vector<24x8xf32> -> vector<24x8xf32>
    %66 = arith.addf %62, %65 : vector<24x8xf32>
    %c0_35 = arith.constant 0 : index
    %c8_36 = arith.constant 8 : index
    %67 = vector.load %arg15[%c0_35, %c8_36] : memref<24x32xf32, #tpu.memory_space<vmem>>, vector<24x8xf32>
    tpu.vector_store %arg15[%c0_35, %c8_36], %66 {strides = array<i32>} : memref<24x32xf32, #tpu.memory_space<vmem>>, vector<24x8xf32>,
    %68 = vector.extract_strided_slice %5 {offsets = [0, 16], sizes = [24, 8], strides = [1, 1]} : vector<24x32xbf16> to vector<24x8xbf16>
    %69 = vector.extract_strided_slice %4 {offsets = [0, 16], sizes = [8, 8], strides = [1, 1]} : vector<8x64xbf16> to vector<8x8xbf16>
    %cst_37 = arith.constant dense<0.000000e+00> : vector<24x8xf32>
    %70 = tpu.matmul %68, %69, %cst_37 {dimension_numbers = #tpu.dot_dimension_numbers<[1], [1], [0], [0], [0, 0, 1, 0], [], []>} : vector<24x8xbf16>, vector<8x8xbf16>, vector<24x8xf32> -> vector<24x8xf32>
    %cst_38 = arith.constant 0.353553385 : f32
    %71 = vector.broadcast %cst_38 : f32 to vector<24x8xf32>
    %72 = arith.mulf %70, %71 : vector<24x8xf32>
    %c0_39 = arith.constant 0 : index
    %c16 = arith.constant 16 : index
    %73 = vector.load %arg13[%c0_39, %c16] : memref<24x32xf32, #tpu.memory_space<vmem>>, vector<24x8xf32>
    %cst_40 = arith.constant dense<0xFF800000> : vector<24xf32>
    %74 = vector.multi_reduction <maximumf>, %72, %cst_40 [1] : vector<24x8xf32> to vector<24xf32>
    %75 = vector.shape_cast %74 : vector<24xf32> to vector<24x1xf32>
    %76 = vector.broadcast %75 : vector<24x1xf32> to vector<24x8xf32>
    %77 = arith.maximumf %73, %76 : vector<24x8xf32>
    %78 = arith.subf %73, %77 : vector<24x8xf32>
    %79 = math.exp %78 : vector<24x8xf32>
    %80 = vector.extract_strided_slice %77 {offsets = [0, 0], sizes = [24, 1], strides = [1, 1]} : vector<24x8xf32> to vector<24x1xf32>
    %81 = vector.broadcast %80 : vector<24x1xf32> to vector<24x8xf32>
    %82 = arith.subf %72, %81 : vector<24x8xf32>
    %83 = math.exp %82 : vector<24x8xf32>
    %c0_41 = arith.constant 0 : index
    %c16_42 = arith.constant 16 : index
    %84 = vector.load %arg13[%c0_41, %c16_42] : memref<24x32xf32, #tpu.memory_space<vmem>>, vector<24x8xf32>
    tpu.vector_store %arg13[%c0_41, %c16_42], %77 {strides = array<i32>} : memref<24x32xf32, #tpu.memory_space<vmem>>, vector<24x8xf32>,
    %c0_43 = arith.constant 0 : index
    %c16_44 = arith.constant 16 : index
    %85 = vector.load %arg14[%c0_43, %c16_44] : memref<24x32xf32, #tpu.memory_space<vmem>>, vector<24x8xf32>
    %86 = arith.mulf %79, %85 : vector<24x8xf32>
    %cst_45 = arith.constant dense<0.000000e+00> : vector<24xf32>
    %87 = vector.multi_reduction <add>, %83, %cst_45 [1] : vector<24x8xf32> to vector<24xf32>
    %88 = vector.shape_cast %87 : vector<24xf32> to vector<24x1xf32>
    %89 = vector.broadcast %88 : vector<24x1xf32> to vector<24x8xf32>
    %90 = arith.addf %86, %89 : vector<24x8xf32>
    %c0_46 = arith.constant 0 : index
    %c16_47 = arith.constant 16 : index
    %91 = vector.load %arg14[%c0_46, %c16_47] : memref<24x32xf32, #tpu.memory_space<vmem>>, vector<24x8xf32>
    tpu.vector_store %arg14[%c0_46, %c16_47], %90 {strides = array<i32>} : memref<24x32xf32, #tpu.memory_space<vmem>>, vector<24x8xf32>,
    %c0_48 = arith.constant 0 : index
    %c16_49 = arith.constant 16 : index
    %92 = vector.load %arg15[%c0_48, %c16_49] : memref<24x32xf32, #tpu.memory_space<vmem>>, vector<24x8xf32>
    %93 = arith.mulf %79, %92 : vector<24x8xf32>
    %94 = arith.truncf %83 : vector<24x8xf32> to vector<24x8xbf16>
    %95 = vector.extract_strided_slice %4 {offsets = [0, 48], sizes = [8, 8], strides = [1, 1]} : vector<8x64xbf16> to vector<8x8xbf16>
    %cst_50 = arith.constant dense<0.000000e+00> : vector<24x8xf32>
    %96 = tpu.matmul %94, %95, %cst_50 {dimension_numbers = #tpu.dot_dimension_numbers<[1], [0], [0], [1], [0, 0, 1, 1], [], []>} : vector<24x8xbf16>, vector<8x8xbf16>, vector<24x8xf32> -> vector<24x8xf32>
    %97 = arith.addf %93, %96 : vector<24x8xf32>
    %c0_51 = arith.constant 0 : index
    %c16_52 = arith.constant 16 : index
    %98 = vector.load %arg15[%c0_51, %c16_52] : memref<24x32xf32, #tpu.memory_space<vmem>>, vector<24x8xf32>
    tpu.vector_store %arg15[%c0_51, %c16_52], %97 {strides = array<i32>} : memref<24x32xf32, #tpu.memory_space<vmem>>, vector<24x8xf32>,
    %99 = vector.extract_strided_slice %5 {offsets = [0, 24], sizes = [24, 8], strides = [1, 1]} : vector<24x32xbf16> to vector<24x8xbf16>
    %100 = vector.extract_strided_slice %4 {offsets = [0, 24], sizes = [8, 8], strides = [1, 1]} : vector<8x64xbf16> to vector<8x8xbf16>
    %cst_53 = arith.constant dense<0.000000e+00> : vector<24x8xf32>
    %101 = tpu.matmul %99, %100, %cst_53 {dimension_numbers = #tpu.dot_dimension_numbers<[1], [1], [0], [0], [0, 0, 1, 0], [], []>} : vector<24x8xbf16>, vector<8x8xbf16>, vector<24x8xf32> -> vector<24x8xf32>
    %cst_54 = arith.constant 0.353553385 : f32
    %102 = vector.broadcast %cst_54 : f32 to vector<24x8xf32>
    %103 = arith.mulf %101, %102 : vector<24x8xf32>
    %c0_55 = arith.constant 0 : index
    %c24 = arith.constant 24 : index
    %104 = vector.load %arg13[%c0_55, %c24] : memref<24x32xf32, #tpu.memory_space<vmem>>, vector<24x8xf32>
    %cst_56 = arith.constant dense<0xFF800000> : vector<24xf32>
    %105 = vector.multi_reduction <maximumf>, %103, %cst_56 [1] : vector<24x8xf32> to vector<24xf32>
    %106 = vector.shape_cast %105 : vector<24xf32> to vector<24x1xf32>
    %107 = vector.broadcast %106 : vector<24x1xf32> to vector<24x8xf32>
    %108 = arith.maximumf %104, %107 : vector<24x8xf32>
    %109 = arith.subf %104, %108 : vector<24x8xf32>
    %110 = math.exp %109 : vector<24x8xf32>
    %111 = vector.extract_strided_slice %108 {offsets = [0, 0], sizes = [24, 1], strides = [1, 1]} : vector<24x8xf32> to vector<24x1xf32>
    %112 = vector.broadcast %111 : vector<24x1xf32> to vector<24x8xf32>
    %113 = arith.subf %103, %112 : vector<24x8xf32>
    %114 = math.exp %113 : vector<24x8xf32>
    %c0_57 = arith.constant 0 : index
    %c24_58 = arith.constant 24 : index
    %115 = vector.load %arg13[%c0_57, %c24_58] : memref<24x32xf32, #tpu.memory_space<vmem>>, vector<24x8xf32>
    tpu.vector_store %arg13[%c0_57, %c24_58], %108 {strides = array<i32>} : memref<24x32xf32, #tpu.memory_space<vmem>>, vector<24x8xf32>,
    %c0_59 = arith.constant 0 : index
    %c24_60 = arith.constant 24 : index
    %116 = vector.load %arg14[%c0_59, %c24_60] : memref<24x32xf32, #tpu.memory_space<vmem>>, vector<24x8xf32>
    %117 = arith.mulf %110, %116 : vector<24x8xf32>
    %cst_61 = arith.constant dense<0.000000e+00> : vector<24xf32>
    %118 = vector.multi_reduction <add>, %114, %cst_61 [1] : vector<24x8xf32> to vector<24xf32>
    %119 = vector.shape_cast %118 : vector<24xf32> to vector<24x1xf32>
    %120 = vector.broadcast %119 : vector<24x1xf32> to vector<24x8xf32>
    %121 = arith.addf %117, %120 : vector<24x8xf32>
    %c0_62 = arith.constant 0 : index
    %c24_63 = arith.constant 24 : index
    %122 = vector.load %arg14[%c0_62, %c24_63] : memref<24x32xf32, #tpu.memory_space<vmem>>, vector<24x8xf32>
    tpu.vector_store %arg14[%c0_62, %c24_63], %121 {strides = array<i32>} : memref<24x32xf32, #tpu.memory_space<vmem>>, vector<24x8xf32>,
    %c0_64 = arith.constant 0 : index
    %c24_65 = arith.constant 24 : index
    %123 = vector.load %arg15[%c0_64, %c24_65] : memref<24x32xf32, #tpu.memory_space<vmem>>, vector<24x8xf32>
    %124 = arith.mulf %110, %123 : vector<24x8xf32>
    %125 = arith.truncf %114 : vector<24x8xf32> to vector<24x8xbf16>
    %126 = vector.extract_strided_slice %4 {offsets = [0, 56], sizes = [8, 8], strides = [1, 1]} : vector<8x64xbf16> to vector<8x8xbf16>
    %cst_66 = arith.constant dense<0.000000e+00> : vector<24x8xf32>
    %127 = tpu.matmul %125, %126, %cst_66 {dimension_numbers = #tpu.dot_dimension_numbers<[1], [0], [0], [1], [0, 0, 1, 1], [], []>} : vector<24x8xbf16>, vector<8x8xbf16>, vector<24x8xf32> -> vector<24x8xf32>
    %128 = arith.addf %124, %127 : vector<24x8xf32>
    %c0_67 = arith.constant 0 : index
    %c24_68 = arith.constant 24 : index
    %129 = vector.load %arg15[%c0_67, %c24_68] : memref<24x32xf32, #tpu.memory_space<vmem>>, vector<24x8xf32>
    tpu.vector_store %arg15[%c0_67, %c24_68], %128 {strides = array<i32>} : memref<24x32xf32, #tpu.memory_space<vmem>>, vector<24x8xf32>,
    %c0_i32_69 = arith.constant 0 : i32
    %130 = arith.cmpi eq, %arg2, %c0_i32_69 : i32
    %131 = arith.extui %130 : i1 to i32
    %c0_i32_70 = arith.constant 0 : i32
    %132 = arith.cmpi ne, %131, %c0_i32_70 : i32
    scf.if %132 {
      %c0_71 = arith.constant 0 : index
      %c0_72 = arith.constant 0 : index
      %133 = vector.load %arg14[%c0_71, %c0_72] : memref<24x32xf32, #tpu.memory_space<vmem>>, vector<24x32xf32>
      %134 = tpu.reciprocal %133 {approx = true} : vector<24x32xf32> -> vector<24x32xf32>
      %c0_73 = arith.constant 0 : index
      %c0_74 = arith.constant 0 : index
      %135 = vector.load %arg15[%c0_73, %c0_74] : memref<24x32xf32, #tpu.memory_space<vmem>>, vector<24x32xf32>
      %136 = arith.mulf %135, %134 : vector<24x32xf32>
      %137 = arith.truncf %136 : vector<24x32xf32> to vector<24x32xbf16>
      %c0_75 = arith.constant 0 : index
      %c0_76 = arith.constant 0 : index
      %138 = vector.load %arg9[%c0_75, %c0_76] : memref<32x32xbf16, #tpu.memory_space<vmem>>, vector<32x32xbf16>
      %cst_77 = arith.constant dense<0.000000e+00> : vector<24x32xf32>
      %139 = tpu.matmul %137, %138, %cst_77 {dimension_numbers = #tpu.dot_dimension_numbers<[1], [0], [0], [1], [0, 0, 1, 1], [], []>} : vector<24x32xbf16>, vector<32x32xbf16>, vector<24x32xf32> -> vector<24x32xf32>
      %c0_78 = arith.constant 0 : index
      %c0_79 = arith.constant 0 : index
      %140 = vector.load %arg10[%c0_78, %c0_79] : memref<1x32xf32, #tpu.memory_space<vmem>>, vector<1x32xf32>
      %141 = vector.broadcast %140 : vector<1x32xf32> to vector<24x32xf32>
      %142 = arith.addf %139, %141 : vector<24x32xf32>
      %c0_80 = arith.constant 0 : index
      %c0_81 = arith.constant 0 : index
      %c0_82 = arith.constant 0 : index
      %143 = vector.load %arg3[%c0_80, %c0_81, %c0_82] : memref<1x24x32xf32, #tpu.memory_space<vmem>>, vector<1x24x32xf32>
      %144 = vector.shape_cast %143 : vector<1x24x32xf32> to vector<24x32xf32>
      %145 = arith.addf %144, %142 : vector<24x32xf32>
      %c0_83 = arith.constant 0 : index
      %c0_84 = arith.constant 0 : index
      %c0_85 = arith.constant 0 : index
      %146 = vector.load %arg11[%c0_83, %c0_84, %c0_85] : memref<1x24x32xf32, #tpu.memory_space<vmem>>, vector<1x24x32xf32>
      %147 = vector.shape_cast %146 : vector<1x24x32xf32> to vector<24x32xf32>
      %148 = vector.shape_cast %145 : vector<24x32xf32> to vector<1x24x32xf32>
      tpu.vector_store %arg11[%c0_83, %c0_84, %c0_85], %148 {strides = array<i32>} : memref<1x24x32xf32, #tpu.memory_space<vmem>>, vector<1x24x32xf32>,
    } else {
    }
    return
  }
  func.func @transform_0(%arg0: i32, %arg1: i32, %arg2: i32) -> (i32, i32, i32) {
    %c0_i32 = arith.constant 0 : i32
    %c0_i32_0 = arith.constant 0 : i32
    return %arg0, %arg1, %c0_i32 : i32, i32, i32
  }
  func.func @transform_1(%arg0: i32, %arg1: i32, %arg2: i32) -> (i32, i32, i32) {
    %c0_i32 = arith.constant 0 : i32
    %c0_i32_0 = arith.constant 0 : i32
    return %arg0, %arg2, %c0_i32 : i32, i32, i32
  }
  func.func @transform_2(%arg0: i32, %arg1: i32, %arg2: i32) -> (i32, i32) {
    %c0_i32 = arith.constant 0 : i32
    %c0_i32_0 = arith.constant 0 : i32
    %c0_i32_1 = arith.constant 0 : i32
    return %c0_i32, %c0_i32_0 : i32, i32
  }
  func.func @transform_3(%arg0: i32, %arg1: i32, %arg2: i32) -> (i32, i32) {
    %c0_i32 = arith.constant 0 : i32
    %c0_i32_0 = arith.constant 0 : i32
    %c0_i32_1 = arith.constant 0 : i32
    return %c0_i32, %c0_i32_0 : i32, i32
  }
  func.func @transform_4(%arg0: i32, %arg1: i32, %arg2: i32) -> (i32, i32) {
    %c0_i32 = arith.constant 0 : i32
    %c0_i32_0 = arith.constant 0 : i32
    %c0_i32_1 = arith.constant 0 : i32
    return %c0_i32, %c0_i32_0 : i32, i32
  }
  func.func @transform_5(%arg0: i32, %arg1: i32, %arg2: i32) -> (i32, i32) {
    %c0_i32 = arith.constant 0 : i32
    %c0_i32_0 = arith.constant 0 : i32
    %c0_i32_1 = arith.constant 0 : i32
    return %c0_i32, %c0_i32_0 : i32, i32
  }
  func.func @transform_6(%arg0: i32, %arg1: i32, %arg2: i32) -> (i32, i32) {
    %c0_i32 = arith.constant 0 : i32
    %c0_i32_0 = arith.constant 0 : i32
    %c0_i32_1 = arith.constant 0 : i32
    return %c0_i32, %c0_i32_0 : i32, i32
  }
  func.func @transform_7(%arg0: i32, %arg1: i32, %arg2: i32) -> (i32, i32) {
    %c0_i32 = arith.constant 0 : i32
    %c0_i32_0 = arith.constant 0 : i32
    %c0_i32_1 = arith.constant 0 : i32
    return %c0_i32, %c0_i32_0 : i32, i32
  }
  func.func @transform_8(%arg0: i32, %arg1: i32, %arg2: i32) -> (i32, i32, i32) {
    %c0_i32 = arith.constant 0 : i32
    %c0_i32_0 = arith.constant 0 : i32
    return %arg0, %arg1, %c0_i32 : i32, i32, i32
  }
}

module attributes {stable_mosaic.version = 11 : i64} {
  func.func @_layernorm_kernel(%arg0: i32, %arg1: memref<40x32xf32, #tpu.memory_space<vmem>>, %arg2: memref<1x32xf32, #tpu.memory_space<vmem>>, %arg3: memref<1x32xf32, #tpu.memory_space<vmem>>, %arg4: memref<40x32xf32, #tpu.memory_space<vmem>>) attributes {dimension_semantics = [#tpu.dimension_semantics<parallel>], iteration_bounds = array<i64: 1>, scalar_prefetch = 0 : i64, scratch_operands = 0 : i64, tpu.core_type = #tpu.core_type<tc>, window_params = [{transform_indices = @transform_0, window_bounds = array<i64: 40, 32>}, {pipeline_mode = #tpu.pipeline_mode<synchronous>, transform_indices = @transform_1, window_bounds = array<i64: 1, 32>}, {pipeline_mode = #tpu.pipeline_mode<synchronous>, transform_indices = @transform_2, window_bounds = array<i64: 1, 32>}, {transform_indices = @transform_3, window_bounds = array<i64: 40, 32>}]} {
    %c0 = arith.constant 0 : index
    %c0_0 = arith.constant 0 : index
    %0 = vector.load %arg1[%c0, %c0_0] : memref<40x32xf32, #tpu.memory_space<vmem>>, vector<40x32xf32>
    %c0_1 = arith.constant 0 : index
    %c0_2 = arith.constant 0 : index
    %1 = vector.load %arg2[%c0_1, %c0_2] : memref<1x32xf32, #tpu.memory_space<vmem>>, vector<1x32xf32>
    %c0_3 = arith.constant 0 : index
    %c0_4 = arith.constant 0 : index
    %2 = vector.load %arg3[%c0_3, %c0_4] : memref<1x32xf32, #tpu.memory_space<vmem>>, vector<1x32xf32>
    %cst = arith.constant dense<0.000000e+00> : vector<40xf32>
    %3 = vector.multi_reduction <add>, %0, %cst [1] : vector<40x32xf32> to vector<40xf32>
    %4 = vector.shape_cast %3 : vector<40xf32> to vector<40x1xf32>
    %cst_5 = arith.constant 3.200000e+01 : f32
    %5 = vector.broadcast %cst_5 : f32 to vector<40x1xf32>
    %6 = arith.divf %4, %5 : vector<40x1xf32>
    %7 = vector.broadcast %6 : vector<40x1xf32> to vector<40x32xf32>
    %8 = arith.subf %0, %7 : vector<40x32xf32>
    %9 = arith.mulf %8, %8 : vector<40x32xf32>
    %cst_6 = arith.constant dense<0.000000e+00> : vector<40xf32>
    %10 = vector.multi_reduction <add>, %9, %cst_6 [1] : vector<40x32xf32> to vector<40xf32>
    %11 = vector.shape_cast %10 : vector<40xf32> to vector<40x1xf32>
    %cst_7 = arith.constant 3.200000e+01 : f32
    %12 = vector.broadcast %cst_7 : f32 to vector<40x1xf32>
    %13 = arith.divf %11, %12 : vector<40x1xf32>
    %cst_8 = arith.constant 9.99999974E-6 : f32
    %14 = vector.broadcast %cst_8 : f32 to vector<40x1xf32>
    %15 = arith.addf %13, %14 : vector<40x1xf32>
    %16 = math.rsqrt %15 : vector<40x1xf32>
    %17 = vector.broadcast %16 : vector<40x1xf32> to vector<40x32xf32>
    %18 = arith.mulf %8, %17 : vector<40x32xf32>
    %19 = vector.broadcast %1 : vector<1x32xf32> to vector<40x32xf32>
    %20 = arith.mulf %18, %19 : vector<40x32xf32>
    %21 = vector.broadcast %2 : vector<1x32xf32> to vector<40x32xf32>
    %22 = arith.addf %20, %21 : vector<40x32xf32>
    %c0_9 = arith.constant 0 : index
    %c0_10 = arith.constant 0 : index
    %23 = vector.load %arg4[%c0_9, %c0_10] : memref<40x32xf32, #tpu.memory_space<vmem>>, vector<40x32xf32>
    tpu.vector_store %arg4[%c0_9, %c0_10], %22 {strides = array<i32>} : memref<40x32xf32, #tpu.memory_space<vmem>>, vector<40x32xf32>,
    return
  }
  func.func @transform_0(%arg0: i32) -> (i32, i32) {
    %c0_i32 = arith.constant 0 : i32
    %c0_i32_0 = arith.constant 0 : i32
    return %arg0, %c0_i32 : i32, i32
  }
  func.func @transform_1(%arg0: i32) -> (i32, i32) {
    %c0_i32 = arith.constant 0 : i32
    %c0_i32_0 = arith.constant 0 : i32
    %c0_i32_1 = arith.constant 0 : i32
    return %c0_i32, %c0_i32_0 : i32, i32
  }
  func.func @transform_2(%arg0: i32) -> (i32, i32) {
    %c0_i32 = arith.constant 0 : i32
    %c0_i32_0 = arith.constant 0 : i32
    %c0_i32_1 = arith.constant 0 : i32
    return %c0_i32, %c0_i32_0 : i32, i32
  }
  func.func @transform_3(%arg0: i32) -> (i32, i32) {
    %c0_i32 = arith.constant 0 : i32
    %c0_i32_0 = arith.constant 0 : i32
    return %arg0, %c0_i32 : i32, i32
  }
}

</mosaic_0001>

<bundles_post_ra>
// kernel: surface_field_autoencoder_forward.22
= control target key start
LH: loop header
LB: loop body
LE: loop exit
PB: predicated region body
PF: predicated region fallthrough
CT: control target
= control target key end

     0   :  { %10 = vsyncpa [#allocation3], 0  ;;  %s1269_s0 = inlined_call_operand.hbm [shape: f32[48,32], index: 0, kind: input, shape index: {}]   ;;  %s1270_s1 = inlined_call_operand.hbm [shape: f32[1,32], index: 1, kind: input, shape index: {}]   ;;  %s1271_s2 = inlined_call_operand.hbm [shape: f32[1,32], index: 2, kind: input, shape index: {}]   ;;  %s1272_s3 = inlined_call_operand.hbm [shape: bf16[32,64], index: 3, kind: input, shape index: {}]   ;;  %s1273_s4 = inlined_call_operand.hbm [shape: f32[1,64], index: 4, kind: input, shape index: {}]   ;;  %s1274_s5 = inlined_call_operand.hbm [shape: bf16[48,64], index: 5, kind: output, shape index: {}]  }
   0x1   :  { %12 = vsyncpa [#allocation3 + $0x1], 0 }
   0x2   :  { %13 = vsyncpa [#allocation6], 0 }
   0x3   :  { %14 = vsyncpa [#allocation9], 0 }
   0x4   :  { %15 = vsyncpa [#allocation4], 0 }
   0x5   :  { %17 = vsyncpa [#allocation4 + $0x1], 0  ;;  %s990_s18 = smov 0   ;;  %s992_s19 = smov 0  }
   0x6   :  { %s994_s20 = smov 0   ;;  %s996_s21 = smov 0  }
   0x7 LB: > { %s1011_s22 = sadd.s32 4294967295, %s946_s21   ;;  %s583_s23 = sadd.s32 4294967294, %s946_s21   ;;  %s946_s21 = sphi %s996_s21, %s1297_s21   ;;  %s942_s20 = sphi %s994_s20, %s1296_s20   ;;  %s938_s19 = sphi %s992_s19, %s1295_s19   ;;  %s934_s18 = sphi %s990_s18, %s1294_s18  }
   0x8   : > { %p43_p0 = scmp.ne.s32.totalorder %s938_s19, %s934_s18  ;;  %p1275_p1 = scmp.eq.s32.totalorder %s1011_s22, 0 }
   0x9   : > { %p157_p3 = scmp.eq.s32.totalorder %s583_s23, 1  ;;  %p584_p5 = scmp.ge.s32.totalorder %s946_s21, 1 }
   0xa   : > { %p1020_p4 = por %p1275_p1, %p43_p0  ;;  %p164_p7 = scmp.lt.s32.totalorder %s946_s21, 3 }
   0xb   : > { %p1025_p6 = por %p157_p3, %p43_p0  ;;  %s948_s27 = smov [#allocation5]  }
   0xc   : > { %s1278_s24 = scalar_select %p1020_p4, 1, 0 }
   0xd   : > { %s1279_s25 = scalar_select %p1025_p6, 1, 0 }
   0xe   : > { %p1030_p8 = pnand %p584_p5, %p164_p7  ;;  %s177_s28 = sshll.u32 %s948_s27, 4  ;;  %s178_s28 = int_to_ptr.vmem [resolvable:$true] %s177_s28 }
   0xf   : > { %s949_s29 = smov [#allocation8]   ;;  %s950_s7 = smov [#allocation7]  }
  0x10   : > { %s1280_s26 = scalar_select %p1030_p8, 1, 0 }
  0x11   : > { %p649_p10 = pneg %p1030_p8  ;;  %s198_s30 = sshll.u32 %s949_s29, 4  ;;  %s1043_s30 = int_to_ptr.vmem [resolvable:$true] %s198_s30 }
  0x12   : > { %s1045_s8 = sshll.u32 %s950_s7, 4  ;;  %s730_s11 = scalar_lea.hbm %s1270_s1, 16  ;;  %s189_s8 = int_to_ptr.vmem [resolvable:$true] %s1045_s8 }
  0x13   : > { %p1039_p11 = pnand %p649_p10, %p1275_p1  ;;  %p731_p12 = scmp.ne.s32.totalorder %s1270_s1, %s730_s11 }
  0x14   : > { %p737_p5 = scmp.lt.u32.totalorder %s730_s11, %s1270_s1 }
  0x15   : > { %p1055_p13 = pneg %p1039_p11 }
  0x17   : > { %p733_p0 = pnand %p1055_p13, %p731_p12 }
  0x19   : > { %p734_p3 = pneg %p733_p0 }
  0x1b   : > { %p739_p7 = pnand %p737_p5, %p734_p3 }
  0x1d   : > { %742 = shalt.err (!%p739_p7)
}
  0x1e   : > { %s743_s17 = scalar_lea.vmem %s178_s28, 16  ;;  %s750_s23 = scalar_lea.vmem %s178_s28, 32 }
  0x1f   : > { %p744_p10 = scmp.ne.s32.totalorder %s178_s28, %s743_s17  ;;  %p751_p2 = scmp.lt.s32.totalorder %s178_s28, %s178_s28 }
  0x20   : > { %p752_p6 = scmp.lt.s32.totalorder %s750_s23, %s743_s17 }
  0x21   : > { %p746_p9 = pnand %p744_p10, %p1055_p13 }
  0x22   : > { %p753_p4 = por %p752_p6, %p751_p2 }
  0x23   : > { %p747_p1 = pneg %p746_p9 }
  0x25   : > { %p754_p8 = pnand %p753_p4, %p747_p1 }
  0x27   : > { %757 = shalt.err (!%p754_p8)
}
  0x28   : > { %652 = dma.hbm_to_vmem [thread:$0]  (!%p1039_p11), %s1270_s1, 16, %s178_s28, [#allocation6]  }
  0x29   : > { %s758_s10 = scalar_lea.hbm %s1272_s3, 256 }
  0x2a   : > { %p759_p9 = scmp.ne.s32.totalorder %s1272_s3, %s758_s10  ;;  %p765_p1 = scmp.lt.u32.totalorder %s758_s10, %s1272_s3 }
  0x2c   : > { %p761_p12 = pnand %p759_p9, %p1055_p13 }
  0x2e   : > { %p762_p2 = pneg %p761_p12 }
  0x30   : > { %p767_p4 = pnand %p765_p1, %p762_p2 }
  0x32   : > { %770 = shalt.err (!%p767_p4)
}
  0x33   : > { %s771_s28 = scalar_lea.vmem %s1043_s30, 256  ;;  %p779_p3 = scmp.lt.s32.totalorder %s1043_s30, %s1043_s30 }
  0x34   : > { %p772_p6 = scmp.ne.s32.totalorder %s1043_s30, %s771_s28  ;;  %p780_p5 = scmp.lt.s32.totalorder %s771_s28, %s771_s28 }
  0x36   : > { %p774_p8 = pnand %p772_p6, %p1055_p13  ;;  %p781_p7 = por %p780_p5, %p779_p3 }
  0x38   : > { %p775_p0 = pneg %p774_p8 }
  0x3a   : > { %p782_p10 = pnand %p781_p7, %p775_p0 }
  0x3c   : > { %785 = shalt.err (!%p782_p10)
}
  0x3d   : > { %s951_s16 = smov 64   ;;  %s952_s17 = smov 4  }
  0x3e   : > { %658 = dma.hbm_to_vmem [thread:$0]  (!%p1039_p11), %s1272_s3, 256, %s1043_s30, [#allocation9], %s951_s16, %s951_s16, %s952_s17  }
  0x3f   : > { %s786_s9 = scalar_lea.hbm %s1271_s2, 16 }
  0x40   : > { %p787_p9 = scmp.ne.s32.totalorder %s1271_s2, %s786_s9  ;;  %p793_p1 = scmp.lt.u32.totalorder %s786_s9, %s1271_s2 }
  0x42   : > { %p789_p12 = pnand %p787_p9, %p1055_p13 }
  0x44   : > { %p790_p2 = pneg %p789_p12 }
  0x46   : > { %p795_p4 = pnand %p793_p1, %p790_p2 }
  0x48   : > { %798 = shalt.err (!%p795_p4)
}
  0x49   : > { %s799_s15 = scalar_lea.vmem %s189_s8, 16  ;;  %s806_s30 = scalar_lea.vmem %s189_s8, 32 }
  0x4a   : > { %p800_p6 = scmp.ne.s32.totalorder %s189_s8, %s799_s15  ;;  %p807_p3 = scmp.lt.s32.totalorder %s189_s8, %s189_s8 }
  0x4b   : > { %p808_p5 = scmp.lt.s32.totalorder %s806_s30, %s799_s15 }
  0x4c   : > { %p802_p8 = pnand %p800_p6, %p1055_p13 }
  0x4d   : > { %p809_p7 = por %p808_p5, %p807_p3 }
  0x4e   : > { %p803_p0 = pneg %p802_p8 }
  0x50   : > { %p810_p10 = pnand %p809_p7, %p803_p0 }
  0x52   : > { %813 = shalt.err (!%p810_p10)
}
  0x53   : > { %655 = dma.hbm_to_vmem [thread:$0]  (!%p1039_p11), %s1271_s2, 16, %s189_s8, [#allocation6]  }
  0x54   : > { %s953_s17 = smov [#allocation10]   ;;  %s814_s7 = scalar_lea.hbm %s1273_s4, 16 }
  0x55   : > { %s212_s23 = sshll.u32 %s953_s17, 4  ;;  %p815_p9 = scmp.ne.s32.totalorder %s1273_s4, %s814_s7  ;;  %s213_s23 = int_to_ptr.vmem [resolvable:$true] %s212_s23 }
  0x56   : > { %p821_p1 = scmp.lt.u32.totalorder %s814_s7, %s1273_s4 }
  0x57   : > { %p817_p12 = pnand %p815_p9, %p1055_p13 }
  0x59   : > { %p818_p2 = pneg %p817_p12 }
  0x5b   : > { %p823_p4 = pnand %p821_p1, %p818_p2 }
  0x5d   : > { %826 = shalt.err (!%p823_p4)
}
  0x5e   : > { %s827_s8 = scalar_lea.vmem %s213_s23, 16  ;;  %s834_s13 = scalar_lea.vmem %s213_s23, 32 }
  0x5f   : > { %p828_p6 = scmp.ne.s32.totalorder %s213_s23, %s827_s8  ;;  %p835_p3 = scmp.lt.s32.totalorder %s213_s23, %s213_s23 }
  0x60   : > { %p836_p5 = scmp.lt.s32.totalorder %s834_s13, %s827_s8 }
  0x61   : > { %p830_p8 = pnand %p828_p6, %p1055_p13 }
  0x62   : > { %p837_p7 = por %p836_p5, %p835_p3 }
  0x63   : > { %p831_p0 = pneg %p830_p8 }
  0x65   : > { %p838_p10 = pnand %p837_p7, %p831_p0 }
  0x67   : > { %841 = shalt.err (!%p838_p10)
}
  0x68   : > { %661 = dma.hbm_to_vmem [thread:$0]  (!%p1039_p11), %s1273_s4, 16, %s213_s23, [#allocation9]  }
  0x69   : > { %s1132_s14 = sadd.s32 1, %s946_s21   ;;  %s30_s28 = sadd.s32 1, %s942_s20 }
  0x6a   : > { %s27_s6 = ssub.s32 %s946_s21, %s1132_s14  ;;  %p37_p13 = scmp.ne.s32.totalorder %s942_s20, %s938_s19 }
  0x6b   : > { %p28_p9 = scmp.eq.s32.totalorder %s27_s6, 0  ;;  %p38_p12 = scmp.eq.s32.totalorder %s946_s21, 0 }
  0x6c   : > { %p1283_p2 = scmp.eq.s32.totalorder %s1011_s22, 1  ;;  %p674_p4 = scmp.lt.s32.totalorder %s946_s21, 2 }
  0x6d   : > { %s1148_s17 = scalar_select %p28_p9, %s942_s20, %s30_s28  }
  0x6e   : > { %p1142_p1 = por %p1283_p2, %p37_p13  ;;  %p39_p6 = por %p38_p12, %p37_p13 }
  0x6f   : > { %s223_s27 = sand.u32 1, %s942_s20   ;;  %s609_s23 = smul.u32 384, %s946_s21 }
  0x70   : > { %s626_s29 = smul.u32 24, %s223_s27  ;;  %p1152_p11 = pnand %p674_p4, %p39_p6 }
  0x71   : > { %s1159_s11 = scalar_lea.hbm %s1269_s0, %s609_s23  ;;  %s1163_s13 = scalar_lea.sflag [#allocation3], %s223_s27 }
  0x72   : > { %s227_s12 = scalar_lea.vmem [#allocation2], %s626_s29  ;;  %s842_s15 = scalar_lea.hbm %s1159_s11, 384 }
  0x73   : > { %s234_s8 = sshll.u32 %s227_s12, 4  ;;  %p843_p8 = scmp.ne.s32.totalorder %s1159_s11, %s842_s15  ;;  %s1161_s8 = int_to_ptr.vmem [resolvable:$true] %s234_s8 }
  0x74   : > { %p844_p0 = pneg %p1152_p11  ;;  %s847_s6 = scalar_lea.hbm %s1269_s0, 768 }
  0x75   : > { %p848_p7 = scmp.lt.u32.totalorder %s1159_s11, %s1269_s0  ;;  %p849_p10 = scmp.lt.u32.totalorder %s847_s6, %s842_s15 }
  0x76   : > { %p845_p3 = pnand %p844_p0, %p843_p8  ;;  %p851_p9 = scmp.lt.u32.totalorder %s842_s15, %s1159_s11 }
  0x77   : > { %p850_p13 = por %p849_p10, %p848_p7 }
  0x78   : > { %p846_p5 = pneg %p845_p3 }
  0x79   : > { %p852_p12 = por %p851_p9, %p850_p13 }
  0x7b   : > { %p853_p2 = pnand %p852_p12, %p846_p5 }
  0x7d   : > { %856 = shalt.err (!%p853_p2)
}
  0x7e   : > { %s857_s27 = scalar_lea.vmem %s1161_s8, 384  ;;  %s954_s29 = smov [#allocation2]  }
  0x7f   : > { %p858_p4 = scmp.ne.s32.totalorder %s1161_s8, %s857_s27  ;;  %s862_s10 = sshll.u32 %s954_s29, 4  ;;  %s863_s10 = int_to_ptr.vmem [resolvable:$false] %s862_s10 }
  0x80   : > { %s864_s12 = scalar_lea.vmem %s863_s10, 768  ;;  %p865_p3 = scmp.lt.s32.totalorder %s1161_s8, %s863_s10 }
  0x81   : > { %p860_p6 = pnand %p858_p4, %p844_p0  ;;  %p866_p7 = scmp.lt.s32.totalorder %s864_s12, %s857_s27 }
  0x83   : > { %p861_p8 = pneg %p860_p6  ;;  %p867_p10 = por %p866_p7, %p865_p3 }
  0x85   : > { %p868_p13 = pnand %p867_p10, %p861_p8 }
  0x87   : > { %871 = shalt.err (!%p868_p13)
}
  0x88   : > { %s955_s15 = smov 128   ;;  %s956_s30 = smov 8  }
  0x89   : > { %665 = dma.hbm_to_vmem [thread:$0]  (!%p1152_p11), %s1159_s11, 384, %s1161_s8, %s1163_s13, %s955_s15, %s955_s15, %s956_s30  }
  0x8a   : > { %p1286_p0 = scmp.ne.s32.totalorder %s1280_s26, 0 }
  0x8b   : > { %s1194_s28 = sand.u32 (!%p1286_p0), 1, %s938_s19   ;;  %p1287_p5 = scmp.ne.s32.totalorder (!%p1286_p0), %s1278_s24, 0 }
  0x8c   : > { %246 = sbr.rel (%p1286_p0) target bundleno = 710 (0x2c6), region = 40  ;;  %s249_s23 = scalar_lea.sflag (!%p1286_p0), [#allocation3], %s1194_s28 }
  0x8d   : > { %s627_s6 = smul.u32 (!%p1286_p0), 24, %s1194_s28 }
  0x8f   : > { %s252_s9 = scalar_lea.vmem (!%p1286_p0), [#allocation2], %s627_s6 }
  0x93   : > { %917 = dma.done.wait (%p1287_p5), %s249_s23, 384  }
  0x94   : > { %919 = vsyncadd (%p1287_p5), %s249_s23, 4294966912  ;;  %p1288_p9 = scmp.eq.s32.totalorder %s1011_s22, 0 }
  0x96   : > { %921 = dma.done.wait (%p1288_p9), [#allocation6], 32   ;;  %p1289_p11 = pmov %p1288_p9 }
  0x97   : > { %p1290_p12 = pmov %p1288_p9 }
  0x98   : > { %923 = vsyncadd (%p1289_p11), [#allocation6], 4294967264 }
  0x99   : > { %925 = dma.done.wait (%p1290_p12), [#allocation9], 272   ;;  %p1291_p2 = pmov %p1288_p9 }
  0x9a   : > { %vm303_vm0 = vcmask 261120   ;;  %v298_v0 = vld [vmem:[%s252_s9] sm:$0xff]  ;;  %v300_v1 = vld [vmem:[%s252_s9 + $0x10] sm:$0xff]  ;;  %v299_v2 = vld [vmem:[%s252_s9 + $0x8] sm:$0xff]  ;;  %s628_s24 = smul.u32 12, %s1194_s28  ;;  %vm454_vm1 = vcmask 519168  }
  0x9b   : > { %927 = vsyncadd (%p1291_p2), [#allocation9], 4294967024  ;;  %v304_v3 = vsel %vm303_vm0, %v298_v0, 0.0  ;;  %v310_v4 = vsel %vm303_vm0, %v300_v1, 0.0  ;;  %v307_v5 = vsel %vm303_vm0, %v299_v2, 0.0  ;;  %v722_v21 = vld [vmem:[#allocation8] sm:$0xff]  }
  0x9c   : > { %305 = vadd.xlane.f32.xlu0 %v304_v3  ;;  %311 = vadd.xlane.f32.xlu1 %v310_v4  ;;  %v723_v22 = vld [vmem:[#allocation8 + $0x8] sm:$0xff]   ;;  %v596_v34 = vld [vmem:[#allocation5] ss:$0 sm:$0xff]  ;;  %v597_v40 = vld [vmem:[#allocation7] ss:$0 sm:$0xff]  ;;  %s294_s26 = scalar_lea.vmem [#allocation11], %s628_s24 }
  0x9d   : > { %618 = vmatprep.subr.bf16.mxu0 %v722_v21  ;;  %v598_v48 = vld [vmem:[#allocation10] ss:$0 sm:$0xff]  ;;  %s472_s7 = sshll.u32 %s294_s26, 4  ;;  %s613_s11 = smul.u32 192, %s1011_s22  ;;  %s1220_s7 = int_to_ptr.vmem [resolvable:$true] %s472_s7 }
  0x9e   : > { %619 = vmatpush3.bf16.msra.mxu0 %v722_v21  ;;  %s459_s22 = scalar_lea.sflag [#allocation4], %s1194_s28  ;;  %s872_s29 = scalar_lea.vmem %s1220_s7, 192 }
  0x9f   : > { %620 = vmatprep.subr.bf16.mxu0 %v723_v22  ;;  %s1225_s27 = scalar_lea.hbm %s1274_s5, %s613_s11  ;;  %p873_p4 = scmp.ne.s32.totalorder %s1220_s7, %s872_s29 }
  0xa0   : > { %308 = vadd.xlane.f32.xlu0 %v307_v5  ;;  %s957_s10 = smov [#allocation11]  }
  0xa1   : > { %p874_p6 = pnand %p873_p4, %p1142_p1  ;;  %s876_s12 = sshll.u32 %s957_s10, 4  ;;  %s877_s12 = int_to_ptr.vmem [resolvable:$false] %s876_s12 }
  0xa2   : > { %621 = vmatpush3.bf16.msra.mxu0 %v723_v22  ;;  %s878_s15 = scalar_lea.vmem %s877_s12, 384  ;;  %p879_p3 = scmp.lt.s32.totalorder %s1220_s7, %s877_s12 }
  0xa3   : > { %p875_p8 = pneg %p874_p6  ;;  %p880_p7 = scmp.lt.s32.totalorder %s878_s15, %s872_s29 }
  0xa5   : > { %p881_p10 = por %p880_p7, %p879_p3 }
  0xa7   : > { %p882_p13 = pnand %p881_p10, %p875_p8 }
 0x129   : > { %v306_v6 = vpop.xlane.xlu0 %305  ;;  %v312_v7 = vpop.xlane.xlu1 %311 }
 0x12a   : > { %v314_v8 = vmul.f32 0.03125, %v306_v6  ;;  %v316_v9 = vmul.f32 0.03125, %v312_v7 }
 0x12c   : > { %v317_v10 = vsub.f32 %v298_v0, %v314_v8  ;;  %v319_v11 = vsub.f32 %v300_v1, %v316_v9 }
 0x12d   : > { %v309_v12 = vpop.xlane.xlu0 %308 }
 0x12e   : > { %v315_v13 = vmul.f32 0.03125, %v309_v12  ;;  %v320_v14 = vmul.f32 %v317_v10, %v317_v10  ;;  %v322_v15 = vmul.f32 %v319_v11, %v319_v11 }
 0x130   : > { %v318_v16 = vsub.f32 %v299_v2, %v315_v13  ;;  %v323_v17 = vsel %vm303_vm0, %v320_v14, 0.0  ;;  %v329_v18 = vsel %vm303_vm0, %v322_v15, 0.0 }
 0x131   : > { %324 = vadd.xlane.f32.xlu1 %v323_v17 }
 0x132   : > { %v321_v19 = vmul.f32 %v318_v16, %v318_v16 }
 0x134   : > { %v326_v20 = vsel %vm303_vm0, %v321_v19, 0.0 }
 0x135   : > { %330 = vadd.xlane.f32.xlu1 %v329_v18  ;;  %327 = vadd.xlane.f32.xlu0 %v326_v20 }
 0x1be   : > { %v325_v23 = vpop.xlane.xlu1 %324 }
 0x1bf   : > { %v332_v24 = vmul.f32 0.03125, %v325_v23 }
 0x1c1   : > { %v335_v25 = vadd.f32 1e-05, %v332_v24 }
 0x1c2   : > { %v331_v26 = vpop.xlane.xlu1 %330  ;;  %v328_v27 = vpop.xlane.xlu0 %327 }
 0x1c3   : > { %724 = vrsqrt.f32 %v335_v25  ;;  %v334_v28 = vmul.f32 0.03125, %v331_v26  ;;  %v333_v29 = vmul.f32 0.03125, %v328_v27 }
 0x1c5   : > { %v337_v30 = vadd.f32 1e-05, %v334_v28  ;;  %v336_v31 = vadd.f32 1e-05, %v333_v29 }
 0x1c7   : > { %726 = vrsqrt.f32 %v337_v30 }
 0x1c8   : > { %728 = vrsqrt.f32 %v336_v31 }
 0x1cd   : > { %v725_v32 = vpop.eup %724 }
 0x1ce   : > { %v341_v33 = vmul.f32 %v725_v32, %v317_v10 }
 0x1d0   : > { %v350_v39 = vmul.f32 %v596_v34, %v341_v33 }
 0x1d1   : > { %v727_v35 = vpop.eup %726 }
 0x1d2   : > { %v729_v36 = vpop.eup %728  ;;  %v343_v37 = vmul.f32 %v727_v35, %v319_v11  ;;  %v359_v44 = vadd.f32 %v597_v40, %v350_v39 }
 0x1d3   : > { %v342_v38 = vmul.f32 %v729_v36, %v318_v16 }
 0x1d4   : > { %v352_v41 = vmul.f32 %v596_v34, %v343_v37 }
 0x1d5   : > { %v351_v42 = vmul.f32 %v596_v34, %v342_v38 }
 0x1d6   : > { %v361_v43 = vadd.f32 %v597_v40, %v352_v41 }
 0x1d7   : > { %v360_v45 = vadd.f32 %v597_v40, %v351_v42 }
 0x1d8   : > { %v363_v46 = vpack.c.bf16 %v361_v43, %v361_v43 }
 0x1d9   : > { %v362_v47 = vpack.c.bf16 %v360_v45, %v359_v44 }
 0x1db   : > { %622 = vmatprep.mubr.msk.bf16.mxu0 %vm303_vm0, %v362_v47 }
 0x1dc   : > { %623 = vmatmul.mubr.msk.bf16.vlgmr.msra.gmra.mrb[0].mxu0 %vm303_vm0, %v363_v46 }
 0x2af   : > { %v624_v49 = vpop.f32.mrb[0].mxu0 }
 0x2b0   : > { %v436_v50 = vadd.f32 %v624_v49, %v598_v48  ;;  %v427_v51 = vpop.f32.mrb[1].mxu0 }
 0x2b1   : > { %v428_v52 = vadd.f32 %v598_v48, %v427_v51  ;;  %v625_v53 = vpop.f32.mrb[2].mxu0 }
 0x2b2   : > { %v612_v54 = vpack.c.bf16 %v436_v50, %v436_v50  ;;  %v430_v55 = vpop.f32.mrb[3].mxu0 }
 0x2b3   : > { %v610_v56 = vpack.c.bf16 %v428_v52, %v428_v52  ;;  %v431_v57 = vadd.f32 %v598_v48, %v430_v55 }
 0x2b4   : > { %457 = vst.msk [vmem:[%s294_s26 + $0x8] sm:$0xf] %vm454_vm1, %v612_v54 }
 0x2b5   : > { %455 = vst.msk [vmem:[%s294_s26] sm:$0xf] %vm454_vm1, %v610_v56  ;;  %v611_v58 = vpack.c.bf16 %v431_v57, %v431_v57 }
 0x2b7   : > { %456 = vst.msk [vmem:[%s294_s26 + $0x4] sm:$0xf] %vm454_vm1, %v611_v58 }
 0x2b8   : > { %885 = shalt.err (!%p882_p13)
}
 0x2b9   : > { %s886_s30 = scalar_lea.hbm %s1225_s27, 192  ;;  %s890_s9 = scalar_lea.hbm %s1274_s5, 384 }
 0x2ba   : > { %p887_p0 = scmp.ne.s32.totalorder %s1225_s27, %s886_s30  ;;  %p891_p11 = scmp.lt.u32.totalorder %s1225_s27, %s1274_s5 }
 0x2bb   : > { %p892_p12 = scmp.lt.u32.totalorder %s890_s9, %s886_s30  ;;  %p894_p4 = scmp.lt.u32.totalorder %s886_s30, %s1225_s27 }
 0x2bc   : > { %p888_p5 = pnand %p887_p0, %p1142_p1 }
 0x2bd   : > { %p893_p2 = por %p892_p12, %p891_p11 }
 0x2be   : > { %p889_p9 = pneg %p888_p5 }
 0x2bf   : > { %p895_p6 = por %p894_p4, %p893_p2 }
 0x2c1   : > { %p896_p8 = pnand %p895_p6, %p889_p9 }
 0x2c3   : > { %899 = shalt.err (!%p896_p8)
}
 0x2c4   : > { %s958_s11 = smov 64   ;;  %s959_s8 = smov 4  }
 0x2c5   : > { %647 = dma.vmem_to_hbm [thread:$0]  (%p1142_p1), %s1220_s7, 192, %s1225_s27, %s459_s22, %s958_s11, %s958_s11, %s959_s8  }
 0x2c6 PF: > { %s487_s13 = sand.u32 1, %s934_s18   ;;  %p1292_p3 = scmp.ne.s32.totalorder %s1279_s25, 0 }
 0x2c7   : > { %p1293_p7 = scmp.ge.s32.totalorder %s946_s21, 2  ;;  %s488_s29 = scalar_lea.sflag [#allocation4], %s487_s13 }
 0x2c9   : > { %p667_p10 = pnand %p1293_p7, %p1292_p3 }
 0x2cb   : > { %929 = dma.done.wait (!%p667_p10), %s488_s29, 192  }
 0x2cc   : > { %931 = vsyncadd (!%p667_p10), %s488_s29, 4294967104  ;;  %p20_p13 = scmp.ge.s32.totalorder %s1132_s14, 4   ;;  %s1294_s18 = smov %s938_s19 }
 0x2cd   : > { %s1295_s19 = smov %s942_s20  ;;  %s1296_s20 = smov %s1148_s17 }
 0x2ce   : > { %s1297_s21 = smov %s1132_s14  ;;  %22 = sbr.rel (!%p20_p13) target bundleno = 7 (0x7), region = 101 }
 0x2d5   :  { %493 = vsyncpa [#allocation3], 1 }
 0x2d6   :  { %495 = vsyncpa [#allocation3 + $0x1], 1 }
 0x2d7   :  { %496 = vsyncpa [#allocation6], 1 }
 0x2d8   :  { %497 = vsyncpa [#allocation9], 1 }
 0x2d9   :  { %498 = vsyncpa [#allocation4], 1 }
 0x2da   :  { %500 = vsyncpa [#allocation4 + $0x1], 1 }

// kernel: surface_field_autoencoder_forward.21
= control target key start
LH: loop header
LB: loop body
LE: loop exit
PB: predicated region body
PF: predicated region fallthrough
CT: control target
= control target key end

     0   :  { %8 = vsyncpa [#allocation4], 0  ;;  %s488_s0 = inlined_call_operand.hbm [shape: f32[40,55], index: 0, kind: input, shape index: {}]   ;;  %s489_s1 = inlined_call_operand.hbm [shape: bf16[55,32], index: 1, kind: input, shape index: {}]   ;;  %s490_s2 = inlined_call_operand.hbm [shape: f32[1,32], index: 2, kind: input, shape index: {}]   ;;  %s491_s3 = inlined_call_operand.hbm [shape: f32[40,32], index: 3, kind: output, shape index: {}]  }
   0x1   :  { %9 = vsyncpa [#allocation7], 0 }
   0x2   :  { %10 = vsyncpa [#allocation5], 0  ;;  %s385_s12 = smov [#allocation6]   ;;  %s291_s16 = scalar_lea.hbm %s489_s1, 448 }
   0x3   :  { %s28_s13 = sshll.u32 %s385_s12, 4  ;;  %p292_p0 = scmp.ne.s32.totalorder %s489_s1, %s291_s16  ;;  %s29_s13 = int_to_ptr.vmem [resolvable:$true] %s28_s13 }
   0x4   :  { %p295_p1 = scmp.lt.u32.totalorder %s291_s16, %s489_s1 }
   0x6   :  { %p297_p2 = pnand %p295_p1, %p292_p0 }
   0x8   :  { %300 = shalt.err (!%p297_p2)
}
   0x9   :  { %s301_s21 = scalar_lea.vmem %s29_s13, 448  ;;  %p306_p4 = scmp.lt.s32.totalorder %s29_s13, %s29_s13 }
   0xa   :  { %p302_p3 = scmp.ne.s32.totalorder %s29_s13, %s301_s21  ;;  %p307_p5 = scmp.lt.s32.totalorder %s301_s21, %s301_s21 }
   0xc   :  { %p308_p6 = por %p307_p5, %p306_p4 }
   0xe   :  { %p309_p7 = pnand %p308_p6, %p302_p3 }
  0x10   :  { %312 = shalt.err (!%p309_p7)
}
  0x11   :  { %s386_s22 = smov 64   ;;  %s387_s23 = smov 4  }
  0x12   :  { %34 = dma.hbm_to_vmem [thread:$0]  %s489_s1, 448, %s29_s13, [#allocation7], %s386_s22, %s386_s22, %s387_s23  }
  0x13   :  { %s388_s26 = smov [#allocation3]   ;;  %s313_s30 = scalar_lea.hbm %s488_s0, 640 }
  0x14   :  { %s16_s27 = sshll.u32 %s388_s26, 4  ;;  %p314_p8 = scmp.ne.s32.totalorder %s488_s0, %s313_s30  ;;  %s17_s27 = int_to_ptr.vmem [resolvable:$true] %s16_s27 }
  0x15   :  { %p317_p9 = scmp.lt.u32.totalorder %s313_s30, %s488_s0 }
  0x17   :  { %p319_p10 = pnand %p317_p9, %p314_p8 }
  0x19   :  { %322 = shalt.err (!%p319_p10)
}
  0x1a   :  { %s323_s8 = scalar_lea.vmem %s17_s27, 640  ;;  %p328_p12 = scmp.lt.s32.totalorder %s17_s27, %s17_s27 }
  0x1b   :  { %p324_p11 = scmp.ne.s32.totalorder %s17_s27, %s323_s8  ;;  %p329_p13 = scmp.lt.s32.totalorder %s323_s8, %s323_s8 }
  0x1d   :  { %p330_p0 = por %p329_p13, %p328_p12 }
  0x1f   :  { %p331_p1 = pnand %p330_p0, %p324_p11 }
  0x21   :  { %334 = shalt.err (!%p331_p1)
}
  0x22   :  { %s389_s1 = smov 128   ;;  %s390_s9 = smov 8  }
  0x23   :  { %22 = dma.hbm_to_vmem [thread:$0]  %s488_s0, 640, %s17_s27, [#allocation4], %s389_s1, %s389_s1, %s390_s9  }
  0x24   :  { %s391_s12 = smov [#allocation8]   ;;  %s335_s16 = scalar_lea.hbm %s490_s2, 16 }
  0x25   :  { %s41_s13 = sshll.u32 %s391_s12, 4  ;;  %p336_p2 = scmp.ne.s32.totalorder %s490_s2, %s335_s16  ;;  %s42_s13 = int_to_ptr.vmem [resolvable:$true] %s41_s13 }
  0x26   :  { %p339_p3 = scmp.lt.u32.totalorder %s335_s16, %s490_s2 }
  0x28   :  { %p341_p4 = pnand %p339_p3, %p336_p2 }
  0x2a   :  { %344 = shalt.err (!%p341_p4)
}
  0x2b   :  { %s345_s21 = scalar_lea.vmem %s42_s13, 16  ;;  %s349_s0 = scalar_lea.vmem %s42_s13, 32 }
  0x2c   :  { %p346_p5 = scmp.ne.s32.totalorder %s42_s13, %s345_s21  ;;  %p350_p6 = scmp.lt.s32.totalorder %s42_s13, %s42_s13 }
  0x2d   :  { %p351_p7 = scmp.lt.s32.totalorder %s349_s0, %s345_s21 }
  0x2f   :  { %p352_p8 = por %p351_p7, %p350_p6 }
  0x31   :  { %p353_p9 = pnand %p352_p8, %p346_p5 }
  0x33   :  { %356 = shalt.err (!%p353_p9)
}
  0x34   :  { %44 = dma.hbm_to_vmem [thread:$0]  %s490_s2, 16, %s42_s13, [#allocation7]  }
  0x35   :  { %379 = dma.done.wait [#allocation4], 640  }
  0x36   :  { %380 = vsyncadd [#allocation4], 4294966656 }
  0x37   :  { %381 = dma.done.wait [#allocation7], 464  }
  0x38   :  { %382 = vsyncadd [#allocation7], 4294966832  ;;  %v392_v0 = vmov 0.0   ;;  %vm59_vm0 = vcmask 261120   ;;  %vm393_vm1 = vmmov 0   ;;  %v287_v1 = vld [vmem:[#allocation6] sm:$0xff]  }
  0x39   :  { %268 = vmatprep.subr.bf16.mxu1 %v392_v0  ;;  %248 = vmatprep.subr.bf16.mxu0 %v392_v0  ;;  %62 = vst.msk [vmem:[#allocation2 + $0x10] sm:$0xff] %vm59_vm0, %v392_v0  ;;  %60 = vst.msk [vmem:[#allocation2] sm:$0xff] %vm59_vm0, %v392_v0  ;;  %vm116_vm2 = vcmask 1042432   ;;  %v288_v2 = vld [vmem:[#allocation6 + $0x8] sm:$0xff]   ;;  %vm117_vm3 = vcmask 1043456   ;;  %v394_v3 = vmov 65535  }
  0x3a   :  { %260 = vmatprep.mubr.msk.bf16.mxu1 %vm393_vm1, %v392_v0  ;;  %256 = vmatprep.mubr.msk.bf16.mxu0 %vm393_vm1, %v392_v0  ;;  %61 = vst.msk [vmem:[#allocation2 + $0x8] sm:$0xff] %vm59_vm0, %v392_v0  ;;  %63 = vst.msk [vmem:[#allocation2 + $0x18] sm:$0xff] %vm59_vm0, %v392_v0  ;;  %v118_v4 = vsel %vm116_vm2, 4294967295, %v394_v3  ;;  %v289_v5 = vld [vmem:[#allocation6 + $0x10] sm:$0xff]   ;;  %v290_v6 = vld [vmem:[#allocation6 + $0x18] ss:$0 sps:$4 sm:$0xff]  }
  0x3b   :  { %64 = vst.msk [vmem:[#allocation2 + $0x20] sm:$0xff] %vm59_vm0, %v392_v0  ;;  %272 = vmatpush3.bf16.msra.mxu1 %v287_v1  ;;  %249 = vmatpush3.bf16.msra.mxu0 %v287_v1  ;;  %v119_v7 = vsel %vm117_vm3, %v118_v4, 0  ;;  %v72_v8 = vld [vmem:[#allocation3 + $0x10] sm:$0xff]  ;;  %v73_v10 = vld [vmem:[#allocation3 + $0x18] sm:$0xff]  ;;  %v70_v11 = vld [vmem:[#allocation3] sm:$0xff]  ;;  %vm106_vm4 = vcmask 449536  }
  0x3c   :  { %269 = vmatprep.subr.bf16.mxu1 %v392_v0  ;;  %250 = vmatprep.subr.bf16.mxu0 %v392_v0  ;;  %v121_v9 = vand.u32 %v290_v6, %v119_v7  ;;  %v71_v12 = vld [vmem:[#allocation3 + $0x8] sm:$0xff]  ;;  %v76_v13 = vpack.c.bf16 %v73_v10, %v72_v8  ;;  %v74_v15 = vld [vmem:[#allocation3 + $0x20] sm:$0xff]  ;;  %s395_s2 = smov [#allocation9]  }
  0x3d   :  { %v75_v14 = vpack.c.bf16 %v71_v12, %v70_v11  ;;  %v77_v16 = vpack.c.bf16 %v74_v15, %v74_v15  ;;  %v240_v35 = vld [vmem:[#allocation8] ss:$0 sm:$0xff]  ;;  %s220_s24 = sshll.u32 %s395_s2, 4  ;;  %s221_s24 = int_to_ptr.vmem [resolvable:$true] %s220_s24 }
  0x3e   :  { %s357_s25 = scalar_lea.vmem %s221_s24, 640  ;;  %p362_p11 = scmp.lt.s32.totalorder %s221_s24, %s221_s24 }
  0x3f   :  { %273 = vmatpush3.bf16.msra.mxu1 %v288_v2  ;;  %251 = vmatpush3.bf16.msra.mxu0 %v288_v2  ;;  %p358_p10 = scmp.ne.s32.totalorder %s221_s24, %s357_s25  ;;  %p363_p12 = scmp.lt.s32.totalorder %s357_s25, %s357_s25 }
  0x40   :  { %270 = vmatprep.subr.bf16.mxu1 %v392_v0  ;;  %252 = vmatprep.subr.bf16.mxu0 %v392_v0  ;;  %v67_v17 = vld [vmem:[#allocation2 + $0x10] sm:$0xff]  ;;  %v65_v18 = vld [vmem:[#allocation2] sm:$0xff] }
  0x41   :  { %v68_v20 = vld [vmem:[#allocation2 + $0x18] sm:$0xff]  ;;  %v66_v22 = vld [vmem:[#allocation2 + $0x8] sm:$0xff]  ;;  %p364_p13 = por %p363_p12, %p362_p11 }
  0x42   :  { %v69_v33 = vld [vmem:[#allocation2 + $0x20] sm:$0xff] }
  0x43   :  { %274 = vmatpush3.bf16.msra.mxu1 %v289_v5  ;;  %253 = vmatpush3.bf16.msra.mxu0 %v289_v5  ;;  %p365_p0 = pnand %p364_p13, %p358_p10 }
  0x44   :  { %271 = vmatprep.subr.bf16.mxu1 %v392_v0  ;;  %254 = vmatprep.subr.bf16.mxu0 %v392_v0 }
  0x47   :  { %275 = vmatpush3.bf16.msra.mxu1 %v121_v9  ;;  %255 = vmatpush3.bf16.msra.mxu0 %v121_v9 }
  0x4a   :  { %261 = vmatmul.mubr.msk.bf16.vlgmr.msra.gmra.mrb[0].mxu1 %vm106_vm4, %v76_v13  ;;  %257 = vmatmul.mubr.msk.bf16.vlgmr.msra.gmra.mrb[0].mxu0 %vm106_vm4, %v75_v14 }
  0x4b   :  { %264 = vmatprep.mubr.msk.bf16.mxu1 %vm393_vm1, %v392_v0 }
  0x52   :  { %265 = vmatmul.mubr.msk.bf16.gmra.mrb[4].mxu1 %vm106_vm4, %v77_v16 }
 0x11d   :  { %v165_v19 = vpop.f32.mrb[0].mxu1  ;;  %v157_v21 = vpop.f32.mrb[0].mxu0 }
 0x11e   :  { %v181_v23 = vadd.f32 %v165_v19, %v67_v17  ;;  %v262_v24 = vpop.f32.mrb[1].mxu1  ;;  %v179_v25 = vadd.f32 %v157_v21, %v65_v18  ;;  %v258_v26 = vpop.f32.mrb[1].mxu0 }
 0x11f   :  { %v168_v27 = vpop.f32.mrb[2].mxu1  ;;  %v160_v28 = vpop.f32.mrb[2].mxu0 }
 0x120   :  { %187 = vst.msk [vmem:[#allocation2 + $0x10] sm:$0xff] %vm59_vm0, %v181_v23  ;;  %v182_v29 = vadd.f32 %v168_v27, %v68_v20  ;;  %185 = vst.msk [vmem:[#allocation2] sm:$0xff] %vm59_vm0, %v179_v25  ;;  %v263_v30 = vpop.f32.mrb[3].mxu1  ;;  %v180_v31 = vadd.f32 %v160_v28, %v66_v22  ;;  %v259_v32 = vpop.f32.mrb[3].mxu0 }
 0x122   :  { %188 = vst.msk [vmem:[#allocation2 + $0x18] sm:$0xff] %vm59_vm0, %v182_v29  ;;  %186 = vst.msk [vmem:[#allocation2 + $0x8] sm:$0xff] %vm59_vm0, %v180_v31 }
 0x125   :  { %v173_v34 = vpop.f32.mrb[4].mxu1 }
 0x126   :  { %v183_v36 = vadd.f32 %v173_v34, %v69_v33  ;;  %v266_v37 = vpop.f32.mrb[5].mxu1 }
 0x127   :  { %v176_v38 = vpop.f32.mrb[6].mxu1  ;;  %v193_v39 = vld [vmem:[#allocation2] sm:$0xff]  ;;  %v195_v40 = vld [vmem:[#allocation2 + $0x10] sm:$0xff] }
 0x128   :  { %189 = vst.msk [vmem:[#allocation2 + $0x20] sm:$0xff] %vm59_vm0, %v183_v36  ;;  %v267_v41 = vpop.f32.mrb[7].mxu1  ;;  %v205_v42 = vadd.f32 %v240_v35, %v193_v39  ;;  %v207_v43 = vadd.f32 %v240_v35, %v195_v40 }
 0x129   :  { %v194_v44 = vld [vmem:[#allocation2 + $0x8] sm:$0xff]  ;;  %v196_v45 = vld [vmem:[#allocation2 + $0x18] sm:$0xff] }
 0x12a   :  { %v206_v46 = vadd.f32 %v240_v35, %v194_v44  ;;  %v208_v47 = vadd.f32 %v240_v35, %v196_v45  ;;  %210 = vst.msk [vmem:[#allocation9] sm:$0xff] %vm59_vm0, %v205_v42  ;;  %212 = vst.msk [vmem:[#allocation9 + $0x10] sm:$0xff] %vm59_vm0, %v207_v43 }
 0x12c   :  { %211 = vst.msk [vmem:[#allocation9 + $0x8] sm:$0xff] %vm59_vm0, %v206_v46  ;;  %213 = vst.msk [vmem:[#allocation9 + $0x18] sm:$0xff] %vm59_vm0, %v208_v47 }
 0x12f   :  { %v197_v48 = vld [vmem:[#allocation2 + $0x20] sm:$0xff] }
 0x130   :  { %v209_v49 = vadd.f32 %v240_v35, %v197_v48 }
 0x132   :  { %214 = vst.msk [vmem:[#allocation9 + $0x20] sm:$0xff] %vm59_vm0, %v209_v49 }
 0x133   :  { %368 = shalt.err (!%p365_p0)
}
 0x134   :  { %s369_s28 = scalar_lea.hbm %s491_s3, 640 }
 0x135   :  { %p370_p1 = scmp.ne.s32.totalorder %s491_s3, %s369_s28  ;;  %p373_p2 = scmp.lt.u32.totalorder %s369_s28, %s491_s3 }
 0x137   :  { %p375_p3 = pnand %p373_p2, %p370_p1 }
 0x139   :  { %378 = shalt.err (!%p375_p3)
}
 0x13a   :  { %226 = dma.vmem_to_hbm [thread:$0]  %s221_s24, 640, %s491_s3, [#allocation5], %s389_s1, %s389_s1, %s390_s9  }
 0x13b   :  { %383 = dma.done.wait [#allocation5], 640  }
 0x13c   :  { %384 = vsyncadd [#allocation5], 4294966656 }
 0x13d   :  { %230 = vsyncpa [#allocation4], 1 }
 0x13e   :  { %231 = vsyncpa [#allocation7], 1 }
 0x13f   :  { %232 = vsyncpa [#allocation5], 1 }

// kernel: surface_field_autoencoder_forward.24
= control target key start
LH: loop header
LB: loop body
LE: loop exit
PB: predicated region body
PF: predicated region fallthrough
CT: control target
= control target key end

     0   :  { %12 = vsyncpa [#allocation3], 0  ;;  %s846_s0 = inlined_call_operand.hbm [shape: f32[16,32], index: 0, kind: input, shape index: {}]   ;;  %s847_s1 = inlined_call_operand.hbm [shape: f32[1,32], index: 1, kind: input, shape index: {}]   ;;  %s848_s2 = inlined_call_operand.hbm [shape: f32[1,32], index: 2, kind: input, shape index: {}]   ;;  %s849_s3 = inlined_call_operand.hbm [shape: bf16[32,128], index: 3, kind: input, shape index: {}]   ;;  %s850_s4 = inlined_call_operand.hbm [shape: f32[1,128], index: 4, kind: input, shape index: {}]   ;;  %s851_s5 = inlined_call_operand.hbm [shape: bf16[128,32], index: 5, kind: input, shape index: {}]   ;;  %s852_s6 = inlined_call_operand.hbm [shape: f32[1,32], index: 6, kind: input, shape index: {}]   ;;  %s853_s7 = inlined_call_operand.hbm [shape: f32[16,32], index: 7, kind: output, shape index: {}]  }
   0x1   :  { %13 = vsyncpa [#allocation6], 0 }
   0x2   :  { %14 = vsyncpa [#allocation9], 0 }
   0x3   :  { %15 = vsyncpa [#allocation12], 0 }
   0x4   :  { %16 = vsyncpa [#allocation4], 0  ;;  %s659_s24 = smov [#allocation5]   ;;  %s660_s26 = smov [#allocation8]  }
   0x5   :  { %s35_s25 = sshll.u32 %s659_s24, 4  ;;  %s54_s27 = sshll.u32 %s660_s26, 4  ;;  %s36_s25 = int_to_ptr.vmem [resolvable:$true] %s35_s25  ;;  %s713_s27 = int_to_ptr.vmem [resolvable:$true] %s54_s27 }
   0x6   :  { %s473_s30 = scalar_lea.hbm %s847_s1, 16 }
   0x7   :  { %p474_p0 = scmp.ne.s32.totalorder %s847_s1, %s473_s30  ;;  %p477_p1 = scmp.lt.u32.totalorder %s473_s30, %s847_s1 }
   0x9   :  { %p479_p2 = pnand %p477_p1, %p474_p0 }
   0xb   :  { %482 = shalt.err (!%p479_p2)
}
   0xc   :  { %s483_s12 = scalar_lea.vmem %s36_s25, 16  ;;  %s487_s13 = scalar_lea.vmem %s36_s25, 32 }
   0xd   :  { %p484_p3 = scmp.ne.s32.totalorder %s36_s25, %s483_s12  ;;  %p488_p4 = scmp.lt.s32.totalorder %s36_s25, %s36_s25 }
   0xe   :  { %p489_p5 = scmp.lt.s32.totalorder %s487_s13, %s483_s12 }
  0x10   :  { %p490_p6 = por %p489_p5, %p488_p4 }
  0x12   :  { %p491_p7 = pnand %p490_p6, %p484_p3 }
  0x14   :  { %494 = shalt.err (!%p491_p7)
}
  0x15   :  { %38 = dma.hbm_to_vmem [thread:$0]  %s847_s1, 16, %s36_s25, [#allocation6]  }
  0x16   :  { %s495_s18 = scalar_lea.hbm %s849_s3, 256 }
  0x17   :  { %p496_p8 = scmp.ne.s32.totalorder %s849_s3, %s495_s18  ;;  %p499_p9 = scmp.lt.u32.totalorder %s495_s18, %s849_s3 }
  0x19   :  { %p501_p10 = pnand %p499_p9, %p496_p8 }
  0x1b   :  { %504 = shalt.err (!%p501_p10)
}
  0x1c   :  { %s505_s23 = scalar_lea.vmem %s713_s27, 256  ;;  %p510_p12 = scmp.lt.s32.totalorder %s713_s27, %s713_s27 }
  0x1d   :  { %p506_p11 = scmp.ne.s32.totalorder %s713_s27, %s505_s23  ;;  %p511_p13 = scmp.lt.s32.totalorder %s505_s23, %s505_s23 }
  0x1f   :  { %p512_p0 = por %p511_p13, %p510_p12 }
  0x21   :  { %p513_p1 = pnand %p512_p0, %p506_p11 }
  0x23   :  { %516 = shalt.err (!%p513_p1)
}
  0x24   :  { %s661_s1 = smov 64   ;;  %s662_s24 = smov 4  }
  0x25   :  { %60 = dma.hbm_to_vmem [thread:$0]  %s849_s3, 256, %s713_s27, [#allocation9], %s661_s1, %s661_s1, %s662_s24  }
  0x26   :  { %s663_s28 = smov [#allocation11]   ;;  %s664_s30 = smov [#allocation2]  }
  0x27   :  { %s76_s29 = sshll.u32 %s663_s28, 4  ;;  %s22_s8 = sshll.u32 %s664_s30, 4  ;;  %s77_s29 = int_to_ptr.vmem [resolvable:$true] %s76_s29  ;;  %s744_s8 = int_to_ptr.vmem [resolvable:$true] %s22_s8 }
  0x28   :  { %s517_s11 = scalar_lea.hbm %s851_s5, 1024 }
  0x29   :  { %p518_p2 = scmp.ne.s32.totalorder %s851_s5, %s517_s11  ;;  %p521_p3 = scmp.lt.u32.totalorder %s517_s11, %s851_s5 }
  0x2b   :  { %p523_p4 = pnand %p521_p3, %p518_p2 }
  0x2d   :  { %526 = shalt.err (!%p523_p4)
}
  0x2e   :  { %s527_s3 = scalar_lea.vmem %s77_s29, 1024  ;;  %p532_p6 = scmp.lt.s32.totalorder %s77_s29, %s77_s29 }
  0x2f   :  { %p528_p5 = scmp.ne.s32.totalorder %s77_s29, %s527_s3  ;;  %p533_p7 = scmp.lt.s32.totalorder %s527_s3, %s527_s3 }
  0x31   :  { %p534_p8 = por %p533_p7, %p532_p6 }
  0x33   :  { %p535_p9 = pnand %p534_p8, %p528_p5 }
  0x35   :  { %538 = shalt.err (!%p535_p9)
}
  0x36   :  { %82 = dma.hbm_to_vmem [thread:$0]  %s851_s5, 1024, %s77_s29, [#allocation12], %s661_s1, %s661_s1, %s662_s24  }
  0x37   :  { %s539_s19 = scalar_lea.hbm %s846_s0, 256 }
  0x38   :  { %p540_p10 = scmp.ne.s32.totalorder %s846_s0, %s539_s19  ;;  %p543_p11 = scmp.lt.u32.totalorder %s539_s19, %s846_s0 }
  0x3a   :  { %p545_p12 = pnand %p543_p11, %p540_p10 }
  0x3c   :  { %548 = shalt.err (!%p545_p12)
}
  0x3d   :  { %s549_s25 = scalar_lea.vmem %s744_s8, 256  ;;  %p554_p0 = scmp.lt.s32.totalorder %s744_s8, %s744_s8 }
  0x3e   :  { %p550_p13 = scmp.ne.s32.totalorder %s744_s8, %s549_s25  ;;  %p555_p1 = scmp.lt.s32.totalorder %s549_s25, %s549_s25 }
  0x40   :  { %p556_p2 = por %p555_p1, %p554_p0 }
  0x42   :  { %p557_p3 = pnand %p556_p2, %p550_p13 }
  0x44   :  { %560 = shalt.err (!%p557_p3)
}
  0x45   :  { %s665_s5 = smov 128   ;;  %s666_s1 = smov 8  }
  0x46   :  { %28 = dma.hbm_to_vmem [thread:$0]  %s846_s0, 256, %s744_s8, [#allocation3], %s665_s5, %s665_s5, %s666_s1  }
  0x47   :  { %s667_s28 = smov [#allocation7]   ;;  %s668_s30 = smov [#allocation10]  }
  0x48   :  { %s45_s29 = sshll.u32 %s667_s28, 4  ;;  %s67_s9 = sshll.u32 %s668_s30, 4  ;;  %s46_s29 = int_to_ptr.vmem [resolvable:$true] %s45_s29  ;;  %s68_s9 = int_to_ptr.vmem [resolvable:$true] %s67_s9 }
  0x49   :  { %s561_s12 = scalar_lea.hbm %s848_s2, 16 }
  0x4a   :  { %p562_p4 = scmp.ne.s32.totalorder %s848_s2, %s561_s12  ;;  %p565_p5 = scmp.lt.u32.totalorder %s561_s12, %s848_s2 }
  0x4c   :  { %p567_p6 = pnand %p565_p5, %p562_p4 }
  0x4e   :  { %570 = shalt.err (!%p567_p6)
}
  0x4f   :  { %s571_s0 = scalar_lea.vmem %s46_s29, 16  ;;  %s575_s8 = scalar_lea.vmem %s46_s29, 32 }
  0x50   :  { %p572_p7 = scmp.ne.s32.totalorder %s46_s29, %s571_s0  ;;  %p576_p8 = scmp.lt.s32.totalorder %s46_s29, %s46_s29 }
  0x51   :  { %p577_p9 = scmp.lt.s32.totalorder %s575_s8, %s571_s0 }
  0x53   :  { %p578_p10 = por %p577_p9, %p576_p8 }
  0x55   :  { %p579_p11 = pnand %p578_p10, %p572_p7 }
  0x57   :  { %582 = shalt.err (!%p579_p11)
}
  0x58   :  { %48 = dma.hbm_to_vmem [thread:$0]  %s848_s2, 16, %s46_s29, [#allocation6]  }
  0x59   :  { %s583_s19 = scalar_lea.hbm %s850_s4, 16 }
  0x5a   :  { %p584_p12 = scmp.ne.s32.totalorder %s850_s4, %s583_s19  ;;  %p587_p13 = scmp.lt.u32.totalorder %s583_s19, %s850_s4 }
  0x5c   :  { %p589_p0 = pnand %p587_p13, %p584_p12 }
  0x5e   :  { %592 = shalt.err (!%p589_p0)
}
  0x5f   :  { %s593_s25 = scalar_lea.vmem %s68_s9, 16  ;;  %s597_s24 = scalar_lea.vmem %s68_s9, 32 }
  0x60   :  { %p594_p1 = scmp.ne.s32.totalorder %s68_s9, %s593_s25  ;;  %p598_p2 = scmp.lt.s32.totalorder %s68_s9, %s68_s9 }
  0x61   :  { %p599_p3 = scmp.lt.s32.totalorder %s597_s24, %s593_s25 }
  0x63   :  { %p600_p4 = por %p599_p3, %p598_p2 }
  0x65   :  { %p601_p5 = pnand %p600_p4, %p594_p1 }
  0x67   :  { %604 = shalt.err (!%p601_p5)
}
  0x68   :  { %70 = dma.hbm_to_vmem [thread:$0]  %s850_s4, 16, %s68_s9, [#allocation9]  }
  0x69   :  { %s669_s28 = smov [#allocation13]   ;;  %s605_s11 = scalar_lea.hbm %s852_s6, 16 }
  0x6a   :  { %s89_s29 = sshll.u32 %s669_s28, 4  ;;  %p606_p6 = scmp.ne.s32.totalorder %s852_s6, %s605_s11  ;;  %s90_s29 = int_to_ptr.vmem [resolvable:$true] %s89_s29 }
  0x6b   :  { %p609_p7 = scmp.lt.u32.totalorder %s605_s11, %s852_s6 }
  0x6d   :  { %p611_p8 = pnand %p609_p7, %p606_p6 }
  0x6f   :  { %614 = shalt.err (!%p611_p8)
}
  0x70   :  { %s615_s3 = scalar_lea.vmem %s90_s29, 16  ;;  %s619_s4 = scalar_lea.vmem %s90_s29, 32 }
  0x71   :  { %p616_p9 = scmp.ne.s32.totalorder %s90_s29, %s615_s3  ;;  %p620_p10 = scmp.lt.s32.totalorder %s90_s29, %s90_s29 }
  0x72   :  { %p621_p11 = scmp.lt.s32.totalorder %s619_s4, %s615_s3 }
  0x74   :  { %p622_p12 = por %p621_p11, %p620_p10 }
  0x76   :  { %p623_p13 = pnand %p622_p12, %p616_p9 }
  0x78   :  { %626 = shalt.err (!%p623_p13)
}
  0x79   :  { %92 = dma.hbm_to_vmem [thread:$0]  %s852_s6, 16, %s90_s29, [#allocation12]  }
  0x7a   :  { %649 = dma.done.wait [#allocation3], 256  }
  0x7b   :  { %650 = vsyncadd [#allocation3], 4294967040 }
  0x7c   :  { %651 = dma.done.wait [#allocation6], 32  }
  0x7d   :  { %652 = vsyncadd [#allocation6], 4294967264 }
  0x7e   :  { %653 = dma.done.wait [#allocation9], 272  }
  0x7f   :  { %654 = vsyncadd [#allocation9], 4294967024 }
  0x80   :  { %655 = dma.done.wait [#allocation12], 1040  }
  0x81   :  { %656 = vsyncadd [#allocation12], 4294966256  ;;  %vm119_vm0 = vcmask 261120   ;;  %v814_v0 = vld [vmem:[#allocation2] sm:$0xff]  ;;  %v816_v1 = vld [vmem:[#allocation2 + $0x8] sm:$0xff]  ;;  %v670_v15 = vmov 0.0  }
  0x82   :  { %v120_v2 = vsel %vm119_vm0, %v814_v0, 0.0  ;;  %v123_v3 = vsel %vm119_vm0, %v816_v1, 0.0  ;;  %v455_v14 = vld [vmem:[#allocation8] sm:$0xff]   ;;  %413 = vmatprep.subr.bf16.mxu0 %v670_v15  ;;  %421 = vmatprep.subr.bf16.mxu1 %v670_v15  ;;  %v456_v16 = vld [vmem:[#allocation8 + $0x8] sm:$0xff]   ;;  %vm671_vm1 = vmmov 0   ;;  %v457_v34 = vld [vmem:[#allocation11] sm:$0xff]  }
  0x83   :  { %121 = vadd.xlane.f32.xlu0 %v120_v2  ;;  %414 = vmatpush3.bf16.msra.mxu0 %v455_v14  ;;  %v386_v25 = vld [vmem:[#allocation5] ss:$0 sm:$0xff]  ;;  %v387_v29 = vld [vmem:[#allocation7] ss:$0 sm:$0xff]  ;;  %v459_v36 = vld [vmem:[#allocation11 + $0x10] sm:$0xff]   ;;  %s672_s6 = smov [#allocation14]  }
  0x84   :  { %417 = vmatprep.mubr.msk.bf16.mxu0 %vm671_vm1, %v670_v15  ;;  %415 = vmatprep.subr.bf16.mxu0 %v670_v15  ;;  %v458_v35 = vld [vmem:[#allocation11 + $0x8] sm:$0xff]   ;;  %v460_v37 = vld [vmem:[#allocation11 + $0x18] sm:$0xff]   ;;  %v461_v38 = vld [vmem:[#allocation11 + $0x20] sm:$0xff]   ;;  %s371_s8 = sshll.u32 %s672_s6, 4  ;;  %s372_s8 = int_to_ptr.vmem [resolvable:$true] %s371_s8 }
  0x85   :  { %437 = vmatprep.mubr.msk.bf16.mxu1 %vm671_vm1, %v670_v15  ;;  %422 = vmatpush3.bf16.msra.mxu1 %v457_v34  ;;  %v462_v39 = vld [vmem:[#allocation11 + $0x28] sm:$0xff]   ;;  %v463_v40 = vld [vmem:[#allocation11 + $0x30] sm:$0xff]   ;;  %v464_v41 = vld [vmem:[#allocation11 + $0x38] sm:$0xff]   ;;  %s627_s27 = scalar_lea.vmem %s372_s8, 256  ;;  %p632_p1 = scmp.lt.s32.totalorder %s372_s8, %s372_s8 }
  0x86   :  { %423 = vmatprep.subr.bf16.mxu1 %v670_v15  ;;  %v388_v42 = vld [vmem:[#allocation10] ss:$0 sm:$0xff]  ;;  %p628_p0 = scmp.ne.s32.totalorder %s372_s8, %s627_s27  ;;  %p633_p2 = scmp.lt.s32.totalorder %s627_s27, %s627_s27 }
  0x87   :  { %124 = vadd.xlane.f32.xlu0 %v123_v3  ;;  %416 = vmatpush3.bf16.msra.mxu0 %v456_v16 }
  0x88   :  { %p634_p3 = por %p633_p2, %p632_p1 }
  0x89   :  { %424 = vmatpush3.bf16.msra.mxu1 %v458_v35 }
  0x8a   :  { %425 = vmatprep.subr.bf16.mxu1 %v670_v15  ;;  %p635_p4 = pnand %p634_p3, %p628_p0 }
  0x8d   :  { %426 = vmatpush3.bf16.msra.mxu1 %v459_v36 }
  0x8e   :  { %427 = vmatprep.subr.bf16.mxu1 %v670_v15 }
  0x91   :  { %428 = vmatpush3.bf16.msra.mxu1 %v460_v37 }
  0x92   :  { %429 = vmatprep.subr.bf16.mxu1 %v670_v15 }
  0x95   :  { %430 = vmatpush3.bf16.msra.mxu1 %v461_v38 }
  0x96   :  { %431 = vmatprep.subr.bf16.mxu1 %v670_v15 }
  0x99   :  { %432 = vmatpush3.bf16.msra.mxu1 %v462_v39 }
  0x9a   :  { %433 = vmatprep.subr.bf16.mxu1 %v670_v15 }
  0x9d   :  { %434 = vmatpush3.bf16.msra.mxu1 %v463_v40 }
  0x9e   :  { %435 = vmatprep.subr.bf16.mxu1 %v670_v15 }
  0xa1   :  { %436 = vmatpush3.bf16.msra.mxu1 %v464_v41 }
 0x110   :  { %v122_v4 = vpop.xlane.xlu0 %121 }
 0x111   :  { %v127_v5 = vmul.f32 0.03125, %v122_v4 }
 0x113   :  { %v129_v6 = vsub.f32 %v814_v0, %v127_v5 }
 0x114   :  { %v125_v7 = vpop.xlane.xlu0 %124 }
 0x115   :  { %v128_v8 = vmul.f32 0.03125, %v125_v7  ;;  %v131_v9 = vmul.f32 %v129_v6, %v129_v6 }
 0x117   :  { %v130_v10 = vsub.f32 %v816_v1, %v128_v8  ;;  %v133_v11 = vsel %vm119_vm0, %v131_v9, 0.0 }
 0x118   :  { %134 = vadd.xlane.f32.xlu1 %v133_v11 }
 0x119   :  { %v132_v12 = vmul.f32 %v130_v10, %v130_v10 }
 0x11b   :  { %v136_v13 = vsel %vm119_vm0, %v132_v12, 0.0 }
 0x11c   :  { %137 = vadd.xlane.f32.xlu1 %v136_v13 }
 0x1a5   :  { %v135_v17 = vpop.xlane.xlu1 %134 }
 0x1a6   :  { %v139_v18 = vmul.f32 0.03125, %v135_v17 }
 0x1a8   :  { %v141_v19 = vadd.f32 1e-05, %v139_v18 }
 0x1a9   :  { %v138_v20 = vpop.xlane.xlu1 %137 }
 0x1aa   :  { %465 = vrsqrt.f32 %v141_v19  ;;  %v140_v21 = vmul.f32 0.03125, %v138_v20 }
 0x1ac   :  { %v142_v22 = vadd.f32 1e-05, %v140_v21 }
 0x1ae   :  { %467 = vrsqrt.f32 %v142_v22 }
 0x1b4   :  { %v466_v23 = vpop.eup %465 }
 0x1b5   :  { %v145_v24 = vmul.f32 %v466_v23, %v129_v6  ;;  %v392_v6 = vld [vmem:[#allocation13] ss:$0 sm:$0xff] }
 0x1b7   :  { %v153_v28 = vmul.f32 %v386_v25, %v145_v24 }
 0x1b8   :  { %v468_v26 = vpop.eup %467 }
 0x1b9   :  { %v146_v27 = vmul.f32 %v468_v26, %v130_v10  ;;  %v161_v31 = vadd.f32 %v387_v29, %v153_v28 }
 0x1bb   :  { %v154_v30 = vmul.f32 %v386_v25, %v146_v27 }
 0x1bd   :  { %v162_v32 = vadd.f32 %v387_v29, %v154_v30 }
 0x1bf   :  { %v163_v33 = vpack.c.bf16 %v162_v32, %v161_v31 }
 0x1c1   :  { %418 = vmatmul.mubr.msk.bf16.vlgmr.msra.gmra.mrb[0].mxu0 %vm119_vm0, %v163_v33 }
 0x294   :  { %v224_v43 = vpop.f32.mrb[0].mxu0 }
 0x295   :  { %v225_v44 = vadd.f32 %v388_v42, %v224_v43  ;;  %v419_v45 = vpop.f32.mrb[1].mxu0 }
 0x296   :  { %v227_v46 = vpop.f32.mrb[2].mxu0 }
 0x297   :  { %v233_v47 = vmul.f32 0.044715, %v225_v44  ;;  %v228_v48 = vadd.f32 %v388_v42, %v227_v46  ;;  %v420_v49 = vpop.f32.mrb[3].mxu0  ;;  %v231_v62 = vmul.f32 0.5, %v225_v44 }
 0x299   :  { %v235_v50 = vmul.f32 %v233_v47, %v225_v44  ;;  %v234_v51 = vmul.f32 0.044715, %v228_v48  ;;  %v232_v63 = vmul.f32 0.5, %v228_v48 }
 0x29b   :  { %v237_v52 = vmul.f32 %v235_v50, %v225_v44  ;;  %v236_v53 = vmul.f32 %v234_v51, %v228_v48 }
 0x29d   :  { %v238_v54 = vmul.f32 %v236_v53, %v228_v48  ;;  %v239_v55 = vadd.f32 %v237_v52, %v225_v44 }
 0x29f   :  { %v240_v56 = vadd.f32 %v238_v54, %v228_v48  ;;  %v241_v57 = vmul.f32 0.7978846, %v239_v55 }
 0x2a1   :  { %v242_v58 = vmul.f32 0.7978846, %v240_v56  ;;  %469 = vtanh.f32 %v241_v57 }
 0x2a3   :  { %471 = vtanh.f32 %v242_v58 }
 0x2ab   :  { %v470_v59 = vpop.eup %469 }
 0x2ac   :  { %v245_v60 = vadd.f32 1.0, %v470_v59 }
 0x2ad   :  { %v472_v61 = vpop.eup %471 }
 0x2ae   :  { %v246_v2 = vadd.f32 1.0, %v472_v61  ;;  %v247_v3 = vmul.f32 %v245_v60, %v231_v62 }
 0x2b0   :  { %v248_v4 = vmul.f32 %v246_v2, %v232_v63 }
 0x2b2   :  { %v249_v5 = vpack.c.bf16 %v248_v4, %v247_v3 }
 0x2b4   :  { %438 = vmatmul.mubr.bf16.vlgmr.msra.gmra.mrb[0].mxu1 %v249_v5 }
 0x387   :  { %v355_v7 = vpop.f32.mrb[0].mxu1 }
 0x388   :  { %v356_v8 = vadd.f32 %v392_v6, %v355_v7  ;;  %v439_v9 = vpop.f32.mrb[1].mxu1 }
 0x389   :  { %v358_v10 = vpop.f32.mrb[2].mxu1 }
 0x38a   :  { %v362_v11 = vadd.f32 %v356_v8, %v814_v0  ;;  %v359_v12 = vadd.f32 %v392_v6, %v358_v10  ;;  %v440_v13 = vpop.f32.mrb[3].mxu1 }
 0x38c   :  { %364 = vst.msk [vmem:[#allocation14] sm:$0xff] %vm119_vm0, %v362_v11  ;;  %v363_v14 = vadd.f32 %v359_v12, %v816_v1 }
 0x38e   :  { %365 = vst.msk [vmem:[#allocation14 + $0x8] sm:$0xff] %vm119_vm0, %v363_v14 }
 0x38f   :  { %638 = shalt.err (!%p635_p4)
}
 0x390   :  { %s639_s18 = scalar_lea.hbm %s853_s7, 256 }
 0x391   :  { %p640_p5 = scmp.ne.s32.totalorder %s853_s7, %s639_s18  ;;  %p643_p6 = scmp.lt.u32.totalorder %s639_s18, %s853_s7 }
 0x393   :  { %p645_p7 = pnand %p643_p6, %p640_p5 }
 0x395   :  { %648 = shalt.err (!%p645_p7)
}
 0x396   :  { %377 = dma.vmem_to_hbm [thread:$0]  %s372_s8, 256, %s853_s7, [#allocation4], %s665_s5, %s665_s5, %s666_s1  }
 0x397   :  { %657 = dma.done.wait [#allocation4], 256  }
 0x398   :  { %658 = vsyncadd [#allocation4], 4294967040 }
 0x399   :  { %381 = vsyncpa [#allocation3], 1 }
 0x39a   :  { %382 = vsyncpa [#allocation6], 1 }
 0x39b   :  { %383 = vsyncpa [#allocation9], 1 }
 0x39c   :  { %384 = vsyncpa [#allocation12], 1 }
 0x39d   :  { %385 = vsyncpa [#allocation4], 1 }

// kernel: surface_field_autoencoder_forward.23
= control target key start
LH: loop header
LB: loop body
LE: loop exit
PB: predicated region body
PF: predicated region fallthrough
CT: control target
= control target key end

     0   :  { %s2745_s0 = inlined_call_operand.hbm [shape: f32[2,8,32], index: 0, kind: input, shape index: {}]   ;;  %s2746_s1 = inlined_call_operand.hbm [shape: bf16[2,24,64], index: 1, kind: input, shape index: {}]   ;;  %s2747_s2 = inlined_call_operand.hbm [shape: f32[1,32], index: 2, kind: input, shape index: {}]   ;;  %s2748_s3 = inlined_call_operand.hbm [shape: f32[1,32], index: 3, kind: input, shape index: {}]   ;;  %s2749_s4 = inlined_call_operand.hbm [shape: bf16[32,32], index: 4, kind: input, shape index: {}]   ;;  %s2750_s5 = inlined_call_operand.hbm [shape: f32[1,32], index: 5, kind: input, shape index: {}]   ;;  %s2751_s6 = inlined_call_operand.hbm [shape: bf16[32,32], index: 6, kind: input, shape index: {}]   ;;  %s2752_s7 = inlined_call_operand.hbm [shape: f32[1,32], index: 7, kind: input, shape index: {}]   ;;  %s2753_s8 = inlined_call_operand.hbm [shape: f32[2,8,32], index: 8, kind: output, shape index: {}]  }
   0x1   :  { %2759 = sst [smem:[#allocation28_spill]] %s2745_s0 }
   0x2   :  { %2760 = sst [smem:[#allocation29_spill]] %s2747_s2 }
   0x3   :  { %2761 = sst [smem:[#allocation30_spill]] %s2748_s3 }
   0x4   :  { %2762 = sst [smem:[#allocation31_spill]] %s2749_s4 }
   0x5   :  { %2763 = sst [smem:[#allocation32_spill]] %s2750_s5 }
   0x6   :  { %2764 = sst [smem:[#allocation33_spill]] %s2751_s6 }
   0x7   :  { %13 = vsyncpa [#allocation7], 0 }
   0x8   :  { %15 = vsyncpa [#allocation7 + $0x1], 0 }
   0x9   :  { %16 = vsyncpa [#allocation10], 0 }
   0xa   :  { %18 = vsyncpa [#allocation10 + $0x1], 0 }
   0xb   :  { %19 = vsyncpa [#allocation13], 0 }
   0xc   :  { %20 = vsyncpa [#allocation16], 0 }
   0xd   :  { %21 = vsyncpa [#allocation19], 0 }
   0xe   :  { %22 = vsyncpa [#allocation8], 0 }
   0xf   :  { %24 = vsyncpa [#allocation8 + $0x1], 0  ;;  %s2162_s27 = smov 0   ;;  %s2164_s28 = smov 0  }
  0x10   :  { %s2166_s29 = smov 0   ;;  %s2168_s30 = smov 0  }
  0x11   :  { %s2170_s9 = smov 0   ;;  %s2172_s10 = smov 0  }
  0x12 LB: > { %s2193_s11 = sadd.s32 4294967295, %s2087_s10   ;;  %p1421_p0 = scmp.ge.s32.totalorder %s2087_s10, 1  ;;  %s2087_s10 = sphi %s2172_s10, %s30_s10   ;;  %s2083_s9 = sphi %s2170_s9, %s2799_s9   ;;  %s2079_s30 = sphi %s2168_s30, %s2798_s30   ;;  %s2075_s29 = sphi %s2166_s29, %s2797_s29   ;;  %s2071_s28 = sphi %s2164_s28, %s2796_s28   ;;  %s2067_s27 = sphi %s2162_s27, %s2795_s27  }
  0x13   : > { %p2754_p1 = scmp.eq.s32.totalorder %s2193_s11, 0  ;;  %p264_p2 = scmp.lt.s32.totalorder %s2087_s10, 3 }
  0x14   : > { %s2089_s13 = smov [#allocation11]   ;;  %s2090_s15 = smov [#allocation12]  }
  0x15   : > { %p2198_p3 = pnand %p1421_p0, %p264_p2  ;;  %s277_s14 = sshll.u32 %s2089_s13, 4  ;;  %s278_s14 = int_to_ptr.vmem [resolvable:$true] %s277_s14 }
  0x16   : > { %s288_s16 = sshll.u32 %s2090_s15, 4  ;;  %s2091_s18 = smov [#allocation15]   ;;  %s2211_s16 = int_to_ptr.vmem [resolvable:$true] %s288_s16 }
  0x17   : > { %s2765_s12 = scalar_select %p2198_p3, 1, 0 }
  0x18   : > { %p1609_p5 = pneg %p2198_p3  ;;  %s312_s19 = sshll.u32 %s2091_s18, 4  ;;  %s2213_s19 = int_to_ptr.vmem [resolvable:$true] %s312_s19 }
  0x19   : > { %s2767_s2 = sld [smem:[#allocation29_spill]] }
  0x1a   : > { %p2207_p6 = pnand %p1609_p5, %p2754_p1 }
  0x1c   : > { %p2223_p8 = pneg %p2207_p6 }
  0x1f   : > { %s1757_s22 = scalar_lea.hbm %s2767_s2, 16 }
  0x20   : > { %p1758_p7 = scmp.ne.s32.totalorder %s2767_s2, %s1757_s22  ;;  %p1764_p11 = scmp.lt.u32.totalorder %s1757_s22, %s2767_s2 }
  0x22   : > { %p1760_p9 = pnand %p2223_p8, %p1758_p7 }
  0x24   : > { %p1761_p10 = pneg %p1760_p9 }
  0x26   : > { %p1766_p12 = pnand %p1764_p11, %p1761_p10 }
  0x28   : > { %1769 = shalt.err (!%p1766_p12)
}
  0x29   : > { %s1770_s15 = scalar_lea.vmem %s278_s14, 16  ;;  %s1777_s18 = scalar_lea.vmem %s278_s14, 32 }
  0x2a   : > { %p1771_p13 = scmp.ne.s32.totalorder %s278_s14, %s1770_s15  ;;  %p1778_p5 = scmp.lt.s32.totalorder %s278_s14, %s278_s14 }
  0x2b   : > { %p1779_p4 = scmp.lt.s32.totalorder %s1777_s18, %s1770_s15 }
  0x2c   : > { %p1773_p0 = pnand %p1771_p13, %p2223_p8 }
  0x2d   : > { %p1780_p1 = por %p1779_p4, %p1778_p5 }
  0x2e   : > { %p1774_p2 = pneg %p1773_p0 }
  0x30   : > { %p1781_p3 = pnand %p1780_p1, %p1774_p2 }
  0x32   : > { %1784 = shalt.err (!%p1781_p3)
}
  0x33   : > { %1612 = dma.hbm_to_vmem [thread:$0]  (!%p2207_p6), %s2767_s2, 16, %s278_s14, [#allocation10]  }
  0x34   : > { %s2769_s3 = sld [smem:[#allocation30_spill]] }
  0x3a   : > { %s1785_s24 = scalar_lea.hbm %s2769_s3, 16 }
  0x3b   : > { %p1786_p7 = scmp.ne.s32.totalorder %s2769_s3, %s1785_s24  ;;  %p1792_p1 = scmp.lt.u32.totalorder %s1785_s24, %s2769_s3 }
  0x3d   : > { %p1788_p9 = pnand %p1786_p7, %p2223_p8 }
  0x3f   : > { %p1789_p4 = pneg %p1788_p9 }
  0x41   : > { %p1794_p3 = pnand %p1792_p1, %p1789_p4 }
  0x43   : > { %1797 = shalt.err (!%p1794_p3)
}
  0x44   : > { %s1798_s14 = scalar_lea.vmem %s2211_s16, 16  ;;  %s1805_s20 = scalar_lea.vmem %s2211_s16, 32 }
  0x45   : > { %p1799_p10 = scmp.ne.s32.totalorder %s2211_s16, %s1798_s14  ;;  %p1806_p13 = scmp.lt.s32.totalorder %s2211_s16, %s2211_s16 }
  0x46   : > { %p1807_p0 = scmp.lt.s32.totalorder %s1805_s20, %s1798_s14 }
  0x47   : > { %p1801_p11 = pnand %p1799_p10, %p2223_p8 }
  0x48   : > { %p1808_p2 = por %p1807_p0, %p1806_p13 }
  0x49   : > { %p1802_p12 = pneg %p1801_p11 }
  0x4b   : > { %p1809_p5 = pnand %p1808_p2, %p1802_p12 }
  0x4d   : > { %1812 = shalt.err (!%p1809_p5)
}
  0x4e   : > { %1615 = dma.hbm_to_vmem [thread:$0]  (!%p2207_p6), %s2769_s3, 16, %s2211_s16, [#allocation13]  }
  0x4f   : > { %s2770_s5 = sld [smem:[#allocation32_spill]] }
  0x55   : > { %s1813_s26 = scalar_lea.hbm %s2770_s5, 16 }
  0x56   : > { %p1814_p7 = scmp.ne.s32.totalorder %s2770_s5, %s1813_s26  ;;  %p1820_p1 = scmp.lt.u32.totalorder %s1813_s26, %s2770_s5 }
  0x58   : > { %p1816_p9 = pnand %p1814_p7, %p2223_p8 }
  0x5a   : > { %p1817_p4 = pneg %p1816_p9 }
  0x5c   : > { %p1822_p3 = pnand %p1820_p1, %p1817_p4 }
  0x5e   : > { %1825 = shalt.err (!%p1822_p3)
}
  0x5f   : > { %s1826_s16 = scalar_lea.vmem %s2213_s19, 16  ;;  %s1833_s20 = scalar_lea.vmem %s2213_s19, 32 }
  0x60   : > { %p1827_p10 = scmp.ne.s32.totalorder %s2213_s19, %s1826_s16  ;;  %p1834_p13 = scmp.lt.s32.totalorder %s2213_s19, %s2213_s19 }
  0x61   : > { %p1835_p0 = scmp.lt.s32.totalorder %s1833_s20, %s1826_s16 }
  0x62   : > { %p1829_p11 = pnand %p1827_p10, %p2223_p8 }
  0x63   : > { %p1836_p2 = por %p1835_p0, %p1834_p13 }
  0x64   : > { %p1830_p12 = pneg %p1829_p11 }
  0x66   : > { %p1837_p5 = pnand %p1836_p2, %p1830_p12 }
  0x68   : > { %1840 = shalt.err (!%p1837_p5)
}
  0x69   : > { %1621 = dma.hbm_to_vmem [thread:$0]  (!%p2207_p6), %s2770_s5, 16, %s2213_s19, [#allocation16]  }
  0x6a   : > { %s2092_s23 = smov [#allocation14]   ;;  %s2771_s4 = sld [smem:[#allocation31_spill]] }
  0x6b   : > { %s298_s24 = sshll.u32 %s2092_s23, 4  ;;  %s299_s24 = int_to_ptr.vmem [resolvable:$true] %s298_s24 }
  0x70   : > { %s1841_s15 = scalar_lea.hbm %s2771_s4, 256 }
  0x71   : > { %p1842_p7 = scmp.ne.s32.totalorder %s2771_s4, %s1841_s15  ;;  %p1848_p1 = scmp.lt.u32.totalorder %s1841_s15, %s2771_s4 }
  0x73   : > { %p1844_p9 = pnand %p1842_p7, %p2223_p8 }
  0x75   : > { %p1845_p4 = pneg %p1844_p9 }
  0x77   : > { %p1850_p3 = pnand %p1848_p1, %p1845_p4 }
  0x79   : > { %1853 = shalt.err (!%p1850_p3)
}
  0x7a   : > { %s1854_s19 = scalar_lea.vmem %s299_s24, 256  ;;  %p1862_p13 = scmp.lt.s32.totalorder %s299_s24, %s299_s24 }
  0x7b   : > { %p1855_p10 = scmp.ne.s32.totalorder %s299_s24, %s1854_s19  ;;  %p1863_p0 = scmp.lt.s32.totalorder %s1854_s19, %s1854_s19 }
  0x7d   : > { %p1857_p11 = pnand %p1855_p10, %p2223_p8  ;;  %p1864_p2 = por %p1863_p0, %p1862_p13 }
  0x7f   : > { %p1858_p12 = pneg %p1857_p11 }
  0x81   : > { %p1865_p5 = pnand %p1864_p2, %p1858_p12 }
  0x83   : > { %1868 = shalt.err (!%p1865_p5)
}
  0x84   : > { %s2756_s21 = smov 64   ;;  %s2757_s22 = smov 4  }
  0x85   : > { %1618 = dma.hbm_to_vmem [thread:$0]  (!%p2207_p6), %s2771_s4, 256, %s299_s24, [#allocation13], %s2756_s21, %s2756_s21, %s2757_s22  }
  0x86   : > { %s2095_s13 = smov [#allocation17]   ;;  %s2096_s18 = smov [#allocation18]  }
  0x87   : > { %s322_s15 = sshll.u32 %s2095_s13, 4  ;;  %s336_s14 = sshll.u32 %s2096_s18, 4  ;;  %s323_s15 = int_to_ptr.vmem [resolvable:$true] %s322_s15  ;;  %s2308_s14 = int_to_ptr.vmem [resolvable:$true] %s336_s14 }
  0x88   : > { %s2772_s6 = sld [smem:[#allocation33_spill]] }
  0x8e   : > { %s1869_s19 = scalar_lea.hbm %s2772_s6, 256 }
  0x8f   : > { %p1870_p7 = scmp.ne.s32.totalorder %s2772_s6, %s1869_s19  ;;  %p1876_p1 = scmp.lt.u32.totalorder %s1869_s19, %s2772_s6 }
  0x91   : > { %p1872_p9 = pnand %p1870_p7, %p2223_p8 }
  0x93   : > { %p1873_p4 = pneg %p1872_p9 }
  0x95   : > { %p1878_p3 = pnand %p1876_p1, %p1873_p4 }
  0x97   : > { %1881 = shalt.err (!%p1878_p3)
}
  0x98   : > { %s1882_s26 = scalar_lea.vmem %s323_s15, 256  ;;  %p1890_p13 = scmp.lt.s32.totalorder %s323_s15, %s323_s15 }
  0x99   : > { %p1883_p10 = scmp.ne.s32.totalorder %s323_s15, %s1882_s26  ;;  %p1891_p0 = scmp.lt.s32.totalorder %s1882_s26, %s1882_s26 }
  0x9b   : > { %p1885_p11 = pnand %p1883_p10, %p2223_p8  ;;  %p1892_p2 = por %p1891_p0, %p1890_p13 }
  0x9d   : > { %p1886_p12 = pneg %p1885_p11 }
  0x9f   : > { %p1893_p5 = pnand %p1892_p2, %p1886_p12 }
  0xa1   : > { %1896 = shalt.err (!%p1893_p5)
}
  0xa2   : > { %1624 = dma.hbm_to_vmem [thread:$0]  (!%p2207_p6), %s2772_s6, 256, %s323_s15, [#allocation16], %s2756_s21, %s2756_s21, %s2757_s22  }
  0xa3   : > { %s1897_s16 = scalar_lea.hbm %s2752_s7, 16 }
  0xa4   : > { %p1898_p7 = scmp.ne.s32.totalorder %s2752_s7, %s1897_s16  ;;  %p1904_p1 = scmp.lt.u32.totalorder %s1897_s16, %s2752_s7 }
  0xa6   : > { %p1900_p9 = pnand %p1898_p7, %p2223_p8 }
  0xa8   : > { %p1901_p4 = pneg %p1900_p9 }
  0xaa   : > { %p1906_p3 = pnand %p1904_p1, %p1901_p4 }
  0xac   : > { %1909 = shalt.err (!%p1906_p3)
}
  0xad   : > { %s1910_s15 = scalar_lea.vmem %s2308_s14, 16  ;;  %s1917_s26 = scalar_lea.vmem %s2308_s14, 32 }
  0xae   : > { %p1911_p10 = scmp.ne.s32.totalorder %s2308_s14, %s1910_s15  ;;  %p1918_p13 = scmp.lt.s32.totalorder %s2308_s14, %s2308_s14 }
  0xaf   : > { %p1919_p0 = scmp.lt.s32.totalorder %s1917_s26, %s1910_s15 }
  0xb0   : > { %p1913_p11 = pnand %p1911_p10, %p2223_p8 }
  0xb1   : > { %p1920_p2 = por %p1919_p0, %p1918_p13 }
  0xb2   : > { %p1914_p12 = pneg %p1913_p11 }
  0xb4   : > { %p1921_p5 = pnand %p1920_p2, %p1914_p12 }
  0xb6   : > { %1924 = shalt.err (!%p1921_p5)
}
  0xb7   : > { %1627 = dma.hbm_to_vmem [thread:$0]  (!%p2207_p6), %s2752_s7, 16, %s2308_s14, [#allocation19]  }
  0xb8   : > { %s1420_s25 = sadd.s32 4294967294, %s2087_s10   ;;  %s49_s13 = sadd.s32 1, %s2083_s9 }
  0xb9   : > { %p51_p8 = scmp.ge.s32.totalorder %s49_s13, 2  ;;  %s58_s17 = sadd.s32 1, %s2075_s29 }
  0xba   : > { %p65_p7 = scmp.ne.s32.totalorder %s2075_s29, %s2071_s28  ;;  %p66_p9 = scmp.eq.s32.totalorder %s2087_s10, 0 }
  0xbb   : > { %s2801_s13 = smov (%p51_p8, %s49_s13), 0  ;;  %p71_p1 = scmp.ne.s32.totalorder %s2071_s28, %s2067_s27 }
  0xbc   : > { %p2363_p4 = por %p66_p9, %p65_p7  ;;  %s53_s14 = ssub.s32 %s2083_s9, %s2801_s13 }
  0xbd   : > { %p251_p6 = scmp.eq.s32.totalorder %s2193_s11, 1  ;;  %p56_p3 = scmp.eq.s32.totalorder %s53_s14, 0 }
  0xbe   : > { %p2774_p10 = scmp.eq.s32.totalorder %s2193_s11, 0  ;;  %p257_p13 = scmp.eq.s32.totalorder %s1420_s25, 1 }
  0xbf   : > { %p2378_p12 = por %p251_p6, %p65_p7  ;;  %p1645_p2 = scmp.lt.s32.totalorder %s2087_s10, 2 }
  0xc0   : > { %p2374_p11 = por %p2774_p10, %p71_p1  ;;  %p2385_p0 = por %p257_p13, %p71_p1 }
  0xc1   : > { %s2776_s20 = scalar_select %p2378_p12, 1, 0 }
  0xc2   : > { %s2383_s19 = scalar_select %p56_p3, %s2075_s29, %s58_s17  }
  0xc3   : > { %s2777_s23 = scalar_select %p2385_p0, 1, 0 }
  0xc4   : > { %s2391_s24 = sand.u32 1, %s2075_s29   ;;  %s1430_s15 = sshll.u32 %s2083_s9, 7 }
  0xc5   : > { %s1429_s26 = sshll.u32 %s2391_s24, 3  ;;  %s2778_s0 = sld [smem:[#allocation28_spill]] }
  0xc6   : > { %s351_s25 = scalar_lea.vmem [#allocation6], %s1429_s26  ;;  %p2402_p5 = pnand %p1645_p2, %p2363_p4 }
  0xc7   : > { %s359_s17 = sshll.u32 %s351_s25, 4  ;;  %s1576_s22 = smul.u32 12, %s2391_s24  ;;  %s2406_s17 = int_to_ptr.vmem [resolvable:$true] %s359_s17 }
  0xc8   : > { %s348_s2 = scalar_lea.sflag [#allocation7], %s2391_s24  ;;  %p1927_p7 = pneg %p2402_p5 }
  0xcb   : > { %s2398_s14 = scalar_lea.hbm %s2778_s0, %s1430_s15  ;;  %s1930_s3 = scalar_lea.hbm %s2778_s0, 256 }
  0xcc   : > { %s1925_s15 = scalar_lea.hbm %s2398_s14, 128  ;;  %p1931_p4 = scmp.lt.u32.totalorder %s2398_s14, %s2778_s0 }
  0xcd   : > { %p1926_p8 = scmp.ne.s32.totalorder %s2398_s14, %s1925_s15  ;;  %p1932_p6 = scmp.lt.u32.totalorder %s1930_s3, %s1925_s15 }
  0xce   : > { %p1934_p10 = scmp.lt.u32.totalorder %s1925_s15, %s2398_s14 }
  0xcf   : > { %p1928_p9 = pnand %p1927_p7, %p1926_p8  ;;  %p1933_p3 = por %p1932_p6, %p1931_p4 }
  0xd1   : > { %p1929_p1 = pneg %p1928_p9  ;;  %p1935_p13 = por %p1934_p10, %p1933_p3 }
  0xd3   : > { %p1936_p2 = pnand %p1935_p13, %p1929_p1 }
  0xd5   : > { %1939 = shalt.err (!%p1936_p2)
}
  0xd6   : > { %s1940_s4 = scalar_lea.vmem %s2406_s17, 128  ;;  %s2097_s18 = smov [#allocation6]  }
  0xd7   : > { %p1941_p8 = scmp.ne.s32.totalorder %s2406_s17, %s1940_s4  ;;  %s1945_s26 = sshll.u32 %s2097_s18, 4  ;;  %s1946_s26 = int_to_ptr.vmem [resolvable:$false] %s1945_s26 }
  0xd8   : > { %s1947_s5 = scalar_lea.vmem %s1946_s26, 256  ;;  %p1948_p12 = scmp.lt.s32.totalorder %s2406_s17, %s1946_s26 }
  0xd9   : > { %p1943_p9 = pnand %p1941_p8, %p1927_p7  ;;  %p1949_p4 = scmp.lt.s32.totalorder %s1947_s5, %s1940_s4 }
  0xdb   : > { %p1944_p0 = pneg %p1943_p9  ;;  %p1950_p6 = por %p1949_p4, %p1948_p12 }
  0xdd   : > { %p1951_p3 = pnand %p1950_p6, %p1944_p0 }
  0xdf   : > { %1954 = shalt.err (!%p1951_p3)
}
  0xe0   : > { %1631 = dma.hbm_to_vmem [thread:$0]  (!%p2402_p5), %s2398_s14, 128, %s2406_s17, %s348_s2  }
  0xe1   : > { %s366_s15 = sand.u32 1, %s2087_s10   ;;  %s370_s3 = scalar_lea.vmem [#allocation9], %s1576_s22 }
  0xe2   : > { %s379_s25 = sshll.u32 %s370_s3, 4  ;;  %s2780_s18 = smul.u32 192, %s2083_s9  ;;  %s2439_s25 = int_to_ptr.vmem [resolvable:$true] %s379_s25 }
  0xe3   : > { %s2448_s0 = scalar_lea.sflag [#allocation10], %s366_s15  ;;  %s1960_s14 = scalar_lea.hbm %s2746_s1, 384 }
  0xe4   : > { %s2446_s5 = scalar_lea.hbm %s2746_s1, %s2780_s18 }
  0xe5   : > { %s1955_s6 = scalar_lea.hbm %s2446_s5, 192  ;;  %p1961_p10 = scmp.lt.u32.totalorder %s2446_s5, %s2746_s1 }
  0xe6   : > { %p1956_p12 = scmp.ne.s32.totalorder %s2446_s5, %s1955_s6  ;;  %p1962_p13 = scmp.lt.u32.totalorder %s1960_s14, %s1955_s6 }
  0xe7   : > { %p1964_p8 = scmp.lt.u32.totalorder %s1955_s6, %s2446_s5 }
  0xe8   : > { %p1958_p0 = pnand %p1956_p12, %p1927_p7  ;;  %p1963_p2 = por %p1962_p13, %p1961_p10 }
  0xea   : > { %p1959_p1 = pneg %p1958_p0  ;;  %p1965_p9 = por %p1964_p8, %p1963_p2 }
  0xec   : > { %p1966_p4 = pnand %p1965_p9, %p1959_p1 }
  0xee   : > { %1969 = shalt.err (!%p1966_p4)
}
  0xef   : > { %s1970_s15 = scalar_lea.vmem %s2439_s25, 192  ;;  %s2098_s3 = smov [#allocation9]  }
  0xf0   : > { %p1971_p6 = scmp.ne.s32.totalorder %s2439_s25, %s1970_s15  ;;  %s1975_s18 = sshll.u32 %s2098_s3, 4  ;;  %s1976_s18 = int_to_ptr.vmem [resolvable:$false] %s1975_s18 }
  0xf1   : > { %s1977_s4 = scalar_lea.vmem %s1976_s18, 384  ;;  %p1978_p0 = scmp.lt.s32.totalorder %s2439_s25, %s1976_s18 }
  0xf2   : > { %p1973_p3 = pnand %p1971_p6, %p1927_p7  ;;  %p1979_p10 = scmp.lt.s32.totalorder %s1977_s4, %s1970_s15 }
  0xf4   : > { %p1974_p12 = pneg %p1973_p3  ;;  %p1980_p13 = por %p1979_p10, %p1978_p0 }
  0xf6   : > { %p1981_p2 = pnand %p1980_p13, %p1974_p12 }
  0xf8   : > { %1984 = shalt.err (!%p1981_p2)
}
  0xf9   : > { %s2781_s6 = smov 4   ;;  %s2782_s26 = smov 64  }
  0xfa   : > { %1634 = dma.hbm_to_vmem [thread:$0]  (!%p2402_p5), %s2446_s5, 192, %s2439_s25, %s2448_s0, %s2782_s26, %s2782_s26, %s2781_s6  }
  0xfb   : > { %p2783_p7 = scmp.ne.s32.totalorder %s2765_s12, 0 }
  0xfc   : > { %s2480_s22 = sand.u32 (!%p2783_p7), 1, %s2071_s28  }
  0xfd   : > { %391 = sbr.rel (%p2783_p7) target bundleno = 3457 (0xd81), region = 52  ;;  %s1433_s24 = sshll.u32 (!%p2783_p7), %s2480_s22, 3 }
  0xfe   : > { %s394_s14 = scalar_lea.sflag (!%p2783_p7), [#allocation7], %s2480_s22  ;;  %s397_s21 = scalar_lea.vmem (!%p2783_p7), [#allocation6], %s1433_s24 }
 0x104   : > { %2038 = dma.done.wait (%p2374_p11), %s394_s14, 128  }
 0x105   : > { %2040 = vsyncadd (%p2374_p11), %s394_s14, 4294967168  ;;  %s402_s0 = sand.u32 1, %s2193_s11   ;;  %s1578_s12 = smul.u32 12, %s2480_s22 }
 0x106   : > { %s403_s25 = scalar_lea.sflag [#allocation10], %s402_s0 }
 0x107   : > { %s2492_s5 = scalar_lea.vmem [#allocation9], %s1578_s12 }
 0x108   : > { %2042 = dma.done.wait (%p2374_p11), %s403_s25, 192  }
 0x109   : > { %2044 = vsyncadd (%p2374_p11), %s403_s25, 4294967104  ;;  %p2784_p5 = scmp.eq.s32.totalorder %s2193_s11, 0 }
 0x10b   : > { %2046 = dma.done.wait (%p2784_p5), [#allocation10], 16   ;;  %p2785_p1 = pmov %p2784_p5 }
 0x10d   : > { %2048 = vsyncadd (%p2785_p1), [#allocation10], 4294967280  ;;  %p2786_p8 = pmov %p2785_p1 }
 0x10e   : > { %p2787_p9 = pmov %p2785_p1 }
 0x10f   : > { %2050 = dma.done.wait (%p2786_p8), [#allocation13], 272  }
 0x110   : > { %2052 = vsyncadd (%p2787_p9), [#allocation13], 4294967024  ;;  %p2788_p4 = pmov %p2785_p1 }
 0x111   : > { %p2789_p6 = pmov %p2785_p1 }
 0x112   : > { %2054 = dma.done.wait (%p2788_p4), [#allocation16], 272  }
 0x113   : > { %2056 = vsyncadd (%p2789_p6), [#allocation16], 4294967024  ;;  %p2790_p11 = pmov %p2785_p1 }
 0x114   : > { %p2791_p3 = pmov %p2785_p1 }
 0x115   : > { %2058 = dma.done.wait (%p2790_p11), [#allocation19], 16  }
 0x116   : > { %2060 = vsyncadd (%p2791_p3), [#allocation19], 4294967280  ;;  %vm477_vm0 = vcmask 261120   ;;  %v2514_v0 = vld [vmem:[%s397_s21] sm:$0xff]  ;;  %v2099_v8 = vmov 0.0   ;;  %vm2100_vm1 = vmmov 0   ;;  %v583_v35 = vlaneseq }
 0x117   : > { %v478_v1 = vsel %vm477_vm0, %v2514_v0, 0.0  ;;  %v1730_v7 = vld [vmem:[#allocation14] sm:$0xff]   ;;  %1496 = vmatprep.subr.bf16.mxu0 %v2099_v8  ;;  %577 = vst.msk [vmem:[#allocation4] sm:$0xff] %vm477_vm0, %v2099_v8  ;;  %578 = vst.msk [vmem:[#allocation5] sm:$0xff] %vm477_vm0, %v2099_v8  ;;  %1500 = vmatprep.mubr.msk.bf16.mxu0 %vm2100_vm1, %v2099_v8  ;;  %v1731_v9 = vld [vmem:[#allocation14 + $0x8] sm:$0xff]   ;;  %vm597_vm2 = vcmask 64512  }
 0x118   : > { %479 = vadd.xlane.f32.xlu0 %v478_v1  ;;  %1497 = vmatpush3.bf16.msra.mxu0 %v1730_v7  ;;  %v2533_v10 = vld [vmem:[%s2492_s5] sm:$0xff]   ;;  %v1441_v16 = vld [vmem:[#allocation11] ss:$0 sm:$0xff]  ;;  %v1442_v18 = vld [vmem:[#allocation12] ss:$0 sm:$0xff]  ;;  %s2101_s11 = smov 96  }
 0x119   : > { %1504 = vmatprep.subr.bf16.mxu1 %v2099_v8  ;;  %1498 = vmatprep.subr.bf16.mxu0 %v2099_v8  ;;  %v602_v11 = vsel %vm597_vm2, %v2533_v10, 0  ;;  %v2542_v22 = vld [vmem:[%s2492_s5 + $0x8] ss:$0 sps:$4 sm:$0xff]   ;;  %v1443_v25 = vld [vmem:[#allocation15] ss:$0 sm:$0xff]  ;;  %vm574_vm3 = vcmask 257024  }
 0x11a   : > { %1508 = vmatprep.mubr.msk.bf16.mxu1 %vm2100_vm1, %v2099_v8  ;;  %1505 = vmatpush3.bf16.xpose.msra.mxu1 %v602_v11  ;;  %v605_v23 = vsel %vm597_vm2, %v2542_v22, 0  ;;  %s2102_s16 = smov 120   ;;  %v2103_v34 = vmov -inf   ;;  %v2557_v36 = vand.u32 127, %v583_v35  ;;  %vm650_vm5 = vcmask 195584   ;;  %s2106_s17 = smov 88  }
 0x11b   : > { %1506 = vmatprep.subr.bf16.mxu1 %v2099_v8  ;;  %576 = vst.msk [vmem:[#allocation3] sm:$0xff] %vm477_vm0, %v2103_v34  ;;  %v2104_v44 = vmov 0   ;;  %vm685_vm6 = vcmask 1043456   ;;  %vm807_vm7 = vcmask 130112   ;;  %s2107_s2 = smov 112   ;;  %s2109_s15 = smov 104  }
 0x11c   : > { %1499 = vmatpush3.bf16.msra.mxu0 %v1731_v9  ;;  %vm588_vm4 = vcmp.lt.s32.totalorder %v2557_v36, 20  ;;  %1726 = vset.pattern.permute.xlu1 %v2104_v44  ;;  %vm949_vm8 = vcmask 195712   ;;  %s2110_s3 = smov 80   ;;  %s2112_s18 = smov 8   ;;  %vm1091_vm9 = vcmask 261312  }
 0x11d   : > { %1512 = vmatprep.subr.bf16.mxu0 %v2099_v8  ;;  %s2113_s4 = smov 72   ;;  %s2114_s6 = smov 16  }
 0x11e   : > { %v674_v63 = vld [vmem:[#allocation5] sm:$0xff]  ;;  %s2115_s26 = smov 24   ;;  %s1463_s14 = sshll.u32 %s2079_s30, 7 }
 0x11f   : > { %s467_s21 = scalar_lea.vmem [#allocation20], %s1433_s24  ;;  %s2695_s5 = scalar_lea.hbm %s2753_s8, %s1463_s14 }
 0x120   : > { %s1253_s0 = sshll.u32 %s467_s21, 4  ;;  %s1239_s30 = scalar_lea.sflag [#allocation8], %s2480_s22  ;;  %s2697_s0 = int_to_ptr.vmem [resolvable:$true] %s1253_s0 }
 0x121   : > { %s1985_s24 = scalar_lea.vmem %s2697_s0, 128  ;;  %p2792_p0 = scmp.ne.s32.totalorder %s2776_s20, 0 }
 0x122   : > { %1507 = vmatpush3.bf16.xpose.msra.mxu1 %v605_v23  ;;  %v649_v45 = vld [vmem:[#allocation3] sm:$0xff]  ;;  %p1986_p12 = scmp.ne.s32.totalorder %s2697_s0, %s1985_s24 }
 0x123   : > { %1528 = vmatprep.subr.bf16.mxu1 %v2099_v8 }
 0x124   : > { %p1987_p10 = pnand %p1986_p12, %p2792_p0 }
 0x126   : > { %p1988_p13 = pneg %p1987_p10 }
 0x1a5   : > { %v480_v2 = vpop.xlane.xlu0 %479 }
 0x1a6   : > { %v482_v3 = vmul.f32 0.03125, %v480_v2 }
 0x1a8   : > { %v483_v4 = vsub.f32 %v2514_v0, %v482_v3 }
 0x1aa   : > { %v484_v5 = vmul.f32 %v483_v4, %v483_v4 }
 0x1ac   : > { %v485_v6 = vsel %vm477_vm0, %v484_v5, 0.0 }
 0x1ad   : > { %486 = vadd.xlane.f32.xlu0 %v485_v6 }
 0x1c3   : > { %677 = vrot.lane.b32.xlu0 %v2533_v10, %s2101_s11 }
 0x23a   : > { %v487_v12 = vpop.xlane.xlu0 %486 }
 0x23b   : > { %v488_v13 = vmul.f32 0.03125, %v487_v12 }
 0x23d   : > { %v489_v14 = vadd.f32 1e-05, %v488_v13 }
 0x23e   : > { %v678_v24 = vpop.permute.xlu0 %677 }
 0x23f   : > { %1737 = vrsqrt.f32 %v489_v14 }
 0x249   : > { %v1738_v15 = vpop.eup %1737 }
 0x24a   : > { %v491_v17 = vmul.f32 %v1738_v15, %v483_v4 }
 0x24c   : > { %v498_v19 = vmul.f32 %v1441_v16, %v491_v17  ;;  %v2105_v16 = vmov 8  }
 0x24d   : > { %1727 = vset.pattern.permute.xlu0 %v2105_v16 }
 0x24e   : > { %v505_v20 = vadd.f32 %v1442_v18, %v498_v19 }
 0x250   : > { %v506_v21 = vpack.c.bf16 %v505_v20, %v505_v20 }
 0x252   : > { %1501 = vmatmul.mubr.msk.bf16.vlgmr.msra.gmra.mrb[0].mxu0 %vm477_vm0, %v506_v21 }
 0x253   : > { %1516 = vmatprep.mubr.msk.bf16.mxu0 %vm2100_vm1, %v2099_v8  ;;  %1513 = vmatpush3.bf16.msra.mxu0 %v678_v24 }
 0x254   : > { %1514 = vmatprep.subr.bf16.mxu0 %v2099_v8 }
 0x325   : > { %v567_v26 = vpop.f32.mrb[0].mxu0 }
 0x326   : > { %v568_v27 = vadd.f32 %v1443_v25, %v567_v26  ;;  %v1502_v28 = vpop.f32.mrb[1].mxu0 }
 0x327   : > { %v570_v29 = vpop.f32.mrb[2].mxu0 }
 0x328   : > { %v573_v30 = vpack.c.bf16 %v568_v27, %v568_v27  ;;  %v1503_v31 = vpop.f32.mrb[3].mxu0 }
 0x32a   : > { %575 = vst.msk [vmem:[#allocation2] sm:$0xf] %vm574_vm3, %v573_v30 }
 0x331   : > { %v582_v32 = vld [vmem:[#allocation2] sm:$0xf] }
 0x332   : > { %1509 = vmatmul.mubr.msk.bf16.vlgmr.msra.gmra.mrb[0].mxu1 %vm597_vm2, %v582_v32  ;;  %v2551_v33 = vcombine.low %v582_v32, %v582_v32 }
 0x333   : > { %1532 = vmatprep.mubr.msk.bf16.mxu1 %vm2100_vm1, %v2099_v8 }
 0x334   : > { %734 = vrot.lane.b32.xlu0 %v2551_v33, %s2102_s16 }
 0x3a6   : > { %v735_v60 = vpop.permute.xlu0 %734 }
 0x405   : > { %v641_v37 = vpop.f32.mrb[0].mxu1 }
 0x406   : > { %v647_v38 = vmul.f32 0.35355338, %v641_v37  ;;  %v1510_v39 = vpop.f32.mrb[1].mxu1 }
 0x407   : > { %v644_v40 = vpop.f32.mrb[2].mxu1 }
 0x408   : > { %v1511_v41 = vpop.f32.mrb[3].mxu1  ;;  %v648_v42 = vsel %vm588_vm4, %v647_v38, -inf }
 0x409   : > { %v651_v43 = vsel %vm650_vm5, %v648_v42, -inf }
 0x40a   : > { %652 = vmax.xlane.f32.xlu1 %v651_v43 }
 0x497   : > { %v653_v46 = vpop.xlane.xlu1 %652 }
 0x498   : > { %v654_v47 = vmax.f32 %v649_v45, %v653_v46 }
 0x49a   : > { %v655_v48 = vsub.f32 %v649_v45, %v654_v47  ;;  %666 = vst.msk [vmem:[#allocation3] sm:$0xff] %vm597_vm2, %v654_v47  ;;  %660 = vperm.xlu1 %1726, %v654_v47  }
 0x49c   : > { %v656_v61 = vmul.f32 1.442695, %v655_v48  ;;  %v2108_v48 = vmov 16  }
 0x49e   : > { %679 = vrot.lane.b32.xlu1 %v2542_v22, %s2101_s11  ;;  %s2116_s11 = smov [#allocation20]  }
 0x49f   : > { %1728 = vset.pattern.permute.xlu1 %v2108_v48 }
 0x4a1   : > { %v2591_v17 = vld [vmem:[#allocation3] sm:$0xff] }
 0x4a2   : > { %736 = vrot.lane.b32.xlu1 %v2533_v10, %s2102_s16 }
 0x4a6   : > { %738 = vrot.lane.b32.xlu1 %v2542_v22, %s2102_s16  ;;  %s1989_s16 = sshll.u32 %s2116_s11, 4  ;;  %s1990_s16 = int_to_ptr.vmem [resolvable:$false] %s1989_s16 }
 0x4a7   : > { %p1992_p2 = scmp.lt.s32.totalorder %s2697_s0, %s1990_s16 }
 0x519   : > { %v661_v49 = vpop.permute.xlu1 %660 }
 0x51a   : > { %v663_v50 = vsub.f32 %v648_v42, %v661_v49 }
 0x51c   : > { %v664_v51 = vmul.f32 1.442695, %v663_v50 }
 0x51d   : > { %v680_v52 = vpop.permute.xlu1 %679 }
 0x51e   : > { %1739 = vpow2.f32 %v664_v51  ;;  %v687_v53 = vsel %vm685_vm6, %v680_v52, 0 }
 0x51f   : > { %1515 = vmatpush3.bf16.msra.mxu0 %v687_v53  ;;  %1741 = vpow2.f32 %v656_v61 }
 0x520   : > { %1520 = vmatprep.subr.bf16.mxu0 %v2099_v8 }
 0x521   : > { %v737_v54 = vpop.permute.xlu1 %736 }
 0x522   : > { %v744_v56 = vsel %vm597_vm2, %v737_v54, 0 }
 0x525   : > { %v739_v58 = vpop.permute.xlu1 %738 }
 0x526   : > { %v747_v59 = vsel %vm597_vm2, %v739_v58, 0 }
 0x528   : > { %v2570_v55 = vpop.eup %1739 }
 0x529   : > { %v676_v57 = vpack.c.bf16 %v2570_v55, %v2570_v55  ;;  %v2584_v62 = vpop.eup %1741 }
 0x52a   : > { %v675_v1 = vmul.f32 %v2584_v62, %v674_v63 }
 0x52b   : > { %1517 = vmatmul.mubr.msk.bf16.vlgmr.msra.gmra.mrb[4].mxu0 %vm650_vm5, %v676_v57 }
 0x52c   : > { %1521 = vmatpush3.bf16.xpose.msra.mxu0 %v744_v56  ;;  %1524 = vmatprep.mubr.msk.bf16.mxu0 %vm2100_vm1, %v2099_v8 }
 0x52d   : > { %1522 = vmatprep.subr.bf16.mxu0 %v2099_v8 }
 0x534   : > { %1523 = vmatpush3.bf16.xpose.msra.mxu0 %v747_v59 }
 0x535   : > { %1544 = vmatprep.subr.bf16.mxu0 %v2099_v8 }
 0x53b   : > { %1525 = vmatmul.mubr.msk.bf16.vlgmr.msra.gmra.mrb[8].mxu0 %vm597_vm2, %v735_v60 }
 0x53c   : > { %1548 = vmatprep.mubr.msk.bf16.mxu0 %vm2100_vm1, %v2099_v8 }
 0x5fe   : > { %v723_v2 = vpop.f32.mrb[4].mxu0 }
 0x5ff   : > { %v729_v3 = vadd.f32 %v723_v2, %v675_v1  ;;  %v1518_v4 = vpop.f32.mrb[5].mxu0 }
 0x600   : > { %v726_v5 = vpop.f32.mrb[6].mxu0 }
 0x601   : > { %730 = vst.msk [vmem:[#allocation5] sm:$0xff] %vm597_vm2, %v729_v3  ;;  %v1519_v6 = vpop.f32.mrb[7].mxu0 }
 0x60e   : > { %v783_v7 = vpop.f32.mrb[8].mxu0 }
 0x60f   : > { %v789_v9 = vmul.f32 0.35355338, %v783_v7  ;;  %v1526_v11 = vpop.f32.mrb[9].mxu0 }
 0x610   : > { %v786_v12 = vpop.f32.mrb[10].mxu0 }
 0x611   : > { %v1527_v13 = vpop.f32.mrb[11].mxu0  ;;  %v790_v14 = vsel %vm588_vm4, %v789_v9, -inf }
 0x612   : > { %v792_v15 = vsel %vm650_vm5, %v790_v14, -inf }
 0x613   : > { %793 = vmax.xlane.f32.xlu1 %v792_v15 }
 0x6a0   : > { %v794_v18 = vpop.xlane.xlu1 %793 }
 0x6a1   : > { %v2594_v19 = vmax.f32 %v2591_v17, %v794_v18 }
 0x6a3   : > { %v796_v20 = vsub.f32 %v2591_v17, %v2594_v19  ;;  %808 = vst.msk [vmem:[#allocation3] sm:$0xff] %vm807_vm7, %v2594_v19  ;;  %801 = vperm.xlu0 %1727, %v2594_v19  }
 0x6a5   : > { %v797_v36 = vmul.f32 1.442695, %v796_v20 }
 0x6a7   : > { %819 = vrot.lane.b32.xlu0 %v2533_v10, %s2106_s17 }
 0x6aa   : > { %v2629_v50 = vld [vmem:[#allocation3] sm:$0xff] }
 0x6ab   : > { %821 = vrot.lane.b32.xlu0 %v2542_v22, %s2106_s17  ;;  %s1991_s17 = scalar_lea.vmem %s1990_s16, 256 }
 0x6ac   : > { %p1993_p7 = scmp.lt.s32.totalorder %s1991_s17, %s1985_s24 }
 0x6ae   : > { %p1994_p5 = por %p1993_p7, %p1992_p2 }
 0x6af   : > { %878 = vrot.lane.b32.xlu0 %v2533_v10, %s2107_s2 }
 0x6b0   : > { %p1995_p1 = pnand %p1994_p5, %p1988_p13 }
 0x6b3   : > { %880 = vrot.lane.b32.xlu0 %v2542_v22, %s2107_s2 }
 0x6b7   : > { %876 = vrot.lane.b32.xlu0 %v2551_v33, %s2107_s2 }
 0x722   : > { %v802_v21 = vpop.permute.xlu0 %801 }
 0x723   : > { %v804_v23 = vsub.f32 %v790_v14, %v802_v21 }
 0x725   : > { %v805_v24 = vmul.f32 1.442695, %v804_v23  ;;  %v2111_v23 = vmov 24  }
 0x726   : > { %v820_v25 = vpop.permute.xlu0 %819  ;;  %1729 = vset.pattern.permute.xlu0 %v2111_v23 }
 0x727   : > { %1743 = vpow2.f32 %v805_v24  ;;  %1529 = vmatpush3.bf16.msra.mxu1 %v820_v25 }
 0x728   : > { %1530 = vmatprep.subr.bf16.mxu1 %v2099_v8 }
 0x72a   : > { %v822_v26 = vpop.permute.xlu0 %821 }
 0x72b   : > { %v828_v27 = vsel %vm685_vm6, %v822_v26, 0 }
 0x72c   : > { %1531 = vmatpush3.bf16.msra.mxu1 %v828_v27 }
 0x72d   : > { %1536 = vmatprep.subr.bf16.mxu1 %v2099_v8 }
 0x72e   : > { %v879_v29 = vpop.permute.xlu0 %878 }
 0x72f   : > { %v886_v30 = vsel %vm597_vm2, %v879_v29, 0 }
 0x731   : > { %v2609_v28 = vpop.eup %1743 }
 0x732   : > { %v818_v31 = vpack.c.bf16 %v2609_v28, %v2609_v28  ;;  %v881_v32 = vpop.permute.xlu0 %880  ;;  %v811_v18 = vsel %vm650_vm5, %v2609_v28, 0.0 }
 0x733   : > { %v889_v34 = vsel %vm597_vm2, %v881_v32, 0  ;;  %v669_v32 = vsel %vm650_vm5, %v2570_v55, 0.0 }
 0x734   : > { %1533 = vmatmul.mubr.msk.bf16.vlgmr.msra.gmra.mrb[4].mxu1 %vm650_vm5, %v818_v31  ;;  %v816_v31 = vld [vmem:[#allocation5] sm:$0xff] }
 0x735   : > { %1537 = vmatpush3.bf16.xpose.msra.mxu1 %v886_v30  ;;  %1540 = vmatprep.mubr.msk.bf16.mxu1 %vm2100_vm1, %v2099_v8 }
 0x736   : > { %1538 = vmatprep.subr.bf16.mxu1 %v2099_v8  ;;  %v877_v35 = vpop.permute.xlu0 %876 }
 0x73d   : > { %1539 = vmatpush3.bf16.xpose.msra.mxu1 %v889_v34 }
 0x73e   : > { %1560 = vmatprep.subr.bf16.mxu1 %v2099_v8 }
 0x744   : > { %1541 = vmatmul.mubr.msk.bf16.vlgmr.msra.gmra.mrb[8].mxu1 %vm597_vm2, %v877_v35 }
 0x745   : > { %1564 = vmatprep.mubr.msk.bf16.mxu1 %vm2100_vm1, %v2099_v8 }
 0x807   : > { %v2623_v37 = vpop.f32.mrb[4].mxu1 }
 0x808   : > { %v1534_v38 = vpop.f32.mrb[5].mxu1 }
 0x809   : > { %v867_v39 = vpop.f32.mrb[6].mxu1 }
 0x80a   : > { %v1535_v40 = vpop.f32.mrb[7].mxu1 }
 0x817   : > { %v925_v41 = vpop.f32.mrb[8].mxu1 }
 0x818   : > { %v931_v42 = vmul.f32 0.35355338, %v925_v41  ;;  %v1542_v43 = vpop.f32.mrb[9].mxu1 }
 0x819   : > { %v928_v44 = vpop.f32.mrb[10].mxu1 }
 0x81a   : > { %v1543_v45 = vpop.f32.mrb[11].mxu1  ;;  %v932_v46 = vsel %vm588_vm4, %v931_v42, -inf  ;;  %v667_v42 = vld [vmem:[#allocation4] sm:$0xff] }
 0x81b   : > { %v934_v47 = vsel %vm650_vm5, %v932_v46, -inf  ;;  %v668_v43 = vmul.f32 %v2584_v62, %v667_v42 }
 0x81c   : > { %935 = vmax.xlane.f32.xlu0 %v934_v47 }
 0x832   : > { %1020 = vrot.lane.b32.xlu0 %v2533_v10, %s2109_s15 }
 0x8a9   : > { %v936_v49 = vpop.xlane.xlu0 %935 }
 0x8aa   : > { %v2632_v51 = vmax.f32 %v2629_v50, %v936_v49 }
 0x8ac   : > { %v938_v52 = vsub.f32 %v2629_v50, %v2632_v51  ;;  %950 = vst.msk [vmem:[#allocation3] sm:$0xff] %vm949_vm8, %v2632_v51  ;;  %943 = vperm.xlu1 %1728, %v2632_v51  }
 0x8ad   : > { %v1021_v60 = vpop.permute.xlu0 %1020 }
 0x8ae   : > { %v1028_v63 = vsel %vm597_vm2, %v1021_v60, 0  ;;  %v939_v41 = vmul.f32 1.442695, %v938_v52 }
 0x8b0   : > { %961 = vrot.lane.b32.xlu1 %v2533_v10, %s2110_s3 }
 0x8b3   : > { %v1075_v24 = vld [vmem:[#allocation3] sm:$0xff] }
 0x8b4   : > { %963 = vrot.lane.b32.xlu1 %v2542_v22, %s2110_s3 }
 0x8b8   : > { %1022 = vrot.lane.b32.xlu1 %v2542_v22, %s2109_s15 }
 0x8bc   : > { %1018 = vrot.lane.b32.xlu1 %v2551_v33, %s2109_s15 }
 0x92b   : > { %v944_v53 = vpop.permute.xlu1 %943 }
 0x92c   : > { %v946_v54 = vsub.f32 %v932_v46, %v944_v53 }
 0x92e   : > { %v947_v56 = vmul.f32 1.442695, %v946_v54 }
 0x92f   : > { %v962_v57 = vpop.permute.xlu1 %961 }
 0x930   : > { %1745 = vpow2.f32 %v947_v56  ;;  %1545 = vmatpush3.bf16.msra.mxu0 %v962_v57 }
 0x931   : > { %1546 = vmatprep.subr.bf16.mxu0 %v2099_v8  ;;  %1747 = vpow2.f32 %v797_v36 }
 0x933   : > { %v964_v58 = vpop.permute.xlu1 %963 }
 0x934   : > { %v970_v59 = vsel %vm685_vm6, %v964_v58, 0 }
 0x935   : > { %1547 = vmatpush3.bf16.msra.mxu0 %v970_v59 }
 0x936   : > { %1552 = vmatprep.subr.bf16.mxu0 %v2099_v8 }
 0x937   : > { %v1023_v33 = vpop.permute.xlu1 %1022 }
 0x938   : > { %v1031_v2 = vsel %vm597_vm2, %v1023_v33, 0  ;;  %v1736_v33 = vld [vmem:[#allocation17 + $0x8] sm:$0xff]  }
 0x93a   : > { %v1746_v61 = vpop.eup %1745 }
 0x93b   : > { %v960_v1 = vpack.c.bf16 %v1746_v61, %v1746_v61  ;;  %v1019_v3 = vpop.permute.xlu1 %1018  ;;  %v953_v21 = vsel %vm650_vm5, %v1746_v61, 0.0  ;;  %v1748_v29 = vpop.eup %1747 }
 0x93c   : > { %v817_v17 = vmul.f32 %v1748_v29, %v816_v31 }
 0x93d   : > { %1549 = vmatmul.mubr.msk.bf16.vlgmr.msra.gmra.mrb[12].mxu0 %vm650_vm5, %v960_v1  ;;  %v1735_v1 = vld [vmem:[#allocation17] sm:$0xff]  }
 0x93e   : > { %1553 = vmatpush3.bf16.xpose.msra.mxu0 %v1028_v63  ;;  %1556 = vmatprep.mubr.msk.bf16.mxu0 %vm2100_vm1, %v2099_v8 }
 0x93f   : > { %1554 = vmatprep.subr.bf16.mxu0 %v2099_v8 }
 0x946   : > { %1555 = vmatpush3.bf16.xpose.msra.mxu0 %v1031_v2 }
 0x94d   : > { %1557 = vmatmul.mubr.msk.bf16.vlgmr.msra.gmra.mrb[16].mxu0 %vm597_vm2, %v1019_v3 }
 0xa10   : > { %v1006_v4 = vpop.f32.mrb[12].mxu0 }
 0xa11   : > { %v1550_v5 = vpop.f32.mrb[13].mxu0 }
 0xa12   : > { %v1009_v6 = vpop.f32.mrb[14].mxu0 }
 0xa13   : > { %v1551_v7 = vpop.f32.mrb[15].mxu0 }
 0xa20   : > { %v1067_v9 = vpop.f32.mrb[16].mxu0 }
 0xa21   : > { %v1073_v11 = vmul.f32 0.35355338, %v1067_v9  ;;  %v1558_v12 = vpop.f32.mrb[17].mxu0 }
 0xa22   : > { %v1070_v13 = vpop.f32.mrb[18].mxu0 }
 0xa23   : > { %v1559_v14 = vpop.f32.mrb[19].mxu0  ;;  %v1074_v15 = vsel %vm588_vm4, %v1073_v11, -inf }
 0xa24   : > { %v1076_v16 = vsel %vm650_vm5, %v1074_v15, -inf }
 0xa25   : > { %1077 = vmax.xlane.f32.xlu1 %v1076_v16  ;;  %v1458_v16 = vld [vmem:[#allocation18] ss:$0 sm:$0xff] }
 0xa29   : > { %812 = vadd.xlane.f32.xlu1 %v811_v18 }
 0xa2d   : > { %954 = vadd.xlane.f32.xlu1 %v953_v21 }
 0xa3e   : > { %871 = vrot.lane.b32.xlu1 %v2623_v37, %s2112_s18 }
 0xab2   : > { %v1078_v25 = vpop.xlane.xlu1 %1077 }
 0xab3   : > { %v1079_v26 = vmax.f32 %v1075_v24, %v1078_v25 }
 0xab5   : > { %v1080_v27 = vsub.f32 %v1075_v24, %v1079_v26  ;;  %1092 = vst.msk [vmem:[#allocation3] sm:$0xff] %vm1091_vm9, %v1079_v26  ;;  %1085 = vperm.xlu0 %1729, %v1079_v26  }
 0xab6   : > { %v813_v28 = vpop.xlane.xlu1 %812 }
 0xab7   : > { %v1081_v62 = vmul.f32 1.442695, %v1080_v27 }
 0xab9   : > { %1103 = vrot.lane.b32.xlu0 %v2533_v10, %s2113_s4 }
 0xaba   : > { %v955_v30 = vpop.xlane.xlu1 %954 }
 0xabd   : > { %1105 = vrot.lane.b32.xlu0 %v2542_v22, %s2113_s4 }
 0xabe   : > { %v872_v19 = vpop.permute.xlu1 %871 }
 0xabf   : > { %v874_v20 = vadd.f32 %v872_v19, %v817_v17 }
 0xac1   : > { %875 = vst.msk [vmem:[#allocation5] sm:$0xff] %vm807_vm7, %v874_v20 }
 0xac8   : > { %v958_v45 = vld [vmem:[#allocation5] sm:$0xff] }
 0xadc   : > { %670 = vadd.xlane.f32.xlu0 %v669_v32 }
 0xaf2   : > { %1013 = vrot.lane.b32.xlu0 %v1006_v4, %s2114_s6 }
 0xb34   : > { %v1086_v34 = vpop.permute.xlu0 %1085 }
 0xb35   : > { %v1088_v35 = vsub.f32 %v1074_v15, %v1086_v34 }
 0xb37   : > { %v1089_v37 = vmul.f32 1.442695, %v1088_v35 }
 0xb38   : > { %v1104_v10 = vpop.permute.xlu0 %1103 }
 0xb39   : > { %1749 = vpow2.f32 %v1089_v37  ;;  %1561 = vmatpush3.bf16.msra.mxu1 %v1104_v10 }
 0xb3a   : > { %1562 = vmatprep.subr.bf16.mxu1 %v2099_v8  ;;  %1751 = vpow2.f32 %v939_v41 }
 0xb3b   : > { %1753 = vpow2.f32 %v1081_v62 }
 0xb3c   : > { %v1106_v22 = vpop.permute.xlu0 %1105 }
 0xb3d   : > { %v1112_v38 = vsel %vm685_vm6, %v1106_v22, 0 }
 0xb3e   : > { %1563 = vmatpush3.bf16.msra.mxu1 %v1112_v38 }
 0xb3f   : > { %1568 = vmatprep.subr.bf16.mxu1 %v2099_v8 }
 0xb43   : > { %v1750_v39 = vpop.eup %1749 }
 0xb44   : > { %v1095_v55 = vsel %vm650_vm5, %v1750_v39, 0.0  ;;  %v1102_v40 = vpack.c.bf16 %v1750_v39, %v1750_v39  ;;  %v1752_v47 = vpop.eup %1751 }
 0xb45   : > { %1096 = vadd.xlane.f32.xlu1 %v1095_v55  ;;  %v959_v48 = vmul.f32 %v1752_v47, %v958_v45  ;;  %v1754_v59 = vpop.eup %1753 }
 0xb46   : > { %1565 = vmatmul.mubr.msk.bf16.vlgmr.msra.gmra.mrb[12].mxu1 %vm650_vm5, %v1102_v40 }
 0xb47   : > { %1572 = vmatprep.mubr.msk.bf16.mxu1 %vm2100_vm1, %v2099_v8  ;;  %1569 = vmatpush3.bf16.msra.mxu1 %v1735_v1 }
 0xb48   : > { %1570 = vmatprep.subr.bf16.mxu1 %v2099_v8 }
 0xb4b   : > { %1571 = vmatpush3.bf16.msra.mxu1 %v1736_v33 }
 0xb69   : > { %v671_v44 = vpop.xlane.xlu0 %670 }
 0xb6a   : > { %v672_v46 = vadd.f32 %v671_v44, %v668_v43 }
 0xb6c   : > { %673 = vst.msk [vmem:[#allocation4] sm:$0xff] %vm597_vm2, %v672_v46 }
 0xb6d   : > { %v1014_v49 = vpop.permute.xlu0 %1013 }
 0xb6e   : > { %v1016_v53 = vadd.f32 %v1014_v49, %v959_v48 }
 0xb70   : > { %1017 = vst.msk [vmem:[#allocation5] sm:$0xff] %vm949_vm8, %v1016_v53 }
 0xb73   : > { %v809_v54 = vld [vmem:[#allocation4] sm:$0xff] }
 0xb74   : > { %v810_v56 = vmul.f32 %v1748_v29, %v809_v54 }
 0xb76   : > { %v814_v57 = vadd.f32 %v813_v28, %v810_v56 }
 0xb77   : > { %v1100_v6 = vld [vmem:[#allocation5] sm:$0xff] }
 0xb78   : > { %815 = vst.msk [vmem:[#allocation4] sm:$0xff] %vm807_vm7, %v814_v57  ;;  %v1101_v9 = vmul.f32 %v1754_v59, %v1100_v6 }
 0xb7f   : > { %v951_v50 = vld [vmem:[#allocation4] sm:$0xff] }
 0xb80   : > { %v952_v51 = vmul.f32 %v1752_v47, %v951_v50 }
 0xb82   : > { %v956_v52 = vadd.f32 %v955_v30, %v952_v51 }
 0xb84   : > { %957 = vst.msk [vmem:[#allocation4] sm:$0xff] %vm949_vm8, %v956_v52 }
 0xb8b   : > { %v1093_v58 = vld [vmem:[#allocation4] sm:$0xff] }
 0xb8c   : > { %v1094_v60 = vmul.f32 %v1754_v59, %v1093_v58 }
 0xbd2   : > { %v1097_v61 = vpop.xlane.xlu1 %1096 }
 0xbd3   : > { %v1098_v63 = vadd.f32 %v1097_v61, %v1094_v60 }
 0xbd5   : > { %1099 = vst.msk [vmem:[#allocation4] sm:$0xff] %vm1091_vm9, %v1098_v63 }
 0xbdc   : > { %v1163_v7 = vld [vmem:[#allocation4] sm:$0xff] }
 0xbdd   : > { %1755 = vrcp.f32 %v1163_v7 }
 0xbe7   : > { %v1756_v13 = vpop.eup %1755 }
 0xc19   : > { %v1148_v2 = vpop.f32.mrb[12].mxu1 }
 0xc1a   : > { %1155 = vrot.lane.b32.xlu1 %v1148_v2, %s2115_s26  ;;  %v1566_v3 = vpop.f32.mrb[13].mxu1 }
 0xc1b   : > { %v1151_v4 = vpop.f32.mrb[14].mxu1 }
 0xc1c   : > { %v1567_v5 = vpop.f32.mrb[15].mxu1 }
 0xc8c   : > { %v1156_v11 = vpop.permute.xlu1 %1155 }
 0xc8d   : > { %v1158_v12 = vadd.f32 %v1156_v11, %v1101_v9 }
 0xc8f   : > { %1159 = vst.msk [vmem:[#allocation5] sm:$0xff] %vm1091_vm9, %v1158_v12 }
 0xc96   : > { %v1165_v14 = vld [vmem:[#allocation5] sm:$0xff] }
 0xc97   : > { %v1166_v8 = vmul.f32 %v1756_v13, %v1165_v14 }
 0xc99   : > { %v1167_v15 = vpack.c.bf16 %v1166_v8, %v1166_v8 }
 0xc9b   : > { %1573 = vmatmul.mubr.msk.bf16.vlgmr.msra.gmra.mrb[16].mxu1 %vm477_vm0, %v1167_v15 }
 0xd6e   : > { %v1229_v18 = vpop.f32.mrb[16].mxu1 }
 0xd6f   : > { %v1230_v21 = vadd.f32 %v1458_v16, %v1229_v18  ;;  %v1574_v23 = vpop.f32.mrb[17].mxu1 }
 0xd70   : > { %v1232_v36 = vpop.f32.mrb[18].mxu1 }
 0xd71   : > { %v1236_v24 = vadd.f32 %v1230_v21, %v2514_v0  ;;  %v1575_v25 = vpop.f32.mrb[19].mxu1 }
 0xd73   : > { %1237 = vst.msk [vmem:[%s467_s21] sm:$0xff] %vm477_vm0, %v1236_v24 }
 0xd74   : > { %1998 = shalt.err (!%p1995_p1)
}
 0xd75   : > { %s1999_s22 = scalar_lea.hbm %s2695_s5, 128  ;;  %s2003_s3 = scalar_lea.hbm %s2753_s8, 256 }
 0xd76   : > { %p2000_p8 = scmp.ne.s32.totalorder %s2695_s5, %s1999_s22  ;;  %p2004_p6 = scmp.lt.u32.totalorder %s2695_s5, %s2753_s8 }
 0xd77   : > { %p2005_p11 = scmp.lt.u32.totalorder %s2003_s3, %s1999_s22  ;;  %p2007_p12 = scmp.lt.u32.totalorder %s1999_s22, %s2695_s5 }
 0xd78   : > { %p2001_p9 = pnand %p2000_p8, %p2792_p0 }
 0xd79   : > { %p2006_p3 = por %p2005_p11, %p2004_p6 }
 0xd7a   : > { %p2002_p4 = pneg %p2001_p9 }
 0xd7b   : > { %p2008_p10 = por %p2007_p12, %p2006_p3 }
 0xd7d   : > { %p2009_p13 = pnand %p2008_p10, %p2002_p4 }
 0xd7f   : > { %2012 = shalt.err (!%p2009_p13)
}
 0xd80   : > { %1607 = dma.vmem_to_hbm [thread:$0]  (%p2792_p0), %s2697_s0, 128, %s2695_s5, %s1239_s30  }
 0xd81 PF: > { %s1265_s6 = sand.u32 1, %s2067_s27   ;;  %p2793_p2 = scmp.ne.s32.totalorder %s2777_s23, 0 }
 0xd82   : > { %p2794_p7 = scmp.ge.s32.totalorder %s2087_s10, 2  ;;  %s1266_s26 = scalar_lea.sflag [#allocation8], %s1265_s6 }
 0xd84   : > { %p1636_p5 = pnand %p2794_p7, %p2793_p2 }
 0xd86   : > { %2062 = dma.done.wait (!%p1636_p5), %s1266_s26, 128  }
 0xd87   : > { %2064 = vsyncadd (!%p1636_p5), %s1266_s26, 4294967168  ;;  %s30_s10 = sadd.s32 1, %s2087_s10   ;;  %s2795_s27 = smov %s2071_s28 }
 0xd88   : > { %p27_p1 = scmp.ge.s32.totalorder %s30_s10, 4   ;;  %s2796_s28 = smov %s2075_s29 }
 0xd89   : > { %s2797_s29 = smov %s2383_s19  ;;  %s2798_s30 = smov %s2083_s9 }
 0xd8a   : > { %s2799_s9 = smov %s2801_s13  ;;  %29 = sbr.rel (!%p27_p1) target bundleno = 18 (0x12), region = 142 }
 0xd91   :  { %1271 = vsyncpa [#allocation7], 1 }
 0xd92   :  { %1273 = vsyncpa [#allocation7 + $0x1], 1 }
 0xd93   :  { %1274 = vsyncpa [#allocation10], 1 }
 0xd94   :  { %1276 = vsyncpa [#allocation10 + $0x1], 1 }
 0xd95   :  { %1277 = vsyncpa [#allocation13], 1 }
 0xd96   :  { %1278 = vsyncpa [#allocation16], 1 }
 0xd97   :  { %1279 = vsyncpa [#allocation19], 1 }
 0xd98   :  { %1280 = vsyncpa [#allocation8], 1 }
 0xd99   :  { %1282 = vsyncpa [#allocation8 + $0x1], 1 }

// kernel: surface_field_autoencoder_forward.25
= control target key start
LH: loop header
LB: loop body
LE: loop exit
PB: predicated region body
PF: predicated region fallthrough
CT: control target
= control target key end

     0   :  { %10 = vsyncpa [#allocation3], 0  ;;  %s1193_s0 = inlined_call_operand.hbm [shape: f32[16,32], index: 0, kind: input, shape index: {}]   ;;  %s1194_s1 = inlined_call_operand.hbm [shape: f32[1,32], index: 1, kind: input, shape index: {}]   ;;  %s1195_s2 = inlined_call_operand.hbm [shape: f32[1,32], index: 2, kind: input, shape index: {}]   ;;  %s1196_s3 = inlined_call_operand.hbm [shape: bf16[32,64], index: 3, kind: input, shape index: {}]   ;;  %s1197_s4 = inlined_call_operand.hbm [shape: f32[1,64], index: 4, kind: input, shape index: {}]   ;;  %s1198_s5 = inlined_call_operand.hbm [shape: bf16[16,64], index: 5, kind: output, shape index: {}]  }
   0x1   :  { %12 = vsyncpa [#allocation3 + $0x1], 0 }
   0x2   :  { %13 = vsyncpa [#allocation6], 0 }
   0x3   :  { %14 = vsyncpa [#allocation9], 0 }
   0x4   :  { %15 = vsyncpa [#allocation4], 0 }
   0x5   :  { %17 = vsyncpa [#allocation4 + $0x1], 0  ;;  %s907_s18 = smov 0   ;;  %s909_s19 = smov 0  }
   0x6   :  { %s911_s20 = smov 0   ;;  %s913_s21 = smov 0  }
   0x7 LB: > { %s867_s22 = smov [#allocation5]   ;;  %s928_s24 = sadd.s32 4294967295, %s865_s21   ;;  %s865_s21 = sphi %s913_s21, %s1222_s21   ;;  %s861_s20 = sphi %s911_s20, %s1221_s20   ;;  %s857_s19 = sphi %s909_s19, %s1220_s19   ;;  %s853_s18 = sphi %s907_s18, %s1219_s18  }
   0x8   : > { %s177_s23 = sshll.u32 %s867_s22, 4  ;;  %p518_p0 = scmp.ge.s32.totalorder %s865_s21, 1  ;;  %s933_s23 = int_to_ptr.vmem [resolvable:$true] %s177_s23 }
   0x9   : > { %p1199_p1 = scmp.eq.s32.totalorder %s928_s24, 0  ;;  %p164_p2 = scmp.lt.s32.totalorder %s865_s21, 3 }
   0xa   : > { %s868_s26 = smov [#allocation8]   ;;  %s869_s29 = smov [#allocation7]  }
   0xb   : > { %p935_p3 = pnand %p518_p0, %p164_p2  ;;  %s198_s27 = sshll.u32 %s868_s26, 4  ;;  %s942_s27 = int_to_ptr.vmem [resolvable:$true] %s198_s27 }
   0xc   : > { %s188_s30 = sshll.u32 %s869_s29, 4  ;;  %s649_s8 = scalar_lea.hbm %s1194_s1, 16  ;;  %s950_s30 = int_to_ptr.vmem [resolvable:$true] %s188_s30 }
   0xd   : > { %s1202_s25 = scalar_select %p935_p3, 1, 0 }
   0xe   : > { %p574_p5 = pneg %p935_p3  ;;  %p650_p7 = scmp.ne.s32.totalorder %s1194_s1, %s649_s8 }
   0xf   : > { %p656_p11 = scmp.lt.u32.totalorder %s649_s8, %s1194_s1 }
  0x10   : > { %p946_p6 = pnand %p574_p5, %p1199_p1 }
  0x12   : > { %p960_p8 = pneg %p946_p6 }
  0x14   : > { %p652_p9 = pnand %p960_p8, %p650_p7 }
  0x16   : > { %p653_p10 = pneg %p652_p9 }
  0x18   : > { %p658_p12 = pnand %p656_p11, %p653_p10 }
  0x1a   : > { %661 = shalt.err (!%p658_p12)
}
  0x1b   : > { %s662_s14 = scalar_lea.vmem %s933_s23, 16  ;;  %s669_s15 = scalar_lea.vmem %s933_s23, 32 }
  0x1c   : > { %p663_p13 = scmp.ne.s32.totalorder %s933_s23, %s662_s14  ;;  %p670_p5 = scmp.lt.s32.totalorder %s933_s23, %s933_s23 }
  0x1d   : > { %p671_p7 = scmp.lt.s32.totalorder %s669_s15, %s662_s14 }
  0x1e   : > { %p665_p0 = pnand %p663_p13, %p960_p8 }
  0x1f   : > { %p672_p9 = por %p671_p7, %p670_p5 }
  0x20   : > { %p666_p2 = pneg %p665_p0 }
  0x22   : > { %p673_p4 = pnand %p672_p9, %p666_p2 }
  0x24   : > { %676 = shalt.err (!%p673_p4)
}
  0x25   : > { %577 = dma.hbm_to_vmem [thread:$0]  (!%p946_p6), %s1194_s1, 16, %s933_s23, [#allocation6]  }
  0x26   : > { %s677_s29 = scalar_lea.hbm %s1196_s3, 256 }
  0x27   : > { %p678_p10 = scmp.ne.s32.totalorder %s1196_s3, %s677_s29  ;;  %p684_p4 = scmp.lt.u32.totalorder %s677_s29, %s1196_s3 }
  0x29   : > { %p680_p11 = pnand %p678_p10, %p960_p8 }
  0x2b   : > { %p681_p12 = pneg %p680_p11 }
  0x2d   : > { %p686_p13 = pnand %p684_p4, %p681_p12 }
  0x2f   : > { %689 = shalt.err (!%p686_p13)
}
  0x30   : > { %s690_s23 = scalar_lea.vmem %s942_s27, 256  ;;  %p698_p7 = scmp.lt.s32.totalorder %s942_s27, %s942_s27 }
  0x31   : > { %p691_p0 = scmp.ne.s32.totalorder %s942_s27, %s690_s23  ;;  %p699_p9 = scmp.lt.s32.totalorder %s690_s23, %s690_s23 }
  0x33   : > { %p693_p2 = pnand %p691_p0, %p960_p8  ;;  %p700_p10 = por %p699_p9, %p698_p7 }
  0x35   : > { %p694_p5 = pneg %p693_p2 }
  0x37   : > { %p701_p11 = pnand %p700_p10, %p694_p5 }
  0x39   : > { %704 = shalt.err (!%p701_p11)
}
  0x3a   : > { %s870_s10 = smov 64   ;;  %s871_s12 = smov 4  }
  0x3b   : > { %583 = dma.hbm_to_vmem [thread:$0]  (!%p946_p6), %s1196_s3, 256, %s942_s27, [#allocation9], %s870_s10, %s870_s10, %s871_s12  }
  0x3c   : > { %s705_s17 = scalar_lea.hbm %s1195_s2, 16 }
  0x3d   : > { %p706_p12 = scmp.ne.s32.totalorder %s1195_s2, %s705_s17  ;;  %p712_p0 = scmp.lt.u32.totalorder %s705_s17, %s1195_s2 }
  0x3f   : > { %p708_p4 = pnand %p706_p12, %p960_p8 }
  0x41   : > { %p709_p13 = pneg %p708_p4 }
  0x43   : > { %p714_p2 = pnand %p712_p0, %p709_p13 }
  0x45   : > { %717 = shalt.err (!%p714_p2)
}
  0x46   : > { %s718_s27 = scalar_lea.vmem %s950_s30, 16  ;;  %s725_s7 = scalar_lea.vmem %s950_s30, 32 }
  0x47   : > { %p719_p5 = scmp.ne.s32.totalorder %s950_s30, %s718_s27  ;;  %p726_p10 = scmp.lt.s32.totalorder %s950_s30, %s950_s30 }
  0x48   : > { %p727_p11 = scmp.lt.s32.totalorder %s725_s7, %s718_s27 }
  0x49   : > { %p721_p7 = pnand %p719_p5, %p960_p8 }
  0x4a   : > { %p728_p12 = por %p727_p11, %p726_p10 }
  0x4b   : > { %p722_p9 = pneg %p721_p7 }
  0x4d   : > { %p729_p4 = pnand %p728_p12, %p722_p9 }
  0x4f   : > { %732 = shalt.err (!%p729_p4)
}
  0x50   : > { %580 = dma.hbm_to_vmem [thread:$0]  (!%p946_p6), %s1195_s2, 16, %s950_s30, [#allocation6]  }
  0x51   : > { %s872_s23 = smov [#allocation10]   ;;  %s733_s14 = scalar_lea.hbm %s1197_s4, 16 }
  0x52   : > { %s212_s10 = sshll.u32 %s872_s23, 4  ;;  %p734_p13 = scmp.ne.s32.totalorder %s1197_s4, %s733_s14  ;;  %s213_s10 = int_to_ptr.vmem [resolvable:$true] %s212_s10 }
  0x53   : > { %p740_p5 = scmp.lt.u32.totalorder %s733_s14, %s1197_s4 }
  0x54   : > { %p736_p0 = pnand %p734_p13, %p960_p8 }
  0x56   : > { %p737_p2 = pneg %p736_p0 }
  0x58   : > { %p742_p7 = pnand %p740_p5, %p737_p2 }
  0x5a   : > { %745 = shalt.err (!%p742_p7)
}
  0x5b   : > { %s746_s30 = scalar_lea.vmem %s213_s10, 16  ;;  %s753_s26 = scalar_lea.vmem %s213_s10, 32 }
  0x5c   : > { %p747_p9 = scmp.ne.s32.totalorder %s213_s10, %s746_s30  ;;  %p754_p12 = scmp.lt.s32.totalorder %s213_s10, %s213_s10 }
  0x5d   : > { %p755_p4 = scmp.lt.s32.totalorder %s753_s26, %s746_s30 }
  0x5e   : > { %p749_p10 = pnand %p747_p9, %p960_p8 }
  0x5f   : > { %p756_p1 = por %p755_p4, %p754_p12 }
  0x60   : > { %p750_p11 = pneg %p749_p10 }
  0x62   : > { %p757_p3 = pnand %p756_p1, %p750_p11 }
  0x64   : > { %760 = shalt.err (!%p757_p3)
}
  0x65   : > { %586 = dma.hbm_to_vmem [thread:$0]  (!%p946_p6), %s1197_s4, 16, %s213_s10, [#allocation9]  }
  0x66   : > { %s517_s11 = sadd.s32 4294967294, %s865_s21   ;;  %s1049_s28 = sadd.s32 1, %s865_s21  }
  0x67   : > { %s27_s27 = ssub.s32 %s865_s21, %s1049_s28  ;;  %s30_s7 = sadd.s32 1, %s861_s20 }
  0x68   : > { %p28_p1 = scmp.eq.s32.totalorder %s27_s27, 0  ;;  %p37_p3 = scmp.ne.s32.totalorder %s861_s20, %s857_s19 }
  0x69   : > { %p38_p8 = scmp.eq.s32.totalorder %s865_s21, 0  ;;  %p43_p13 = scmp.ne.s32.totalorder %s857_s19, %s853_s18 }
  0x6a   : > { %s1060_s8 = scalar_select %p28_p1, %s861_s20, %s30_s7  }
  0x6b   : > { %p1062_p0 = por %p38_p8, %p37_p3  ;;  %p1206_p2 = scmp.eq.s32.totalorder %s928_s24, 0 }
  0x6c   : > { %p151_p5 = scmp.eq.s32.totalorder %s928_s24, 1  ;;  %p157_p7 = scmp.eq.s32.totalorder %s517_s11, 1 }
  0x6d   : > { %p1068_p6 = por %p1206_p2, %p43_p13  ;;  %p599_p9 = scmp.lt.s32.totalorder %s865_s21, 2 }
  0x6e   : > { %s223_s10 = sand.u32 1, %s861_s20   ;;  %p1075_p10 = por %p151_p5, %p37_p3 }
  0x6f   : > { %p1079_p11 = por %p157_p7, %p43_p13  ;;  %s524_s14 = sshll.u32 %s223_s10, 3 }
  0x70   : > { %s1208_s12 = scalar_select %p1075_p10, 1, 0 }
  0x71   : > { %s1209_s13 = scalar_select %p1079_p11, 1, 0 }
  0x72   : > { %s525_s15 = sshll.u32 %s865_s21, 7  ;;  %s227_s30 = scalar_lea.vmem [#allocation2], %s524_s14 }
  0x73   : > { %s1087_s22 = scalar_lea.hbm %s1193_s0, %s525_s15  ;;  %s234_s26 = sshll.u32 %s227_s30, 4  ;;  %s1089_s26 = int_to_ptr.vmem [resolvable:$true] %s234_s26 }
  0x74   : > { %p1093_p12 = pnand %p599_p9, %p1062_p0  ;;  %s224_s6 = scalar_lea.sflag [#allocation3], %s223_s10 }
  0x75   : > { %s761_s11 = scalar_lea.hbm %s1087_s22, 128  ;;  %s766_s14 = scalar_lea.hbm %s1193_s0, 256 }
  0x76   : > { %p762_p4 = scmp.ne.s32.totalorder %s1087_s22, %s761_s11  ;;  %p763_p1 = pneg %p1093_p12 }
  0x77   : > { %p767_p13 = scmp.lt.u32.totalorder %s1087_s22, %s1193_s0  ;;  %p768_p0 = scmp.lt.u32.totalorder %s766_s14, %s761_s11 }
  0x78   : > { %p764_p3 = pnand %p763_p1, %p762_p4  ;;  %p770_p5 = scmp.lt.u32.totalorder %s761_s11, %s1087_s22 }
  0x79   : > { %p769_p2 = por %p768_p0, %p767_p13 }
  0x7a   : > { %p765_p8 = pneg %p764_p3 }
  0x7b   : > { %p771_p7 = por %p770_p5, %p769_p2 }
  0x7d   : > { %p772_p9 = pnand %p771_p7, %p765_p8 }
  0x7f   : > { %775 = shalt.err (!%p772_p9)
}
  0x80   : > { %s776_s10 = scalar_lea.vmem %s1089_s26, 128  ;;  %s873_s16 = smov [#allocation2]  }
  0x81   : > { %p777_p4 = scmp.ne.s32.totalorder %s1089_s26, %s776_s10  ;;  %s781_s17 = sshll.u32 %s873_s16, 4  ;;  %s782_s17 = int_to_ptr.vmem [resolvable:$false] %s781_s17 }
  0x82   : > { %s783_s30 = scalar_lea.vmem %s782_s17, 256  ;;  %p784_p10 = scmp.lt.s32.totalorder %s1089_s26, %s782_s17 }
  0x83   : > { %p779_p3 = pnand %p777_p4, %p763_p1  ;;  %p785_p13 = scmp.lt.s32.totalorder %s783_s30, %s776_s10 }
  0x85   : > { %p780_p11 = pneg %p779_p3  ;;  %p786_p0 = por %p785_p13, %p784_p10 }
  0x87   : > { %p787_p2 = pnand %p786_p0, %p780_p11 }
  0x89   : > { %790 = shalt.err (!%p787_p2)
}
  0x8a   : > { %590 = dma.hbm_to_vmem [thread:$0]  (!%p1093_p12), %s1087_s22, 128, %s1089_s26, %s224_s6  }
  0x8b   : > { %p1211_p8 = scmp.ne.s32.totalorder %s1202_s25, 0 }
  0x8c   : > { %s1125_s11 = sand.u32 (!%p1211_p8), 1, %s857_s19  }
  0x8d   : > { %243 = sbr.rel (%p1211_p8) target bundleno = 701 (0x2bd), region = 40  ;;  %s527_s27 = sshll.u32 (!%p1211_p8), %s1125_s11, 3 }
  0x8e   : > { %s246_s7 = scalar_lea.sflag (!%p1211_p8), [#allocation3], %s1125_s11  ;;  %s249_s14 = scalar_lea.vmem (!%p1211_p8), [#allocation2], %s527_s27 }
  0x94   : > { %836 = dma.done.wait (%p1068_p6), %s246_s7, 128  }
  0x95   : > { %838 = vsyncadd (%p1068_p6), %s246_s7, 4294967168  ;;  %p1212_p10 = scmp.eq.s32.totalorder %s928_s24, 0 }
  0x97   : > { %840 = dma.done.wait (%p1212_p10), [#allocation6], 32   ;;  %p1213_p11 = pmov %p1212_p10 }
  0x98   : > { %p1214_p12 = pmov %p1212_p10 }
  0x99   : > { %842 = vsyncadd (%p1213_p11), [#allocation6], 4294967264 }
  0x9a   : > { %844 = dma.done.wait (%p1214_p12), [#allocation9], 272   ;;  %p1215_p1 = pmov %p1212_p10 }
  0x9b   : > { %vm296_vm0 = vcmask 261120   ;;  %v293_v0 = vld [vmem:[%s249_s14] sm:$0xff]  ;;  %v645_v7 = vld [vmem:[#allocation8] sm:$0xff]   ;;  %v874_v8 = vmov 0.0   ;;  %vm875_vm1 = vmmov 0   ;;  %s532_s25 = sshll.u32 %s1125_s11, 2 }
  0x9c   : > { %846 = vsyncadd (%p1215_p1), [#allocation9], 4294967024  ;;  %v297_v1 = vsel %vm296_vm0, %v293_v0, 0.0  ;;  %546 = vmatprep.subr.bf16.mxu0 %v874_v8  ;;  %v646_v9 = vld [vmem:[#allocation8 + $0x8] sm:$0xff]   ;;  %550 = vmatprep.mubr.msk.bf16.mxu0 %vm875_vm1, %v874_v8  ;;  %v533_v14 = vld [vmem:[#allocation5] ss:$0 sm:$0xff] }
  0x9d   : > { %298 = vadd.xlane.f32.xlu0 %v297_v1  ;;  %547 = vmatpush3.bf16.msra.mxu0 %v645_v7  ;;  %v534_v16 = vld [vmem:[#allocation7] ss:$0 sm:$0xff]  ;;  %v535_v20 = vld [vmem:[#allocation10] ss:$0 sm:$0xff]  ;;  %s540_s23 = sshll.u32 %s928_s24, 6  ;;  %s291_s22 = scalar_lea.vmem [#allocation11], %s532_s25 }
  0x9e   : > { %548 = vmatprep.subr.bf16.mxu0 %v874_v8  ;;  %s409_s26 = sshll.u32 %s291_s22, 4  ;;  %vm393_vm2 = vcmask 519168   ;;  %s1149_s9 = scalar_lea.hbm %s1198_s5, %s540_s23  ;;  %s1151_s26 = int_to_ptr.vmem [resolvable:$true] %s409_s26 }
  0x9f   : > { %s396_s24 = scalar_lea.sflag [#allocation4], %s1125_s11  ;;  %s791_s15 = scalar_lea.vmem %s1151_s26, 64 }
  0xa0   : > { %p792_p6 = scmp.ne.s32.totalorder %s1151_s26, %s791_s15  ;;  %p1216_p5 = scmp.ne.s32.totalorder %s1208_s12, 0 }
  0xa1   : > { %549 = vmatpush3.bf16.msra.mxu0 %v646_v9  ;;  %s876_s10 = smov [#allocation11]  }
  0xa2   : > { %p793_p7 = pnand %p792_p6, %p1216_p5  ;;  %s795_s16 = sshll.u32 %s876_s10, 4  ;;  %s796_s16 = int_to_ptr.vmem [resolvable:$false] %s795_s16 }
  0xa3   : > { %s797_s17 = scalar_lea.vmem %s796_s16, 128  ;;  %p798_p4 = scmp.lt.s32.totalorder %s1151_s26, %s796_s16 }
  0xa4   : > { %p794_p9 = pneg %p793_p7  ;;  %p799_p3 = scmp.lt.s32.totalorder %s797_s17, %s791_s15 }
  0xa6   : > { %p800_p13 = por %p799_p3, %p798_p4 }
  0xa8   : > { %p801_p0 = pnand %p800_p13, %p794_p9 }
 0x12a   : > { %v299_v2 = vpop.xlane.xlu0 %298 }
 0x12b   : > { %v301_v3 = vmul.f32 0.03125, %v299_v2 }
 0x12d   : > { %v302_v4 = vsub.f32 %v293_v0, %v301_v3 }
 0x12f   : > { %v303_v5 = vmul.f32 %v302_v4, %v302_v4 }
 0x131   : > { %v304_v6 = vsel %vm296_vm0, %v303_v5, 0.0 }
 0x132   : > { %305 = vadd.xlane.f32.xlu0 %v304_v6 }
 0x1bf   : > { %v306_v10 = vpop.xlane.xlu0 %305 }
 0x1c0   : > { %v307_v11 = vmul.f32 0.03125, %v306_v10 }
 0x1c2   : > { %v308_v12 = vadd.f32 1e-05, %v307_v11 }
 0x1c4   : > { %647 = vrsqrt.f32 %v308_v12 }
 0x1ce   : > { %v648_v13 = vpop.eup %647 }
 0x1cf   : > { %v310_v15 = vmul.f32 %v648_v13, %v302_v4 }
 0x1d1   : > { %v317_v17 = vmul.f32 %v533_v14, %v310_v15 }
 0x1d3   : > { %v324_v18 = vadd.f32 %v534_v16, %v317_v17 }
 0x1d5   : > { %v325_v19 = vpack.c.bf16 %v324_v18, %v324_v18 }
 0x1d7   : > { %551 = vmatmul.mubr.msk.bf16.vlgmr.msra.gmra.mrb[0].mxu0 %vm296_vm0, %v325_v19 }
 0x2aa   : > { %v386_v21 = vpop.f32.mrb[0].mxu0 }
 0x2ab   : > { %v387_v22 = vadd.f32 %v535_v20, %v386_v21  ;;  %v552_v23 = vpop.f32.mrb[1].mxu0 }
 0x2ac   : > { %v389_v24 = vpop.f32.mrb[2].mxu0 }
 0x2ad   : > { %v392_v25 = vpack.c.bf16 %v387_v22, %v387_v22  ;;  %v553_v26 = vpop.f32.mrb[3].mxu0 }
 0x2af   : > { %394 = vst.msk [vmem:[%s291_s22] sm:$0xf] %vm393_vm2, %v392_v25 }
 0x2b0   : > { %804 = shalt.err (!%p801_p0)
}
 0x2b1   : > { %s805_s30 = scalar_lea.hbm %s1149_s9, 64  ;;  %s809_s7 = scalar_lea.hbm %s1198_s5, 128 }
 0x2b2   : > { %p806_p2 = scmp.ne.s32.totalorder %s1149_s9, %s805_s30  ;;  %p810_p11 = scmp.lt.u32.totalorder %s1149_s9, %s1198_s5 }
 0x2b3   : > { %p811_p12 = scmp.lt.u32.totalorder %s809_s7, %s805_s30  ;;  %p813_p6 = scmp.lt.u32.totalorder %s805_s30, %s1149_s9 }
 0x2b4   : > { %p807_p8 = pnand %p806_p2, %p1216_p5 }
 0x2b5   : > { %p812_p1 = por %p811_p12, %p810_p11 }
 0x2b6   : > { %p808_p10 = pneg %p807_p8 }
 0x2b7   : > { %p814_p7 = por %p813_p6, %p812_p1 }
 0x2b9   : > { %p815_p9 = pnand %p814_p7, %p808_p10 }
 0x2bb   : > { %818 = shalt.err (!%p815_p9)
}
 0x2bc   : > { %572 = dma.vmem_to_hbm [thread:$0]  (%p1216_p5), %s1151_s26, 64, %s1149_s9, %s396_s24  }
 0x2bd PF: > { %s421_s23 = sand.u32 1, %s853_s18   ;;  %p1217_p4 = scmp.ne.s32.totalorder %s1209_s13, 0 }
 0x2be   : > { %p1218_p3 = scmp.ge.s32.totalorder %s865_s21, 2  ;;  %s422_s22 = scalar_lea.sflag [#allocation4], %s421_s23 }
 0x2c0   : > { %p592_p13 = pnand %p1218_p3, %p1217_p4 }
 0x2c2   : > { %848 = dma.done.wait (!%p592_p13), %s422_s22, 64  }
 0x2c3   : > { %850 = vsyncadd (!%p592_p13), %s422_s22, 4294967232  ;;  %p20_p0 = scmp.ge.s32.totalorder %s1049_s28, 4   ;;  %s1219_s18 = smov %s857_s19 }
 0x2c4   : > { %s1220_s19 = smov %s861_s20  ;;  %s1221_s20 = smov %s1060_s8 }
 0x2c5   : > { %s1222_s21 = smov %s1049_s28  ;;  %22 = sbr.rel (!%p20_p0) target bundleno = 7 (0x7), region = 101 }
 0x2cc   :  { %427 = vsyncpa [#allocation3], 1 }
 0x2cd   :  { %429 = vsyncpa [#allocation3 + $0x1], 1 }
 0x2ce   :  { %430 = vsyncpa [#allocation6], 1 }
 0x2cf   :  { %431 = vsyncpa [#allocation9], 1 }
 0x2d0   :  { %432 = vsyncpa [#allocation4], 1 }
 0x2d1   :  { %434 = vsyncpa [#allocation4 + $0x1], 1 }

// kernel: surface_field_autoencoder_forward.26
= control target key start
LH: loop header
LB: loop body
LE: loop exit
PB: predicated region body
PF: predicated region fallthrough
CT: control target
= control target key end

     0   :  { %s2621_s0 = inlined_call_operand.hbm [shape: f32[2,8,32], index: 0, kind: input, shape index: {}]   ;;  %s2622_s1 = inlined_call_operand.hbm [shape: bf16[2,8,64], index: 1, kind: input, shape index: {}]   ;;  %s2623_s2 = inlined_call_operand.hbm [shape: f32[1,32], index: 2, kind: input, shape index: {}]   ;;  %s2624_s3 = inlined_call_operand.hbm [shape: f32[1,32], index: 3, kind: input, shape index: {}]   ;;  %s2625_s4 = inlined_call_operand.hbm [shape: bf16[32,32], index: 4, kind: input, shape index: {}]   ;;  %s2626_s5 = inlined_call_operand.hbm [shape: f32[1,32], index: 5, kind: input, shape index: {}]   ;;  %s2627_s6 = inlined_call_operand.hbm [shape: bf16[32,32], index: 6, kind: input, shape index: {}]   ;;  %s2628_s7 = inlined_call_operand.hbm [shape: f32[1,32], index: 7, kind: input, shape index: {}]   ;;  %s2629_s8 = inlined_call_operand.hbm [shape: f32[2,8,32], index: 8, kind: output, shape index: {}]  }
   0x1   :  { %2634 = sst [smem:[#allocation28_spill]] %s2621_s0 }
   0x2   :  { %2635 = sst [smem:[#allocation29_spill]] %s2623_s2 }
   0x3   :  { %2636 = sst [smem:[#allocation30_spill]] %s2624_s3 }
   0x4   :  { %2637 = sst [smem:[#allocation31_spill]] %s2625_s4 }
   0x5   :  { %2638 = sst [smem:[#allocation32_spill]] %s2626_s5 }
   0x6   :  { %2639 = sst [smem:[#allocation33_spill]] %s2627_s6 }
   0x7   :  { %13 = vsyncpa [#allocation7], 0 }
   0x8   :  { %15 = vsyncpa [#allocation7 + $0x1], 0 }
   0x9   :  { %16 = vsyncpa [#allocation10], 0 }
   0xa   :  { %18 = vsyncpa [#allocation10 + $0x1], 0 }
   0xb   :  { %19 = vsyncpa [#allocation13], 0 }
   0xc   :  { %20 = vsyncpa [#allocation16], 0 }
   0xd   :  { %21 = vsyncpa [#allocation19], 0 }
   0xe   :  { %22 = vsyncpa [#allocation8], 0 }
   0xf   :  { %24 = vsyncpa [#allocation8 + $0x1], 0  ;;  %s2081_s27 = smov 0   ;;  %s2083_s28 = smov 0  }
  0x10   :  { %s2085_s29 = smov 0   ;;  %s2087_s30 = smov 0  }
  0x11   :  { %s2089_s9 = smov 0   ;;  %s2091_s10 = smov 0  }
  0x12 LB: > { %s2112_s11 = sadd.s32 4294967295, %s2006_s10   ;;  %p1366_p0 = scmp.ge.s32.totalorder %s2006_s10, 1  ;;  %s2006_s10 = sphi %s2091_s10, %s30_s10   ;;  %s2002_s9 = sphi %s2089_s9, %s2673_s9   ;;  %s1998_s30 = sphi %s2087_s30, %s2672_s30   ;;  %s1994_s29 = sphi %s2085_s29, %s2671_s29   ;;  %s1990_s28 = sphi %s2083_s28, %s2670_s28   ;;  %s1986_s27 = sphi %s2081_s27, %s2669_s27  }
  0x13   : > { %p2630_p1 = scmp.eq.s32.totalorder %s2112_s11, 0  ;;  %p264_p2 = scmp.lt.s32.totalorder %s2006_s10, 3 }
  0x14   : > { %s2008_s13 = smov [#allocation11]   ;;  %s2009_s15 = smov [#allocation12]  }
  0x15   : > { %p2117_p3 = pnand %p1366_p0, %p264_p2  ;;  %s277_s14 = sshll.u32 %s2008_s13, 4  ;;  %s278_s14 = int_to_ptr.vmem [resolvable:$true] %s277_s14 }
  0x16   : > { %s288_s16 = sshll.u32 %s2009_s15, 4  ;;  %s2010_s18 = smov [#allocation15]   ;;  %s2130_s16 = int_to_ptr.vmem [resolvable:$true] %s288_s16 }
  0x17   : > { %s2640_s12 = scalar_select %p2117_p3, 1, 0 }
  0x18   : > { %p1528_p5 = pneg %p2117_p3  ;;  %s312_s19 = sshll.u32 %s2010_s18, 4  ;;  %s2132_s19 = int_to_ptr.vmem [resolvable:$true] %s312_s19 }
  0x19   : > { %s2642_s2 = sld [smem:[#allocation29_spill]] }
  0x1a   : > { %p2126_p6 = pnand %p1528_p5, %p2630_p1 }
  0x1c   : > { %p2142_p8 = pneg %p2126_p6 }
  0x1f   : > { %s1676_s22 = scalar_lea.hbm %s2642_s2, 16 }
  0x20   : > { %p1677_p7 = scmp.ne.s32.totalorder %s2642_s2, %s1676_s22  ;;  %p1683_p11 = scmp.lt.u32.totalorder %s1676_s22, %s2642_s2 }
  0x22   : > { %p1679_p9 = pnand %p2142_p8, %p1677_p7 }
  0x24   : > { %p1680_p10 = pneg %p1679_p9 }
  0x26   : > { %p1685_p12 = pnand %p1683_p11, %p1680_p10 }
  0x28   : > { %1688 = shalt.err (!%p1685_p12)
}
  0x29   : > { %s1689_s15 = scalar_lea.vmem %s278_s14, 16  ;;  %s1696_s18 = scalar_lea.vmem %s278_s14, 32 }
  0x2a   : > { %p1690_p13 = scmp.ne.s32.totalorder %s278_s14, %s1689_s15  ;;  %p1697_p5 = scmp.lt.s32.totalorder %s278_s14, %s278_s14 }
  0x2b   : > { %p1698_p4 = scmp.lt.s32.totalorder %s1696_s18, %s1689_s15 }
  0x2c   : > { %p1692_p0 = pnand %p1690_p13, %p2142_p8 }
  0x2d   : > { %p1699_p1 = por %p1698_p4, %p1697_p5 }
  0x2e   : > { %p1693_p2 = pneg %p1692_p0 }
  0x30   : > { %p1700_p3 = pnand %p1699_p1, %p1693_p2 }
  0x32   : > { %1703 = shalt.err (!%p1700_p3)
}
  0x33   : > { %1531 = dma.hbm_to_vmem [thread:$0]  (!%p2126_p6), %s2642_s2, 16, %s278_s14, [#allocation10]  }
  0x34   : > { %s2644_s3 = sld [smem:[#allocation30_spill]] }
  0x3a   : > { %s1704_s24 = scalar_lea.hbm %s2644_s3, 16 }
  0x3b   : > { %p1705_p7 = scmp.ne.s32.totalorder %s2644_s3, %s1704_s24  ;;  %p1711_p1 = scmp.lt.u32.totalorder %s1704_s24, %s2644_s3 }
  0x3d   : > { %p1707_p9 = pnand %p1705_p7, %p2142_p8 }
  0x3f   : > { %p1708_p4 = pneg %p1707_p9 }
  0x41   : > { %p1713_p3 = pnand %p1711_p1, %p1708_p4 }
  0x43   : > { %1716 = shalt.err (!%p1713_p3)
}
  0x44   : > { %s1717_s14 = scalar_lea.vmem %s2130_s16, 16  ;;  %s1724_s20 = scalar_lea.vmem %s2130_s16, 32 }
  0x45   : > { %p1718_p10 = scmp.ne.s32.totalorder %s2130_s16, %s1717_s14  ;;  %p1725_p13 = scmp.lt.s32.totalorder %s2130_s16, %s2130_s16 }
  0x46   : > { %p1726_p0 = scmp.lt.s32.totalorder %s1724_s20, %s1717_s14 }
  0x47   : > { %p1720_p11 = pnand %p1718_p10, %p2142_p8 }
  0x48   : > { %p1727_p2 = por %p1726_p0, %p1725_p13 }
  0x49   : > { %p1721_p12 = pneg %p1720_p11 }
  0x4b   : > { %p1728_p5 = pnand %p1727_p2, %p1721_p12 }
  0x4d   : > { %1731 = shalt.err (!%p1728_p5)
}
  0x4e   : > { %1534 = dma.hbm_to_vmem [thread:$0]  (!%p2126_p6), %s2644_s3, 16, %s2130_s16, [#allocation13]  }
  0x4f   : > { %s2645_s5 = sld [smem:[#allocation32_spill]] }
  0x55   : > { %s1732_s26 = scalar_lea.hbm %s2645_s5, 16 }
  0x56   : > { %p1733_p7 = scmp.ne.s32.totalorder %s2645_s5, %s1732_s26  ;;  %p1739_p1 = scmp.lt.u32.totalorder %s1732_s26, %s2645_s5 }
  0x58   : > { %p1735_p9 = pnand %p1733_p7, %p2142_p8 }
  0x5a   : > { %p1736_p4 = pneg %p1735_p9 }
  0x5c   : > { %p1741_p3 = pnand %p1739_p1, %p1736_p4 }
  0x5e   : > { %1744 = shalt.err (!%p1741_p3)
}
  0x5f   : > { %s1745_s16 = scalar_lea.vmem %s2132_s19, 16  ;;  %s1752_s20 = scalar_lea.vmem %s2132_s19, 32 }
  0x60   : > { %p1746_p10 = scmp.ne.s32.totalorder %s2132_s19, %s1745_s16  ;;  %p1753_p13 = scmp.lt.s32.totalorder %s2132_s19, %s2132_s19 }
  0x61   : > { %p1754_p0 = scmp.lt.s32.totalorder %s1752_s20, %s1745_s16 }
  0x62   : > { %p1748_p11 = pnand %p1746_p10, %p2142_p8 }
  0x63   : > { %p1755_p2 = por %p1754_p0, %p1753_p13 }
  0x64   : > { %p1749_p12 = pneg %p1748_p11 }
  0x66   : > { %p1756_p5 = pnand %p1755_p2, %p1749_p12 }
  0x68   : > { %1759 = shalt.err (!%p1756_p5)
}
  0x69   : > { %1540 = dma.hbm_to_vmem [thread:$0]  (!%p2126_p6), %s2645_s5, 16, %s2132_s19, [#allocation16]  }
  0x6a   : > { %s2011_s23 = smov [#allocation14]   ;;  %s2646_s4 = sld [smem:[#allocation31_spill]] }
  0x6b   : > { %s298_s24 = sshll.u32 %s2011_s23, 4  ;;  %s299_s24 = int_to_ptr.vmem [resolvable:$true] %s298_s24 }
  0x70   : > { %s1760_s15 = scalar_lea.hbm %s2646_s4, 256 }
  0x71   : > { %p1761_p7 = scmp.ne.s32.totalorder %s2646_s4, %s1760_s15  ;;  %p1767_p1 = scmp.lt.u32.totalorder %s1760_s15, %s2646_s4 }
  0x73   : > { %p1763_p9 = pnand %p1761_p7, %p2142_p8 }
  0x75   : > { %p1764_p4 = pneg %p1763_p9 }
  0x77   : > { %p1769_p3 = pnand %p1767_p1, %p1764_p4 }
  0x79   : > { %1772 = shalt.err (!%p1769_p3)
}
  0x7a   : > { %s1773_s19 = scalar_lea.vmem %s299_s24, 256  ;;  %p1781_p13 = scmp.lt.s32.totalorder %s299_s24, %s299_s24 }
  0x7b   : > { %p1774_p10 = scmp.ne.s32.totalorder %s299_s24, %s1773_s19  ;;  %p1782_p0 = scmp.lt.s32.totalorder %s1773_s19, %s1773_s19 }
  0x7d   : > { %p1776_p11 = pnand %p1774_p10, %p2142_p8  ;;  %p1783_p2 = por %p1782_p0, %p1781_p13 }
  0x7f   : > { %p1777_p12 = pneg %p1776_p11 }
  0x81   : > { %p1784_p5 = pnand %p1783_p2, %p1777_p12 }
  0x83   : > { %1787 = shalt.err (!%p1784_p5)
}
  0x84   : > { %s2012_s21 = smov 64   ;;  %s2013_s22 = smov 4  }
  0x85   : > { %1537 = dma.hbm_to_vmem [thread:$0]  (!%p2126_p6), %s2646_s4, 256, %s299_s24, [#allocation13], %s2012_s21, %s2012_s21, %s2013_s22  }
  0x86   : > { %s2014_s13 = smov [#allocation17]   ;;  %s2015_s18 = smov [#allocation18]  }
  0x87   : > { %s322_s15 = sshll.u32 %s2014_s13, 4  ;;  %s336_s14 = sshll.u32 %s2015_s18, 4  ;;  %s323_s15 = int_to_ptr.vmem [resolvable:$true] %s322_s15  ;;  %s2224_s14 = int_to_ptr.vmem [resolvable:$true] %s336_s14 }
  0x88   : > { %s2647_s6 = sld [smem:[#allocation33_spill]] }
  0x8e   : > { %s1788_s19 = scalar_lea.hbm %s2647_s6, 256 }
  0x8f   : > { %p1789_p7 = scmp.ne.s32.totalorder %s2647_s6, %s1788_s19  ;;  %p1795_p1 = scmp.lt.u32.totalorder %s1788_s19, %s2647_s6 }
  0x91   : > { %p1791_p9 = pnand %p1789_p7, %p2142_p8 }
  0x93   : > { %p1792_p4 = pneg %p1791_p9 }
  0x95   : > { %p1797_p3 = pnand %p1795_p1, %p1792_p4 }
  0x97   : > { %1800 = shalt.err (!%p1797_p3)
}
  0x98   : > { %s1801_s26 = scalar_lea.vmem %s323_s15, 256  ;;  %p1809_p13 = scmp.lt.s32.totalorder %s323_s15, %s323_s15 }
  0x99   : > { %p1802_p10 = scmp.ne.s32.totalorder %s323_s15, %s1801_s26  ;;  %p1810_p0 = scmp.lt.s32.totalorder %s1801_s26, %s1801_s26 }
  0x9b   : > { %p1804_p11 = pnand %p1802_p10, %p2142_p8  ;;  %p1811_p2 = por %p1810_p0, %p1809_p13 }
  0x9d   : > { %p1805_p12 = pneg %p1804_p11 }
  0x9f   : > { %p1812_p5 = pnand %p1811_p2, %p1805_p12 }
  0xa1   : > { %1815 = shalt.err (!%p1812_p5)
}
  0xa2   : > { %1543 = dma.hbm_to_vmem [thread:$0]  (!%p2126_p6), %s2647_s6, 256, %s323_s15, [#allocation16], %s2012_s21, %s2012_s21, %s2013_s22  }
  0xa3   : > { %s1816_s16 = scalar_lea.hbm %s2628_s7, 16 }
  0xa4   : > { %p1817_p7 = scmp.ne.s32.totalorder %s2628_s7, %s1816_s16  ;;  %p1823_p1 = scmp.lt.u32.totalorder %s1816_s16, %s2628_s7 }
  0xa6   : > { %p1819_p9 = pnand %p1817_p7, %p2142_p8 }
  0xa8   : > { %p1820_p4 = pneg %p1819_p9 }
  0xaa   : > { %p1825_p3 = pnand %p1823_p1, %p1820_p4 }
  0xac   : > { %1828 = shalt.err (!%p1825_p3)
}
  0xad   : > { %s1829_s21 = scalar_lea.vmem %s2224_s14, 16  ;;  %s1836_s22 = scalar_lea.vmem %s2224_s14, 32 }
  0xae   : > { %p1830_p10 = scmp.ne.s32.totalorder %s2224_s14, %s1829_s21  ;;  %p1837_p13 = scmp.lt.s32.totalorder %s2224_s14, %s2224_s14 }
  0xaf   : > { %p1838_p0 = scmp.lt.s32.totalorder %s1836_s22, %s1829_s21 }
  0xb0   : > { %p1832_p11 = pnand %p1830_p10, %p2142_p8 }
  0xb1   : > { %p1839_p2 = por %p1838_p0, %p1837_p13 }
  0xb2   : > { %p1833_p12 = pneg %p1832_p11 }
  0xb4   : > { %p1840_p5 = pnand %p1839_p2, %p1833_p12 }
  0xb6   : > { %1843 = shalt.err (!%p1840_p5)
}
  0xb7   : > { %1546 = dma.hbm_to_vmem [thread:$0]  (!%p2126_p6), %s2628_s7, 16, %s2224_s14, [#allocation19]  }
  0xb8   : > { %s1365_s25 = sadd.s32 4294967294, %s2006_s10   ;;  %s49_s2 = sadd.s32 1, %s2002_s9 }
  0xb9   : > { %p51_p8 = scmp.ge.s32.totalorder %s49_s2, 2  ;;  %s58_s17 = sadd.s32 1, %s1994_s29 }
  0xba   : > { %p65_p7 = scmp.ne.s32.totalorder %s1994_s29, %s1990_s28  ;;  %p66_p9 = scmp.eq.s32.totalorder %s2006_s10, 0 }
  0xbb   : > { %s2675_s2 = smov (%p51_p8, %s49_s2), 0  ;;  %p71_p1 = scmp.ne.s32.totalorder %s1990_s28, %s1986_s27 }
  0xbc   : > { %p2276_p4 = por %p66_p9, %p65_p7  ;;  %s53_s14 = ssub.s32 %s2002_s9, %s2675_s2 }
  0xbd   : > { %p251_p6 = scmp.eq.s32.totalorder %s2112_s11, 1  ;;  %p56_p3 = scmp.eq.s32.totalorder %s53_s14, 0 }
  0xbe   : > { %p2649_p10 = scmp.eq.s32.totalorder %s2112_s11, 0  ;;  %p257_p13 = scmp.eq.s32.totalorder %s1365_s25, 1 }
  0xbf   : > { %p2291_p12 = por %p251_p6, %p65_p7  ;;  %p1564_p2 = scmp.lt.s32.totalorder %s2006_s10, 2 }
  0xc0   : > { %p2287_p11 = por %p2649_p10, %p71_p1  ;;  %p2298_p0 = por %p257_p13, %p71_p1 }
  0xc1   : > { %s2651_s18 = scalar_select %p2291_p12, 1, 0 }
  0xc2   : > { %s2650_s13 = scalar_select %p2287_p11, 1, 0 }
  0xc3   : > { %s2296_s16 = scalar_select %p56_p3, %s1994_s29, %s58_s17  }
  0xc4   : > { %s2652_s20 = scalar_select %p2298_p0, 1, 0 }
  0xc5   : > { %s2304_s19 = sand.u32 1, %s1994_s29   ;;  %s1375_s23 = sshll.u32 %s2002_s9, 7 }
  0xc6   : > { %s1374_s24 = sshll.u32 %s2304_s19, 3  ;;  %s2653_s0 = sld [smem:[#allocation28_spill]] }
  0xc7   : > { %s351_s26 = scalar_lea.vmem [#allocation6], %s1374_s24  ;;  %p2315_p5 = pnand %p1564_p2, %p2276_p4 }
  0xc8   : > { %s359_s25 = sshll.u32 %s351_s26, 4  ;;  %s348_s4 = scalar_lea.sflag [#allocation7], %s2304_s19  ;;  %s2319_s25 = int_to_ptr.vmem [resolvable:$true] %s359_s25 }
  0xc9   : > { %p1846_p7 = pneg %p2315_p5 }
  0xcc   : > { %s2311_s15 = scalar_lea.hbm %s2653_s0, %s1375_s23  ;;  %s1849_s24 = scalar_lea.hbm %s2653_s0, 256 }
  0xcd   : > { %s1844_s21 = scalar_lea.hbm %s2311_s15, 128  ;;  %p1850_p4 = scmp.lt.u32.totalorder %s2311_s15, %s2653_s0 }
  0xce   : > { %p1845_p8 = scmp.ne.s32.totalorder %s2311_s15, %s1844_s21  ;;  %p1851_p6 = scmp.lt.u32.totalorder %s1849_s24, %s1844_s21 }
  0xcf   : > { %p1853_p10 = scmp.lt.u32.totalorder %s1844_s21, %s2311_s15 }
  0xd0   : > { %p1847_p9 = pnand %p1846_p7, %p1845_p8  ;;  %p1852_p3 = por %p1851_p6, %p1850_p4 }
  0xd2   : > { %p1848_p1 = pneg %p1847_p9  ;;  %p1854_p13 = por %p1853_p10, %p1852_p3 }
  0xd4   : > { %p1855_p2 = pnand %p1854_p13, %p1848_p1 }
  0xd6   : > { %1858 = shalt.err (!%p1855_p2)
}
  0xd7   : > { %s1859_s14 = scalar_lea.vmem %s2319_s25, 128  ;;  %s2016_s23 = smov [#allocation6]  }
  0xd8   : > { %p1860_p8 = scmp.ne.s32.totalorder %s2319_s25, %s1859_s14  ;;  %s1864_s3 = sshll.u32 %s2016_s23, 4  ;;  %s1865_s3 = int_to_ptr.vmem [resolvable:$false] %s1864_s3 }
  0xd9   : > { %s1866_s22 = scalar_lea.vmem %s1865_s3, 256  ;;  %p1867_p12 = scmp.lt.s32.totalorder %s2319_s25, %s1865_s3 }
  0xda   : > { %p1862_p9 = pnand %p1860_p8, %p1846_p7  ;;  %p1868_p4 = scmp.lt.s32.totalorder %s1866_s22, %s1859_s14 }
  0xdc   : > { %p1863_p0 = pneg %p1862_p9  ;;  %p1869_p6 = por %p1868_p4, %p1867_p12 }
  0xde   : > { %p1870_p3 = pnand %p1869_p6, %p1863_p0 }
  0xe0   : > { %1873 = shalt.err (!%p1870_p3)
}
  0xe1   : > { %1550 = dma.hbm_to_vmem [thread:$0]  (!%p2315_p5), %s2311_s15, 128, %s2319_s25, %s348_s4  }
  0xe2   : > { %s1376_s21 = sshll.u32 %s2304_s19, 2  ;;  %s1377_s24 = sshll.u32 %s2002_s9, 6 }
  0xe3   : > { %s2353_s0 = scalar_lea.hbm %s2622_s1, %s1377_s24  ;;  %s370_s14 = scalar_lea.vmem [#allocation9], %s1376_s21 }
  0xe4   : > { %s378_s3 = sshll.u32 %s370_s14, 4  ;;  %s2655_s22 = sand.u32 1, %s2006_s10   ;;  %s379_s3 = int_to_ptr.vmem [resolvable:$true] %s378_s3 }
  0xe5   : > { %s367_s5 = scalar_lea.sflag [#allocation10], %s2655_s22  ;;  %s1874_s6 = scalar_lea.hbm %s2353_s0, 64 }
  0xe6   : > { %p1875_p12 = scmp.ne.s32.totalorder %s2353_s0, %s1874_s6  ;;  %s1879_s15 = scalar_lea.hbm %s2622_s1, 128 }
  0xe7   : > { %p1880_p10 = scmp.lt.u32.totalorder %s2353_s0, %s2622_s1  ;;  %p1881_p13 = scmp.lt.u32.totalorder %s1879_s15, %s1874_s6 }
  0xe8   : > { %p1877_p0 = pnand %p1875_p12, %p1846_p7  ;;  %p1883_p8 = scmp.lt.u32.totalorder %s1874_s6, %s2353_s0 }
  0xe9   : > { %p1882_p2 = por %p1881_p13, %p1880_p10 }
  0xea   : > { %p1878_p1 = pneg %p1877_p0 }
  0xeb   : > { %p1884_p9 = por %p1883_p8, %p1882_p2 }
  0xed   : > { %p1885_p4 = pnand %p1884_p9, %p1878_p1 }
  0xef   : > { %1888 = shalt.err (!%p1885_p4)
}
  0xf0   : > { %s1889_s21 = scalar_lea.vmem %s379_s3, 64  ;;  %s2017_s26 = smov [#allocation9]  }
  0xf1   : > { %p1890_p6 = scmp.ne.s32.totalorder %s379_s3, %s1889_s21  ;;  %s1894_s23 = sshll.u32 %s2017_s26, 4  ;;  %s1895_s23 = int_to_ptr.vmem [resolvable:$false] %s1894_s23 }
  0xf2   : > { %s1896_s14 = scalar_lea.vmem %s1895_s23, 128  ;;  %p1897_p0 = scmp.lt.s32.totalorder %s379_s3, %s1895_s23 }
  0xf3   : > { %p1892_p3 = pnand %p1890_p6, %p1846_p7  ;;  %p1898_p11 = scmp.lt.s32.totalorder %s1896_s14, %s1889_s21 }
  0xf5   : > { %p1893_p12 = pneg %p1892_p3  ;;  %p1899_p10 = por %p1898_p11, %p1897_p0 }
  0xf7   : > { %p1900_p13 = pnand %p1899_p10, %p1893_p12 }
  0xf9   : > { %1903 = shalt.err (!%p1900_p13)
}
  0xfa   : > { %1553 = dma.hbm_to_vmem [thread:$0]  (!%p2315_p5), %s2353_s0, 64, %s379_s3, %s367_s5  }
  0xfb   : > { %p2656_p1 = scmp.ne.s32.totalorder %s2640_s12, 0 }
  0xfc   : > { %s2379_s6 = sand.u32 (!%p2656_p1), 1, %s1990_s28   ;;  %p2657_p11 = scmp.ne.s32.totalorder (!%p2656_p1), %s2650_s13, 0 }
  0xfd   : > { %387 = sbr.rel (%p2656_p1) target bundleno = 2033 (0x7f1), region = 52  ;;  %s1379_s22 = sshll.u32 (!%p2656_p1), %s2379_s6, 3 }
  0xfe   : > { %s390_s4 = scalar_lea.sflag (!%p2656_p1), [#allocation7], %s2379_s6  ;;  %s393_s19 = scalar_lea.vmem (!%p2656_p1), [#allocation6], %s1379_s22 }
 0x104   : > { %1957 = dma.done.wait (%p2657_p11), %s390_s4, 128  }
 0x105   : > { %1959 = vsyncadd (%p2657_p11), %s390_s4, 4294967168  ;;  %s398_s0 = sand.u32 1, %s2112_s11   ;;  %s1380_s5 = sshll.u32 %s2379_s6, 2 }
 0x106   : > { %s399_s12 = scalar_lea.sflag [#allocation10], %s398_s0  ;;  %s2391_s17 = scalar_lea.vmem [#allocation9], %s1380_s5 }
 0x107   : > { %1961 = dma.done.wait (%p2657_p11), %s399_s12, 64  }
 0x108   : > { %1963 = vsyncadd (%p2657_p11), %s399_s12, 4294967232  ;;  %p2658_p5 = scmp.eq.s32.totalorder %s2112_s11, 0 }
 0x10a   : > { %1965 = dma.done.wait (%p2658_p5), [#allocation10], 16   ;;  %p2659_p7 = pmov %p2658_p5 }
 0x10b   : > { %p2660_p2 = pmov %p2658_p5 }
 0x10c   : > { %1967 = vsyncadd (%p2659_p7), [#allocation10], 4294967280 }
 0x10d   : > { %1969 = dma.done.wait (%p2660_p2), [#allocation13], 272   ;;  %p2661_p8 = pmov %p2660_p2 }
 0x10e   : > { %p2662_p9 = pmov %p2660_p2 }
 0x10f   : > { %1971 = vsyncadd (%p2661_p8), [#allocation13], 4294967024 }
 0x110   : > { %1973 = dma.done.wait (%p2662_p9), [#allocation16], 272   ;;  %p2663_p4 = pmov %p2660_p2 }
 0x111   : > { %p2664_p6 = pmov %p2660_p2 }
 0x112   : > { %1975 = vsyncadd (%p2663_p4), [#allocation16], 4294967024 }
 0x113   : > { %1977 = dma.done.wait (%p2664_p6), [#allocation19], 16   ;;  %p2665_p3 = pmov %p2660_p2 }
 0x114   : > { %vm472_vm0 = vcmask 261120   ;;  %v2413_v0 = vld [vmem:[%s393_s19] sm:$0xff]  ;;  %v2018_v8 = vmov 0.0   ;;  %vm2019_vm1 = vmmov 0   ;;  %v1388_v14 = vld [vmem:[#allocation11] ss:$0 sm:$0xff] }
 0x115   : > { %1979 = vsyncadd (%p2665_p3), [#allocation19], 4294967280  ;;  %v473_v1 = vsel %vm472_vm0, %v2413_v0, 0.0  ;;  %v1650_v7 = vld [vmem:[#allocation14] sm:$0xff]   ;;  %1434 = vmatprep.subr.bf16.mxu0 %v2018_v8  ;;  %572 = vst.msk [vmem:[#allocation4] sm:$0xff] %vm472_vm0, %v2018_v8  ;;  %1438 = vmatprep.mubr.msk.bf16.mxu0 %vm2019_vm1, %v2018_v8  ;;  %v1651_v9 = vld [vmem:[#allocation14 + $0x8] sm:$0xff]  }
 0x116   : > { %474 = vadd.xlane.f32.xlu0 %v473_v1  ;;  %573 = vst.msk [vmem:[#allocation5] sm:$0xff] %vm472_vm0, %v2018_v8  ;;  %1435 = vmatpush3.bf16.msra.mxu0 %v1650_v7  ;;  %v1389_v16 = vld [vmem:[#allocation12] ss:$0 sm:$0xff]  ;;  %v574_v20 = vld [vmem:[%s2391_s17] sm:$0xf]  ;;  %vm576_vm2 = vcmask 64512  }
 0x117   : > { %1442 = vmatprep.subr.bf16.mxu1 %v2018_v8  ;;  %1436 = vmatprep.subr.bf16.mxu0 %v2018_v8  ;;  %v581_v21 = vsel %vm576_vm2, %v574_v20, 0  ;;  %v2436_v22 = vcombine.low %v574_v20, %v574_v20  ;;  %s2020_s11 = smov 120   ;;  %s2021_s13 = smov 112   ;;  %v1390_v23 = vld [vmem:[#allocation15] ss:$0 sm:$0xff]  ;;  %vm569_vm3 = vcmask 257024  }
 0x118   : > { %1444 = vmatprep.mubr.msk.bf16.mxu1 %vm2019_vm1, %v2018_v8  ;;  %1443 = vmatpush3.bf16.xpose.msra.mxu1 %v581_v21  ;;  %s2022_s3 = smov 104   ;;  %v2023_v47 = vmov -inf   ;;  %v2024_v48 = vmov 0   ;;  %vm775_vm4 = vcmask 130112   ;;  %s2027_s15 = smov 96   ;;  %vm908_vm5 = vcmask 195712  }
 0x119   : > { %710 = vrot.lane.b32.xlu1 %v2436_v22, %s2020_s11  ;;  %1454 = vmatprep.subr.bf16.mxu1 %v2018_v8  ;;  %571 = vst.msk [vmem:[#allocation3] sm:$0xff] %vm472_vm0, %v2023_v47  ;;  %s2029_s25 = smov 88   ;;  %vm1041_vm6 = vcmask 261312   ;;  %s2030_s24 = smov 80   ;;  %vm659_vm7 = vcmask 1043456  }
 0x11a   : > { %1437 = vmatpush3.bf16.msra.mxu0 %v1651_v9  ;;  %1645 = vset.pattern.permute.xlu0 %v2024_v48  ;;  %s2031_s21 = smov 72   ;;  %s2032_s26 = smov 8  }
 0x11b   : > { %1448 = vmatprep.subr.bf16.mxu0 %v2018_v8  ;;  %s2033_s23 = smov 16   ;;  %s2034_s14 = smov 24  }
 0x11c   : > { %s1409_s4 = sshll.u32 %s1998_s30, 7  ;;  %s463_s19 = scalar_lea.vmem [#allocation20], %s1379_s22 }
 0x11d   : > { %s1200_s0 = sshll.u32 %s463_s19, 4  ;;  %s2571_s17 = scalar_lea.hbm %s2629_s8, %s1409_s4  ;;  %s2573_s0 = int_to_ptr.vmem [resolvable:$true] %s1200_s0 }
 0x11e   : > { %s1186_s30 = scalar_lea.sflag [#allocation8], %s2379_s6  ;;  %s1904_s22 = scalar_lea.vmem %s2573_s0, 128 }
 0x11f   : > { %p1905_p12 = scmp.ne.s32.totalorder %s2573_s0, %s1904_s22  ;;  %p2666_p0 = scmp.ne.s32.totalorder %s2651_s18, 0 }
 0x121   : > { %p1906_p10 = pnand %p1905_p12, %p2666_p0 }
 0x123   : > { %p1907_p13 = pneg %p1906_p10 }
 0x18b   : > { %v711_v30 = vpop.permute.xlu1 %710 }
 0x18c   : > { %v716_v31 = vsel %vm576_vm2, %v711_v30, 0 }
 0x1a3   : > { %v475_v2 = vpop.xlane.xlu0 %474 }
 0x1a4   : > { %v477_v3 = vmul.f32 0.03125, %v475_v2 }
 0x1a6   : > { %v478_v4 = vsub.f32 %v2413_v0, %v477_v3 }
 0x1a8   : > { %v479_v5 = vmul.f32 %v478_v4, %v478_v4 }
 0x1aa   : > { %v480_v6 = vsel %vm472_vm0, %v479_v5, 0.0  ;;  %v2474_v5 = vld [vmem:[#allocation3] sm:$0xff] }
 0x1ab   : > { %481 = vadd.xlane.f32.xlu0 %v480_v6 }
 0x1c1   : > { %843 = vrot.lane.b32.xlu0 %v2436_v22, %s2021_s13 }
 0x238   : > { %v482_v10 = vpop.xlane.xlu0 %481 }
 0x239   : > { %v483_v11 = vmul.f32 0.03125, %v482_v10  ;;  %v2026_v10 = vmov 24  }
 0x23b   : > { %v484_v12 = vadd.f32 1e-05, %v483_v11 }
 0x23c   : > { %v844_v34 = vpop.permute.xlu0 %843 }
 0x23d   : > { %1656 = vrsqrt.f32 %v484_v12  ;;  %v849_v35 = vsel %vm576_vm2, %v844_v34, 0 }
 0x247   : > { %v1657_v13 = vpop.eup %1656 }
 0x248   : > { %v486_v15 = vmul.f32 %v1657_v13, %v478_v4  ;;  %v2025_v4 = vmov 8  }
 0x249   : > { %1646 = vset.pattern.permute.xlu1 %v2025_v4 }
 0x24a   : > { %v493_v17 = vmul.f32 %v1388_v14, %v486_v15  ;;  %v2028_v15 = vmov 16  }
 0x24c   : > { %v500_v18 = vadd.f32 %v1389_v16, %v493_v17 }
 0x24e   : > { %v501_v19 = vpack.c.bf16 %v500_v18, %v500_v18 }
 0x250   : > { %1439 = vmatmul.mubr.msk.bf16.vlgmr.msra.gmra.mrb[0].mxu0 %vm472_vm0, %v501_v19 }
 0x251   : > { %1450 = vmatprep.mubr.msk.bf16.mxu0 %vm2019_vm1, %v2018_v8 }
 0x323   : > { %v562_v24 = vpop.f32.mrb[0].mxu0 }
 0x324   : > { %v563_v25 = vadd.f32 %v1390_v23, %v562_v24  ;;  %v1440_v26 = vpop.f32.mrb[1].mxu0 }
 0x325   : > { %v565_v27 = vpop.f32.mrb[2].mxu0 }
 0x326   : > { %v568_v28 = vpack.c.bf16 %v563_v25, %v563_v25  ;;  %v1441_v29 = vpop.f32.mrb[3].mxu0 }
 0x328   : > { %570 = vst.msk [vmem:[#allocation2] sm:$0xf] %vm569_vm3, %v568_v28 }
 0x32f   : > { %v575_v32 = vld [vmem:[#allocation2] sm:$0xf] }
 0x330   : > { %1445 = vmatmul.mubr.msk.bf16.vlgmr.msra.gmra.mrb[0].mxu1 %vm576_vm2, %v575_v32  ;;  %v1397_v33 = vcombine.low %v575_v32, %v575_v32 }
 0x331   : > { %1455 = vmatpush3.bf16.xpose.msra.mxu1 %v716_v31  ;;  %1456 = vmatprep.mubr.msk.bf16.mxu1 %vm2019_vm1, %v2018_v8 }
 0x332   : > { %708 = vrot.lane.b32.xlu1 %v1397_v33, %s2020_s11  ;;  %1466 = vmatprep.subr.bf16.mxu1 %v2018_v8  ;;  %s2035_s11 = smov [#allocation20]  }
 0x336   : > { %841 = vrot.lane.b32.xlu1 %v1397_v33, %s2021_s13  ;;  %s1908_s13 = sshll.u32 %s2035_s11, 4  ;;  %s1909_s13 = int_to_ptr.vmem [resolvable:$false] %s1908_s13 }
 0x337   : > { %p1911_p1 = scmp.lt.s32.totalorder %s2573_s0, %s1909_s13 }
 0x33a   : > { %976 = vrot.lane.b32.xlu1 %v2436_v22, %s2022_s3 }
 0x33e   : > { %974 = vrot.lane.b32.xlu1 %v1397_v33, %s2022_s3  ;;  %s1910_s3 = scalar_lea.vmem %s1909_s13, 256 }
 0x33f   : > { %p1912_p11 = scmp.lt.s32.totalorder %s1910_s3, %s1904_s22 }
 0x341   : > { %p1913_p5 = por %p1912_p11, %p1911_p1 }
 0x343   : > { %p1914_p7 = pnand %p1913_p5, %p1907_p13 }
 0x3a4   : > { %v709_v36 = vpop.permute.xlu1 %708 }
 0x3a5   : > { %1457 = vmatmul.mubr.msk.bf16.vlgmr.msra.gmra.mrb[4].mxu1 %vm576_vm2, %v709_v36 }
 0x3a6   : > { %1467 = vmatpush3.bf16.xpose.msra.mxu1 %v849_v35  ;;  %1468 = vmatprep.mubr.msk.bf16.mxu1 %vm2019_vm1, %v2018_v8 }
 0x3a7   : > { %1478 = vmatprep.subr.bf16.mxu1 %v2018_v8 }
 0x3a8   : > { %v842_v37 = vpop.permute.xlu1 %841 }
 0x3ac   : > { %v977_v38 = vpop.permute.xlu1 %976 }
 0x3ad   : > { %v982_v39 = vsel %vm576_vm2, %v977_v38, 0  ;;  %1469 = vmatmul.mubr.msk.bf16.vlgmr.msra.gmra.mrb[8].mxu1 %vm576_vm2, %v842_v37 }
 0x3ae   : > { %1479 = vmatpush3.bf16.xpose.msra.mxu1 %v982_v39  ;;  %1480 = vmatprep.mubr.msk.bf16.mxu1 %vm2019_vm1, %v2018_v8 }
 0x3af   : > { %1490 = vmatprep.subr.bf16.mxu1 %v2018_v8 }
 0x3b0   : > { %v975_v40 = vpop.permute.xlu1 %974 }
 0x3b5   : > { %1481 = vmatmul.mubr.msk.bf16.vlgmr.msra.gmra.mrb[12].mxu1 %vm576_vm2, %v975_v40 }
 0x3b6   : > { %1494 = vmatprep.mubr.msk.bf16.mxu1 %vm2019_vm1, %v2018_v8 }
 0x403   : > { %v617_v41 = vpop.f32.mrb[0].mxu1 }
 0x404   : > { %v623_v42 = vmul.f32 0.35355338, %v617_v41  ;;  %v1446_v43 = vpop.f32.mrb[1].mxu1 }
 0x405   : > { %v620_v44 = vpop.f32.mrb[2].mxu1 }
 0x406   : > { %v1447_v45 = vpop.f32.mrb[3].mxu1  ;;  %v625_v46 = vsel %vm576_vm2, %v623_v42, -inf }
 0x407   : > { %626 = vmax.xlane.f32.xlu1 %v625_v46 }
 0x478   : > { %v752_v49 = vpop.f32.mrb[4].mxu1 }
 0x479   : > { %v2462_v50 = vmul.f32 0.35355338, %v752_v49  ;;  %v1458_v51 = vpop.f32.mrb[5].mxu1 }
 0x47a   : > { %v755_v52 = vpop.f32.mrb[6].mxu1 }
 0x47b   : > { %v1459_v53 = vpop.f32.mrb[7].mxu1  ;;  %v760_v54 = vsel %vm576_vm2, %v2462_v50, -inf }
 0x47c   : > { %761 = vmax.xlane.f32.xlu0 %v760_v54 }
 0x480   : > { %v885_v55 = vpop.f32.mrb[8].mxu1 }
 0x481   : > { %v2466_v56 = vmul.f32 0.35355338, %v885_v55  ;;  %v1470_v57 = vpop.f32.mrb[9].mxu1 }
 0x482   : > { %v888_v58 = vpop.f32.mrb[10].mxu1 }
 0x483   : > { %v1471_v59 = vpop.f32.mrb[11].mxu1  ;;  %v893_v60 = vsel %vm576_vm2, %v2466_v56, -inf  ;;  %v641_v58 = vld [vmem:[#allocation4] sm:$0xff] }
 0x484   : > { %894 = vmax.xlane.f32.xlu1 %v893_v60 }
 0x488   : > { %v1018_v61 = vpop.f32.mrb[12].mxu1 }
 0x489   : > { %v2470_v62 = vmul.f32 0.35355338, %v1018_v61  ;;  %v1482_v63 = vpop.f32.mrb[13].mxu1 }
 0x48a   : > { %v1021_v1 = vpop.f32.mrb[14].mxu1 }
 0x48b   : > { %v1483_v2 = vpop.f32.mrb[15].mxu1  ;;  %v1026_v3 = vsel %vm576_vm2, %v2470_v62, -inf }
 0x48c   : > { %1027 = vmax.xlane.f32.xlu1 %v1026_v3 }
 0x494   : > { %v627_v6 = vpop.xlane.xlu1 %626 }
 0x495   : > { %v2477_v7 = vmax.f32 %v2474_v5, %v627_v6 }
 0x497   : > { %v629_v9 = vsub.f32 %v2474_v5, %v2477_v7  ;;  %640 = vst.msk [vmem:[#allocation3] sm:$0xff] %vm576_vm2, %v2477_v7  ;;  %634 = vperm.xlu0 %1645, %v2477_v7  }
 0x499   : > { %v630_v45 = vmul.f32 1.442695, %v629_v9 }
 0x49b   : > { %1649 = vset.pattern.permute.xlu0 %v2026_v10 }
 0x49e   : > { %v2484_v11 = vld [vmem:[#allocation3] sm:$0xff] }
 0x509   : > { %v762_v12 = vpop.xlane.xlu0 %761 }
 0x50a   : > { %v2487_v13 = vmax.f32 %v2484_v11, %v762_v12 }
 0x50c   : > { %v764_v14 = vsub.f32 %v2484_v11, %v2487_v13  ;;  %776 = vst.msk [vmem:[#allocation3] sm:$0xff] %vm775_vm4, %v2487_v13  ;;  %769 = vperm.xlu1 %1646, %v2487_v13  }
 0x510   : > { %654 = vrot.lane.b32.xlu1 %v2436_v22, %s2027_s15 }
 0x511   : > { %1647 = vset.pattern.permute.xlu1 %v2028_v15  ;;  %v895_v16 = vpop.xlane.xlu1 %894 }
 0x513   : > { %v2495_v17 = vld [vmem:[#allocation3] sm:$0xff] }
 0x514   : > { %v2498_v18 = vmax.f32 %v2495_v17, %v895_v16 }
 0x516   : > { %v897_v19 = vsub.f32 %v2495_v17, %v2498_v18  ;;  %909 = vst.msk [vmem:[#allocation3] sm:$0xff] %vm908_vm5, %v2498_v18  ;;  %902 = vperm.xlu1 %1647, %v2498_v18   ;;  %v635_v20 = vpop.permute.xlu0 %634  ;;  %v648_v18 = vld [vmem:[#allocation5] sm:$0xff] }
 0x517   : > { %v637_v21 = vsub.f32 %v623_v42, %v635_v20 }
 0x518   : > { %v898_v63 = vmul.f32 1.442695, %v897_v19 }
 0x519   : > { %v638_v23 = vmul.f32 1.442695, %v637_v21  ;;  %v1028_v24 = vpop.xlane.xlu1 %1027 }
 0x51a   : > { %787 = vrot.lane.b32.xlu1 %v2436_v22, %s2029_s25 }
 0x51b   : > { %1658 = vpow2.f32 %v638_v23  ;;  %1648 = vset.pattern.permute.xlu1 %v2026_v10 }
 0x51d   : > { %v2506_v25 = vld [vmem:[#allocation3] sm:$0xff] }
 0x51e   : > { %v2509_v26 = vmax.f32 %v2506_v25, %v1028_v24 }
 0x520   : > { %v1030_v27 = vsub.f32 %v2506_v25, %v2509_v26  ;;  %1042 = vst.msk [vmem:[#allocation3] sm:$0xff] %vm1041_vm6, %v2509_v26  ;;  %1035 = vperm.xlu1 %1648, %v2509_v26  }
 0x522   : > { %v1031_v6 = vmul.f32 1.442695, %v1030_v27 }
 0x524   : > { %920 = vrot.lane.b32.xlu1 %v2436_v22, %s2030_s24 }
 0x525   : > { %v1659_v28 = vpop.eup %1658 }
 0x526   : > { %v643_v29 = vsel %vm576_vm2, %v1659_v28, 0.0  ;;  %v650_v35 = vpack.c.bf16 %v1659_v28, %v1659_v28 }
 0x527   : > { %644 = vadd.xlane.f32.xlu0 %v643_v29 }
 0x528   : > { %1053 = vrot.lane.b32.xlu1 %v2436_v22, %s2031_s21 }
 0x58b   : > { %v770_v30 = vpop.permute.xlu1 %769 }
 0x58c   : > { %v772_v31 = vsub.f32 %v2462_v50, %v770_v30 }
 0x58e   : > { %v773_v32 = vmul.f32 1.442695, %v772_v31 }
 0x58f   : > { %v655_v33 = vpop.permute.xlu1 %654 }
 0x590   : > { %1660 = vpow2.f32 %v773_v32  ;;  %v661_v34 = vsel %vm659_vm7, %v655_v33, 0 }
 0x591   : > { %1449 = vmatpush3.bf16.msra.mxu0 %v661_v34  ;;  %v1654_v34 = vld [vmem:[#allocation17] sm:$0xff]  }
 0x592   : > { %1460 = vmatprep.subr.bf16.mxu0 %v2018_v8  ;;  %1491 = vmatpush3.bf16.msra.mxu1 %v1654_v34 }
 0x593   : > { %1492 = vmatprep.subr.bf16.mxu1 %v2018_v8 }
 0x594   : > { %1451 = vmatmul.mubr.msk.bf16.vlgmr.msra.gmra.mrb[4].mxu0 %vm576_vm2, %v650_v35  ;;  %v1655_v35 = vld [vmem:[#allocation17 + $0x8] sm:$0xff]  }
 0x595   : > { %v903_v36 = vpop.permute.xlu1 %902  ;;  %1462 = vmatprep.mubr.msk.bf16.mxu0 %vm2019_vm1, %v2018_v8 }
 0x596   : > { %v905_v22 = vsub.f32 %v2466_v56, %v903_v36  ;;  %1493 = vmatpush3.bf16.msra.mxu1 %v1655_v35 }
 0x598   : > { %v906_v37 = vmul.f32 1.442695, %v905_v22 }
 0x599   : > { %v788_v38 = vpop.permute.xlu1 %787 }
 0x59a   : > { %v1661_v39 = vpop.eup %1660  ;;  %1662 = vpow2.f32 %v906_v37  ;;  %v793_v40 = vsel %vm659_vm7, %v788_v38, 0 }
 0x59b   : > { %1461 = vmatpush3.bf16.msra.mxu0 %v793_v40  ;;  %v779_v41 = vsel %vm576_vm2, %v1661_v39, 0.0  ;;  %v786_v42 = vpack.c.bf16 %v1661_v39, %v1661_v39 }
 0x59c   : > { %780 = vadd.xlane.f32.xlu1 %v779_v41  ;;  %1472 = vmatprep.subr.bf16.mxu0 %v2018_v8 }
 0x59e   : > { %1463 = vmatmul.mubr.msk.bf16.vlgmr.msra.gmra.mrb[8].mxu0 %vm576_vm2, %v786_v42 }
 0x59f   : > { %v1036_v43 = vpop.permute.xlu1 %1035  ;;  %1474 = vmatprep.mubr.msk.bf16.mxu0 %vm2019_vm1, %v2018_v8 }
 0x5a0   : > { %v1038_v44 = vsub.f32 %v2470_v62, %v1036_v43  ;;  %v765_v62 = vmul.f32 1.442695, %v764_v14 }
 0x5a2   : > { %v1039_v46 = vmul.f32 1.442695, %v1038_v44 }
 0x5a3   : > { %v921_v47 = vpop.permute.xlu1 %920 }
 0x5a4   : > { %v1663_v48 = vpop.eup %1662  ;;  %1664 = vpow2.f32 %v1039_v46  ;;  %v926_v49 = vsel %vm659_vm7, %v921_v47, 0 }
 0x5a5   : > { %1473 = vmatpush3.bf16.msra.mxu0 %v926_v49  ;;  %v912_v50 = vsel %vm576_vm2, %v1663_v48, 0.0  ;;  %v919_v51 = vpack.c.bf16 %v1663_v48, %v1663_v48  ;;  %1666 = vpow2.f32 %v630_v45 }
 0x5a6   : > { %913 = vadd.xlane.f32.xlu0 %v912_v50  ;;  %1484 = vmatprep.subr.bf16.mxu0 %v2018_v8  ;;  %1668 = vpow2.f32 %v765_v62 }
 0x5a7   : > { %v1054_v52 = vpop.permute.xlu1 %1053  ;;  %1670 = vpow2.f32 %v898_v63 }
 0x5a8   : > { %1475 = vmatmul.mubr.msk.bf16.vlgmr.msra.gmra.mrb[12].mxu0 %vm576_vm2, %v919_v51  ;;  %v1059_v53 = vsel %vm659_vm7, %v1054_v52, 0  ;;  %1672 = vpow2.f32 %v1031_v6 }
 0x5a9   : > { %1485 = vmatpush3.bf16.msra.mxu0 %v1059_v53  ;;  %1486 = vmatprep.mubr.msk.bf16.mxu0 %vm2019_vm1, %v2018_v8 }
 0x5ae   : > { %v1665_v54 = vpop.eup %1664 }
 0x5af   : > { %v1045_v55 = vsel %vm576_vm2, %v1665_v54, 0.0  ;;  %v1052_v56 = vpack.c.bf16 %v1665_v54, %v1665_v54  ;;  %v1667_v57 = vpop.eup %1666 }
 0x5b0   : > { %1046 = vadd.xlane.f32.xlu0 %v1045_v55  ;;  %v642_v59 = vmul.f32 %v1667_v57, %v641_v58  ;;  %v1669_v2 = vpop.eup %1668  ;;  %v649_v19 = vmul.f32 %v1667_v57, %v648_v18  ;;  %v1404_v55 = vld [vmem:[#allocation18] ss:$0 sm:$0xff] }
 0x5b1   : > { %1487 = vmatmul.mubr.msk.bf16.vlgmr.msra.gmra.mrb[16].mxu0 %vm576_vm2, %v1052_v56  ;;  %v1671_v7 = vpop.eup %1670 }
 0x5b2   : > { %v1673_v13 = vpop.eup %1672 }
 0x5b4   : > { %v645_v60 = vpop.xlane.xlu0 %644 }
 0x5b5   : > { %v646_v61 = vadd.f32 %v645_v60, %v642_v59 }
 0x5b7   : > { %647 = vst.msk [vmem:[#allocation4] sm:$0xff] %vm576_vm2, %v646_v61 }
 0x5be   : > { %v777_v1 = vld [vmem:[#allocation4] sm:$0xff] }
 0x5bf   : > { %v778_v3 = vmul.f32 %v1669_v2, %v777_v1 }
 0x629   : > { %v781_v4 = vpop.xlane.xlu1 %780 }
 0x62a   : > { %v782_v5 = vadd.f32 %v781_v4, %v778_v3 }
 0x62c   : > { %783 = vst.msk [vmem:[#allocation4] sm:$0xff] %vm775_vm4, %v782_v5 }
 0x633   : > { %v910_v9 = vld [vmem:[#allocation4] sm:$0xff]  ;;  %v914_v11 = vpop.xlane.xlu0 %913 }
 0x634   : > { %v911_v10 = vmul.f32 %v1671_v7, %v910_v9 }
 0x636   : > { %v915_v12 = vadd.f32 %v914_v11, %v911_v10 }
 0x638   : > { %916 = vst.msk [vmem:[#allocation4] sm:$0xff] %vm908_vm5, %v915_v12 }
 0x63d   : > { %v1047_v16 = vpop.xlane.xlu0 %1046 }
 0x63f   : > { %v1043_v14 = vld [vmem:[#allocation4] sm:$0xff] }
 0x640   : > { %v1044_v15 = vmul.f32 %v1673_v13, %v1043_v14 }
 0x642   : > { %v1048_v17 = vadd.f32 %v1047_v16, %v1044_v15 }
 0x644   : > { %1049 = vst.msk [vmem:[#allocation4] sm:$0xff] %vm1041_vm6, %v1048_v17 }
 0x64b   : > { %v1110_v8 = vld [vmem:[#allocation4] sm:$0xff] }
 0x64c   : > { %1674 = vrcp.f32 %v1110_v8 }
 0x656   : > { %v1675_v51 = vpop.eup %1674 }
 0x667   : > { %v697_v20 = vpop.f32.mrb[4].mxu0 }
 0x668   : > { %v703_v21 = vadd.f32 %v697_v20, %v649_v19  ;;  %v1452_v23 = vpop.f32.mrb[5].mxu0 }
 0x669   : > { %v700_v24 = vpop.f32.mrb[6].mxu0 }
 0x66a   : > { %704 = vst.msk [vmem:[#allocation5] sm:$0xff] %vm576_vm2, %v703_v21  ;;  %v1453_v25 = vpop.f32.mrb[7].mxu0 }
 0x671   : > { %v829_v26 = vpop.f32.mrb[8].mxu0  ;;  %v784_v39 = vld [vmem:[#allocation5] sm:$0xff] }
 0x672   : > { %836 = vrot.lane.b32.xlu1 %v829_v26, %s2032_s26  ;;  %v1464_v27 = vpop.f32.mrb[9].mxu0  ;;  %v785_v40 = vmul.f32 %v1669_v2, %v784_v39 }
 0x673   : > { %v832_v28 = vpop.f32.mrb[10].mxu0 }
 0x674   : > { %v1465_v29 = vpop.f32.mrb[11].mxu0 }
 0x67b   : > { %v962_v30 = vpop.f32.mrb[12].mxu0 }
 0x67c   : > { %v1476_v31 = vpop.f32.mrb[13].mxu0  ;;  %969 = vrot.lane.b32.xlu0 %v962_v30, %s2033_s23 }
 0x67d   : > { %v965_v32 = vpop.f32.mrb[14].mxu0 }
 0x67e   : > { %v1477_v33 = vpop.f32.mrb[15].mxu0 }
 0x684   : > { %v1095_v36 = vpop.f32.mrb[16].mxu0 }
 0x685   : > { %1102 = vrot.lane.b32.xlu1 %v1095_v36, %s2034_s14  ;;  %v1488_v22 = vpop.f32.mrb[17].mxu0 }
 0x686   : > { %v1098_v37 = vpop.f32.mrb[18].mxu0 }
 0x687   : > { %v1489_v38 = vpop.f32.mrb[19].mxu0 }
 0x6e4   : > { %v837_v41 = vpop.permute.xlu1 %836 }
 0x6e5   : > { %v839_v42 = vadd.f32 %v837_v41, %v785_v40 }
 0x6e7   : > { %840 = vst.msk [vmem:[#allocation5] sm:$0xff] %vm775_vm4, %v839_v42 }
 0x6ee   : > { %v917_v43 = vld [vmem:[#allocation5] sm:$0xff]  ;;  %v970_v45 = vpop.permute.xlu0 %969 }
 0x6ef   : > { %v918_v44 = vmul.f32 %v1671_v7, %v917_v43 }
 0x6f1   : > { %v972_v46 = vadd.f32 %v970_v45, %v918_v44 }
 0x6f3   : > { %973 = vst.msk [vmem:[#allocation5] sm:$0xff] %vm908_vm5, %v972_v46 }
 0x6f7   : > { %v1103_v49 = vpop.permute.xlu1 %1102 }
 0x6fa   : > { %v1050_v47 = vld [vmem:[#allocation5] sm:$0xff] }
 0x6fb   : > { %v1051_v48 = vmul.f32 %v1673_v13, %v1050_v47 }
 0x6fd   : > { %v1105_v50 = vadd.f32 %v1103_v49, %v1051_v48 }
 0x6ff   : > { %1106 = vst.msk [vmem:[#allocation5] sm:$0xff] %vm1041_vm6, %v1105_v50 }
 0x706   : > { %v1112_v52 = vld [vmem:[#allocation5] sm:$0xff] }
 0x707   : > { %v1113_v53 = vmul.f32 %v1675_v51, %v1112_v52 }
 0x709   : > { %v1114_v54 = vpack.c.bf16 %v1113_v53, %v1113_v53 }
 0x70b   : > { %1495 = vmatmul.mubr.msk.bf16.vlgmr.msra.gmra.mrb[16].mxu1 %vm472_vm0, %v1114_v54 }
 0x7de   : > { %v1176_v56 = vpop.f32.mrb[16].mxu1 }
 0x7df   : > { %v1177_v57 = vadd.f32 %v1404_v55, %v1176_v56  ;;  %v1496_v58 = vpop.f32.mrb[17].mxu1 }
 0x7e0   : > { %v1179_v59 = vpop.f32.mrb[18].mxu1 }
 0x7e1   : > { %v1183_v60 = vadd.f32 %v1177_v57, %v2413_v0  ;;  %v1497_v61 = vpop.f32.mrb[19].mxu1 }
 0x7e3   : > { %1184 = vst.msk [vmem:[%s463_s19] sm:$0xff] %vm472_vm0, %v1183_v60 }
 0x7e4   : > { %1917 = shalt.err (!%p1914_p7)
}
 0x7e5   : > { %s1918_s6 = scalar_lea.hbm %s2571_s17, 128  ;;  %s1922_s24 = scalar_lea.hbm %s2629_s8, 256 }
 0x7e6   : > { %p1919_p2 = scmp.ne.s32.totalorder %s2571_s17, %s1918_s6  ;;  %p1923_p4 = scmp.lt.u32.totalorder %s2571_s17, %s2629_s8 }
 0x7e7   : > { %p1924_p6 = scmp.lt.u32.totalorder %s1922_s24, %s1918_s6  ;;  %p1926_p12 = scmp.lt.u32.totalorder %s1918_s6, %s2571_s17 }
 0x7e8   : > { %p1920_p8 = pnand %p1919_p2, %p2666_p0 }
 0x7e9   : > { %p1925_p3 = por %p1924_p6, %p1923_p4 }
 0x7ea   : > { %p1921_p9 = pneg %p1920_p8 }
 0x7eb   : > { %p1927_p10 = por %p1926_p12, %p1925_p3 }
 0x7ed   : > { %p1928_p13 = pnand %p1927_p10, %p1921_p9 }
 0x7ef   : > { %1931 = shalt.err (!%p1928_p13)
}
 0x7f0   : > { %1526 = dma.vmem_to_hbm [thread:$0]  (%p2666_p0), %s2573_s0, 128, %s2571_s17, %s1186_s30  }
 0x7f1 PF: > { %s1212_s23 = sand.u32 1, %s1986_s27   ;;  %p2667_p1 = scmp.ne.s32.totalorder %s2652_s20, 0 }
 0x7f2   : > { %p2668_p11 = scmp.ge.s32.totalorder %s2006_s10, 2  ;;  %s1213_s14 = scalar_lea.sflag [#allocation8], %s1212_s23 }
 0x7f4   : > { %p1555_p5 = pnand %p2668_p11, %p2667_p1 }
 0x7f6   : > { %1981 = dma.done.wait (!%p1555_p5), %s1213_s14, 128  }
 0x7f7   : > { %1983 = vsyncadd (!%p1555_p5), %s1213_s14, 4294967168  ;;  %s30_s10 = sadd.s32 1, %s2006_s10   ;;  %s2669_s27 = smov %s1990_s28 }
 0x7f8   : > { %p27_p7 = scmp.ge.s32.totalorder %s30_s10, 4   ;;  %s2670_s28 = smov %s1994_s29 }
 0x7f9   : > { %s2671_s29 = smov %s2296_s16  ;;  %s2672_s30 = smov %s2002_s9 }
 0x7fa   : > { %s2673_s9 = smov %s2675_s2  ;;  %29 = sbr.rel (!%p27_p7) target bundleno = 18 (0x12), region = 142 }
 0x801   :  { %1218 = vsyncpa [#allocation7], 1 }
 0x802   :  { %1220 = vsyncpa [#allocation7 + $0x1], 1 }
 0x803   :  { %1221 = vsyncpa [#allocation10], 1 }
 0x804   :  { %1223 = vsyncpa [#allocation10 + $0x1], 1 }
 0x805   :  { %1224 = vsyncpa [#allocation13], 1 }
 0x806   :  { %1225 = vsyncpa [#allocation16], 1 }
 0x807   :  { %1226 = vsyncpa [#allocation19], 1 }
 0x808   :  { %1227 = vsyncpa [#allocation8], 1 }
 0x809   :  { %1229 = vsyncpa [#allocation8 + $0x1], 1 }

// kernel: surface_field_autoencoder_forward.37
= control target key start
LH: loop header
LB: loop body
LE: loop exit
PB: predicated region body
PF: predicated region fallthrough
CT: control target
= control target key end

     0   :  { %8 = vsyncpa [#allocation4], 0  ;;  %s488_s0 = inlined_call_operand.hbm [shape: f32[40,51], index: 0, kind: input, shape index: {}]   ;;  %s489_s1 = inlined_call_operand.hbm [shape: bf16[51,32], index: 1, kind: input, shape index: {}]   ;;  %s490_s2 = inlined_call_operand.hbm [shape: f32[1,32], index: 2, kind: input, shape index: {}]   ;;  %s491_s3 = inlined_call_operand.hbm [shape: f32[40,32], index: 3, kind: output, shape index: {}]  }
   0x1   :  { %9 = vsyncpa [#allocation7], 0 }
   0x2   :  { %10 = vsyncpa [#allocation5], 0  ;;  %s385_s12 = smov [#allocation6]   ;;  %s291_s16 = scalar_lea.hbm %s489_s1, 448 }
   0x3   :  { %s28_s13 = sshll.u32 %s385_s12, 4  ;;  %p292_p0 = scmp.ne.s32.totalorder %s489_s1, %s291_s16  ;;  %s29_s13 = int_to_ptr.vmem [resolvable:$true] %s28_s13 }
   0x4   :  { %p295_p1 = scmp.lt.u32.totalorder %s291_s16, %s489_s1 }
   0x6   :  { %p297_p2 = pnand %p295_p1, %p292_p0 }
   0x8   :  { %300 = shalt.err (!%p297_p2)
}
   0x9   :  { %s301_s21 = scalar_lea.vmem %s29_s13, 448  ;;  %p306_p4 = scmp.lt.s32.totalorder %s29_s13, %s29_s13 }
   0xa   :  { %p302_p3 = scmp.ne.s32.totalorder %s29_s13, %s301_s21  ;;  %p307_p5 = scmp.lt.s32.totalorder %s301_s21, %s301_s21 }
   0xc   :  { %p308_p6 = por %p307_p5, %p306_p4 }
   0xe   :  { %p309_p7 = pnand %p308_p6, %p302_p3 }
  0x10   :  { %312 = shalt.err (!%p309_p7)
}
  0x11   :  { %s386_s22 = smov 64   ;;  %s387_s23 = smov 4  }
  0x12   :  { %34 = dma.hbm_to_vmem [thread:$0]  %s489_s1, 448, %s29_s13, [#allocation7], %s386_s22, %s386_s22, %s387_s23  }
  0x13   :  { %s388_s26 = smov [#allocation3]   ;;  %s313_s30 = scalar_lea.hbm %s488_s0, 640 }
  0x14   :  { %s16_s27 = sshll.u32 %s388_s26, 4  ;;  %p314_p8 = scmp.ne.s32.totalorder %s488_s0, %s313_s30  ;;  %s17_s27 = int_to_ptr.vmem [resolvable:$true] %s16_s27 }
  0x15   :  { %p317_p9 = scmp.lt.u32.totalorder %s313_s30, %s488_s0 }
  0x17   :  { %p319_p10 = pnand %p317_p9, %p314_p8 }
  0x19   :  { %322 = shalt.err (!%p319_p10)
}
  0x1a   :  { %s323_s8 = scalar_lea.vmem %s17_s27, 640  ;;  %p328_p12 = scmp.lt.s32.totalorder %s17_s27, %s17_s27 }
  0x1b   :  { %p324_p11 = scmp.ne.s32.totalorder %s17_s27, %s323_s8  ;;  %p329_p13 = scmp.lt.s32.totalorder %s323_s8, %s323_s8 }
  0x1d   :  { %p330_p0 = por %p329_p13, %p328_p12 }
  0x1f   :  { %p331_p1 = pnand %p330_p0, %p324_p11 }
  0x21   :  { %334 = shalt.err (!%p331_p1)
}
  0x22   :  { %s389_s1 = smov 128   ;;  %s390_s9 = smov 8  }
  0x23   :  { %22 = dma.hbm_to_vmem [thread:$0]  %s488_s0, 640, %s17_s27, [#allocation4], %s389_s1, %s389_s1, %s390_s9  }
  0x24   :  { %s391_s12 = smov [#allocation8]   ;;  %s335_s16 = scalar_lea.hbm %s490_s2, 16 }
  0x25   :  { %s41_s13 = sshll.u32 %s391_s12, 4  ;;  %p336_p2 = scmp.ne.s32.totalorder %s490_s2, %s335_s16  ;;  %s42_s13 = int_to_ptr.vmem [resolvable:$true] %s41_s13 }
  0x26   :  { %p339_p3 = scmp.lt.u32.totalorder %s335_s16, %s490_s2 }
  0x28   :  { %p341_p4 = pnand %p339_p3, %p336_p2 }
  0x2a   :  { %344 = shalt.err (!%p341_p4)
}
  0x2b   :  { %s345_s21 = scalar_lea.vmem %s42_s13, 16  ;;  %s349_s0 = scalar_lea.vmem %s42_s13, 32 }
  0x2c   :  { %p346_p5 = scmp.ne.s32.totalorder %s42_s13, %s345_s21  ;;  %p350_p6 = scmp.lt.s32.totalorder %s42_s13, %s42_s13 }
  0x2d   :  { %p351_p7 = scmp.lt.s32.totalorder %s349_s0, %s345_s21 }
  0x2f   :  { %p352_p8 = por %p351_p7, %p350_p6 }
  0x31   :  { %p353_p9 = pnand %p352_p8, %p346_p5 }
  0x33   :  { %356 = shalt.err (!%p353_p9)
}
  0x34   :  { %44 = dma.hbm_to_vmem [thread:$0]  %s490_s2, 16, %s42_s13, [#allocation7]  }
  0x35   :  { %379 = dma.done.wait [#allocation4], 640  }
  0x36   :  { %380 = vsyncadd [#allocation4], 4294966656 }
  0x37   :  { %381 = dma.done.wait [#allocation7], 464  }
  0x38   :  { %382 = vsyncadd [#allocation7], 4294966832  ;;  %v392_v0 = vmov 0.0   ;;  %vm59_vm0 = vcmask 261120   ;;  %vm393_vm1 = vmmov 0   ;;  %v287_v1 = vld [vmem:[#allocation6] sm:$0xff]  }
  0x39   :  { %268 = vmatprep.subr.bf16.mxu1 %v392_v0  ;;  %248 = vmatprep.subr.bf16.mxu0 %v392_v0  ;;  %62 = vst.msk [vmem:[#allocation2 + $0x10] sm:$0xff] %vm59_vm0, %v392_v0  ;;  %60 = vst.msk [vmem:[#allocation2] sm:$0xff] %vm59_vm0, %v392_v0  ;;  %vm116_vm2 = vcmask 1040384   ;;  %v288_v2 = vld [vmem:[#allocation6 + $0x8] sm:$0xff]   ;;  %vm117_vm3 = vcmask 1041408   ;;  %v394_v3 = vmov 65535  }
  0x3a   :  { %260 = vmatprep.mubr.msk.bf16.mxu1 %vm393_vm1, %v392_v0  ;;  %256 = vmatprep.mubr.msk.bf16.mxu0 %vm393_vm1, %v392_v0  ;;  %61 = vst.msk [vmem:[#allocation2 + $0x8] sm:$0xff] %vm59_vm0, %v392_v0  ;;  %63 = vst.msk [vmem:[#allocation2 + $0x18] sm:$0xff] %vm59_vm0, %v392_v0  ;;  %v118_v4 = vsel %vm116_vm2, 4294967295, %v394_v3  ;;  %v289_v5 = vld [vmem:[#allocation6 + $0x10] sm:$0xff]   ;;  %v72_v8 = vld [vmem:[#allocation3 + $0x10] sm:$0xff]  ;;  %vm106_vm4 = vcmask 416768  }
  0x3b   :  { %64 = vst.msk [vmem:[#allocation2 + $0x20] sm:$0xff] %vm59_vm0, %v392_v0  ;;  %272 = vmatpush3.bf16.msra.mxu1 %v287_v1  ;;  %249 = vmatpush3.bf16.msra.mxu0 %v287_v1  ;;  %v290_v6 = vld [vmem:[#allocation6 + $0x18] ss:$0 sps:$4 sm:$0x33]   ;;  %v119_v7 = vsel %vm117_vm3, %v118_v4, 0  ;;  %v73_v10 = vld [vmem:[#allocation3 + $0x18] sm:$0xff] }
  0x3c   :  { %269 = vmatprep.subr.bf16.mxu1 %v392_v0  ;;  %250 = vmatprep.subr.bf16.mxu0 %v392_v0  ;;  %v121_v9 = vand.u32 %v290_v6, %v119_v7  ;;  %v70_v11 = vld [vmem:[#allocation3] sm:$0xff]  ;;  %v71_v12 = vld [vmem:[#allocation3 + $0x8] sm:$0xff]  ;;  %v76_v13 = vpack.c.bf16 %v73_v10, %v72_v8  ;;  %s395_s2 = smov [#allocation9]  }
  0x3d   :  { %v75_v14 = vpack.c.bf16 %v71_v12, %v70_v11  ;;  %v74_v15 = vld [vmem:[#allocation3 + $0x20] sm:$0xff]  ;;  %s220_s24 = sshll.u32 %s395_s2, 4  ;;  %s221_s24 = int_to_ptr.vmem [resolvable:$true] %s220_s24 }
  0x3e   :  { %v77_v16 = vpack.c.bf16 %v74_v15, %v74_v15  ;;  %v240_v35 = vld [vmem:[#allocation8] ss:$0 sm:$0xff]  ;;  %s357_s25 = scalar_lea.vmem %s221_s24, 640  ;;  %p362_p11 = scmp.lt.s32.totalorder %s221_s24, %s221_s24 }
  0x3f   :  { %273 = vmatpush3.bf16.msra.mxu1 %v288_v2  ;;  %251 = vmatpush3.bf16.msra.mxu0 %v288_v2  ;;  %p358_p10 = scmp.ne.s32.totalorder %s221_s24, %s357_s25  ;;  %p363_p12 = scmp.lt.s32.totalorder %s357_s25, %s357_s25 }
  0x40   :  { %270 = vmatprep.subr.bf16.mxu1 %v392_v0  ;;  %252 = vmatprep.subr.bf16.mxu0 %v392_v0  ;;  %v67_v17 = vld [vmem:[#allocation2 + $0x10] sm:$0xff]  ;;  %v65_v18 = vld [vmem:[#allocation2] sm:$0xff] }
  0x41   :  { %v68_v20 = vld [vmem:[#allocation2 + $0x18] sm:$0xff]  ;;  %v66_v22 = vld [vmem:[#allocation2 + $0x8] sm:$0xff]  ;;  %p364_p13 = por %p363_p12, %p362_p11 }
  0x42   :  { %v69_v33 = vld [vmem:[#allocation2 + $0x20] sm:$0xff] }
  0x43   :  { %274 = vmatpush3.bf16.msra.mxu1 %v289_v5  ;;  %253 = vmatpush3.bf16.msra.mxu0 %v289_v5  ;;  %p365_p0 = pnand %p364_p13, %p358_p10 }
  0x44   :  { %271 = vmatprep.subr.bf16.mxu1 %v392_v0  ;;  %254 = vmatprep.subr.bf16.mxu0 %v392_v0 }
  0x47   :  { %275 = vmatpush3.bf16.msra.mxu1 %v121_v9  ;;  %255 = vmatpush3.bf16.msra.mxu0 %v121_v9 }
  0x4a   :  { %261 = vmatmul.mubr.msk.bf16.vlgmr.msra.gmra.mrb[0].mxu1 %vm106_vm4, %v76_v13  ;;  %257 = vmatmul.mubr.msk.bf16.vlgmr.msra.gmra.mrb[0].mxu0 %vm106_vm4, %v75_v14 }
  0x4b   :  { %264 = vmatprep.mubr.msk.bf16.mxu1 %vm393_vm1, %v392_v0 }
  0x52   :  { %265 = vmatmul.mubr.msk.bf16.gmra.mrb[4].mxu1 %vm106_vm4, %v77_v16 }
 0x11d   :  { %v165_v19 = vpop.f32.mrb[0].mxu1  ;;  %v157_v21 = vpop.f32.mrb[0].mxu0 }
 0x11e   :  { %v181_v23 = vadd.f32 %v165_v19, %v67_v17  ;;  %v262_v24 = vpop.f32.mrb[1].mxu1  ;;  %v179_v25 = vadd.f32 %v157_v21, %v65_v18  ;;  %v258_v26 = vpop.f32.mrb[1].mxu0 }
 0x11f   :  { %v168_v27 = vpop.f32.mrb[2].mxu1  ;;  %v160_v28 = vpop.f32.mrb[2].mxu0 }
 0x120   :  { %187 = vst.msk [vmem:[#allocation2 + $0x10] sm:$0xff] %vm59_vm0, %v181_v23  ;;  %v182_v29 = vadd.f32 %v168_v27, %v68_v20  ;;  %185 = vst.msk [vmem:[#allocation2] sm:$0xff] %vm59_vm0, %v179_v25  ;;  %v263_v30 = vpop.f32.mrb[3].mxu1  ;;  %v180_v31 = vadd.f32 %v160_v28, %v66_v22  ;;  %v259_v32 = vpop.f32.mrb[3].mxu0 }
 0x122   :  { %188 = vst.msk [vmem:[#allocation2 + $0x18] sm:$0xff] %vm59_vm0, %v182_v29  ;;  %186 = vst.msk [vmem:[#allocation2 + $0x8] sm:$0xff] %vm59_vm0, %v180_v31 }
 0x125   :  { %v173_v34 = vpop.f32.mrb[4].mxu1 }
 0x126   :  { %v183_v36 = vadd.f32 %v173_v34, %v69_v33  ;;  %v266_v37 = vpop.f32.mrb[5].mxu1 }
 0x127   :  { %v176_v38 = vpop.f32.mrb[6].mxu1  ;;  %v193_v39 = vld [vmem:[#allocation2] sm:$0xff]  ;;  %v195_v40 = vld [vmem:[#allocation2 + $0x10] sm:$0xff] }
 0x128   :  { %189 = vst.msk [vmem:[#allocation2 + $0x20] sm:$0xff] %vm59_vm0, %v183_v36  ;;  %v267_v41 = vpop.f32.mrb[7].mxu1  ;;  %v205_v42 = vadd.f32 %v240_v35, %v193_v39  ;;  %v207_v43 = vadd.f32 %v240_v35, %v195_v40 }
 0x129   :  { %v194_v44 = vld [vmem:[#allocation2 + $0x8] sm:$0xff]  ;;  %v196_v45 = vld [vmem:[#allocation2 + $0x18] sm:$0xff] }
 0x12a   :  { %v206_v46 = vadd.f32 %v240_v35, %v194_v44  ;;  %v208_v47 = vadd.f32 %v240_v35, %v196_v45  ;;  %210 = vst.msk [vmem:[#allocation9] sm:$0xff] %vm59_vm0, %v205_v42  ;;  %212 = vst.msk [vmem:[#allocation9 + $0x10] sm:$0xff] %vm59_vm0, %v207_v43 }
 0x12c   :  { %211 = vst.msk [vmem:[#allocation9 + $0x8] sm:$0xff] %vm59_vm0, %v206_v46  ;;  %213 = vst.msk [vmem:[#allocation9 + $0x18] sm:$0xff] %vm59_vm0, %v208_v47 }
 0x12f   :  { %v197_v48 = vld [vmem:[#allocation2 + $0x20] sm:$0xff] }
 0x130   :  { %v209_v49 = vadd.f32 %v240_v35, %v197_v48 }
 0x132   :  { %214 = vst.msk [vmem:[#allocation9 + $0x20] sm:$0xff] %vm59_vm0, %v209_v49 }
 0x133   :  { %368 = shalt.err (!%p365_p0)
}
 0x134   :  { %s369_s28 = scalar_lea.hbm %s491_s3, 640 }
 0x135   :  { %p370_p1 = scmp.ne.s32.totalorder %s491_s3, %s369_s28  ;;  %p373_p2 = scmp.lt.u32.totalorder %s369_s28, %s491_s3 }
 0x137   :  { %p375_p3 = pnand %p373_p2, %p370_p1 }
 0x139   :  { %378 = shalt.err (!%p375_p3)
}
 0x13a   :  { %226 = dma.vmem_to_hbm [thread:$0]  %s221_s24, 640, %s491_s3, [#allocation5], %s389_s1, %s389_s1, %s390_s9  }
 0x13b   :  { %383 = dma.done.wait [#allocation5], 640  }
 0x13c   :  { %384 = vsyncadd [#allocation5], 4294966656 }
 0x13d   :  { %230 = vsyncpa [#allocation4], 1 }
 0x13e   :  { %231 = vsyncpa [#allocation7], 1 }
 0x13f   :  { %232 = vsyncpa [#allocation5], 1 }

// kernel: surface_field_autoencoder_forward.40
= control target key start
LH: loop header
LB: loop body
LE: loop exit
PB: predicated region body
PF: predicated region fallthrough
CT: control target
= control target key end

     0   :  { %12 = vsyncpa [#allocation3], 0  ;;  %s1078_s0 = inlined_call_operand.hbm [shape: f32[40,32], index: 0, kind: input, shape index: {}]   ;;  %s1079_s1 = inlined_call_operand.hbm [shape: f32[1,32], index: 1, kind: input, shape index: {}]   ;;  %s1080_s2 = inlined_call_operand.hbm [shape: f32[1,32], index: 2, kind: input, shape index: {}]   ;;  %s1081_s3 = inlined_call_operand.hbm [shape: bf16[32,128], index: 3, kind: input, shape index: {}]   ;;  %s1082_s4 = inlined_call_operand.hbm [shape: f32[1,128], index: 4, kind: input, shape index: {}]   ;;  %s1083_s5 = inlined_call_operand.hbm [shape: bf16[128,32], index: 5, kind: input, shape index: {}]   ;;  %s1084_s6 = inlined_call_operand.hbm [shape: f32[1,32], index: 6, kind: input, shape index: {}]   ;;  %s1085_s7 = inlined_call_operand.hbm [shape: f32[40,32], index: 7, kind: output, shape index: {}]  }
   0x1   :  { %13 = vsyncpa [#allocation6], 0 }
   0x2   :  { %14 = vsyncpa [#allocation9], 0 }
   0x3   :  { %15 = vsyncpa [#allocation12], 0 }
   0x4   :  { %16 = vsyncpa [#allocation4], 0  ;;  %s830_s24 = smov [#allocation5]   ;;  %s831_s26 = smov [#allocation8]  }
   0x5   :  { %s35_s25 = sshll.u32 %s830_s24, 4  ;;  %s54_s27 = sshll.u32 %s831_s26, 4  ;;  %s36_s25 = int_to_ptr.vmem [resolvable:$true] %s35_s25  ;;  %s884_s27 = int_to_ptr.vmem [resolvable:$true] %s54_s27 }
   0x6   :  { %s644_s30 = scalar_lea.hbm %s1079_s1, 16 }
   0x7   :  { %p645_p0 = scmp.ne.s32.totalorder %s1079_s1, %s644_s30  ;;  %p648_p1 = scmp.lt.u32.totalorder %s644_s30, %s1079_s1 }
   0x9   :  { %p650_p2 = pnand %p648_p1, %p645_p0 }
   0xb   :  { %653 = shalt.err (!%p650_p2)
}
   0xc   :  { %s654_s12 = scalar_lea.vmem %s36_s25, 16  ;;  %s658_s13 = scalar_lea.vmem %s36_s25, 32 }
   0xd   :  { %p655_p3 = scmp.ne.s32.totalorder %s36_s25, %s654_s12  ;;  %p659_p4 = scmp.lt.s32.totalorder %s36_s25, %s36_s25 }
   0xe   :  { %p660_p5 = scmp.lt.s32.totalorder %s658_s13, %s654_s12 }
  0x10   :  { %p661_p6 = por %p660_p5, %p659_p4 }
  0x12   :  { %p662_p7 = pnand %p661_p6, %p655_p3 }
  0x14   :  { %665 = shalt.err (!%p662_p7)
}
  0x15   :  { %38 = dma.hbm_to_vmem [thread:$0]  %s1079_s1, 16, %s36_s25, [#allocation6]  }
  0x16   :  { %s666_s18 = scalar_lea.hbm %s1081_s3, 256 }
  0x17   :  { %p667_p8 = scmp.ne.s32.totalorder %s1081_s3, %s666_s18  ;;  %p670_p9 = scmp.lt.u32.totalorder %s666_s18, %s1081_s3 }
  0x19   :  { %p672_p10 = pnand %p670_p9, %p667_p8 }
  0x1b   :  { %675 = shalt.err (!%p672_p10)
}
  0x1c   :  { %s676_s23 = scalar_lea.vmem %s884_s27, 256  ;;  %p681_p12 = scmp.lt.s32.totalorder %s884_s27, %s884_s27 }
  0x1d   :  { %p677_p11 = scmp.ne.s32.totalorder %s884_s27, %s676_s23  ;;  %p682_p13 = scmp.lt.s32.totalorder %s676_s23, %s676_s23 }
  0x1f   :  { %p683_p0 = por %p682_p13, %p681_p12 }
  0x21   :  { %p684_p1 = pnand %p683_p0, %p677_p11 }
  0x23   :  { %687 = shalt.err (!%p684_p1)
}
  0x24   :  { %s832_s1 = smov 64   ;;  %s833_s24 = smov 4  }
  0x25   :  { %60 = dma.hbm_to_vmem [thread:$0]  %s1081_s3, 256, %s884_s27, [#allocation9], %s832_s1, %s832_s1, %s833_s24  }
  0x26   :  { %s834_s28 = smov [#allocation11]   ;;  %s835_s30 = smov [#allocation2]  }
  0x27   :  { %s76_s29 = sshll.u32 %s834_s28, 4  ;;  %s22_s8 = sshll.u32 %s835_s30, 4  ;;  %s77_s29 = int_to_ptr.vmem [resolvable:$true] %s76_s29  ;;  %s915_s8 = int_to_ptr.vmem [resolvable:$true] %s22_s8 }
  0x28   :  { %s688_s11 = scalar_lea.hbm %s1083_s5, 1024 }
  0x29   :  { %p689_p2 = scmp.ne.s32.totalorder %s1083_s5, %s688_s11  ;;  %p692_p3 = scmp.lt.u32.totalorder %s688_s11, %s1083_s5 }
  0x2b   :  { %p694_p4 = pnand %p692_p3, %p689_p2 }
  0x2d   :  { %697 = shalt.err (!%p694_p4)
}
  0x2e   :  { %s698_s3 = scalar_lea.vmem %s77_s29, 1024  ;;  %p703_p6 = scmp.lt.s32.totalorder %s77_s29, %s77_s29 }
  0x2f   :  { %p699_p5 = scmp.ne.s32.totalorder %s77_s29, %s698_s3  ;;  %p704_p7 = scmp.lt.s32.totalorder %s698_s3, %s698_s3 }
  0x31   :  { %p705_p8 = por %p704_p7, %p703_p6 }
  0x33   :  { %p706_p9 = pnand %p705_p8, %p699_p5 }
  0x35   :  { %709 = shalt.err (!%p706_p9)
}
  0x36   :  { %82 = dma.hbm_to_vmem [thread:$0]  %s1083_s5, 1024, %s77_s29, [#allocation12], %s832_s1, %s832_s1, %s833_s24  }
  0x37   :  { %s710_s19 = scalar_lea.hbm %s1078_s0, 640 }
  0x38   :  { %p711_p10 = scmp.ne.s32.totalorder %s1078_s0, %s710_s19  ;;  %p714_p11 = scmp.lt.u32.totalorder %s710_s19, %s1078_s0 }
  0x3a   :  { %p716_p12 = pnand %p714_p11, %p711_p10 }
  0x3c   :  { %719 = shalt.err (!%p716_p12)
}
  0x3d   :  { %s720_s25 = scalar_lea.vmem %s915_s8, 640  ;;  %p725_p0 = scmp.lt.s32.totalorder %s915_s8, %s915_s8 }
  0x3e   :  { %p721_p13 = scmp.ne.s32.totalorder %s915_s8, %s720_s25  ;;  %p726_p1 = scmp.lt.s32.totalorder %s720_s25, %s720_s25 }
  0x40   :  { %p727_p2 = por %p726_p1, %p725_p0 }
  0x42   :  { %p728_p3 = pnand %p727_p2, %p721_p13 }
  0x44   :  { %731 = shalt.err (!%p728_p3)
}
  0x45   :  { %s836_s5 = smov 128   ;;  %s837_s1 = smov 8  }
  0x46   :  { %28 = dma.hbm_to_vmem [thread:$0]  %s1078_s0, 640, %s915_s8, [#allocation3], %s836_s5, %s836_s5, %s837_s1  }
  0x47   :  { %s838_s28 = smov [#allocation7]   ;;  %s839_s30 = smov [#allocation10]  }
  0x48   :  { %s45_s29 = sshll.u32 %s838_s28, 4  ;;  %s67_s9 = sshll.u32 %s839_s30, 4  ;;  %s46_s29 = int_to_ptr.vmem [resolvable:$true] %s45_s29  ;;  %s68_s9 = int_to_ptr.vmem [resolvable:$true] %s67_s9 }
  0x49   :  { %s732_s12 = scalar_lea.hbm %s1080_s2, 16 }
  0x4a   :  { %p733_p4 = scmp.ne.s32.totalorder %s1080_s2, %s732_s12  ;;  %p736_p5 = scmp.lt.u32.totalorder %s732_s12, %s1080_s2 }
  0x4c   :  { %p738_p6 = pnand %p736_p5, %p733_p4 }
  0x4e   :  { %741 = shalt.err (!%p738_p6)
}
  0x4f   :  { %s742_s0 = scalar_lea.vmem %s46_s29, 16  ;;  %s746_s8 = scalar_lea.vmem %s46_s29, 32 }
  0x50   :  { %p743_p7 = scmp.ne.s32.totalorder %s46_s29, %s742_s0  ;;  %p747_p8 = scmp.lt.s32.totalorder %s46_s29, %s46_s29 }
  0x51   :  { %p748_p9 = scmp.lt.s32.totalorder %s746_s8, %s742_s0 }
  0x53   :  { %p749_p10 = por %p748_p9, %p747_p8 }
  0x55   :  { %p750_p11 = pnand %p749_p10, %p743_p7 }
  0x57   :  { %753 = shalt.err (!%p750_p11)
}
  0x58   :  { %48 = dma.hbm_to_vmem [thread:$0]  %s1080_s2, 16, %s46_s29, [#allocation6]  }
  0x59   :  { %s754_s19 = scalar_lea.hbm %s1082_s4, 16 }
  0x5a   :  { %p755_p12 = scmp.ne.s32.totalorder %s1082_s4, %s754_s19  ;;  %p758_p13 = scmp.lt.u32.totalorder %s754_s19, %s1082_s4 }
  0x5c   :  { %p760_p0 = pnand %p758_p13, %p755_p12 }
  0x5e   :  { %763 = shalt.err (!%p760_p0)
}
  0x5f   :  { %s764_s25 = scalar_lea.vmem %s68_s9, 16  ;;  %s768_s24 = scalar_lea.vmem %s68_s9, 32 }
  0x60   :  { %p765_p1 = scmp.ne.s32.totalorder %s68_s9, %s764_s25  ;;  %p769_p2 = scmp.lt.s32.totalorder %s68_s9, %s68_s9 }
  0x61   :  { %p770_p3 = scmp.lt.s32.totalorder %s768_s24, %s764_s25 }
  0x63   :  { %p771_p4 = por %p770_p3, %p769_p2 }
  0x65   :  { %p772_p5 = pnand %p771_p4, %p765_p1 }
  0x67   :  { %775 = shalt.err (!%p772_p5)
}
  0x68   :  { %70 = dma.hbm_to_vmem [thread:$0]  %s1082_s4, 16, %s68_s9, [#allocation9]  }
  0x69   :  { %s840_s28 = smov [#allocation13]   ;;  %s776_s11 = scalar_lea.hbm %s1084_s6, 16 }
  0x6a   :  { %s89_s29 = sshll.u32 %s840_s28, 4  ;;  %p777_p6 = scmp.ne.s32.totalorder %s1084_s6, %s776_s11  ;;  %s90_s29 = int_to_ptr.vmem [resolvable:$true] %s89_s29 }
  0x6b   :  { %p780_p7 = scmp.lt.u32.totalorder %s776_s11, %s1084_s6 }
  0x6d   :  { %p782_p8 = pnand %p780_p7, %p777_p6 }
  0x6f   :  { %785 = shalt.err (!%p782_p8)
}
  0x70   :  { %s786_s3 = scalar_lea.vmem %s90_s29, 16  ;;  %s790_s4 = scalar_lea.vmem %s90_s29, 32 }
  0x71   :  { %p787_p9 = scmp.ne.s32.totalorder %s90_s29, %s786_s3  ;;  %p791_p10 = scmp.lt.s32.totalorder %s90_s29, %s90_s29 }
  0x72   :  { %p792_p11 = scmp.lt.s32.totalorder %s790_s4, %s786_s3 }
  0x74   :  { %p793_p12 = por %p792_p11, %p791_p10 }
  0x76   :  { %p794_p13 = pnand %p793_p12, %p787_p9 }
  0x78   :  { %797 = shalt.err (!%p794_p13)
}
  0x79   :  { %92 = dma.hbm_to_vmem [thread:$0]  %s1084_s6, 16, %s90_s29, [#allocation12]  }
  0x7a   :  { %820 = dma.done.wait [#allocation3], 640  }
  0x7b   :  { %821 = vsyncadd [#allocation3], 4294966656 }
  0x7c   :  { %822 = dma.done.wait [#allocation6], 32  }
  0x7d   :  { %823 = vsyncadd [#allocation6], 4294967264 }
  0x7e   :  { %824 = dma.done.wait [#allocation9], 272  }
  0x7f   :  { %825 = vsyncadd [#allocation9], 4294967024 }
  0x80   :  { %826 = dma.done.wait [#allocation12], 1040  }
  0x81   :  { %827 = vsyncadd [#allocation12], 4294966256  ;;  %vm122_vm0 = vcmask 261120   ;;  %v985_v0 = vld [vmem:[#allocation2] sm:$0xff]  ;;  %v987_v1 = vld [vmem:[#allocation2 + $0x10] sm:$0xff]  ;;  %v841_v36 = vmov 0.0  }
  0x82   :  { %v989_v2 = vld [vmem:[#allocation2 + $0x8] sm:$0xff]  ;;  %v123_v3 = vsel %vm122_vm0, %v985_v0, 0.0  ;;  %v129_v4 = vsel %vm122_vm0, %v987_v1, 0.0  ;;  %v997_v6 = vld [vmem:[#allocation2 + $0x18] sm:$0xff]  ;;  %v999_v7 = vld [vmem:[#allocation2 + $0x20] sm:$0xff]  ;;  %540 = vmatprep.subr.bf16.mxu0 %v841_v36  ;;  %584 = vmatprep.subr.bf16.mxu1 %v841_v36  ;;  %vm842_vm1 = vmmov 0  }
  0x83   :  { %v126_v5 = vsel %vm122_vm0, %v989_v2, 0.0  ;;  %124 = vadd.xlane.f32.xlu0 %v123_v3  ;;  %130 = vadd.xlane.f32.xlu1 %v129_v4  ;;  %v132_v8 = vsel %vm122_vm0, %v997_v6, 0.0  ;;  %v135_v9 = vsel %vm122_vm0, %v999_v7, 0.0  ;;  %v614_v35 = vld [vmem:[#allocation8] sm:$0xff]   ;;  %v615_v37 = vld [vmem:[#allocation8 + $0x8] sm:$0xff]   ;;  %s843_s6 = smov [#allocation14]  }
  0x84   :  { %541 = vmatpush3.bf16.msra.mxu0 %v614_v35  ;;  %544 = vmatprep.mubr.msk.bf16.mxu0 %vm842_vm1, %v841_v36  ;;  %v507_v55 = vld [vmem:[#allocation5] ss:$0 sm:$0xff]  ;;  %v508_v60 = vld [vmem:[#allocation7] ss:$0 sm:$0xff]  ;;  %s492_s8 = sshll.u32 %s843_s6, 4  ;;  %s493_s8 = int_to_ptr.vmem [resolvable:$true] %s492_s8 }
  0x85   :  { %542 = vmatprep.subr.bf16.mxu0 %v841_v36  ;;  %576 = vmatprep.mubr.msk.bf16.mxu1 %vm842_vm1, %v841_v36  ;;  %s798_s27 = scalar_lea.vmem %s493_s8, 640  ;;  %p803_p1 = scmp.lt.s32.totalorder %s493_s8, %s493_s8 }
  0x86   :  { %p799_p0 = scmp.ne.s32.totalorder %s493_s8, %s798_s27  ;;  %p804_p2 = scmp.lt.s32.totalorder %s798_s27, %s798_s27 }
  0x87   :  { %127 = vadd.xlane.f32.xlu0 %v126_v5  ;;  %133 = vadd.xlane.f32.xlu1 %v132_v8 }
  0x88   :  { %543 = vmatpush3.bf16.msra.mxu0 %v615_v37  ;;  %p805_p3 = por %p804_p2, %p803_p1 }
  0x89   :  { %556 = vmatprep.subr.bf16.mxu0 %v841_v36 }
  0x8a   :  { %p806_p4 = pnand %p805_p3, %p799_p0 }
  0x8b   :  { %136 = vadd.xlane.f32.xlu0 %v135_v9 }
 0x110   :  { %v125_v10 = vpop.xlane.xlu0 %124  ;;  %v131_v11 = vpop.xlane.xlu1 %130 }
 0x111   :  { %v139_v12 = vmul.f32 0.03125, %v125_v10  ;;  %v141_v13 = vmul.f32 0.03125, %v131_v11 }
 0x113   :  { %v144_v14 = vsub.f32 %v985_v0, %v139_v12  ;;  %v1007_v15 = vsub.f32 %v987_v1, %v141_v13 }
 0x114   :  { %v128_v16 = vpop.xlane.xlu0 %127  ;;  %v134_v17 = vpop.xlane.xlu1 %133 }
 0x115   :  { %v140_v18 = vmul.f32 0.03125, %v128_v16  ;;  %v142_v19 = vmul.f32 0.03125, %v134_v17  ;;  %v149_v20 = vmul.f32 %v144_v14, %v144_v14  ;;  %v151_v21 = vmul.f32 %v1007_v15, %v1007_v15 }
 0x117   :  { %v145_v22 = vsub.f32 %v989_v2, %v140_v18  ;;  %v147_v23 = vsub.f32 %v997_v6, %v142_v19  ;;  %v154_v24 = vsel %vm122_vm0, %v149_v20, 0.0  ;;  %v160_v27 = vsel %vm122_vm0, %v151_v21, 0.0  ;;  %v616_v19 = vld [vmem:[#allocation11] sm:$0xff]   ;;  %v617_v20 = vld [vmem:[#allocation11 + $0x8] sm:$0xff]   ;;  %v618_v21 = vld [vmem:[#allocation11 + $0x10] sm:$0xff]  }
 0x118   :  { %155 = vadd.xlane.f32.xlu1 %v154_v24  ;;  %v137_v25 = vpop.xlane.xlu0 %136  ;;  %592 = vmatpush3.bf16.msra.mxu1 %v616_v19  ;;  %v621_v24 = vld [vmem:[#allocation11 + $0x28] sm:$0xff]  }
 0x119   :  { %v143_v26 = vmul.f32 0.03125, %v137_v25  ;;  %v150_v28 = vmul.f32 %v145_v22, %v145_v22  ;;  %v152_v29 = vmul.f32 %v147_v23, %v147_v23  ;;  %585 = vmatprep.subr.bf16.mxu1 %v841_v36  ;;  %v622_v25 = vld [vmem:[#allocation11 + $0x30] sm:$0xff]  }
 0x11b   :  { %v148_v30 = vsub.f32 %v999_v7, %v143_v26  ;;  %v157_v31 = vsel %vm122_vm0, %v150_v28, 0.0  ;;  %v163_v32 = vsel %vm122_vm0, %v152_v29, 0.0  ;;  %v623_v26 = vld [vmem:[#allocation11 + $0x38] sm:$0xff]  }
 0x11c   :  { %161 = vadd.xlane.f32.xlu1 %v160_v27  ;;  %158 = vadd.xlane.f32.xlu0 %v157_v31  ;;  %v509_v27 = vld [vmem:[#allocation10] ss:$0 sm:$0xff] }
 0x11d   :  { %v153_v33 = vmul.f32 %v148_v30, %v148_v30  ;;  %593 = vmatpush3.bf16.msra.mxu1 %v617_v20 }
 0x11e   :  { %586 = vmatprep.subr.bf16.mxu1 %v841_v36 }
 0x11f   :  { %v166_v34 = vsel %vm122_vm0, %v153_v33, 0.0 }
 0x120   :  { %164 = vadd.xlane.f32.xlu0 %v163_v32  ;;  %167 = vadd.xlane.f32.xlu1 %v166_v34 }
 0x121   :  { %594 = vmatpush3.bf16.msra.mxu1 %v618_v21 }
 0x122   :  { %587 = vmatprep.subr.bf16.mxu1 %v841_v36 }
 0x1a5   :  { %v156_v38 = vpop.xlane.xlu1 %155 }
 0x1a6   :  { %v169_v39 = vmul.f32 0.03125, %v156_v38 }
 0x1a8   :  { %v174_v40 = vadd.f32 1e-05, %v169_v39 }
 0x1a9   :  { %v162_v41 = vpop.xlane.xlu1 %161  ;;  %v159_v42 = vpop.xlane.xlu0 %158 }
 0x1aa   :  { %624 = vrsqrt.f32 %v174_v40  ;;  %v171_v43 = vmul.f32 0.03125, %v162_v41  ;;  %v170_v44 = vmul.f32 0.03125, %v159_v42 }
 0x1ac   :  { %v175_v45 = vadd.f32 1e-05, %v170_v44  ;;  %v176_v46 = vadd.f32 1e-05, %v171_v43 }
 0x1ad   :  { %v168_v47 = vpop.xlane.xlu1 %167  ;;  %v165_v48 = vpop.xlane.xlu0 %164 }
 0x1ae   :  { %v172_v49 = vmul.f32 0.03125, %v165_v48  ;;  %626 = vrsqrt.f32 %v175_v45  ;;  %v173_v50 = vmul.f32 0.03125, %v168_v47 }
 0x1af   :  { %628 = vrsqrt.f32 %v176_v46 }
 0x1b0   :  { %v177_v51 = vadd.f32 1e-05, %v172_v49  ;;  %v178_v52 = vadd.f32 1e-05, %v173_v50 }
 0x1b2   :  { %630 = vrsqrt.f32 %v177_v51 }
 0x1b3   :  { %632 = vrsqrt.f32 %v178_v52 }
 0x1b4   :  { %v625_v53 = vpop.eup %624 }
 0x1b5   :  { %v184_v54 = vmul.f32 %v625_v53, %v144_v14 }
 0x1b7   :  { %v195_v58 = vmul.f32 %v507_v55, %v184_v54 }
 0x1b8   :  { %v627_v56 = vpop.eup %626 }
 0x1b9   :  { %v185_v57 = vmul.f32 %v627_v56, %v145_v22  ;;  %v629_v59 = vpop.eup %628  ;;  %v206_v4 = vadd.f32 %v508_v60, %v195_v58  ;;  %v619_v22 = vld [vmem:[#allocation11 + $0x18] sm:$0xff]  }
 0x1ba   :  { %v186_v63 = vmul.f32 %v629_v59, %v1007_v15  ;;  %595 = vmatpush3.bf16.msra.mxu1 %v619_v22 }
 0x1bb   :  { %v196_v61 = vmul.f32 %v507_v55, %v185_v57  ;;  %588 = vmatprep.subr.bf16.mxu1 %v841_v36 }
 0x1bc   :  { %v631_v62 = vpop.eup %630  ;;  %v197_v11 = vmul.f32 %v507_v55, %v186_v63 }
 0x1bd   :  { %v187_v3 = vmul.f32 %v631_v62, %v147_v23  ;;  %v207_v5 = vadd.f32 %v508_v60, %v196_v61  ;;  %v633_v10 = vpop.eup %632  ;;  %v620_v23 = vld [vmem:[#allocation11 + $0x20] sm:$0xff]  }
 0x1be   :  { %v188_v12 = vmul.f32 %v633_v10, %v148_v30  ;;  %v208_v14 = vadd.f32 %v508_v60, %v197_v11  ;;  %596 = vmatpush3.bf16.msra.mxu1 %v620_v23 }
 0x1bf   :  { %v211_v8 = vpack.c.bf16 %v207_v5, %v206_v4  ;;  %v198_v9 = vmul.f32 %v507_v55, %v187_v3  ;;  %589 = vmatprep.subr.bf16.mxu1 %v841_v36 }
 0x1c0   :  { %v199_v17 = vmul.f32 %v507_v55, %v188_v12 }
 0x1c1   :  { %545 = vmatmul.mubr.msk.bf16.vlgmr.msra.gmra.mrb[0].mxu0 %vm122_vm0, %v211_v8  ;;  %v209_v13 = vadd.f32 %v508_v60, %v198_v9 }
 0x1c2   :  { %548 = vmatprep.mubr.msk.bf16.mxu0 %vm842_vm1, %v841_v36  ;;  %v210_v15 = vadd.f32 %v508_v60, %v199_v17  ;;  %557 = vmatpush3.bf16.msra.mxu0 %v616_v19 }
 0x1c3   :  { %v212_v16 = vpack.c.bf16 %v209_v13, %v208_v14  ;;  %558 = vmatprep.subr.bf16.mxu0 %v841_v36  ;;  %597 = vmatpush3.bf16.msra.mxu1 %v621_v24 }
 0x1c4   :  { %v213_v18 = vpack.c.bf16 %v210_v15, %v210_v15  ;;  %590 = vmatprep.subr.bf16.mxu1 %v841_v36 }
 0x1c6   :  { %559 = vmatpush3.bf16.msra.mxu0 %v617_v20 }
 0x1c7   :  { %560 = vmatprep.subr.bf16.mxu0 %v841_v36  ;;  %598 = vmatpush3.bf16.msra.mxu1 %v622_v25 }
 0x1c8   :  { %591 = vmatprep.subr.bf16.mxu1 %v841_v36 }
 0x1c9   :  { %549 = vmatmul.mubr.msk.bf16.gmra.mrb[4].mxu0 %vm122_vm0, %v212_v16 }
 0x1ca   :  { %552 = vmatprep.mubr.msk.bf16.mxu0 %vm842_vm1, %v841_v36  ;;  %561 = vmatpush3.bf16.msra.mxu0 %v618_v21 }
 0x1cb   :  { %562 = vmatprep.subr.bf16.mxu0 %v841_v36  ;;  %599 = vmatpush3.bf16.msra.mxu1 %v623_v26 }
 0x1ce   :  { %563 = vmatpush3.bf16.msra.mxu0 %v619_v22 }
 0x1cf   :  { %564 = vmatprep.subr.bf16.mxu0 %v841_v36 }
 0x1d1   :  { %553 = vmatmul.mubr.msk.bf16.gmra.mrb[8].mxu0 %vm122_vm0, %v213_v18 }
 0x1d2   :  { %572 = vmatprep.mubr.msk.bf16.mxu0 %vm842_vm1, %v841_v36  ;;  %565 = vmatpush3.bf16.msra.mxu0 %v620_v23 }
 0x1d3   :  { %566 = vmatprep.subr.bf16.mxu0 %v841_v36 }
 0x1d6   :  { %567 = vmatpush3.bf16.msra.mxu0 %v621_v24 }
 0x1d7   :  { %568 = vmatprep.subr.bf16.mxu0 %v841_v36 }
 0x1da   :  { %569 = vmatpush3.bf16.msra.mxu0 %v622_v25 }
 0x1db   :  { %570 = vmatprep.subr.bf16.mxu0 %v841_v36 }
 0x1de   :  { %571 = vmatpush3.bf16.msra.mxu0 %v623_v26 }
 0x294   :  { %v280_v28 = vpop.f32.mrb[0].mxu0 }
 0x295   :  { %v281_v29 = vadd.f32 %v509_v27, %v280_v28  ;;  %v546_v30 = vpop.f32.mrb[1].mxu0 }
 0x296   :  { %v283_v31 = vpop.f32.mrb[2].mxu0 }
 0x297   :  { %v307_v32 = vmul.f32 0.044715, %v281_v29  ;;  %v284_v33 = vadd.f32 %v509_v27, %v283_v31  ;;  %v547_v34 = vpop.f32.mrb[3].mxu0  ;;  %v302_v14 = vmul.f32 0.5, %v281_v29 }
 0x299   :  { %v312_v35 = vmul.f32 %v307_v32, %v281_v29  ;;  %v308_v37 = vmul.f32 0.044715, %v284_v33  ;;  %v303_v16 = vmul.f32 0.5, %v284_v33 }
 0x29b   :  { %v317_v38 = vmul.f32 %v312_v35, %v281_v29  ;;  %v313_v39 = vmul.f32 %v308_v37, %v284_v33  ;;  %v515_v35 = vld [vmem:[#allocation13] ss:$0 sm:$0xff] }
 0x29c   :  { %v288_v40 = vpop.f32.mrb[4].mxu0 }
 0x29d   :  { %v322_v41 = vadd.f32 %v317_v38, %v281_v29  ;;  %v318_v42 = vmul.f32 %v313_v39, %v284_v33  ;;  %v289_v43 = vadd.f32 %v509_v27, %v288_v40  ;;  %v550_v44 = vpop.f32.mrb[5].mxu0 }
 0x29e   :  { %v291_v45 = vpop.f32.mrb[6].mxu0 }
 0x29f   :  { %v327_v46 = vmul.f32 0.7978846, %v322_v41  ;;  %v323_v47 = vadd.f32 %v318_v42, %v284_v33  ;;  %v309_v48 = vmul.f32 0.044715, %v289_v43  ;;  %v292_v49 = vadd.f32 %v509_v27, %v291_v45  ;;  %v551_v50 = vpop.f32.mrb[7].mxu0 }
 0x2a0   :  { %v304_v24 = vmul.f32 0.5, %v289_v43 }
 0x2a1   :  { %634 = vtanh.f32 %v327_v46  ;;  %v328_v51 = vmul.f32 0.7978846, %v323_v47  ;;  %v314_v52 = vmul.f32 %v309_v48, %v289_v43  ;;  %v310_v53 = vmul.f32 0.044715, %v292_v49 }
 0x2a2   :  { %v305_v25 = vmul.f32 0.5, %v292_v49 }
 0x2a3   :  { %636 = vtanh.f32 %v328_v51  ;;  %v319_v54 = vmul.f32 %v314_v52, %v289_v43  ;;  %v315_v55 = vmul.f32 %v310_v53, %v292_v49 }
 0x2a4   :  { %v296_v56 = vpop.f32.mrb[8].mxu0 }
 0x2a5   :  { %v320_v57 = vmul.f32 %v315_v55, %v292_v49  ;;  %v297_v58 = vadd.f32 %v509_v27, %v296_v56  ;;  %v554_v59 = vpop.f32.mrb[9].mxu0  ;;  %v324_v60 = vadd.f32 %v319_v54, %v289_v43 }
 0x2a6   :  { %v299_v61 = vpop.f32.mrb[10].mxu0 }
 0x2a7   :  { %v311_v62 = vmul.f32 0.044715, %v297_v58  ;;  %v555_v63 = vpop.f32.mrb[11].mxu0  ;;  %v325_v3 = vadd.f32 %v320_v57, %v292_v49  ;;  %v329_v4 = vmul.f32 0.7978846, %v324_v60  ;;  %v306_v29 = vmul.f32 0.5, %v297_v58 }
 0x2a9   :  { %v316_v5 = vmul.f32 %v311_v62, %v297_v58  ;;  %v330_v8 = vmul.f32 0.7978846, %v325_v3  ;;  %638 = vtanh.f32 %v329_v4 }
 0x2ab   :  { %v635_v9 = vpop.eup %634  ;;  %640 = vtanh.f32 %v330_v8  ;;  %v321_v10 = vmul.f32 %v316_v5, %v297_v58 }
 0x2ac   :  { %v337_v11 = vadd.f32 1.0, %v635_v9 }
 0x2ad   :  { %v637_v12 = vpop.eup %636  ;;  %v326_v13 = vadd.f32 %v321_v10, %v297_v58 }
 0x2ae   :  { %v338_v17 = vadd.f32 1.0, %v637_v12  ;;  %v342_v18 = vmul.f32 %v337_v11, %v302_v14 }
 0x2af   :  { %v331_v15 = vmul.f32 0.7978846, %v326_v13 }
 0x2b0   :  { %v343_v19 = vmul.f32 %v338_v17, %v303_v16 }
 0x2b1   :  { %642 = vtanh.f32 %v331_v15 }
 0x2b2   :  { %v347_v20 = vpack.c.bf16 %v343_v19, %v342_v18 }
 0x2b3   :  { %v639_v21 = vpop.eup %638 }
 0x2b4   :  { %573 = vmatmul.mubr.bf16.vlgmr.msra.gmra.mrb[12].mxu0 %v347_v20  ;;  %v339_v22 = vadd.f32 1.0, %v639_v21 }
 0x2b5   :  { %v641_v23 = vpop.eup %640 }
 0x2b6   :  { %v340_v26 = vadd.f32 1.0, %v641_v23  ;;  %v344_v27 = vmul.f32 %v339_v22, %v304_v24 }
 0x2b8   :  { %v345_v28 = vmul.f32 %v340_v26, %v305_v25 }
 0x2ba   :  { %v348_v30 = vpack.c.bf16 %v345_v28, %v344_v27 }
 0x2bb   :  { %v643_v31 = vpop.eup %642 }
 0x2bc   :  { %577 = vmatmul.mubr.bf16.vlgmr.msra.gmra.mrb[0].mxu1 %v348_v30  ;;  %v341_v32 = vadd.f32 1.0, %v643_v31 }
 0x2bd   :  { %580 = vmatprep.mubr.msk.bf16.mxu1 %vm842_vm1, %v841_v36 }
 0x2be   :  { %v346_v33 = vmul.f32 %v341_v32, %v306_v29 }
 0x2c0   :  { %v349_v34 = vpack.c.bf16 %v346_v33, %v346_v33 }
 0x2c4   :  { %581 = vmatmul.mubr.bf16.gmra.mrb[4].mxu1 %v349_v34 }
 0x387   :  { %v455_v37 = vpop.f32.mrb[12].mxu0 }
 0x388   :  { %v456_v38 = vadd.f32 %v515_v35, %v455_v37  ;;  %v574_v39 = vpop.f32.mrb[13].mxu0 }
 0x389   :  { %v458_v40 = vpop.f32.mrb[14].mxu0 }
 0x38a   :  { %v477_v41 = vadd.f32 %v456_v38, %v985_v0  ;;  %v459_v42 = vadd.f32 %v515_v35, %v458_v40  ;;  %v575_v43 = vpop.f32.mrb[15].mxu0 }
 0x38c   :  { %482 = vst.msk [vmem:[#allocation14] sm:$0xff] %vm122_vm0, %v477_v41  ;;  %v478_v44 = vadd.f32 %v459_v42, %v989_v2 }
 0x38e   :  { %483 = vst.msk [vmem:[#allocation14 + $0x8] sm:$0xff] %vm122_vm0, %v478_v44 }
 0x38f   :  { %v463_v45 = vpop.f32.mrb[0].mxu1 }
 0x390   :  { %v464_v36 = vadd.f32 %v515_v35, %v463_v45  ;;  %v578_v46 = vpop.f32.mrb[1].mxu1 }
 0x391   :  { %v466_v47 = vpop.f32.mrb[2].mxu1 }
 0x392   :  { %v479_v48 = vadd.f32 %v464_v36, %v987_v1  ;;  %v467_v49 = vadd.f32 %v515_v35, %v466_v47  ;;  %v579_v50 = vpop.f32.mrb[3].mxu1 }
 0x394   :  { %484 = vst.msk [vmem:[#allocation14 + $0x10] sm:$0xff] %vm122_vm0, %v479_v48  ;;  %v480_v0 = vadd.f32 %v467_v49, %v997_v6 }
 0x396   :  { %485 = vst.msk [vmem:[#allocation14 + $0x18] sm:$0xff] %vm122_vm0, %v480_v0 }
 0x397   :  { %v471_v51 = vpop.f32.mrb[4].mxu1 }
 0x398   :  { %v472_v2 = vadd.f32 %v515_v35, %v471_v51  ;;  %v582_v52 = vpop.f32.mrb[5].mxu1 }
 0x399   :  { %v474_v53 = vpop.f32.mrb[6].mxu1 }
 0x39a   :  { %v481_v54 = vadd.f32 %v472_v2, %v999_v7  ;;  %v583_v55 = vpop.f32.mrb[7].mxu1 }
 0x39c   :  { %486 = vst.msk [vmem:[#allocation14 + $0x20] sm:$0xff] %vm122_vm0, %v481_v54 }
 0x39d   :  { %809 = shalt.err (!%p806_p4)
}
 0x39e   :  { %s810_s18 = scalar_lea.hbm %s1085_s7, 640 }
 0x39f   :  { %p811_p5 = scmp.ne.s32.totalorder %s1085_s7, %s810_s18  ;;  %p814_p6 = scmp.lt.u32.totalorder %s810_s18, %s1085_s7 }
 0x3a1   :  { %p816_p7 = pnand %p814_p6, %p811_p5 }
 0x3a3   :  { %819 = shalt.err (!%p816_p7)
}
 0x3a4   :  { %498 = dma.vmem_to_hbm [thread:$0]  %s493_s8, 640, %s1085_s7, [#allocation4], %s836_s5, %s836_s5, %s837_s1  }
 0x3a5   :  { %828 = dma.done.wait [#allocation4], 640  }
 0x3a6   :  { %829 = vsyncadd [#allocation4], 4294966656 }
 0x3a7   :  { %502 = vsyncpa [#allocation3], 1 }
 0x3a8   :  { %503 = vsyncpa [#allocation6], 1 }
 0x3a9   :  { %504 = vsyncpa [#allocation9], 1 }
 0x3aa   :  { %505 = vsyncpa [#allocation12], 1 }
 0x3ab   :  { %506 = vsyncpa [#allocation4], 1 }

// kernel: surface_field_autoencoder_forward.41
= control target key start
LH: loop header
LB: loop body
LE: loop exit
PB: predicated region body
PF: predicated region fallthrough
CT: control target
= control target key end

     0   :  { %8 = vsyncpa [#allocation3], 0  ;;  %s385_s0 = inlined_call_operand.hbm [shape: f32[40,32], index: 0, kind: input, shape index: {}]   ;;  %s386_s1 = inlined_call_operand.hbm [shape: f32[1,32], index: 1, kind: input, shape index: {}]   ;;  %s387_s2 = inlined_call_operand.hbm [shape: f32[1,32], index: 2, kind: input, shape index: {}]   ;;  %s388_s3 = inlined_call_operand.hbm [shape: f32[40,32], index: 3, kind: output, shape index: {}]  }
   0x1   :  { %9 = vsyncpa [#allocation6], 0 }
   0x2   :  { %10 = vsyncpa [#allocation4], 0  ;;  %s283_s12 = smov [#allocation5]   ;;  %s284_s14 = smov [#allocation2]  }
   0x3   :  { %s29_s13 = sshll.u32 %s283_s12, 4  ;;  %s16_s15 = sshll.u32 %s284_s14, 4  ;;  %s30_s13 = int_to_ptr.vmem [resolvable:$true] %s29_s13  ;;  %s309_s15 = int_to_ptr.vmem [resolvable:$true] %s16_s15 }
   0x4   :  { %s189_s18 = scalar_lea.hbm %s386_s1, 16 }
   0x5   :  { %p190_p0 = scmp.ne.s32.totalorder %s386_s1, %s189_s18  ;;  %p193_p1 = scmp.lt.u32.totalorder %s189_s18, %s386_s1 }
   0x7   :  { %p195_p2 = pnand %p193_p1, %p190_p0 }
   0x9   :  { %198 = shalt.err (!%p195_p2)
}
   0xa   :  { %s199_s23 = scalar_lea.vmem %s30_s13, 16  ;;  %s203_s24 = scalar_lea.vmem %s30_s13, 32 }
   0xb   :  { %p200_p3 = scmp.ne.s32.totalorder %s30_s13, %s199_s23  ;;  %p204_p4 = scmp.lt.s32.totalorder %s30_s13, %s30_s13 }
   0xc   :  { %p205_p5 = scmp.lt.s32.totalorder %s203_s24, %s199_s23 }
   0xe   :  { %p206_p6 = por %p205_p5, %p204_p4 }
  0x10   :  { %p207_p7 = pnand %p206_p6, %p200_p3 }
  0x12   :  { %210 = shalt.err (!%p207_p7)
}
  0x13   :  { %32 = dma.hbm_to_vmem [thread:$0]  %s386_s1, 16, %s30_s13, [#allocation6]  }
  0x14   :  { %s211_s29 = scalar_lea.hbm %s385_s0, 640 }
  0x15   :  { %p212_p8 = scmp.ne.s32.totalorder %s385_s0, %s211_s29  ;;  %p215_p9 = scmp.lt.u32.totalorder %s211_s29, %s385_s0 }
  0x17   :  { %p217_p10 = pnand %p215_p9, %p212_p8 }
  0x19   :  { %220 = shalt.err (!%p217_p10)
}
  0x1a   :  { %s221_s7 = scalar_lea.vmem %s309_s15, 640  ;;  %p226_p12 = scmp.lt.s32.totalorder %s309_s15, %s309_s15 }
  0x1b   :  { %p222_p11 = scmp.ne.s32.totalorder %s309_s15, %s221_s7  ;;  %p227_p13 = scmp.lt.s32.totalorder %s221_s7, %s221_s7 }
  0x1d   :  { %p228_p0 = por %p227_p13, %p226_p12 }
  0x1f   :  { %p229_p1 = pnand %p228_p0, %p222_p11 }
  0x21   :  { %232 = shalt.err (!%p229_p1)
}
  0x22   :  { %s285_s1 = smov 128   ;;  %s286_s8 = smov 8  }
  0x23   :  { %22 = dma.hbm_to_vmem [thread:$0]  %s385_s0, 640, %s309_s15, [#allocation3], %s285_s1, %s285_s1, %s286_s8  }
  0x24   :  { %s287_s11 = smov [#allocation7]   ;;  %s233_s16 = scalar_lea.hbm %s387_s2, 16 }
  0x25   :  { %s39_s12 = sshll.u32 %s287_s11, 4  ;;  %p234_p2 = scmp.ne.s32.totalorder %s387_s2, %s233_s16  ;;  %s40_s12 = int_to_ptr.vmem [resolvable:$true] %s39_s12 }
  0x26   :  { %p237_p3 = scmp.lt.u32.totalorder %s233_s16, %s387_s2 }
  0x28   :  { %p239_p4 = pnand %p237_p3, %p234_p2 }
  0x2a   :  { %242 = shalt.err (!%p239_p4)
}
  0x2b   :  { %s243_s21 = scalar_lea.vmem %s40_s12, 16  ;;  %s247_s0 = scalar_lea.vmem %s40_s12, 32 }
  0x2c   :  { %p244_p5 = scmp.ne.s32.totalorder %s40_s12, %s243_s21  ;;  %p248_p6 = scmp.lt.s32.totalorder %s40_s12, %s40_s12 }
  0x2d   :  { %p249_p7 = scmp.lt.s32.totalorder %s247_s0, %s243_s21 }
  0x2f   :  { %p250_p8 = por %p249_p7, %p248_p6 }
  0x31   :  { %p251_p9 = pnand %p250_p8, %p244_p5 }
  0x33   :  { %254 = shalt.err (!%p251_p9)
}
  0x34   :  { %42 = dma.hbm_to_vmem [thread:$0]  %s387_s2, 16, %s40_s12, [#allocation6]  }
  0x35   :  { %277 = dma.done.wait [#allocation3], 640  }
  0x36   :  { %278 = vsyncadd [#allocation3], 4294966656 }
  0x37   :  { %279 = dma.done.wait [#allocation6], 32  }
  0x38   :  { %280 = vsyncadd [#allocation6], 4294967264  ;;  %vm59_vm0 = vcmask 261120   ;;  %v52_v0 = vld [vmem:[#allocation2] sm:$0xff]  ;;  %v54_v1 = vld [vmem:[#allocation2 + $0x10] sm:$0xff]  ;;  %s288_s2 = smov [#allocation8]  }
  0x39   :  { %v53_v2 = vld [vmem:[#allocation2 + $0x8] sm:$0xff]  ;;  %v60_v3 = vsel %vm59_vm0, %v52_v0, 0.0  ;;  %v66_v4 = vsel %vm59_vm0, %v54_v1, 0.0  ;;  %v55_v5 = vld [vmem:[#allocation2 + $0x18] sm:$0xff]  ;;  %v56_v8 = vld [vmem:[#allocation2 + $0x20] sm:$0xff]  ;;  %s158_s23 = sshll.u32 %s288_s2, 4  ;;  %s159_s23 = int_to_ptr.vmem [resolvable:$true] %s158_s23 }
  0x3a   :  { %61 = vadd.xlane.f32.xlu0 %v60_v3  ;;  %67 = vadd.xlane.f32.xlu1 %v66_v4  ;;  %v63_v6 = vsel %vm59_vm0, %v53_v2, 0.0  ;;  %v69_v7 = vsel %vm59_vm0, %v55_v5, 0.0  ;;  %v72_v9 = vsel %vm59_vm0, %v56_v8, 0.0  ;;  %v171_v51 = vld [vmem:[#allocation5] ss:$0 sm:$0xff]  ;;  %s255_s24 = scalar_lea.vmem %s159_s23, 640  ;;  %p260_p11 = scmp.lt.s32.totalorder %s159_s23, %s159_s23 }
  0x3b   :  { %v172_v53 = vld [vmem:[#allocation7] ss:$0 sm:$0xff]  ;;  %p256_p10 = scmp.ne.s32.totalorder %s159_s23, %s255_s24  ;;  %p261_p12 = scmp.lt.s32.totalorder %s255_s24, %s255_s24 }
  0x3d   :  { %p262_p13 = por %p261_p12, %p260_p11 }
  0x3e   :  { %64 = vadd.xlane.f32.xlu0 %v63_v6  ;;  %70 = vadd.xlane.f32.xlu1 %v69_v7 }
  0x3f   :  { %p263_p0 = pnand %p262_p13, %p256_p10 }
  0x42   :  { %73 = vadd.xlane.f32.xlu0 %v72_v9 }
  0xc7   :  { %v62_v10 = vpop.xlane.xlu0 %61  ;;  %v68_v11 = vpop.xlane.xlu1 %67 }
  0xc8   :  { %v76_v12 = vmul.f32 0.03125, %v62_v10  ;;  %v78_v13 = vmul.f32 0.03125, %v68_v11 }
  0xca   :  { %v81_v14 = vsub.f32 %v52_v0, %v76_v12  ;;  %v83_v15 = vsub.f32 %v54_v1, %v78_v13 }
  0xcb   :  { %v65_v16 = vpop.xlane.xlu0 %64  ;;  %v71_v17 = vpop.xlane.xlu1 %70 }
  0xcc   :  { %v77_v18 = vmul.f32 0.03125, %v65_v16  ;;  %v79_v19 = vmul.f32 0.03125, %v71_v17  ;;  %v86_v20 = vmul.f32 %v81_v14, %v81_v14  ;;  %v88_v21 = vmul.f32 %v83_v15, %v83_v15 }
  0xce   :  { %v82_v22 = vsub.f32 %v53_v2, %v77_v18  ;;  %v84_v23 = vsub.f32 %v55_v5, %v79_v19  ;;  %v91_v24 = vsel %vm59_vm0, %v86_v20, 0.0  ;;  %v97_v27 = vsel %vm59_vm0, %v88_v21, 0.0 }
  0xcf   :  { %92 = vadd.xlane.f32.xlu1 %v91_v24  ;;  %v74_v25 = vpop.xlane.xlu0 %73 }
  0xd0   :  { %v80_v26 = vmul.f32 0.03125, %v74_v25  ;;  %v87_v28 = vmul.f32 %v82_v22, %v82_v22  ;;  %v89_v29 = vmul.f32 %v84_v23, %v84_v23 }
  0xd2   :  { %v85_v30 = vsub.f32 %v56_v8, %v80_v26  ;;  %v94_v31 = vsel %vm59_vm0, %v87_v28, 0.0  ;;  %v100_v32 = vsel %vm59_vm0, %v89_v29, 0.0 }
  0xd3   :  { %98 = vadd.xlane.f32.xlu1 %v97_v27  ;;  %95 = vadd.xlane.f32.xlu0 %v94_v31 }
  0xd4   :  { %v90_v33 = vmul.f32 %v85_v30, %v85_v30 }
  0xd6   :  { %v103_v34 = vsel %vm59_vm0, %v90_v33, 0.0 }
  0xd7   :  { %101 = vadd.xlane.f32.xlu0 %v100_v32  ;;  %104 = vadd.xlane.f32.xlu1 %v103_v34 }
 0x15c   :  { %v93_v35 = vpop.xlane.xlu1 %92 }
 0x15d   :  { %v106_v36 = vmul.f32 0.03125, %v93_v35 }
 0x15f   :  { %v111_v37 = vadd.f32 1e-05, %v106_v36 }
 0x160   :  { %v99_v38 = vpop.xlane.xlu1 %98  ;;  %v96_v39 = vpop.xlane.xlu0 %95 }
 0x161   :  { %179 = vrsqrt.f32 %v111_v37  ;;  %v108_v40 = vmul.f32 0.03125, %v99_v38  ;;  %v107_v41 = vmul.f32 0.03125, %v96_v39 }
 0x163   :  { %v113_v42 = vadd.f32 1e-05, %v108_v40  ;;  %v112_v43 = vadd.f32 1e-05, %v107_v41 }
 0x164   :  { %v105_v44 = vpop.xlane.xlu1 %104  ;;  %v102_v45 = vpop.xlane.xlu0 %101 }
 0x165   :  { %181 = vrsqrt.f32 %v113_v42  ;;  %v110_v46 = vmul.f32 0.03125, %v105_v44  ;;  %v109_v47 = vmul.f32 0.03125, %v102_v45 }
 0x166   :  { %183 = vrsqrt.f32 %v112_v43 }
 0x167   :  { %v115_v48 = vadd.f32 1e-05, %v110_v46  ;;  %v114_v49 = vadd.f32 1e-05, %v109_v47 }
 0x169   :  { %185 = vrsqrt.f32 %v115_v48 }
 0x16a   :  { %187 = vrsqrt.f32 %v114_v49 }
 0x16b   :  { %v180_v50 = vpop.eup %179 }
 0x16c   :  { %v121_v52 = vmul.f32 %v180_v50, %v81_v14 }
 0x16e   :  { %v132_v54 = vmul.f32 %v171_v51, %v121_v52 }
 0x16f   :  { %v182_v55 = vpop.eup %181 }
 0x170   :  { %v184_v56 = vpop.eup %183  ;;  %v123_v57 = vmul.f32 %v182_v55, %v83_v15  ;;  %v143_v58 = vadd.f32 %v172_v53, %v132_v54 }
 0x171   :  { %v122_v59 = vmul.f32 %v184_v56, %v82_v22 }
 0x172   :  { %v134_v60 = vmul.f32 %v171_v51, %v123_v57  ;;  %148 = vst.msk [vmem:[#allocation8] sm:$0xff] %vm59_vm0, %v143_v58 }
 0x173   :  { %v186_v61 = vpop.eup %185  ;;  %v133_v62 = vmul.f32 %v171_v51, %v122_v59 }
 0x174   :  { %v188_v63 = vpop.eup %187  ;;  %v125_v0 = vmul.f32 %v186_v61, %v85_v30  ;;  %v145_v1 = vadd.f32 %v172_v53, %v134_v60 }
 0x175   :  { %v124_v2 = vmul.f32 %v188_v63, %v84_v23  ;;  %v144_v3 = vadd.f32 %v172_v53, %v133_v62 }
 0x176   :  { %v136_v4 = vmul.f32 %v171_v51, %v125_v0  ;;  %150 = vst.msk [vmem:[#allocation8 + $0x10] sm:$0xff] %vm59_vm0, %v145_v1 }
 0x177   :  { %v135_v5 = vmul.f32 %v171_v51, %v124_v2  ;;  %149 = vst.msk [vmem:[#allocation8 + $0x8] sm:$0xff] %vm59_vm0, %v144_v3 }
 0x178   :  { %v147_v6 = vadd.f32 %v172_v53, %v136_v4 }
 0x179   :  { %v146_v7 = vadd.f32 %v172_v53, %v135_v5 }
 0x17a   :  { %152 = vst.msk [vmem:[#allocation8 + $0x20] sm:$0xff] %vm59_vm0, %v147_v6 }
 0x17b   :  { %151 = vst.msk [vmem:[#allocation8 + $0x18] sm:$0xff] %vm59_vm0, %v146_v7 }
 0x17c   :  { %266 = shalt.err (!%p263_p0)
}
 0x17d   :  { %s267_s27 = scalar_lea.hbm %s388_s3, 640 }
 0x17e   :  { %p268_p1 = scmp.ne.s32.totalorder %s388_s3, %s267_s27  ;;  %p271_p2 = scmp.lt.u32.totalorder %s267_s27, %s388_s3 }
 0x180   :  { %p273_p3 = pnand %p271_p2, %p268_p1 }
 0x182   :  { %276 = shalt.err (!%p273_p3)
}
 0x183   :  { %164 = dma.vmem_to_hbm [thread:$0]  %s159_s23, 640, %s388_s3, [#allocation4], %s285_s1, %s285_s1, %s286_s8  }
 0x184   :  { %281 = dma.done.wait [#allocation4], 640  }
 0x185   :  { %282 = vsyncadd [#allocation4], 4294966656 }
 0x186   :  { %168 = vsyncpa [#allocation3], 1 }
 0x187   :  { %169 = vsyncpa [#allocation6], 1 }
 0x188   :  { %170 = vsyncpa [#allocation4], 1 }

// kernel: surface_field_autoencoder_forward.39
= control target key start
LH: loop header
LB: loop body
LE: loop exit
PB: predicated region body
PF: predicated region fallthrough
CT: control target
= control target key end

     0   :  { %s3398_s0 = inlined_call_operand.hbm [shape: f32[2,24,32], index: 0, kind: input, shape index: {}]   ;;  %s3399_s1 = inlined_call_operand.hbm [shape: bf16[2,8,64], index: 1, kind: input, shape index: {}]   ;;  %s3400_s2 = inlined_call_operand.hbm [shape: f32[1,32], index: 2, kind: input, shape index: {}]   ;;  %s3401_s3 = inlined_call_operand.hbm [shape: f32[1,32], index: 3, kind: input, shape index: {}]   ;;  %s3402_s4 = inlined_call_operand.hbm [shape: bf16[32,32], index: 4, kind: input, shape index: {}]   ;;  %s3403_s5 = inlined_call_operand.hbm [shape: f32[1,32], index: 5, kind: input, shape index: {}]   ;;  %s3404_s6 = inlined_call_operand.hbm [shape: bf16[32,32], index: 6, kind: input, shape index: {}]   ;;  %s3405_s7 = inlined_call_operand.hbm [shape: f32[1,32], index: 7, kind: input, shape index: {}]   ;;  %s3406_s8 = inlined_call_operand.hbm [shape: f32[2,24,32], index: 8, kind: output, shape index: {}]  }
   0x1   :  { %3412 = sst [smem:[#allocation29_spill]] %s3398_s0 }
   0x2   :  { %3413 = sst [smem:[#allocation30_spill]] %s3400_s2 }
   0x3   :  { %3414 = sst [smem:[#allocation31_spill]] %s3401_s3 }
   0x4   :  { %3415 = sst [smem:[#allocation32_spill]] %s3402_s4 }
   0x5   :  { %3416 = sst [smem:[#allocation33_spill]] %s3403_s5 }
   0x6   :  { %3417 = sst [smem:[#allocation34_spill]] %s3404_s6 }
   0x7   :  { %3418 = sst [smem:[#allocation35_spill]] %s3405_s7 }
   0x8   :  { %13 = vsyncpa [#allocation7], 0 }
   0x9   :  { %15 = vsyncpa [#allocation7 + $0x1], 0 }
   0xa   :  { %16 = vsyncpa [#allocation10], 0 }
   0xb   :  { %18 = vsyncpa [#allocation10 + $0x1], 0 }
   0xc   :  { %19 = vsyncpa [#allocation13], 0 }
   0xd   :  { %20 = vsyncpa [#allocation16], 0 }
   0xe   :  { %21 = vsyncpa [#allocation19], 0 }
   0xf   :  { %22 = vsyncpa [#allocation8], 0 }
  0x10   :  { %24 = vsyncpa [#allocation8 + $0x1], 0  ;;  %s2627_s27 = smov 0   ;;  %s2629_s28 = smov 0  }
  0x11   :  { %s2631_s29 = smov 0   ;;  %s2633_s30 = smov 0  }
  0x12   :  { %s2635_s9 = smov 0   ;;  %s2637_s10 = smov 0  }
  0x13 LB: > { %s2658_s11 = sadd.s32 4294967295, %s2550_s10   ;;  %p1831_p0 = scmp.ge.s32.totalorder %s2550_s10, 1  ;;  %s2550_s10 = sphi %s2637_s10, %s30_s10   ;;  %s2546_s9 = sphi %s2635_s9, %s3454_s9   ;;  %s2542_s30 = sphi %s2633_s30, %s3453_s30   ;;  %s2538_s29 = sphi %s2631_s29, %s3452_s29   ;;  %s2534_s28 = sphi %s2629_s28, %s3451_s28   ;;  %s2530_s27 = sphi %s2627_s27, %s3450_s27  }
  0x14   : > { %p3407_p1 = scmp.eq.s32.totalorder %s2658_s11, 0  ;;  %p264_p2 = scmp.lt.s32.totalorder %s2550_s10, 3 }
  0x15   : > { %s2552_s13 = smov [#allocation11]   ;;  %s2553_s15 = smov [#allocation12]  }
  0x16   : > { %p2663_p3 = pnand %p1831_p0, %p264_p2  ;;  %s277_s14 = sshll.u32 %s2552_s13, 4  ;;  %s278_s14 = int_to_ptr.vmem [resolvable:$true] %s277_s14 }
  0x17   : > { %s288_s16 = sshll.u32 %s2553_s15, 4  ;;  %s2554_s18 = smov [#allocation15]   ;;  %s2676_s16 = int_to_ptr.vmem [resolvable:$true] %s288_s16 }
  0x18   : > { %s3419_s12 = scalar_select %p2663_p3, 1, 0 }
  0x19   : > { %p2028_p5 = pneg %p2663_p3  ;;  %s312_s19 = sshll.u32 %s2554_s18, 4  ;;  %s2678_s19 = int_to_ptr.vmem [resolvable:$true] %s312_s19 }
  0x1a   : > { %s3421_s2 = sld [smem:[#allocation30_spill]] }
  0x1b   : > { %p2672_p6 = pnand %p2028_p5, %p3407_p1 }
  0x1d   : > { %p2688_p8 = pneg %p2672_p6 }
  0x20   : > { %s2220_s22 = scalar_lea.hbm %s3421_s2, 16 }
  0x21   : > { %p2221_p7 = scmp.ne.s32.totalorder %s3421_s2, %s2220_s22  ;;  %p2227_p11 = scmp.lt.u32.totalorder %s2220_s22, %s3421_s2 }
  0x23   : > { %p2223_p9 = pnand %p2688_p8, %p2221_p7 }
  0x25   : > { %p2224_p10 = pneg %p2223_p9 }
  0x27   : > { %p2229_p12 = pnand %p2227_p11, %p2224_p10 }
  0x29   : > { %2232 = shalt.err (!%p2229_p12)
}
  0x2a   : > { %s2233_s15 = scalar_lea.vmem %s278_s14, 16  ;;  %s2240_s18 = scalar_lea.vmem %s278_s14, 32 }
  0x2b   : > { %p2234_p13 = scmp.ne.s32.totalorder %s278_s14, %s2233_s15  ;;  %p2241_p5 = scmp.lt.s32.totalorder %s278_s14, %s278_s14 }
  0x2c   : > { %p2242_p4 = scmp.lt.s32.totalorder %s2240_s18, %s2233_s15 }
  0x2d   : > { %p2236_p0 = pnand %p2234_p13, %p2688_p8 }
  0x2e   : > { %p2243_p1 = por %p2242_p4, %p2241_p5 }
  0x2f   : > { %p2237_p2 = pneg %p2236_p0 }
  0x31   : > { %p2244_p3 = pnand %p2243_p1, %p2237_p2 }
  0x33   : > { %2247 = shalt.err (!%p2244_p3)
}
  0x34   : > { %2031 = dma.hbm_to_vmem [thread:$0]  (!%p2672_p6), %s3421_s2, 16, %s278_s14, [#allocation10]  }
  0x35   : > { %s3423_s3 = sld [smem:[#allocation31_spill]] }
  0x3b   : > { %s2248_s24 = scalar_lea.hbm %s3423_s3, 16 }
  0x3c   : > { %p2249_p7 = scmp.ne.s32.totalorder %s3423_s3, %s2248_s24  ;;  %p2255_p1 = scmp.lt.u32.totalorder %s2248_s24, %s3423_s3 }
  0x3e   : > { %p2251_p9 = pnand %p2249_p7, %p2688_p8 }
  0x40   : > { %p2252_p4 = pneg %p2251_p9 }
  0x42   : > { %p2257_p3 = pnand %p2255_p1, %p2252_p4 }
  0x44   : > { %2260 = shalt.err (!%p2257_p3)
}
  0x45   : > { %s2261_s14 = scalar_lea.vmem %s2676_s16, 16  ;;  %s2268_s20 = scalar_lea.vmem %s2676_s16, 32 }
  0x46   : > { %p2262_p10 = scmp.ne.s32.totalorder %s2676_s16, %s2261_s14  ;;  %p2269_p13 = scmp.lt.s32.totalorder %s2676_s16, %s2676_s16 }
  0x47   : > { %p2270_p0 = scmp.lt.s32.totalorder %s2268_s20, %s2261_s14 }
  0x48   : > { %p2264_p11 = pnand %p2262_p10, %p2688_p8 }
  0x49   : > { %p2271_p2 = por %p2270_p0, %p2269_p13 }
  0x4a   : > { %p2265_p12 = pneg %p2264_p11 }
  0x4c   : > { %p2272_p5 = pnand %p2271_p2, %p2265_p12 }
  0x4e   : > { %2275 = shalt.err (!%p2272_p5)
}
  0x4f   : > { %2034 = dma.hbm_to_vmem [thread:$0]  (!%p2672_p6), %s3423_s3, 16, %s2676_s16, [#allocation13]  }
  0x50   : > { %s3424_s5 = sld [smem:[#allocation33_spill]] }
  0x56   : > { %s2276_s26 = scalar_lea.hbm %s3424_s5, 16 }
  0x57   : > { %p2277_p7 = scmp.ne.s32.totalorder %s3424_s5, %s2276_s26  ;;  %p2283_p1 = scmp.lt.u32.totalorder %s2276_s26, %s3424_s5 }
  0x59   : > { %p2279_p9 = pnand %p2277_p7, %p2688_p8 }
  0x5b   : > { %p2280_p4 = pneg %p2279_p9 }
  0x5d   : > { %p2285_p3 = pnand %p2283_p1, %p2280_p4 }
  0x5f   : > { %2288 = shalt.err (!%p2285_p3)
}
  0x60   : > { %s2289_s16 = scalar_lea.vmem %s2678_s19, 16  ;;  %s2296_s20 = scalar_lea.vmem %s2678_s19, 32 }
  0x61   : > { %p2290_p10 = scmp.ne.s32.totalorder %s2678_s19, %s2289_s16  ;;  %p2297_p13 = scmp.lt.s32.totalorder %s2678_s19, %s2678_s19 }
  0x62   : > { %p2298_p0 = scmp.lt.s32.totalorder %s2296_s20, %s2289_s16 }
  0x63   : > { %p2292_p11 = pnand %p2290_p10, %p2688_p8 }
  0x64   : > { %p2299_p2 = por %p2298_p0, %p2297_p13 }
  0x65   : > { %p2293_p12 = pneg %p2292_p11 }
  0x67   : > { %p2300_p5 = pnand %p2299_p2, %p2293_p12 }
  0x69   : > { %2303 = shalt.err (!%p2300_p5)
}
  0x6a   : > { %2040 = dma.hbm_to_vmem [thread:$0]  (!%p2672_p6), %s3424_s5, 16, %s2678_s19, [#allocation16]  }
  0x6b   : > { %s2555_s23 = smov [#allocation14]   ;;  %s3425_s4 = sld [smem:[#allocation32_spill]] }
  0x6c   : > { %s298_s24 = sshll.u32 %s2555_s23, 4  ;;  %s299_s24 = int_to_ptr.vmem [resolvable:$true] %s298_s24 }
  0x71   : > { %s2304_s15 = scalar_lea.hbm %s3425_s4, 256 }
  0x72   : > { %p2305_p7 = scmp.ne.s32.totalorder %s3425_s4, %s2304_s15  ;;  %p2311_p1 = scmp.lt.u32.totalorder %s2304_s15, %s3425_s4 }
  0x74   : > { %p2307_p9 = pnand %p2305_p7, %p2688_p8 }
  0x76   : > { %p2308_p4 = pneg %p2307_p9 }
  0x78   : > { %p2313_p3 = pnand %p2311_p1, %p2308_p4 }
  0x7a   : > { %2316 = shalt.err (!%p2313_p3)
}
  0x7b   : > { %s2317_s19 = scalar_lea.vmem %s299_s24, 256  ;;  %p2325_p13 = scmp.lt.s32.totalorder %s299_s24, %s299_s24 }
  0x7c   : > { %p2318_p10 = scmp.ne.s32.totalorder %s299_s24, %s2317_s19  ;;  %p2326_p0 = scmp.lt.s32.totalorder %s2317_s19, %s2317_s19 }
  0x7e   : > { %p2320_p11 = pnand %p2318_p10, %p2688_p8  ;;  %p2327_p2 = por %p2326_p0, %p2325_p13 }
  0x80   : > { %p2321_p12 = pneg %p2320_p11 }
  0x82   : > { %p2328_p5 = pnand %p2327_p2, %p2321_p12 }
  0x84   : > { %2331 = shalt.err (!%p2328_p5)
}
  0x85   : > { %s2556_s21 = smov 64   ;;  %s2557_s22 = smov 4  }
  0x86   : > { %2037 = dma.hbm_to_vmem [thread:$0]  (!%p2672_p6), %s3425_s4, 256, %s299_s24, [#allocation13], %s2556_s21, %s2556_s21, %s2557_s22  }
  0x87   : > { %s2558_s13 = smov [#allocation17]   ;;  %s2559_s18 = smov [#allocation18]  }
  0x88   : > { %s322_s15 = sshll.u32 %s2558_s13, 4  ;;  %s336_s14 = sshll.u32 %s2559_s18, 4  ;;  %s323_s15 = int_to_ptr.vmem [resolvable:$true] %s322_s15  ;;  %s2770_s14 = int_to_ptr.vmem [resolvable:$true] %s336_s14 }
  0x89   : > { %s3426_s6 = sld [smem:[#allocation34_spill]] }
  0x8f   : > { %s2332_s19 = scalar_lea.hbm %s3426_s6, 256 }
  0x90   : > { %p2333_p7 = scmp.ne.s32.totalorder %s3426_s6, %s2332_s19  ;;  %p2339_p1 = scmp.lt.u32.totalorder %s2332_s19, %s3426_s6 }
  0x92   : > { %p2335_p9 = pnand %p2333_p7, %p2688_p8 }
  0x94   : > { %p2336_p4 = pneg %p2335_p9 }
  0x96   : > { %p2341_p3 = pnand %p2339_p1, %p2336_p4 }
  0x98   : > { %2344 = shalt.err (!%p2341_p3)
}
  0x99   : > { %s2345_s26 = scalar_lea.vmem %s323_s15, 256  ;;  %p2353_p13 = scmp.lt.s32.totalorder %s323_s15, %s323_s15 }
  0x9a   : > { %p2346_p10 = scmp.ne.s32.totalorder %s323_s15, %s2345_s26  ;;  %p2354_p0 = scmp.lt.s32.totalorder %s2345_s26, %s2345_s26 }
  0x9c   : > { %p2348_p11 = pnand %p2346_p10, %p2688_p8  ;;  %p2355_p2 = por %p2354_p0, %p2353_p13 }
  0x9e   : > { %p2349_p12 = pneg %p2348_p11 }
  0xa0   : > { %p2356_p5 = pnand %p2355_p2, %p2349_p12 }
  0xa2   : > { %2359 = shalt.err (!%p2356_p5)
}
  0xa3   : > { %2043 = dma.hbm_to_vmem [thread:$0]  (!%p2672_p6), %s3426_s6, 256, %s323_s15, [#allocation16], %s2556_s21, %s2556_s21, %s2557_s22  }
  0xa4   : > { %s3427_s7 = sld [smem:[#allocation35_spill]] }
  0xaa   : > { %s2360_s16 = scalar_lea.hbm %s3427_s7, 16 }
  0xab   : > { %p2361_p7 = scmp.ne.s32.totalorder %s3427_s7, %s2360_s16  ;;  %p2367_p1 = scmp.lt.u32.totalorder %s2360_s16, %s3427_s7 }
  0xad   : > { %p2363_p9 = pnand %p2361_p7, %p2688_p8 }
  0xaf   : > { %p2364_p4 = pneg %p2363_p9 }
  0xb1   : > { %p2369_p3 = pnand %p2367_p1, %p2364_p4 }
  0xb3   : > { %2372 = shalt.err (!%p2369_p3)
}
  0xb4   : > { %s2373_s21 = scalar_lea.vmem %s2770_s14, 16  ;;  %s2380_s22 = scalar_lea.vmem %s2770_s14, 32 }
  0xb5   : > { %p2374_p10 = scmp.ne.s32.totalorder %s2770_s14, %s2373_s21  ;;  %p2381_p13 = scmp.lt.s32.totalorder %s2770_s14, %s2770_s14 }
  0xb6   : > { %p2382_p0 = scmp.lt.s32.totalorder %s2380_s22, %s2373_s21 }
  0xb7   : > { %p2376_p11 = pnand %p2374_p10, %p2688_p8 }
  0xb8   : > { %p2383_p2 = por %p2382_p0, %p2381_p13 }
  0xb9   : > { %p2377_p12 = pneg %p2376_p11 }
  0xbb   : > { %p2384_p5 = pnand %p2383_p2, %p2377_p12 }
  0xbd   : > { %2387 = shalt.err (!%p2384_p5)
}
  0xbe   : > { %2046 = dma.hbm_to_vmem [thread:$0]  (!%p2672_p6), %s3427_s7, 16, %s2770_s14, [#allocation19]  }
  0xbf   : > { %s1830_s25 = sadd.s32 4294967294, %s2550_s10   ;;  %s49_s2 = sadd.s32 1, %s2546_s9 }
  0xc0   : > { %p51_p8 = scmp.ge.s32.totalorder %s49_s2, 2  ;;  %s58_s17 = sadd.s32 1, %s2538_s29 }
  0xc1   : > { %p65_p7 = scmp.ne.s32.totalorder %s2538_s29, %s2534_s28  ;;  %p66_p9 = scmp.eq.s32.totalorder %s2550_s10, 0 }
  0xc2   : > { %s3456_s2 = smov (%p51_p8, %s49_s2), 0  ;;  %p71_p1 = scmp.ne.s32.totalorder %s2534_s28, %s2530_s27 }
  0xc3   : > { %3428 = sst [smem:[#allocation28_spill]] %s3456_s2  ;;  %p2822_p4 = por %p66_p9, %p65_p7 }
  0xc4   : > { %s53_s14 = ssub.s32 %s2546_s9, %s3456_s2  ;;  %p251_p6 = scmp.eq.s32.totalorder %s2658_s11, 1 }
  0xc5   : > { %p56_p3 = scmp.eq.s32.totalorder %s53_s14, 0  ;;  %p3430_p10 = scmp.eq.s32.totalorder %s2658_s11, 0 }
  0xc6   : > { %p2837_p12 = por %p251_p6, %p65_p7  ;;  %p257_p13 = scmp.eq.s32.totalorder %s1830_s25, 1 }
  0xc7   : > { %p2833_p11 = por %p3430_p10, %p71_p1  ;;  %p2064_p2 = scmp.lt.s32.totalorder %s2550_s10, 2 }
  0xc8   : > { %s3432_s18 = scalar_select %p2837_p12, 1, 0 }
  0xc9   : > { %s3431_s13 = scalar_select %p2833_p11, 1, 0 }
  0xca   : > { %s2842_s16 = scalar_select %p56_p3, %s2538_s29, %s58_s17  }
  0xcb   : > { %p2844_p0 = por %p257_p13, %p71_p1  ;;  %s2850_s19 = sand.u32 1, %s2538_s29  }
  0xcc   : > { %s1995_s23 = smul.u32 384, %s2546_s9  ;;  %s3434_s0 = sld [smem:[#allocation29_spill]] }
  0xcd   : > { %s3433_s20 = scalar_select %p2844_p0, 1, 0 }
  0xce   : > { %s1994_s24 = smul.u32 24, %s2850_s19  ;;  %p2861_p5 = pnand %p2064_p2, %p2822_p4 }
  0xcf   : > { %s348_s14 = scalar_lea.sflag [#allocation7], %s2850_s19 }
  0xd0   : > { %s351_s25 = scalar_lea.vmem [#allocation6], %s1994_s24  ;;  %p2390_p7 = pneg %p2861_p5 }
  0xd1   : > { %s360_s17 = sshll.u32 %s351_s25, 4  ;;  %s2865_s17 = int_to_ptr.vmem [resolvable:$true] %s360_s17 }
  0xd2   : > { %s2857_s15 = scalar_lea.hbm %s3434_s0, %s1995_s23  ;;  %s2393_s21 = scalar_lea.hbm %s3434_s0, 768 }
  0xd3   : > { %s2388_s4 = scalar_lea.hbm %s2857_s15, 384  ;;  %p2394_p4 = scmp.lt.u32.totalorder %s2857_s15, %s3434_s0 }
  0xd4   : > { %p2389_p8 = scmp.ne.s32.totalorder %s2857_s15, %s2388_s4  ;;  %p2395_p6 = scmp.lt.u32.totalorder %s2393_s21, %s2388_s4 }
  0xd5   : > { %p2397_p10 = scmp.lt.u32.totalorder %s2388_s4, %s2857_s15 }
  0xd6   : > { %p2391_p9 = pnand %p2390_p7, %p2389_p8  ;;  %p2396_p3 = por %p2395_p6, %p2394_p4 }
  0xd8   : > { %p2392_p1 = pneg %p2391_p9  ;;  %p2398_p13 = por %p2397_p10, %p2396_p3 }
  0xda   : > { %p2399_p2 = pnand %p2398_p13, %p2392_p1 }
  0xdc   : > { %2402 = shalt.err (!%p2399_p2)
}
  0xdd   : > { %s2403_s24 = scalar_lea.vmem %s2865_s17, 384  ;;  %s2560_s25 = smov [#allocation6]  }
  0xde   : > { %p2404_p8 = scmp.ne.s32.totalorder %s2865_s17, %s2403_s24  ;;  %s2408_s3 = sshll.u32 %s2560_s25, 4  ;;  %s2409_s3 = int_to_ptr.vmem [resolvable:$false] %s2408_s3 }
  0xdf   : > { %s2410_s5 = scalar_lea.vmem %s2409_s3, 768  ;;  %p2411_p12 = scmp.lt.s32.totalorder %s2865_s17, %s2409_s3 }
  0xe0   : > { %p2406_p9 = pnand %p2404_p8, %p2390_p7  ;;  %p2412_p4 = scmp.lt.s32.totalorder %s2410_s5, %s2403_s24 }
  0xe2   : > { %p2407_p0 = pneg %p2406_p9  ;;  %p2413_p6 = por %p2412_p4, %p2411_p12 }
  0xe4   : > { %p2414_p3 = pnand %p2413_p6, %p2407_p0 }
  0xe6   : > { %2417 = shalt.err (!%p2414_p3)
}
  0xe7   : > { %s2561_s4 = smov 128   ;;  %s2562_s23 = smov 8  }
  0xe8   : > { %2050 = dma.hbm_to_vmem [thread:$0]  (!%p2861_p5), %s2857_s15, 384, %s2865_s17, %s348_s14, %s2561_s4, %s2561_s4, %s2562_s23  }
  0xe9   : > { %s370_s21 = sand.u32 1, %s2550_s10   ;;  %s1840_s22 = sshll.u32 %s2850_s19, 2 }
  0xea   : > { %s1841_s25 = sshll.u32 %s2546_s9, 6  ;;  %s374_s24 = scalar_lea.vmem [#allocation9], %s1840_s22 }
  0xeb   : > { %s382_s3 = sshll.u32 %s374_s24, 4  ;;  %s2901_s6 = scalar_lea.hbm %s3399_s1, %s1841_s25  ;;  %s383_s3 = int_to_ptr.vmem [resolvable:$true] %s382_s3 }
  0xec   : > { %s371_s7 = scalar_lea.sflag [#allocation10], %s370_s21  ;;  %s2418_s2 = scalar_lea.hbm %s2901_s6, 64 }
  0xed   : > { %p2419_p12 = scmp.ne.s32.totalorder %s2901_s6, %s2418_s2  ;;  %s2423_s17 = scalar_lea.hbm %s3399_s1, 128 }
  0xee   : > { %p2424_p10 = scmp.lt.u32.totalorder %s2901_s6, %s3399_s1  ;;  %p2425_p13 = scmp.lt.u32.totalorder %s2423_s17, %s2418_s2 }
  0xef   : > { %p2421_p0 = pnand %p2419_p12, %p2390_p7  ;;  %p2427_p8 = scmp.lt.u32.totalorder %s2418_s2, %s2901_s6 }
  0xf0   : > { %p2426_p2 = por %p2425_p13, %p2424_p10 }
  0xf1   : > { %p2422_p1 = pneg %p2421_p0 }
  0xf2   : > { %p2428_p9 = por %p2427_p8, %p2426_p2 }
  0xf4   : > { %p2429_p4 = pnand %p2428_p9, %p2422_p1 }
  0xf6   : > { %2432 = shalt.err (!%p2429_p4)
}
  0xf7   : > { %s2433_s4 = scalar_lea.vmem %s383_s3, 64  ;;  %s2563_s23 = smov [#allocation9]  }
  0xf8   : > { %p2434_p6 = scmp.ne.s32.totalorder %s383_s3, %s2433_s4  ;;  %s2438_s21 = sshll.u32 %s2563_s23, 4  ;;  %s2439_s21 = int_to_ptr.vmem [resolvable:$false] %s2438_s21 }
  0xf9   : > { %s2440_s22 = scalar_lea.vmem %s2439_s21, 128  ;;  %p2441_p0 = scmp.lt.s32.totalorder %s383_s3, %s2439_s21 }
  0xfa   : > { %p2436_p3 = pnand %p2434_p6, %p2390_p7  ;;  %p2442_p11 = scmp.lt.s32.totalorder %s2440_s22, %s2433_s4 }
  0xfc   : > { %p2437_p12 = pneg %p2436_p3  ;;  %p2443_p10 = por %p2442_p11, %p2441_p0 }
  0xfe   : > { %p2444_p13 = pnand %p2443_p10, %p2437_p12 }
 0x100   : > { %2447 = shalt.err (!%p2444_p13)
}
 0x101   : > { %2053 = dma.hbm_to_vmem [thread:$0]  (!%p2861_p5), %s2901_s6, 64, %s383_s3, %s371_s7  }
 0x102   : > { %p3436_p1 = scmp.ne.s32.totalorder %s3419_s12, 0 }
 0x103   : > { %s2925_s2 = sand.u32 (!%p3436_p1), 1, %s2534_s28   ;;  %p3437_p11 = scmp.ne.s32.totalorder (!%p3436_p1), %s3431_s13, 0 }
 0x104   : > { %391 = sbr.rel (%p3436_p1) target bundleno = 2119 (0x847), region = 52  ;;  %s394_s24 = scalar_lea.sflag (!%p3436_p1), [#allocation7], %s2925_s2 }
 0x105   : > { %s1996_s25 = smul.u32 (!%p3436_p1), 24, %s2925_s2 }
 0x107   : > { %s2931_s5 = scalar_lea.vmem (!%p3436_p1), [#allocation6], %s1996_s25 }
 0x10b   : > { %2501 = dma.done.wait (%p3437_p11), %s394_s24, 384  }
 0x10c   : > { %2503 = vsyncadd (%p3437_p11), %s394_s24, 4294966912  ;;  %s402_s6 = sand.u32 1, %s2658_s11   ;;  %s1843_s7 = sshll.u32 %s2925_s2, 2 }
 0x10d   : > { %s403_s12 = scalar_lea.sflag [#allocation10], %s402_s6  ;;  %s2939_s26 = scalar_lea.vmem [#allocation9], %s1843_s7 }
 0x10e   : > { %2505 = dma.done.wait (%p3437_p11), %s403_s12, 64  }
 0x10f   : > { %2507 = vsyncadd (%p3437_p11), %s403_s12, 4294967232  ;;  %p3438_p5 = scmp.eq.s32.totalorder %s2658_s11, 0 }
 0x111   : > { %2509 = dma.done.wait (%p3438_p5), [#allocation10], 16   ;;  %p3439_p7 = pmov %p3438_p5 }
 0x112   : > { %p3440_p2 = pmov %p3438_p5 }
 0x113   : > { %2511 = vsyncadd (%p3439_p7), [#allocation10], 4294967280 }
 0x114   : > { %2513 = dma.done.wait (%p3440_p2), [#allocation13], 272   ;;  %p3441_p8 = pmov %p3440_p2 }
 0x115   : > { %p3442_p9 = pmov %p3440_p2 }
 0x116   : > { %2515 = vsyncadd (%p3441_p8), [#allocation13], 4294967024 }
 0x117   : > { %2517 = dma.done.wait (%p3442_p9), [#allocation16], 272   ;;  %p3443_p4 = pmov %p3440_p2 }
 0x118   : > { %p3444_p6 = pmov %p3440_p2 }
 0x119   : > { %2519 = vsyncadd (%p3443_p4), [#allocation16], 4294967024 }
 0x11a   : > { %2521 = dma.done.wait (%p3444_p6), [#allocation19], 16   ;;  %p3445_p3 = pmov %p3440_p2 }
 0x11b   : > { %vm480_vm0 = vcmask 261120   ;;  %v475_v0 = vld [vmem:[%s2931_s5] sm:$0xff]  ;;  %v477_v1 = vld [vmem:[%s2931_s5 + $0x10] sm:$0xff]  ;;  %v476_v2 = vld [vmem:[%s2931_s5 + $0x8] sm:$0xff]  ;;  %vm656_vm1 = vcmask 64512   ;;  %s2564_s11 = smov 120  }
 0x11c   : > { %2523 = vsyncadd (%p3445_p3), [#allocation19], 4294967280  ;;  %v481_v3 = vsel %vm480_vm0, %v475_v0, 0.0  ;;  %v487_v4 = vsel %vm480_vm0, %v477_v1, 0.0  ;;  %v484_v5 = vsel %vm480_vm0, %v476_v2, 0.0  ;;  %v2153_v21 = vld [vmem:[#allocation14] sm:$0xff]  }
 0x11d   : > { %482 = vadd.xlane.f32.xlu0 %v481_v3  ;;  %488 = vadd.xlane.f32.xlu1 %v487_v4  ;;  %v2154_v22 = vld [vmem:[#allocation14 + $0x8] sm:$0xff]   ;;  %v1850_v34 = vld [vmem:[#allocation11] ss:$0 sm:$0xff]  ;;  %v1851_v40 = vld [vmem:[#allocation12] ss:$0 sm:$0xff]  ;;  %vm631_vm2 = vcmask 257024  }
 0x11e   : > { %1922 = vmatprep.subr.bf16.mxu0 %v2153_v21  ;;  %v644_v48 = vld [vmem:[%s2939_s26] sm:$0xf]  ;;  %v1852_v52 = vld [vmem:[#allocation15] ss:$0 sm:$0xff]  ;;  %s2565_s13 = smov 112   ;;  %s2566_s3 = smov 104  }
 0x11f   : > { %1923 = vmatpush3.bf16.msra.mxu0 %v2153_v21  ;;  %1986 = vmatprep.subr.msk.bf16.mxu1 %vm656_vm1, %v644_v48  ;;  %v2974_v49 = vcombine.low %v644_v48, %v644_v48  ;;  %v664_v50 = vsel %vm656_vm1, %v644_v48, 0  ;;  %s2571_s19 = smov 88   ;;  %vm980_vm3 = vcmask 130112   ;;  %vm1204_vm4 = vcmask 195712   ;;  %s2573_s15 = smov 96  }
 0x120   : > { %1924 = vmatprep.subr.bf16.mxu0 %v2154_v22  ;;  %1931 = vmatpush3.bf16.xpose.msra.mxu1 %v664_v50  ;;  %vm1428_vm5 = vcmask 261312   ;;  %s2575_s17 = smov 72   ;;  %s2576_s14 = smov 80   ;;  %vm808_vm6 = vcmask 1043456  }
 0x121   : > { %485 = vadd.xlane.f32.xlu0 %v484_v5  ;;  %s2577_s0 = smov 8   ;;  %s2578_s4 = smov 16  }
 0x122   : > { %s2579_s23 = smov 24   ;;  %s467_s21 = scalar_lea.vmem [#allocation20], %s1996_s25 }
 0x123   : > { %1925 = vmatpush3.bf16.msra.mxu0 %v2154_v22  ;;  %v2567_v22 = vmov -inf   ;;  %s1658_s22 = sshll.u32 %s467_s21, 4  ;;  %s1997_s24 = smul.u32 384, %s2542_s30  ;;  %s3341_s22 = int_to_ptr.vmem [resolvable:$true] %s1658_s22 }
 0x124   : > { %635 = vst.msk [vmem:[#allocation3] sm:$0xff] %vm480_vm0, %v2567_v22  ;;  %636 = vst.msk [vmem:[#allocation3 + $0x8] sm:$0xff] %vm480_vm0, %v2567_v22  ;;  %s1643_s30 = scalar_lea.sflag [#allocation8], %s2925_s2  ;;  %p3446_p0 = scmp.ne.s32.totalorder %s3432_s18, 0 }
 0x125   : > { %637 = vst.msk [vmem:[#allocation3 + $0x10] sm:$0xff] %vm480_vm0, %v2567_v22  ;;  %s3347_s7 = scalar_lea.hbm %s3406_s8, %s1997_s24  ;;  %s2580_s12 = smov [#allocation20]  }
 0x126   : > { %s2452_s26 = sshll.u32 %s2580_s12, 4  ;;  %s2453_s26 = int_to_ptr.vmem [resolvable:$false] %s2452_s26 }
 0x127   : > { %p2455_p1 = scmp.lt.s32.totalorder %s3341_s22, %s2453_s26 }
 0x1aa   : > { %v483_v6 = vpop.xlane.xlu0 %482  ;;  %v489_v7 = vpop.xlane.xlu1 %488 }
 0x1ab   : > { %v491_v8 = vmul.f32 0.03125, %v483_v6  ;;  %v493_v9 = vmul.f32 0.03125, %v489_v7 }
 0x1ad   : > { %v494_v10 = vsub.f32 %v475_v0, %v491_v8  ;;  %v496_v11 = vsub.f32 %v477_v1, %v493_v9 }
 0x1ae   : > { %v486_v12 = vpop.xlane.xlu0 %485 }
 0x1af   : > { %v492_v13 = vmul.f32 0.03125, %v486_v12  ;;  %v497_v14 = vmul.f32 %v494_v10, %v494_v10  ;;  %v499_v15 = vmul.f32 %v496_v11, %v496_v11 }
 0x1b1   : > { %v495_v16 = vsub.f32 %v476_v2, %v492_v13  ;;  %v500_v17 = vsel %vm480_vm0, %v497_v14, 0.0  ;;  %v506_v18 = vsel %vm480_vm0, %v499_v15, 0.0 }
 0x1b2   : > { %501 = vadd.xlane.f32.xlu1 %v500_v17 }
 0x1b3   : > { %v498_v19 = vmul.f32 %v495_v16, %v495_v16 }
 0x1b5   : > { %v503_v20 = vsel %vm480_vm0, %v498_v19, 0.0 }
 0x1b6   : > { %507 = vadd.xlane.f32.xlu1 %v506_v18  ;;  %504 = vadd.xlane.f32.xlu0 %v503_v20 }
 0x1cc   : > { %870 = vrot.lane.b32.xlu0 %v2974_v49, %s2564_s11 }
 0x23f   : > { %v502_v23 = vpop.xlane.xlu1 %501 }
 0x240   : > { %v509_v24 = vmul.f32 0.03125, %v502_v23  ;;  %v2568_v23 = vmov 0.0  }
 0x241   : > { %640 = vst.msk [vmem:[#allocation4 + $0x10] sm:$0xff] %vm480_vm0, %v2568_v23  ;;  %638 = vst.msk [vmem:[#allocation4] sm:$0xff] %vm480_vm0, %v2568_v23 }
 0x242   : > { %v512_v25 = vadd.f32 1e-05, %v509_v24  ;;  %639 = vst.msk [vmem:[#allocation4 + $0x8] sm:$0xff] %vm480_vm0, %v2568_v23  ;;  %641 = vst.msk [vmem:[#allocation5] sm:$0xff] %vm480_vm0, %v2568_v23  ;;  %v2569_v24 = vmov 0  }
 0x243   : > { %v508_v26 = vpop.xlane.xlu1 %507  ;;  %v505_v27 = vpop.xlane.xlu0 %504  ;;  %642 = vst.msk [vmem:[#allocation5 + $0x8] sm:$0xff] %vm480_vm0, %v2568_v23  ;;  %643 = vst.msk [vmem:[#allocation5 + $0x10] sm:$0xff] %vm480_vm0, %v2568_v23  ;;  %2147 = vset.pattern.permute.xlu1 %v2569_v24  ;;  %2148 = vset.pattern.permute.xlu0 %v2569_v24 }
 0x244   : > { %2160 = vrsqrt.f32 %v512_v25  ;;  %v511_v28 = vmul.f32 0.03125, %v508_v26  ;;  %v510_v29 = vmul.f32 0.03125, %v505_v27 }
 0x246   : > { %v514_v30 = vadd.f32 1e-05, %v511_v28  ;;  %v513_v31 = vadd.f32 1e-05, %v510_v29 }
 0x247   : > { %v871_v51 = vpop.permute.xlu0 %870 }
 0x248   : > { %2162 = vrsqrt.f32 %v514_v30  ;;  %1988 = vmatprep.subr.msk.bf16.mxu1 %vm656_vm1, %v871_v51  ;;  %v879_v1 = vsel %vm656_vm1, %v871_v51, 0 }
 0x249   : > { %2164 = vrsqrt.f32 %v513_v31 }
 0x24e   : > { %v2161_v32 = vpop.eup %2160 }
 0x24f   : > { %v518_v33 = vmul.f32 %v2161_v32, %v494_v10 }
 0x251   : > { %v527_v39 = vmul.f32 %v1850_v34, %v518_v33 }
 0x252   : > { %v2163_v35 = vpop.eup %2162 }
 0x253   : > { %v2165_v36 = vpop.eup %2164  ;;  %v520_v37 = vmul.f32 %v2163_v35, %v496_v11  ;;  %v536_v44 = vadd.f32 %v1851_v40, %v527_v39 }
 0x254   : > { %v519_v38 = vmul.f32 %v2165_v36, %v495_v16 }
 0x255   : > { %v529_v41 = vmul.f32 %v1850_v34, %v520_v37 }
 0x256   : > { %v528_v42 = vmul.f32 %v1850_v34, %v519_v38 }
 0x257   : > { %v538_v43 = vadd.f32 %v1851_v40, %v529_v41 }
 0x258   : > { %v537_v45 = vadd.f32 %v1851_v40, %v528_v42 }
 0x259   : > { %v540_v46 = vpack.c.bf16 %v538_v43, %v538_v43 }
 0x25a   : > { %v539_v47 = vpack.c.bf16 %v537_v45, %v536_v44 }
 0x25c   : > { %1926 = vmatprep.mubr.msk.bf16.mxu0 %vm480_vm0, %v539_v47 }
 0x25d   : > { %1927 = vmatmul.mubr.msk.bf16.vlgmr.msra.gmra.mrb[0].mxu0 %vm480_vm0, %v540_v46 }
 0x330   : > { %v1928_v53 = vpop.f32.mrb[0].mxu0 }
 0x331   : > { %v613_v54 = vadd.f32 %v1928_v53, %v1852_v52  ;;  %v604_v55 = vpop.f32.mrb[1].mxu0 }
 0x332   : > { %v605_v56 = vadd.f32 %v1852_v52, %v604_v55  ;;  %v1929_v57 = vpop.f32.mrb[2].mxu0  ;;  %v3052_v55 = vld [vmem:[#allocation3] sm:$0xff] }
 0x333   : > { %v1889_v58 = vpack.c.bf16 %v613_v54, %v613_v54  ;;  %v607_v59 = vpop.f32.mrb[3].mxu0 }
 0x334   : > { %v1887_v60 = vpack.c.bf16 %v605_v56, %v605_v56  ;;  %v608_v61 = vadd.f32 %v1852_v52, %v607_v59 }
 0x335   : > { %634 = vst.msk [vmem:[#allocation2 + $0x8] sm:$0xf] %vm631_vm2, %v1889_v58  ;;  %v3056_v58 = vld [vmem:[#allocation3 + $0x8] sm:$0xff] }
 0x336   : > { %632 = vst.msk [vmem:[#allocation2] sm:$0xf] %vm631_vm2, %v1887_v60  ;;  %v1888_v62 = vpack.c.bf16 %v608_v61, %v608_v61 }
 0x338   : > { %633 = vst.msk [vmem:[#allocation2 + $0x4] sm:$0xf] %vm631_vm2, %v1888_v62 }
 0x33c   : > { %v2157_v0 = vld [vmem:[#allocation2 + $0x8] ss:$0 sps:$4 sm:$0xff]  }
 0x33f   : > { %v2156_v63 = vld [vmem:[#allocation2] sm:$0xff]  }
 0x340   : > { %1090 = vrot.lane.b32.xlu0 %v2156_v63, %s2565_s13  ;;  %866 = vrot.lane.b32.xlu1 %v2156_v63, %s2564_s11 }
 0x341   : > { %1932 = vmatprep.mubr.msk.bf16.mxu1 %vm656_vm1, %v2156_v63 }
 0x342   : > { %1933 = vmatmul.mubr.msk.bf16.vlgmr.msra.gmra.mrb[0].mxu1 %vm656_vm1, %v2157_v0 }
 0x343   : > { %1943 = vmatpush3.bf16.xpose.msra.mxu1 %v879_v1 }
 0x344   : > { %1318 = vrot.lane.b32.xlu0 %v2974_v49, %s2566_s3  ;;  %868 = vrot.lane.b32.xlu1 %v2157_v0, %s2564_s11  ;;  %s2454_s11 = scalar_lea.vmem %s2453_s26, 768 }
 0x348   : > { %1316 = vrot.lane.b32.xlu0 %v2157_v0, %s2566_s3  ;;  %1094 = vrot.lane.b32.xlu1 %v2974_v49, %s2565_s13 }
 0x34c   : > { %1092 = vrot.lane.b32.xlu1 %v2157_v0, %s2565_s13 }
 0x350   : > { %1314 = vrot.lane.b32.xlu1 %v2156_v63, %s2566_s3  ;;  %v3068_v63 = vld [vmem:[#allocation3 + $0x10] sm:$0xff] }
 0x3b2   : > { %v867_v2 = vpop.permute.xlu1 %866  ;;  %v1091_v3 = vpop.permute.xlu0 %1090 }
 0x3b3   : > { %1944 = vmatprep.mubr.msk.bf16.mxu1 %vm656_vm1, %v867_v2 }
 0x3b6   : > { %v869_v4 = vpop.permute.xlu1 %868  ;;  %v1319_v7 = vpop.permute.xlu0 %1318 }
 0x3b7   : > { %1945 = vmatmul.mubr.msk.bf16.vlgmr.msra.gmra.mrb[4].mxu1 %vm656_vm1, %v869_v4  ;;  %v1327_v9 = vsel %vm656_vm1, %v1319_v7, 0  ;;  %v2570_v4 = vmov 8  }
 0x3b8   : > { %1956 = vmatprep.mubr.msk.bf16.mxu1 %vm656_vm1, %v1091_v3 }
 0x3ba   : > { %v1095_v5 = vpop.permute.xlu1 %1094  ;;  %v1317_v11 = vpop.permute.xlu0 %1316 }
 0x3bb   : > { %v1103_v6 = vsel %vm656_vm1, %v1095_v5, 0  ;;  %1990 = vmatprep.subr.msk.bf16.mxu1 %vm656_vm1, %v1095_v5  ;;  %v2572_v5 = vmov 24  }
 0x3bc   : > { %1955 = vmatpush3.bf16.xpose.msra.mxu1 %v1103_v6 }
 0x3bd   : > { %1992 = vmatprep.subr.msk.bf16.mxu1 %vm656_vm1, %v1319_v7 }
 0x3be   : > { %v1093_v8 = vpop.permute.xlu1 %1092 }
 0x3c2   : > { %v1315_v10 = vpop.permute.xlu1 %1314 }
 0x3c3   : > { %1957 = vmatmul.mubr.msk.bf16.vlgmr.msra.gmra.mrb[8].mxu1 %vm656_vm1, %v1093_v8 }
 0x3c4   : > { %1967 = vmatpush3.bf16.xpose.msra.mxu1 %v1327_v9  ;;  %1968 = vmatprep.mubr.msk.bf16.mxu1 %vm656_vm1, %v1315_v10 }
 0x3cb   : > { %1969 = vmatmul.mubr.msk.bf16.vlgmr.msra.gmra.mrb[12].mxu1 %vm656_vm1, %v1317_v11 }
 0x415   : > { %v1934_v12 = vpop.f32.mrb[0].mxu1 }
 0x416   : > { %v700_v13 = vpop.f32.mrb[1].mxu1  ;;  %v3003_v19 = vmul.f32 0.35355338, %v1934_v12 }
 0x417   : > { %v2997_v14 = vmul.f32 0.35355338, %v700_v13  ;;  %v1935_v15 = vpop.f32.mrb[2].mxu1 }
 0x418   : > { %v703_v16 = vpop.f32.mrb[3].mxu1  ;;  %v726_v21 = vsel %vm656_vm1, %v3003_v19, -inf }
 0x419   : > { %v2999_v17 = vmul.f32 0.35355338, %v703_v16  ;;  %v720_v18 = vsel %vm656_vm1, %v2997_v14, -inf }
 0x41a   : > { %721 = vmax.xlane.f32.xlu1 %v720_v18 }
 0x41b   : > { %v723_v20 = vsel %vm656_vm1, %v2999_v17, -inf }
 0x41c   : > { %724 = vmax.xlane.f32.xlu0 %v723_v20 }
 0x420   : > { %727 = vmax.xlane.f32.xlu0 %v726_v21 }
 0x48a   : > { %v1946_v25 = vpop.f32.mrb[4].mxu1 }
 0x48b   : > { %v915_v26 = vpop.f32.mrb[5].mxu1  ;;  %v3020_v30 = vmul.f32 0.35355338, %v1946_v25 }
 0x48c   : > { %v3018_v27 = vmul.f32 0.35355338, %v915_v26  ;;  %v1947_v28 = vpop.f32.mrb[6].mxu1 }
 0x48d   : > { %v918_v29 = vpop.f32.mrb[7].mxu1  ;;  %v941_v34 = vsel %vm656_vm1, %v3020_v30, -inf }
 0x48e   : > { %v3022_v31 = vmul.f32 0.35355338, %v918_v29  ;;  %v935_v32 = vsel %vm656_vm1, %v3018_v27, -inf }
 0x48f   : > { %936 = vmax.xlane.f32.xlu0 %v935_v32 }
 0x490   : > { %v938_v33 = vsel %vm656_vm1, %v3022_v31, -inf }
 0x491   : > { %939 = vmax.xlane.f32.xlu1 %v938_v33 }
 0x493   : > { %942 = vmax.xlane.f32.xlu0 %v941_v34 }
 0x496   : > { %v1958_v35 = vpop.f32.mrb[8].mxu1 }
 0x497   : > { %v1139_v36 = vpop.f32.mrb[9].mxu1  ;;  %v3032_v40 = vmul.f32 0.35355338, %v1958_v35 }
 0x498   : > { %v3030_v37 = vmul.f32 0.35355338, %v1139_v36  ;;  %v1959_v38 = vpop.f32.mrb[10].mxu1 }
 0x499   : > { %v1142_v39 = vpop.f32.mrb[11].mxu1  ;;  %v1165_v45 = vsel %vm656_vm1, %v3032_v40, -inf  ;;  %v2574_v38 = vmov 16  }
 0x49a   : > { %v3034_v41 = vmul.f32 0.35355338, %v1142_v39  ;;  %v1159_v42 = vsel %vm656_vm1, %v3030_v37, -inf }
 0x49b   : > { %1160 = vmax.xlane.f32.xlu1 %v1159_v42 }
 0x49c   : > { %v1162_v43 = vsel %vm656_vm1, %v3034_v41, -inf }
 0x49d   : > { %1163 = vmax.xlane.f32.xlu0 %v1162_v43 }
 0x49e   : > { %v1970_v44 = vpop.f32.mrb[12].mxu1 }
 0x49f   : > { %1166 = vmax.xlane.f32.xlu1 %v1165_v45  ;;  %v1363_v46 = vpop.f32.mrb[13].mxu1  ;;  %v3044_v51 = vmul.f32 0.35355338, %v1970_v44 }
 0x4a0   : > { %v3042_v47 = vmul.f32 0.35355338, %v1363_v46  ;;  %v1971_v48 = vpop.f32.mrb[14].mxu1 }
 0x4a1   : > { %v1366_v50 = vpop.f32.mrb[15].mxu1  ;;  %v1389_v56 = vsel %vm656_vm1, %v3044_v51, -inf }
 0x4a2   : > { %v3046_v52 = vmul.f32 0.35355338, %v1366_v50  ;;  %v1383_v53 = vsel %vm656_vm1, %v3042_v47, -inf }
 0x4a3   : > { %1384 = vmax.xlane.f32.xlu0 %v1383_v53 }
 0x4a4   : > { %v1386_v54 = vsel %vm656_vm1, %v3046_v52, -inf }
 0x4a5   : > { %1387 = vmax.xlane.f32.xlu1 %v1386_v54 }
 0x4a7   : > { %v722_v57 = vpop.xlane.xlu1 %721  ;;  %1390 = vmax.xlane.f32.xlu0 %v1389_v56 }
 0x4a8   : > { %v3059_v59 = vmax.f32 %v3052_v55, %v722_v57 }
 0x4a9   : > { %v725_v60 = vpop.xlane.xlu0 %724 }
 0x4aa   : > { %v732_v61 = vsub.f32 %v3052_v55, %v3059_v59  ;;  %765 = vst.msk [vmem:[#allocation3] sm:$0xff] %vm656_vm1, %v3059_v59  ;;  %v3066_v62 = vmax.f32 %v3056_v58, %v725_v60 }
 0x4ac   : > { %v733_v0 = vsub.f32 %v3056_v58, %v3066_v62  ;;  %766 = vst.msk [vmem:[#allocation3 + $0x8] sm:$0xff] %vm656_vm1, %v3066_v62 }
 0x4ad   : > { %v728_v1 = vpop.xlane.xlu0 %727 }
 0x4ae   : > { %v3075_v2 = vmax.f32 %v3068_v63, %v728_v1 }
 0x4b0   : > { %v734_v3 = vsub.f32 %v3068_v63, %v3075_v2  ;;  %767 = vst.msk [vmem:[#allocation3 + $0x10] sm:$0xff] %vm656_vm1, %v3075_v2  ;;  %v735_v63 = vmul.f32 1.442695, %v732_v61 }
 0x4b1   : > { %v3086_v6 = vld [vmem:[#allocation3] sm:$0xff] }
 0x4b3   : > { %v3091_v10 = vld [vmem:[#allocation3 + $0x8] sm:$0xff] }
 0x4b6   : > { %743 = vperm.xlu1 %2147, %v3059_v59  }
 0x4b7   : > { %v3100_v13 = vld [vmem:[#allocation3 + $0x10] sm:$0xff] }
 0x4ba   : > { %753 = vperm.xlu1 %2147, %v3075_v2  }
 0x4bd   : > { %748 = vperm.xlu0 %2148, %v3066_v62  }
 0x4be   : > { %2149 = vset.pattern.permute.xlu1 %v2570_v4 }
 0x4c1   : > { %1013 = vrot.lane.b32.xlu0 %v2974_v49, %s2571_s19 }
 0x4c2   : > { %2152 = vset.pattern.permute.xlu0 %v2572_v5 }
 0x51c   : > { %v937_v7 = vpop.xlane.xlu0 %936 }
 0x51d   : > { %v3089_v8 = vmax.f32 %v3086_v6, %v937_v7 }
 0x51e   : > { %v940_v9 = vpop.xlane.xlu1 %939 }
 0x51f   : > { %v947_v11 = vsub.f32 %v3086_v6, %v3089_v8  ;;  %981 = vst.msk [vmem:[#allocation3] sm:$0xff] %vm980_vm3, %v3089_v8  ;;  %v3098_v12 = vmax.f32 %v3091_v10, %v940_v9 }
 0x520   : > { %v943_v15 = vpop.xlane.xlu0 %942 }
 0x521   : > { %v948_v16 = vsub.f32 %v3091_v10, %v3098_v12  ;;  %982 = vst.msk [vmem:[#allocation3 + $0x8] sm:$0xff] %vm980_vm3, %v3098_v12  ;;  %v3107_v18 = vmax.f32 %v3100_v13, %v943_v15  ;;  %v950_v61 = vmul.f32 1.442695, %v947_v11 }
 0x523   : > { %v949_v20 = vsub.f32 %v3100_v13, %v3107_v18  ;;  %983 = vst.msk [vmem:[#allocation3 + $0x10] sm:$0xff] %vm980_vm3, %v3107_v18  ;;  %968 = vperm.xlu1 %2149, %v3107_v18  }
 0x525   : > { %v954_v59 = vmul.f32 1.442695, %v949_v20 }
 0x526   : > { %v3115_v22 = vld [vmem:[#allocation3] sm:$0xff] }
 0x527   : > { %958 = vperm.xlu1 %2149, %v3089_v8  }
 0x528   : > { %v1161_v21 = vpop.xlane.xlu1 %1160  ;;  %v3120_v24 = vld [vmem:[#allocation3 + $0x8] sm:$0xff] }
 0x529   : > { %v3118_v23 = vmax.f32 %v3115_v22, %v1161_v21 }
 0x52a   : > { %v1164_v25 = vpop.xlane.xlu0 %1163  ;;  %v3130_v32 = vld [vmem:[#allocation3 + $0x10] sm:$0xff] }
 0x52b   : > { %v1171_v26 = vsub.f32 %v3115_v22, %v3118_v23  ;;  %1205 = vst.msk [vmem:[#allocation3] sm:$0xff] %vm1204_vm4, %v3118_v23  ;;  %v3127_v28 = vmax.f32 %v3120_v24, %v1164_v25  ;;  %963 = vperm.xlu1 %2149, %v3098_v12  }
 0x52c   : > { %v1167_v29 = vpop.xlane.xlu1 %1166 }
 0x52d   : > { %v1172_v33 = vsub.f32 %v3120_v24, %v3127_v28  ;;  %1206 = vst.msk [vmem:[#allocation3 + $0x8] sm:$0xff] %vm1204_vm4, %v3127_v28  ;;  %v3137_v34 = vmax.f32 %v3130_v32, %v1167_v29  ;;  %v1174_v24 = vmul.f32 1.442695, %v1171_v26 }
 0x52f   : > { %v1173_v35 = vsub.f32 %v3130_v32, %v3137_v34  ;;  %1207 = vst.msk [vmem:[#allocation3 + $0x10] sm:$0xff] %vm1204_vm4, %v3137_v34  ;;  %800 = vrot.lane.b32.xlu1 %v2974_v49, %s2573_s15  ;;  %v1176_v8 = vmul.f32 1.442695, %v1172_v33 }
 0x530   : > { %v1385_v36 = vpop.xlane.xlu0 %1384  ;;  %2150 = vset.pattern.permute.xlu1 %v2574_v38 }
 0x532   : > { %v3144_v39 = vld [vmem:[#allocation3] sm:$0xff]  ;;  %v1388_v42 = vpop.xlane.xlu1 %1387 }
 0x533   : > { %v3147_v43 = vmax.f32 %v3144_v39, %v1385_v36  ;;  %1182 = vperm.xlu1 %2150, %v3118_v23  }
 0x534   : > { %v3150_v44 = vld [vmem:[#allocation3 + $0x8] sm:$0xff]  ;;  %v1391_v50 = vpop.xlane.xlu0 %1390 }
 0x535   : > { %v1395_v45 = vsub.f32 %v3144_v39, %v3147_v43  ;;  %1429 = vst.msk [vmem:[#allocation3] sm:$0xff] %vm1428_vm5, %v3147_v43  ;;  %v3157_v46 = vmax.f32 %v3150_v44, %v1388_v42 }
 0x536   : > { %v3159_v48 = vld [vmem:[#allocation3 + $0x10] sm:$0xff]  ;;  %v744_v53 = vpop.permute.xlu1 %743 }
 0x537   : > { %v1396_v54 = vsub.f32 %v3150_v44, %v3157_v46  ;;  %1430 = vst.msk [vmem:[#allocation3 + $0x8] sm:$0xff] %vm1428_vm5, %v3157_v46  ;;  %v3166_v56 = vmax.f32 %v3159_v48, %v1391_v50  ;;  %1187 = vperm.xlu1 %2150, %v3127_v28   ;;  %1411 = vperm.xlu0 %2152, %v3157_v46   ;;  %v1398_v23 = vmul.f32 1.442695, %v1395_v45 }
 0x538   : > { %v756_v57 = vsub.f32 %v2997_v14, %v744_v53 }
 0x539   : > { %v1397_v60 = vsub.f32 %v3159_v48, %v3166_v56  ;;  %1431 = vst.msk [vmem:[#allocation3 + $0x10] sm:$0xff] %vm1428_vm5, %v3166_v56  ;;  %v1400_v28 = vmul.f32 1.442695, %v1396_v54 }
 0x53a   : > { %v759_v1 = vmul.f32 1.442695, %v756_v57  ;;  %v754_v14 = vpop.permute.xlu1 %753 }
 0x53b   : > { %1192 = vperm.xlu1 %2150, %v3137_v34   ;;  %1461 = vrot.lane.b32.xlu0 %v2974_v49, %s2575_s17  ;;  %v758_v15 = vsub.f32 %v3003_v19, %v754_v14 }
 0x53c   : > { %v749_v4 = vpop.permute.xlu0 %748  ;;  %2166 = vpow2.f32 %v759_v1 }
 0x53d   : > { %v757_v7 = vsub.f32 %v2999_v17, %v749_v4  ;;  %v763_v21 = vmul.f32 1.442695, %v758_v15 }
 0x53f   : > { %v761_v9 = vmul.f32 1.442695, %v757_v7  ;;  %2151 = vset.pattern.permute.xlu1 %v2572_v5 }
 0x540   : > { %1406 = vperm.xlu1 %2151, %v3147_v43  }
 0x541   : > { %2168 = vpow2.f32 %v761_v9 }
 0x542   : > { %2170 = vpow2.f32 %v763_v21 }
 0x544   : > { %1416 = vperm.xlu1 %2151, %v3166_v56  }
 0x546   : > { %v2167_v25 = vpop.eup %2166 }
 0x547   : > { %v774_v19 = vsel %vm656_vm1, %v2167_v25, 0.0 }
 0x548   : > { %1237 = vrot.lane.b32.xlu1 %v2974_v49, %s2576_s14 }
 0x54b   : > { %v2169_v29 = vpop.eup %2168 }
 0x54c   : > { %v795_v17 = vpack.c.bf16 %v2169_v29, %v2167_v25  ;;  %v2171_v5 = vpop.eup %2170  ;;  %v777_v38 = vsel %vm656_vm1, %v2169_v29, 0.0 }
 0x54d   : > { %v780_v36 = vsel %vm656_vm1, %v2171_v5, 0.0  ;;  %v796_v29 = vpack.c.bf16 %v2171_v5, %v2171_v5 }
 0x54e   : > { %1938 = vmatprep.mubr.msk.bf16.mxu0 %vm656_vm1, %v795_v17 }
 0x55a   : > { %781 = vadd.xlane.f32.xlu0 %v780_v36 }
 0x55e   : > { %778 = vadd.xlane.f32.xlu0 %v777_v38 }
 0x56c   : > { %775 = vadd.xlane.f32.xlu1 %v774_v19 }
 0x5a2   : > { %v969_v42 = vpop.permute.xlu1 %968 }
 0x5a3   : > { %v973_v50 = vsub.f32 %v3020_v30, %v969_v42  ;;  %v1014_v30 = vpop.permute.xlu0 %1013 }
 0x5a4   : > { %v1022_v25 = vsel %vm808_vm6, %v1014_v30, 0 }
 0x5a5   : > { %v978_v49 = vmul.f32 1.442695, %v973_v50 }
 0x5a6   : > { %v959_v53 = vpop.permute.xlu1 %958 }
 0x5a7   : > { %2172 = vpow2.f32 %v978_v49  ;;  %v971_v57 = vsub.f32 %v3018_v27, %v959_v53 }
 0x5a9   : > { %v974_v1 = vmul.f32 1.442695, %v971_v57 }
 0x5aa   : > { %v964_v4 = vpop.permute.xlu1 %963 }
 0x5ab   : > { %2174 = vpow2.f32 %v974_v1  ;;  %v972_v7 = vsub.f32 %v3022_v31, %v964_v4 }
 0x5ad   : > { %v976_v9 = vmul.f32 1.442695, %v972_v7 }
 0x5ae   : > { %v801_v14 = vpop.permute.xlu1 %800 }
 0x5af   : > { %2176 = vpow2.f32 %v976_v9  ;;  %v810_v15 = vsel %vm808_vm6, %v801_v14, 0  ;;  %1987 = vmatprep.subr.msk.bf16.mxu0 %vm808_vm6, %v801_v14 }
 0x5b0   : > { %1937 = vmatpush3.bf16.msra.mxu0 %v810_v15 }
 0x5b1   : > { %v2173_v21 = vpop.eup %2172  ;;  %1989 = vmatprep.subr.msk.bf16.mxu0 %vm808_vm6, %v1014_v30 }
 0x5b2   : > { %v1183_v27 = vpop.permute.xlu1 %1182  ;;  %v996_v17 = vsel %vm656_vm1, %v2173_v21, 0.0  ;;  %v1012_v9 = vpack.c.bf16 %v2173_v21, %v2173_v21 }
 0x5b3   : > { %v1195_v31 = vsub.f32 %v3030_v37, %v1183_v27  ;;  %997 = vadd.xlane.f32.xlu1 %v996_v17  ;;  %1939 = vmatmul.mubr.msk.bf16.vlgmr.msra.gmra.mrb[4].mxu0 %vm656_vm1, %v796_v29 }
 0x5b4   : > { %1949 = vmatpush3.bf16.msra.mxu0 %v1022_v25 }
 0x5b5   : > { %v2175_v36 = vpop.eup %2174  ;;  %v1198_v38 = vmul.f32 1.442695, %v1195_v31 }
 0x5b6   : > { %v1188_v19 = vpop.permute.xlu1 %1187  ;;  %v990_v42 = vsel %vm656_vm1, %v2175_v36, 0.0  ;;  %v1412_v5 = vpop.permute.xlu0 %1411 }
 0x5b7   : > { %v1196_v50 = vsub.f32 %v3034_v41, %v1188_v19  ;;  %991 = vadd.xlane.f32.xlu1 %v990_v42  ;;  %2178 = vpow2.f32 %v1198_v38  ;;  %v1420_v4 = vsub.f32 %v3046_v52, %v1412_v5 }
 0x5b9   : > { %v2177_v49 = vpop.eup %2176  ;;  %v1200_v53 = vmul.f32 1.442695, %v1196_v50  ;;  %v1424_v41 = vmul.f32 1.442695, %v1420_v4 }
 0x5ba   : > { %v1193_v57 = vpop.permute.xlu1 %1192  ;;  %v993_v1 = vsel %vm656_vm1, %v2177_v49, 0.0  ;;  %v1011_v37 = vpack.c.bf16 %v2177_v49, %v2175_v36  ;;  %v1462_v38 = vpop.permute.xlu0 %1461 }
 0x5bb   : > { %2180 = vpow2.f32 %v1200_v53  ;;  %v1197_v7 = vsub.f32 %v3032_v40, %v1193_v57  ;;  %994 = vadd.xlane.f32.xlu0 %v993_v1  ;;  %v1470_v50 = vsel %vm808_vm6, %v1462_v38, 0 }
 0x5bc   : > { %1950 = vmatprep.mubr.msk.bf16.mxu0 %vm656_vm1, %v1011_v37 }
 0x5bd   : > { %v1202_v14 = vmul.f32 1.442695, %v1197_v7  ;;  %1951 = vmatmul.mubr.msk.bf16.vlgmr.msra.gmra.mrb[8].mxu0 %vm656_vm1, %v1012_v9  ;;  %v739_v9 = vmul.f32 1.442695, %v734_v3  ;;  %v769_v3 = vld [vmem:[#allocation4 + $0x8] sm:$0xff] }
 0x5bf   : > { %2182 = vpow2.f32 %v1202_v14  ;;  %v1407_v15 = vpop.permute.xlu1 %1406  ;;  %v737_v14 = vmul.f32 1.442695, %v733_v0 }
 0x5c0   : > { %v1419_v30 = vsub.f32 %v3042_v47, %v1407_v15  ;;  %2184 = vpow2.f32 %v1424_v41  ;;  %v770_v15 = vld [vmem:[#allocation4 + $0x10] sm:$0xff] }
 0x5c1   : > { %v2179_v27 = vpop.eup %2178 }
 0x5c2   : > { %v1422_v25 = vmul.f32 1.442695, %v1419_v30  ;;  %v1214_v53 = vsel %vm656_vm1, %v2179_v27, 0.0 }
 0x5c3   : > { %v1417_v29 = vpop.permute.xlu1 %1416 }
 0x5c4   : > { %2186 = vpow2.f32 %v1422_v25  ;;  %v1421_v52 = vsub.f32 %v3044_v51, %v1417_v29 }
 0x5c5   : > { %v2181_v40 = vpop.eup %2180 }
 0x5c6   : > { %v1426_v17 = vmul.f32 1.442695, %v1421_v52  ;;  %v1217_v21 = vsel %vm656_vm1, %v2181_v40, 0.0  ;;  %v1235_v31 = vpack.c.bf16 %v2181_v40, %v2179_v27  ;;  %v768_v52 = vld [vmem:[#allocation4] sm:$0xff] }
 0x5c7   : > { %1218 = vadd.xlane.f32.xlu1 %v1217_v21  ;;  %v1238_v36 = vpop.permute.xlu1 %1237  ;;  %v952_v21 = vmul.f32 1.442695, %v948_v16 }
 0x5c8   : > { %2188 = vpow2.f32 %v1426_v17  ;;  %v1246_v19 = vsel %vm808_vm6, %v1238_v36, 0  ;;  %1991 = vmatprep.subr.msk.bf16.mxu0 %vm808_vm6, %v1238_v36  ;;  %1962 = vmatprep.mubr.msk.bf16.mxu0 %vm656_vm1, %v1235_v31 }
 0x5c9   : > { %v2183_v47 = vpop.eup %2182  ;;  %1961 = vmatpush3.bf16.msra.mxu0 %v1246_v19  ;;  %2190 = vpow2.f32 %v739_v9 }
 0x5ca   : > { %v1220_v42 = vsel %vm656_vm1, %v2183_v47, 0.0  ;;  %v1236_v51 = vpack.c.bf16 %v2183_v47, %v2183_v47  ;;  %1993 = vmatprep.subr.msk.bf16.mxu0 %vm808_vm6, %v1462_v38  ;;  %v2185_v5 = vpop.eup %2184  ;;  %2192 = vpow2.f32 %v737_v14 }
 0x5cb   : > { %1221 = vadd.xlane.f32.xlu0 %v1220_v42  ;;  %v1441_v4 = vsel %vm656_vm1, %v2185_v5, 0.0  ;;  %2194 = vpow2.f32 %v735_v63  ;;  %v1178_v42 = vmul.f32 1.442695, %v1173_v35 }
 0x5cc   : > { %1963 = vmatmul.mubr.msk.bf16.vlgmr.msra.gmra.mrb[12].mxu0 %vm656_vm1, %v1236_v51  ;;  %2196 = vpow2.f32 %v954_v59 }
 0x5cd   : > { %1973 = vmatpush3.bf16.msra.mxu0 %v1470_v50  ;;  %2198 = vpow2.f32 %v950_v61 }
 0x5ce   : > { %v2187_v49 = vpop.eup %2186  ;;  %2200 = vpow2.f32 %v952_v21 }
 0x5cf   : > { %1215 = vadd.xlane.f32.xlu0 %v1214_v53  ;;  %v1438_v57 = vsel %vm656_vm1, %v2187_v49, 0.0  ;;  %v1459_v1 = vpack.c.bf16 %v2185_v5, %v2187_v49  ;;  %2202 = vpow2.f32 %v1176_v8 }
 0x5d0   : > { %1439 = vadd.xlane.f32.xlu1 %v1438_v57  ;;  %2204 = vpow2.f32 %v1178_v42  ;;  %v2158_v42 = vld [vmem:[#allocation17] sm:$0xff]  }
 0x5d1   : > { %1974 = vmatprep.mubr.msk.bf16.mxu0 %vm656_vm1, %v1459_v1  ;;  %2206 = vpow2.f32 %v1174_v24  ;;  %1978 = vmatprep.subr.bf16.mxu1 %v2158_v42 }
 0x5d2   : > { %v3217_v37 = vpop.eup %2188  ;;  %2208 = vpow2.f32 %v1400_v28  ;;  %1979 = vmatpush3.bf16.msra.mxu1 %v2158_v42 }
 0x5d3   : > { %1442 = vadd.xlane.f32.xlu0 %v1441_v4  ;;  %v1460_v7 = vpack.c.bf16 %v3217_v37, %v3217_v37  ;;  %v3229_v41 = vpop.eup %2190  ;;  %2210 = vpow2.f32 %v1398_v23 }
 0x5d4   : > { %v773_v30 = vmul.f32 %v3229_v41, %v770_v15  ;;  %v3232_v25 = vpop.eup %2192 }
 0x5d5   : > { %1975 = vmatmul.mubr.msk.bf16.vlgmr.msra.gmra.mrb[16].mxu0 %vm656_vm1, %v1460_v7  ;;  %v772_v58 = vmul.f32 %v3232_v25, %v769_v3  ;;  %v3240_v27 = vpop.eup %2194  ;;  %v791_v3 = vld [vmem:[#allocation5 + $0x10] sm:$0xff] }
 0x5d6   : > { %v771_v40 = vmul.f32 %v3240_v27, %v768_v52  ;;  %v3253_v36 = vpop.eup %2196 }
 0x5d7   : > { %v3256_v18 = vpop.eup %2198 }
 0x5d8   : > { %v3263_v16 = vpop.eup %2200 }
 0x5d9   : > { %v3277_v33 = vpop.eup %2202 }
 0x5da   : > { %v3280_v53 = vpop.eup %2204 }
 0x5db   : > { %v3287_v54 = vpop.eup %2206 }
 0x5dc   : > { %v3291_v7 = vpop.eup %2208 }
 0x5dd   : > { %v3296_v14 = vpop.eup %2210 }
 0x5e7   : > { %v782_v2 = vpop.xlane.xlu0 %781 }
 0x5e8   : > { %v785_v29 = vadd.f32 %v782_v2, %v773_v30 }
 0x5ea   : > { %788 = vst.msk [vmem:[#allocation4 + $0x10] sm:$0xff] %vm656_vm1, %v785_v29  ;;  %v789_v29 = vld [vmem:[#allocation5] sm:$0xff] }
 0x5eb   : > { %v779_v62 = vpop.xlane.xlu0 %778  ;;  %v792_v52 = vmul.f32 %v3240_v27, %v789_v29 }
 0x5ec   : > { %v784_v0 = vadd.f32 %v779_v62, %v772_v58  ;;  %v794_v58 = vmul.f32 %v3229_v41, %v791_v3  ;;  %v790_v62 = vld [vmem:[#allocation5 + $0x8] sm:$0xff] }
 0x5ed   : > { %v793_v61 = vmul.f32 %v3232_v25, %v790_v62 }
 0x5ee   : > { %787 = vst.msk [vmem:[#allocation4 + $0x8] sm:$0xff] %vm656_vm1, %v784_v0 }
 0x5f1   : > { %v986_v31 = vld [vmem:[#allocation4 + $0x10] sm:$0xff] }
 0x5f2   : > { %v989_v38 = vmul.f32 %v3253_v36, %v986_v31 }
 0x5f5   : > { %v985_v11 = vld [vmem:[#allocation4 + $0x8] sm:$0xff] }
 0x5f6   : > { %v988_v20 = vmul.f32 %v3263_v16, %v985_v11 }
 0x5f9   : > { %v776_v17 = vpop.xlane.xlu1 %775 }
 0x5fa   : > { %v783_v55 = vadd.f32 %v776_v17, %v771_v40 }
 0x5fc   : > { %786 = vst.msk [vmem:[#allocation4] sm:$0xff] %vm656_vm1, %v783_v55 }
 0x603   : > { %v984_v47 = vld [vmem:[#allocation4] sm:$0xff] }
 0x604   : > { %v987_v6 = vmul.f32 %v3256_v18, %v984_v47 }
 0x640   : > { %v998_v19 = vpop.xlane.xlu1 %997 }
 0x641   : > { %v1001_v13 = vadd.f32 %v998_v19, %v989_v38 }
 0x643   : > { %1004 = vst.msk [vmem:[#allocation4 + $0x10] sm:$0xff] %vm980_vm3, %v1001_v13 }
 0x644   : > { %v992_v10 = vpop.xlane.xlu1 %991 }
 0x645   : > { %v999_v12 = vadd.f32 %v992_v10, %v987_v6 }
 0x647   : > { %1002 = vst.msk [vmem:[#allocation4] sm:$0xff] %vm980_vm3, %v999_v12 }
 0x648   : > { %v995_v51 = vpop.xlane.xlu0 %994 }
 0x649   : > { %v1000_v50 = vadd.f32 %v995_v51, %v988_v20  ;;  %v1444_v20 = vsel %vm656_vm1, %v3217_v37, 0.0  ;;  %v2159_v51 = vld [vmem:[#allocation17 + $0x8] sm:$0xff]  }
 0x64a   : > { %v1210_v35 = vld [vmem:[#allocation4 + $0x10] sm:$0xff]  ;;  %1980 = vmatprep.subr.bf16.mxu1 %v2159_v51 }
 0x64b   : > { %1003 = vst.msk [vmem:[#allocation4 + $0x8] sm:$0xff] %vm980_vm3, %v1000_v50  ;;  %v1213_v22 = vmul.f32 %v3280_v53, %v1210_v35  ;;  %1981 = vmatpush3.bf16.msra.mxu1 %v2159_v51 }
 0x64e   : > { %v1208_v44 = vld [vmem:[#allocation4] sm:$0xff] }
 0x64f   : > { %v1211_v57 = vmul.f32 %v3287_v54, %v1208_v44 }
 0x652   : > { %v1209_v5 = vld [vmem:[#allocation4 + $0x8] sm:$0xff] }
 0x653   : > { %v1212_v32 = vmul.f32 %v3277_v33, %v1209_v5 }
 0x654   : > { %v1219_v34 = vpop.xlane.xlu1 %1218 }
 0x655   : > { %v1224_v49 = vadd.f32 %v1219_v34, %v1212_v32 }
 0x657   : > { %1227 = vst.msk [vmem:[#allocation4 + $0x8] sm:$0xff] %vm1204_vm4, %v1224_v49 }
 0x658   : > { %v1222_v26 = vpop.xlane.xlu0 %1221 }
 0x659   : > { %v1225_v46 = vadd.f32 %v1222_v26, %v1213_v22 }
 0x65b   : > { %1228 = vst.msk [vmem:[#allocation4 + $0x10] sm:$0xff] %vm1204_vm4, %v1225_v46 }
 0x65c   : > { %v1216_v1 = vpop.xlane.xlu0 %1215 }
 0x65d   : > { %v1223_v4 = vadd.f32 %v1216_v1, %v1211_v57  ;;  %v1440_v63 = vpop.xlane.xlu1 %1439 }
 0x65e   : > { %v1433_v9 = vld [vmem:[#allocation4 + $0x8] sm:$0xff] }
 0x65f   : > { %1226 = vst.msk [vmem:[#allocation4] sm:$0xff] %vm1204_vm4, %v1223_v4  ;;  %v1436_v39 = vmul.f32 %v3291_v7, %v1433_v9  ;;  %v1402_v4 = vmul.f32 1.442695, %v1397_v60 }
 0x660   : > { %v1443_v43 = vpop.xlane.xlu0 %1442 }
 0x661   : > { %v1448_v45 = vadd.f32 %v1443_v43, %v1436_v39  ;;  %2212 = vpow2.f32 %v1402_v4 }
 0x663   : > { %1451 = vst.msk [vmem:[#allocation4 + $0x8] sm:$0xff] %vm1428_vm5, %v1448_v45 }
 0x666   : > { %v1432_v15 = vld [vmem:[#allocation4] sm:$0xff] }
 0x667   : > { %v1435_v30 = vmul.f32 %v3296_v14, %v1432_v15 }
 0x669   : > { %v1447_v2 = vadd.f32 %v1440_v63, %v1435_v30 }
 0x66a   : > { %v1542_v63 = vld [vmem:[#allocation4 + $0x8] sm:$0xff] }
 0x66b   : > { %1450 = vst.msk [vmem:[#allocation4] sm:$0xff] %vm1428_vm5, %v1447_v2  ;;  %2214 = vrcp.f32 %v1542_v63  ;;  %v2213_v29 = vpop.eup %2212 }
 0x672   : > { %v1541_v48 = vld [vmem:[#allocation4] sm:$0xff] }
 0x673   : > { %2216 = vrcp.f32 %v1541_v48 }
 0x686   : > { %v1940_v0 = vpop.f32.mrb[4].mxu0 }
 0x687   : > { %v862_v40 = vadd.f32 %v1940_v0, %v794_v58  ;;  %v846_v17 = vpop.f32.mrb[5].mxu0 }
 0x688   : > { %v860_v55 = vadd.f32 %v846_v17, %v792_v52  ;;  %v1941_v59 = vpop.f32.mrb[6].mxu0 }
 0x689   : > { %865 = vst.msk [vmem:[#allocation5 + $0x10] sm:$0xff] %vm656_vm1, %v862_v40  ;;  %v849_v21 = vpop.f32.mrb[7].mxu0  ;;  %v2215_v40 = vpop.eup %2214 }
 0x68a   : > { %863 = vst.msk [vmem:[#allocation5] sm:$0xff] %vm656_vm1, %v860_v55  ;;  %v861_v31 = vadd.f32 %v849_v21, %v793_v61  ;;  %v2217_v17 = vpop.eup %2216  ;;  %v1434_v21 = vld [vmem:[#allocation4 + $0x10] sm:$0xff] }
 0x68c   : > { %864 = vst.msk [vmem:[#allocation5 + $0x8] sm:$0xff] %vm656_vm1, %v861_v31  ;;  %v1437_v31 = vmul.f32 %v2213_v29, %v1434_v21 }
 0x690   : > { %v1952_v38 = vpop.f32.mrb[8].mxu0  ;;  %v1007_v49 = vld [vmem:[#allocation5 + $0x10] sm:$0xff] }
 0x691   : > { %v1058_v41 = vpop.f32.mrb[9].mxu0  ;;  %v1005_v50 = vld [vmem:[#allocation5] sm:$0xff]  ;;  %v1010_v22 = vmul.f32 %v3253_v36, %v1007_v49 }
 0x692   : > { %1075 = vrot.lane.b32.xlu1 %v1058_v41, %s2577_s0  ;;  %v1953_v27 = vpop.f32.mrb[10].mxu0  ;;  %v1008_v28 = vmul.f32 %v3256_v18, %v1005_v50 }
 0x693   : > { %v1061_v19 = vpop.f32.mrb[11].mxu0  ;;  %v1006_v24 = vld [vmem:[#allocation5 + $0x8] sm:$0xff] }
 0x694   : > { %1077 = vrot.lane.b32.xlu0 %v1061_v19, %s2577_s0  ;;  %v1009_v34 = vmul.f32 %v3263_v16, %v1006_v24 }
 0x698   : > { %1079 = vrot.lane.b32.xlu0 %v1952_v38, %s2577_s0 }
 0x69f   : > { %v1964_v25 = vpop.f32.mrb[12].mxu0 }
 0x6a0   : > { %v1282_v47 = vpop.f32.mrb[13].mxu0 }
 0x6a1   : > { %v1965_v13 = vpop.f32.mrb[14].mxu0  ;;  %1299 = vrot.lane.b32.xlu0 %v1282_v47, %s2578_s4 }
 0x6a2   : > { %v1285_v6 = vpop.f32.mrb[15].mxu0 }
 0x6a5   : > { %1301 = vrot.lane.b32.xlu0 %v1285_v6, %s2578_s4  ;;  %v1879_v6 = vld [vmem:[#allocation18] ss:$0 sm:$0xff] }
 0x6a8   : > { %v1976_v8 = vpop.f32.mrb[16].mxu0 }
 0x6a9   : > { %1303 = vrot.lane.b32.xlu0 %v1964_v25, %s2578_s4  ;;  %v1506_v10 = vpop.f32.mrb[17].mxu0 }
 0x6aa   : > { %v1977_v11 = vpop.f32.mrb[18].mxu0 }
 0x6ab   : > { %v1509_v12 = vpop.f32.mrb[19].mxu0 }
 0x6ad   : > { %1523 = vrot.lane.b32.xlu0 %v1506_v10, %s2579_s23  ;;  %v1635_v10 = vld [vmem:[%s2931_s5 + $0x10] sm:$0xff] }
 0x6b1   : > { %1525 = vrot.lane.b32.xlu0 %v1509_v12, %s2579_s23 }
 0x6b5   : > { %1527 = vrot.lane.b32.xlu0 %v1976_v8, %s2579_s23 }
 0x6b6   : > { %1445 = vadd.xlane.f32.xlu1 %v1444_v20  ;;  %v1633_v20 = vld [vmem:[%s2931_s5] sm:$0xff] }
 0x704   : > { %v1076_v5 = vpop.permute.xlu1 %1075 }
 0x705   : > { %v1084_v32 = vadd.f32 %v1076_v5, %v1008_v28  ;;  %v1634_v28 = vld [vmem:[%s2931_s5 + $0x8] sm:$0xff]  ;;  %s2448_s5 = scalar_lea.vmem %s3341_s22, 384 }
 0x706   : > { %v1078_v35 = vpop.permute.xlu0 %1077  ;;  %p2449_p12 = scmp.ne.s32.totalorder %s3341_s22, %s2448_s5  ;;  %p2456_p11 = scmp.lt.s32.totalorder %s2454_s11, %s2448_s5 }
 0x707   : > { %1087 = vst.msk [vmem:[#allocation5] sm:$0xff] %vm980_vm3, %v1084_v32  ;;  %v1085_v37 = vadd.f32 %v1078_v35, %v1009_v34 }
 0x708   : > { %p2450_p10 = pnand %p2449_p12, %p3446_p0  ;;  %p2457_p5 = por %p2456_p11, %p2455_p1 }
 0x709   : > { %1088 = vst.msk [vmem:[#allocation5 + $0x8] sm:$0xff] %vm980_vm3, %v1085_v37 }
 0x70a   : > { %v1080_v23 = vpop.permute.xlu0 %1079  ;;  %p2451_p13 = pneg %p2450_p10 }
 0x70b   : > { %v1086_v26 = vadd.f32 %v1080_v23, %v1010_v22 }
 0x70c   : > { %p2458_p7 = pnand %p2457_p5, %p2451_p13 }
 0x70d   : > { %1089 = vst.msk [vmem:[#allocation5 + $0x10] sm:$0xff] %vm980_vm3, %v1086_v26 }
 0x70e   : > { %v1229_v44 = vld [vmem:[#allocation5] sm:$0xff] }
 0x70f   : > { %v1232_v18 = vmul.f32 %v3287_v54, %v1229_v44 }
 0x710   : > { %v1230_v57 = vld [vmem:[#allocation5 + $0x8] sm:$0xff] }
 0x711   : > { %v1233_v16 = vmul.f32 %v3277_v33, %v1230_v57 }
 0x713   : > { %v1300_v46 = vpop.permute.xlu0 %1299 }
 0x714   : > { %v1308_v1 = vadd.f32 %v1300_v46, %v1232_v18  ;;  %v1231_v36 = vld [vmem:[#allocation5 + $0x10] sm:$0xff] }
 0x715   : > { %v1234_v43 = vmul.f32 %v3280_v53, %v1231_v36 }
 0x716   : > { %1311 = vst.msk [vmem:[#allocation5] sm:$0xff] %vm1204_vm4, %v1308_v1 }
 0x717   : > { %v1302_v9 = vpop.permute.xlu0 %1301 }
 0x718   : > { %v1309_v39 = vadd.f32 %v1302_v9, %v1233_v16 }
 0x71a   : > { %1312 = vst.msk [vmem:[#allocation5 + $0x8] sm:$0xff] %vm1204_vm4, %v1309_v39 }
 0x71b   : > { %v1304_v54 = vpop.permute.xlu0 %1303 }
 0x71c   : > { %v1310_v45 = vadd.f32 %v1304_v54, %v1234_v43 }
 0x71d   : > { %v1453_v15 = vld [vmem:[#allocation5] sm:$0xff] }
 0x71e   : > { %1313 = vst.msk [vmem:[#allocation5 + $0x10] sm:$0xff] %vm1204_vm4, %v1310_v45  ;;  %v1456_v30 = vmul.f32 %v3296_v14, %v1453_v15 }
 0x71f   : > { %v1524_v33 = vpop.permute.xlu0 %1523 }
 0x720   : > { %v1532_v2 = vadd.f32 %v1524_v33, %v1456_v30 }
 0x721   : > { %v1454_v56 = vld [vmem:[#allocation5 + $0x8] sm:$0xff] }
 0x722   : > { %1535 = vst.msk [vmem:[#allocation5] sm:$0xff] %vm1428_vm5, %v1532_v2  ;;  %v1457_v60 = vmul.f32 %v3291_v7, %v1454_v56 }
 0x723   : > { %v1526_v3 = vpop.permute.xlu0 %1525 }
 0x724   : > { %v1533_v53 = vadd.f32 %v1526_v3, %v1457_v60 }
 0x725   : > { %v1455_v58 = vld [vmem:[#allocation5 + $0x10] sm:$0xff] }
 0x726   : > { %1536 = vst.msk [vmem:[#allocation5 + $0x8] sm:$0xff] %vm1428_vm5, %v1533_v53  ;;  %v1458_v62 = vmul.f32 %v2213_v29, %v1455_v58 }
 0x727   : > { %v1528_v0 = vpop.permute.xlu0 %1527 }
 0x728   : > { %v1534_v14 = vadd.f32 %v1528_v0, %v1458_v62 }
 0x729   : > { %v1547_v52 = vld [vmem:[#allocation5] sm:$0xff] }
 0x72a   : > { %1537 = vst.msk [vmem:[#allocation5 + $0x10] sm:$0xff] %vm1428_vm5, %v1534_v14  ;;  %v1550_v59 = vmul.f32 %v2217_v17, %v1547_v52 }
 0x72d   : > { %v1548_v55 = vld [vmem:[#allocation5 + $0x8] sm:$0xff] }
 0x72e   : > { %v1551_v61 = vmul.f32 %v2215_v40, %v1548_v55 }
 0x730   : > { %v1553_v7 = vpack.c.bf16 %v1551_v61, %v1550_v59 }
 0x731   : > { %v1549_v25 = vld [vmem:[#allocation5 + $0x10] sm:$0xff] }
 0x732   : > { %1982 = vmatprep.mubr.msk.bf16.mxu1 %vm480_vm0, %v1553_v7 }
 0x743   : > { %v1446_v38 = vpop.xlane.xlu1 %1445 }
 0x744   : > { %v1449_v41 = vadd.f32 %v1446_v38, %v1437_v31 }
 0x746   : > { %1452 = vst.msk [vmem:[#allocation4 + $0x10] sm:$0xff] %vm1428_vm5, %v1449_v41 }
 0x74d   : > { %v1543_v27 = vld [vmem:[#allocation4 + $0x10] sm:$0xff] }
 0x74e   : > { %2218 = vrcp.f32 %v1543_v27 }
 0x758   : > { %v2219_v19 = vpop.eup %2218 }
 0x759   : > { %v1552_v47 = vmul.f32 %v2219_v19, %v1549_v25 }
 0x75b   : > { %v1554_v13 = vpack.c.bf16 %v1552_v47, %v1552_v47 }
 0x75d   : > { %1983 = vmatmul.mubr.msk.bf16.vlgmr.msra.gmra.mrb[16].mxu1 %vm480_vm0, %v1554_v13 }
 0x830   : > { %v1984_v8 = vpop.f32.mrb[16].mxu1 }
 0x831   : > { %v1628_v11 = vadd.f32 %v1984_v8, %v1879_v6  ;;  %v1619_v12 = vpop.f32.mrb[17].mxu1 }
 0x832   : > { %v1620_v42 = vadd.f32 %v1879_v6, %v1619_v12  ;;  %v1985_v51 = vpop.f32.mrb[18].mxu1 }
 0x833   : > { %v1638_v50 = vadd.f32 %v1635_v10, %v1628_v11  ;;  %v1622_v24 = vpop.f32.mrb[19].mxu1 }
 0x834   : > { %v1636_v5 = vadd.f32 %v1633_v20, %v1620_v42  ;;  %v1623_v32 = vadd.f32 %v1879_v6, %v1622_v24 }
 0x835   : > { %1641 = vst.msk [vmem:[%s467_s21 + $0x10] sm:$0xff] %vm480_vm0, %v1638_v50 }
 0x836   : > { %1639 = vst.msk [vmem:[%s467_s21] sm:$0xff] %vm480_vm0, %v1636_v5  ;;  %v1637_v34 = vadd.f32 %v1634_v28, %v1623_v32 }
 0x838   : > { %1640 = vst.msk [vmem:[%s467_s21 + $0x8] sm:$0xff] %vm480_vm0, %v1637_v34 }
 0x839   : > { %2461 = shalt.err (!%p2458_p7)
}
 0x83a   : > { %s2462_s13 = scalar_lea.hbm %s3347_s7, 384  ;;  %s2466_s15 = scalar_lea.hbm %s3406_s8, 768 }
 0x83b   : > { %p2463_p2 = scmp.ne.s32.totalorder %s3347_s7, %s2462_s13  ;;  %p2467_p4 = scmp.lt.u32.totalorder %s3347_s7, %s3406_s8 }
 0x83c   : > { %p2468_p6 = scmp.lt.u32.totalorder %s2466_s15, %s2462_s13  ;;  %p2470_p12 = scmp.lt.u32.totalorder %s2462_s13, %s3347_s7 }
 0x83d   : > { %p2464_p8 = pnand %p2463_p2, %p3446_p0 }
 0x83e   : > { %p2469_p3 = por %p2468_p6, %p2467_p4 }
 0x83f   : > { %p2465_p9 = pneg %p2464_p8 }
 0x840   : > { %p2471_p10 = por %p2470_p12, %p2469_p3 }
 0x842   : > { %p2472_p13 = pnand %p2471_p10, %p2465_p9 }
 0x844   : > { %2475 = shalt.err (!%p2472_p13)
}
 0x845   : > { %s2581_s4 = smov 128  }
 0x846   : > { %2026 = dma.vmem_to_hbm [thread:$0]  (%p3446_p0), %s3341_s22, 384, %s3347_s7, %s1643_s30, %s2581_s4, %s2581_s4, %s2577_s0  }
 0x847 PF: > { %s1673_s23 = sand.u32 1, %s2530_s27   ;;  %p3447_p1 = scmp.ne.s32.totalorder %s3433_s20, 0 }
 0x848   : > { %p3448_p11 = scmp.ge.s32.totalorder %s2550_s10, 2  ;;  %s1674_s21 = scalar_lea.sflag [#allocation8], %s1673_s23 }
 0x84a   : > { %p2055_p5 = pnand %p3448_p11, %p3447_p1 }
 0x84c   : > { %2525 = dma.done.wait (!%p2055_p5), %s1674_s21, 384  }
 0x84d   : > { %2527 = vsyncadd (!%p2055_p5), %s1674_s21, 4294966912  ;;  %s30_s10 = sadd.s32 1, %s2550_s10   ;;  %s3449_s18 = sld [smem:[#allocation28_spill]] }
 0x84e   : > { %p27_p7 = scmp.ge.s32.totalorder %s30_s10, 4   ;;  %s3450_s27 = smov %s2534_s28 }
 0x84f   : > { %s3451_s28 = smov %s2538_s29  ;;  %s3452_s29 = smov %s2842_s16 }
 0x850   : > { %s3453_s30 = smov %s2546_s9  ;;  %29 = sbr.rel (!%p27_p7) target bundleno = 19 (0x13), region = 142 }
 0x853   : > { %s3454_s9 = smov %s3449_s18 }
 0x857   :  { %1679 = vsyncpa [#allocation7], 1 }
 0x858   :  { %1681 = vsyncpa [#allocation7 + $0x1], 1 }
 0x859   :  { %1682 = vsyncpa [#allocation10], 1 }
 0x85a   :  { %1684 = vsyncpa [#allocation10 + $0x1], 1 }
 0x85b   :  { %1685 = vsyncpa [#allocation13], 1 }
 0x85c   :  { %1686 = vsyncpa [#allocation16], 1 }
 0x85d   :  { %1687 = vsyncpa [#allocation19], 1 }
 0x85e   :  { %1688 = vsyncpa [#allocation8], 1 }
 0x85f   :  { %1690 = vsyncpa [#allocation8 + $0x1], 1 }

</bundles_post_ra>
